<compile_context>
chip_gen: v6e
topology: v6e:2x2x1
jax: 0.10.0
libtpu: 0.0.40
codegen_flags: <defaults>
</compile_context>

<pallas_src>
import jax
import jax.numpy as jnp
from jax.experimental import pallas as pl
from jax.experimental.pallas import tpu as pltpu

N_CAPS, D_CAPS = 10, 16
IN_DIM = N_CAPS * D_CAPS          # 160
H1, H2 = 512, 1024
OUT_H, OUT_W = 40, 40
OUT_DIM = OUT_H * OUT_W           # 1600
TM_MAX = 512                      # row tile (batch rows) for the fused MLP


# ---------------------------------------------------------------------------
# Pallas kernel: fused 3-layer MLP (bias + ReLU + sigmoid) on one row tile
# ---------------------------------------------------------------------------
def _decoder_kernel(x_ref, w1_ref, b1_ref, w2_ref, b2_ref, w3_ref, b3_ref,
                    o_ref):
    # Layer 1: (TM, 160) @ (160, 512) + b1 -> ReLU
    h = jnp.dot(x_ref[...], w1_ref[...], preferred_element_type=jnp.float32)
    h = jnp.maximum(h + b1_ref[...], 0.0)                       # (TM, 512)

    # Layer 2: (TM, 512) @ (512, 1024) + b2 -> ReLU
    h = jnp.dot(h, w2_ref[...], preferred_element_type=jnp.float32)
    h = jnp.maximum(h + b2_ref[...], 0.0)                       # (TM, 1024)

    # Layer 3: (TM, 1024) @ (1024, 1600) + b3 -> sigmoid (EUP exp)
    y = jnp.dot(h, w3_ref[...], preferred_element_type=jnp.float32)
    o_ref[...] = jax.nn.sigmoid(y + b3_ref[...])                # (TM, 1600)


# ---------------------------------------------------------------------------
# Wrapper
# ---------------------------------------------------------------------------
def decoder_forward(x, P):
    """x: (B, 10, 16) -> (B, 1, 40, 40)."""
    B = x.shape[0]
    xf = x.reshape(B, IN_DIM).astype(jnp.float32)

    # Round batch rows up to a sublane-aligned tile; the pad is tiny (the
    # input is only 160 lanes wide) and padded rows are sliced off afterwards.
    b8 = ((B + 7) // 8) * 8
    tm = min(TM_MAX, b8)
    bp = ((b8 + tm - 1) // tm) * tm
    if bp != B:
        xf = jnp.pad(xf, ((0, bp - B), (0, 0)))

    # Advisory cost hint for XLA's scheduler around the custom call.
    flops = 2 * bp * (IN_DIM * H1 + H1 * H2 + H2 * OUT_DIM)
    weight_bytes = 4 * (IN_DIM * H1 + H1 + H1 * H2 + H2 + H2 * OUT_DIM + OUT_DIM)
    cost = pl.CostEstimate(
        flops=flops,
        transcendentals=bp * OUT_DIM,
        bytes_accessed=4 * bp * (IN_DIM + OUT_DIM) + weight_bytes)

    out = pl.pallas_call(
        _decoder_kernel,
        out_shape=jax.ShapeDtypeStruct((bp, OUT_DIM), jnp.float32),
        grid_spec=pltpu.PrefetchScalarGridSpec(
            num_scalar_prefetch=0,
            grid=(bp // tm,),
            in_specs=[
                pl.BlockSpec((tm, IN_DIM), lambda m: (m, 0)),
                # Weights/biases: constant block index -> fetched once,
                # resident in VMEM across all batch tiles.
                pl.BlockSpec((IN_DIM, H1), lambda m: (0, 0)),
                pl.BlockSpec((1, H1), lambda m: (0, 0)),
                pl.BlockSpec((H1, H2), lambda m: (0, 0)),
                pl.BlockSpec((1, H2), lambda m: (0, 0)),
                pl.BlockSpec((H2, OUT_DIM), lambda m: (0, 0)),
                pl.BlockSpec((1, OUT_DIM), lambda m: (0, 0)),
            ],
            out_specs=pl.BlockSpec((tm, OUT_DIM), lambda m: (m, 0))),
        compiler_params=pltpu.CompilerParams(
            dimension_semantics=("parallel",),
            # Resident weights (~9 MB f32, double-buffered) + activation tiles
            # + compiler scratch; safe on v5e/v6e (128 MiB) and v7x (64 MiB)
            # physical VMEM.
            vmem_limit_bytes=48 * 1024 * 1024),
        cost_estimate=cost,
    )(xf, P["w1"], P["b1"], P["w2"], P["b2"], P["w3"], P["b3"])

    return out[:B].reshape(B, 1, OUT_H, OUT_W)


decoder_forward_jit = jax.jit(decoder_forward)


# ---------------------------------------------------------------------------
# Deterministic parameter init (synthetic; no checkpoint loading)
# ---------------------------------------------------------------------------
def init_params(key):
    ks = iter(jax.random.split(key, 8))
    P = {}
    cfg = [("1", IN_DIM, H1), ("2", H1, H2), ("3", H2, OUT_DIM)]
    for name, fan_in, fan_out in cfg:
        w = jax.random.normal(next(ks), (fan_in, fan_out), jnp.float32)
        P["w" + name] = w / jnp.sqrt(float(fan_in))
        b = 0.05 * jax.random.normal(next(ks), (fan_out,), jnp.float32)
        P["b" + name] = b.reshape(1, fan_out)
    return P


# ---------------------------------------------------------------------------
# Pure-JAX reference (independent path through XLA)
# ---------------------------------------------------------------------------
def reference_forward(x, P):
    hp = jax.lax.Precision.HIGHEST
    B = x.shape[0]
    h = x.reshape(B, IN_DIM).astype(jnp.float32)
    h = jnp.maximum(jnp.dot(h, P["w1"], precision=hp) + P["b1"], 0.0)
    h = jnp.maximum(jnp.dot(h, P["w2"], precision=hp) + P["b2"], 0.0)
    y = jax.nn.sigmoid(jnp.dot(h, P["w3"], precision=hp) + P["b3"])
    return y.reshape(B, 1, OUT_H, OUT_W)


if __name__ == "__main__":
    key = jax.random.PRNGKey(0)
    kp, kx = jax.random.split(key)
    P = init_params(kp)
    # (b, n, d) with n=10, d=16 — masking of non-target capsules is done by
    # the caller in the full pipeline; raw values exercise the same math.
    x = jax.random.normal(kx, (2, N_CAPS, D_CAPS), jnp.float32)

    x_rec = decoder_forward_jit(x, P)
    x_rec = jax.block_until_ready(x_rec)

    assert x_rec.shape == (2, 1, OUT_H, OUT_W), x_rec.shape
    assert bool(jnp.all(jnp.isfinite(x_rec)))
    assert bool(jnp.all((x_rec >= 0.0) & (x_rec <= 1.0)))       # sigmoid range

    ref = reference_forward(x, P)
    max_diff = float(jnp.max(jnp.abs(x_rec - ref)))
    assert bool(jnp.allclose(x_rec, ref, atol=1e-3, rtol=1e-3)), (
        "max abs diff = %g" % max_diff)
    print("KERNEL_OK")
</pallas_src>

<mosaic_0001>
module attributes {stable_mosaic.version = 11 : i64} {
  func.func @_decoder_kernel(%arg0: i32, %arg1: memref<8x160xf32, #tpu.memory_space<vmem>>, %arg2: memref<160x512xf32, #tpu.memory_space<vmem>>, %arg3: memref<1x512xf32, #tpu.memory_space<vmem>>, %arg4: memref<512x1024xf32, #tpu.memory_space<vmem>>, %arg5: memref<1x1024xf32, #tpu.memory_space<vmem>>, %arg6: memref<1024x1600xf32, #tpu.memory_space<vmem>>, %arg7: memref<1x1600xf32, #tpu.memory_space<vmem>>, %arg8: memref<8x1600xf32, #tpu.memory_space<vmem>>) attributes {dimension_semantics = [#tpu.dimension_semantics<parallel>], iteration_bounds = array<i64: 1>, scalar_prefetch = 0 : i64, scratch_operands = 0 : i64, tpu.core_type = #tpu.core_type<tc>, window_params = [{transform_indices = @transform_0, window_bounds = array<i64: 8, 160>}, {pipeline_mode = #tpu.pipeline_mode<synchronous>, transform_indices = @transform_1, window_bounds = array<i64: 160, 512>}, {pipeline_mode = #tpu.pipeline_mode<synchronous>, transform_indices = @transform_2, window_bounds = array<i64: 1, 512>}, {pipeline_mode = #tpu.pipeline_mode<synchronous>, transform_indices = @transform_3, window_bounds = array<i64: 512, 1024>}, {pipeline_mode = #tpu.pipeline_mode<synchronous>, transform_indices = @transform_4, window_bounds = array<i64: 1, 1024>}, {pipeline_mode = #tpu.pipeline_mode<synchronous>, transform_indices = @transform_5, window_bounds = array<i64: 1024, 1600>}, {pipeline_mode = #tpu.pipeline_mode<synchronous>, transform_indices = @transform_6, window_bounds = array<i64: 1, 1600>}, {transform_indices = @transform_7, window_bounds = array<i64: 8, 1600>}]} {
    %c0 = arith.constant 0 : index
    %c0_0 = arith.constant 0 : index
    %0 = vector.load %arg1[%c0, %c0_0] : memref<8x160xf32, #tpu.memory_space<vmem>>, vector<8x160xf32>
    %c0_1 = arith.constant 0 : index
    %c0_2 = arith.constant 0 : index
    %1 = vector.load %arg2[%c0_1, %c0_2] : memref<160x512xf32, #tpu.memory_space<vmem>>, vector<160x512xf32>
    %cst = arith.constant dense<0.000000e+00> : vector<8x512xf32>
    %2 = tpu.matmul %0, %1, %cst {dimension_numbers = #tpu.dot_dimension_numbers<[1], [0], [0], [1], [0, 0, 1, 1], [], []>} : vector<8x160xf32>, vector<160x512xf32>, vector<8x512xf32> -> vector<8x512xf32>
    %c0_3 = arith.constant 0 : index
    %c0_4 = arith.constant 0 : index
    %3 = vector.load %arg3[%c0_3, %c0_4] : memref<1x512xf32, #tpu.memory_space<vmem>>, vector<1x512xf32>
    %4 = vector.broadcast %3 : vector<1x512xf32> to vector<8x512xf32>
    %5 = arith.addf %2, %4 : vector<8x512xf32>
    %cst_5 = arith.constant 0.000000e+00 : f32
    %6 = vector.broadcast %cst_5 : f32 to vector<8x512xf32>
    %7 = arith.maximumf %5, %6 : vector<8x512xf32>
    %c0_6 = arith.constant 0 : index
    %c0_7 = arith.constant 0 : index
    %8 = vector.load %arg4[%c0_6, %c0_7] : memref<512x1024xf32, #tpu.memory_space<vmem>>, vector<512x1024xf32>
    %cst_8 = arith.constant dense<0.000000e+00> : vector<8x1024xf32>
    %9 = tpu.matmul %7, %8, %cst_8 {dimension_numbers = #tpu.dot_dimension_numbers<[1], [0], [0], [1], [0, 0, 1, 1], [], []>} : vector<8x512xf32>, vector<512x1024xf32>, vector<8x1024xf32> -> vector<8x1024xf32>
    %c0_9 = arith.constant 0 : index
    %c0_10 = arith.constant 0 : index
    %10 = vector.load %arg5[%c0_9, %c0_10] : memref<1x1024xf32, #tpu.memory_space<vmem>>, vector<1x1024xf32>
    %11 = vector.broadcast %10 : vector<1x1024xf32> to vector<8x1024xf32>
    %12 = arith.addf %9, %11 : vector<8x1024xf32>
    %cst_11 = arith.constant 0.000000e+00 : f32
    %13 = vector.broadcast %cst_11 : f32 to vector<8x1024xf32>
    %14 = arith.maximumf %12, %13 : vector<8x1024xf32>
    %c0_12 = arith.constant 0 : index
    %c0_13 = arith.constant 0 : index
    %15 = vector.load %arg6[%c0_12, %c0_13] : memref<1024x1600xf32, #tpu.memory_space<vmem>>, vector<1024x1600xf32>
    %cst_14 = arith.constant dense<0.000000e+00> : vector<8x1600xf32>
    %16 = tpu.matmul %14, %15, %cst_14 {dimension_numbers = #tpu.dot_dimension_numbers<[1], [0], [0], [1], [0, 0, 1, 1], [], []>} : vector<8x1024xf32>, vector<1024x1600xf32>, vector<8x1600xf32> -> vector<8x1600xf32>
    %c0_15 = arith.constant 0 : index
    %c0_16 = arith.constant 0 : index
    %17 = vector.load %arg7[%c0_15, %c0_16] : memref<1x1600xf32, #tpu.memory_space<vmem>>, vector<1x1600xf32>
    %18 = vector.broadcast %17 : vector<1x1600xf32> to vector<8x1600xf32>
    %19 = arith.addf %16, %18 : vector<8x1600xf32>
    %20 = arith.negf %19 : vector<8x1600xf32>
    %21 = math.exp %20 : vector<8x1600xf32>
    %cst_17 = arith.constant 1.000000e+00 : f32
    %22 = vector.broadcast %cst_17 : f32 to vector<8x1600xf32>
    %23 = arith.addf %22, %21 : vector<8x1600xf32>
    %24 = arith.divf %22, %23 : vector<8x1600xf32>
    %c0_18 = arith.constant 0 : index
    %c0_19 = arith.constant 0 : index
    %25 = vector.load %arg8[%c0_18, %c0_19] : memref<8x1600xf32, #tpu.memory_space<vmem>>, vector<8x1600xf32>
    tpu.vector_store %arg8[%c0_18, %c0_19], %24 {strides = array<i32>} : memref<8x1600xf32, #tpu.memory_space<vmem>>, vector<8x1600xf32>,
    return
  }
  func.func @transform_0(%arg0: i32) -> (i32, i32) {
    %c0_i32 = arith.constant 0 : i32
    %c0_i32_0 = arith.constant 0 : i32
    return %arg0, %c0_i32 : i32, i32
  }
  func.func @transform_1(%arg0: i32) -> (i32, i32) {
    %c0_i32 = arith.constant 0 : i32
    %c0_i32_0 = arith.constant 0 : i32
    %c0_i32_1 = arith.constant 0 : i32
    return %c0_i32, %c0_i32_0 : i32, i32
  }
  func.func @transform_2(%arg0: i32) -> (i32, i32) {
    %c0_i32 = arith.constant 0 : i32
    %c0_i32_0 = arith.constant 0 : i32
    %c0_i32_1 = arith.constant 0 : i32
    return %c0_i32, %c0_i32_0 : i32, i32
  }
  func.func @transform_3(%arg0: i32) -> (i32, i32) {
    %c0_i32 = arith.constant 0 : i32
    %c0_i32_0 = arith.constant 0 : i32
    %c0_i32_1 = arith.constant 0 : i32
    return %c0_i32, %c0_i32_0 : i32, i32
  }
  func.func @transform_4(%arg0: i32) -> (i32, i32) {
    %c0_i32 = arith.constant 0 : i32
    %c0_i32_0 = arith.constant 0 : i32
    %c0_i32_1 = arith.constant 0 : i32
    return %c0_i32, %c0_i32_0 : i32, i32
  }
  func.func @transform_5(%arg0: i32) -> (i32, i32) {
    %c0_i32 = arith.constant 0 : i32
    %c0_i32_0 = arith.constant 0 : i32
    %c0_i32_1 = arith.constant 0 : i32
    return %c0_i32, %c0_i32_0 : i32, i32
  }
  func.func @transform_6(%arg0: i32) -> (i32, i32) {
    %c0_i32 = arith.constant 0 : i32
    %c0_i32_0 = arith.constant 0 : i32
    %c0_i32_1 = arith.constant 0 : i32
    return %c0_i32, %c0_i32_0 : i32, i32
  }
  func.func @transform_7(%arg0: i32) -> (i32, i32) {
    %c0_i32 = arith.constant 0 : i32
    %c0_i32_0 = arith.constant 0 : i32
    return %arg0, %c0_i32 : i32, i32
  }
}

</mosaic_0001>

<bundles_post_ra>
// kernel: decoder_forward.1
= control target key start
LH: loop header
LB: loop body
LE: loop exit
PB: predicated region body
PF: predicated region fallthrough
CT: control target
= control target key end

     0   :  { %vm130_vm0 = vcmask 261120   ;;  %vm5217_vm1 = vcmask 523264   ;;  %s12483_s1 = inlined_call_operand.vmem [shape: f32[160,512], index: 1, kind: input, shape index: {}]   ;;  %s12484_s0 = inlined_call_operand.vmem [shape: f32[8,160], index: 0, kind: input, shape index: {}]   ;;  %s12485_s3 = inlined_call_operand.vmem [shape: f32[512,1024], index: 3, kind: input, shape index: {}]   ;;  %s12486_s2 = inlined_call_operand.vmem [shape: f32[1,512], index: 2, kind: input, shape index: {}]   ;;  %s12487_s4 = inlined_call_operand.vmem [shape: f32[1,1024], index: 4, kind: input, shape index: {}]   ;;  %s12488_s5 = inlined_call_operand.vmem [shape: f32[1024,1600], index: 5, kind: input, shape index: {}]   ;;  %s12489_s6 = inlined_call_operand.vmem [shape: f32[1,1600], index: 6, kind: input, shape index: {}]   ;;  %s12490_s7 = inlined_call_operand.vmem [shape: f32[8,1600], index: 7, kind: output, shape index: {}]  }
   0x1   :  { %v89_v0 = vld [vmem:[%s12483_s1 + $0x1e8] sm:$0xff]  ;;  %v91_v1 = vld [vmem:[%s12483_s1 + $0x1f8] sm:$0xff]  ;;  %v88_v2 = vld [vmem:[%s12483_s1 + $0x1e0] sm:$0xff] }
   0x2   :  { %134 = vmatprep.subr.mxu0 %v89_v0  ;;  %205 = vmatprep.subr.mxu1 %v91_v1  ;;  %v90_v3 = vld [vmem:[%s12483_s1 + $0x1f0] sm:$0xff]  ;;  %v85_v4 = vld [vmem:[%s12483_s1 + $0x1c8] sm:$0xff]  ;;  %v87_v5 = vld [vmem:[%s12483_s1 + $0x1d8] sm:$0xff] }
   0x3   :  { %135 = vmatpush1.msra.mxu0 %v88_v2  ;;  %206 = vmatpush1.msra.mxu1 %v90_v3  ;;  %v84_v6 = vld [vmem:[%s12483_s1 + $0x1c0] sm:$0xff]  ;;  %v86_v7 = vld [vmem:[%s12483_s1 + $0x1d0] sm:$0xff]  ;;  %v81_v8 = vld [vmem:[%s12483_s1 + $0x1a8] sm:$0xff] }
   0x4   :  { %136 = vmatprep.subr.mxu0 %v85_v4  ;;  %207 = vmatprep.subr.mxu1 %v87_v5  ;;  %v83_v9 = vld [vmem:[%s12483_s1 + $0x1b8] sm:$0xff]  ;;  %v80_v10 = vld [vmem:[%s12483_s1 + $0x1a0] sm:$0xff]  ;;  %v82_v11 = vld [vmem:[%s12483_s1 + $0x1b0] sm:$0xff] }
   0x5   :  { %137 = vmatpush1.msra.mxu0 %v84_v6  ;;  %208 = vmatpush1.msra.mxu1 %v86_v7  ;;  %v77_v12 = vld [vmem:[%s12483_s1 + $0x188] sm:$0xff]  ;;  %v79_v13 = vld [vmem:[%s12483_s1 + $0x198] sm:$0xff]  ;;  %v76_v14 = vld [vmem:[%s12483_s1 + $0x180] sm:$0xff] }
   0x6   :  { %138 = vmatprep.subr.mxu0 %v81_v8  ;;  %209 = vmatprep.subr.mxu1 %v83_v9  ;;  %v78_v15 = vld [vmem:[%s12483_s1 + $0x190] sm:$0xff]  ;;  %v73_v16 = vld [vmem:[%s12483_s1 + $0x168] sm:$0xff]  ;;  %v75_v17 = vld [vmem:[%s12483_s1 + $0x178] sm:$0xff] }
   0x7   :  { %139 = vmatpush1.msra.mxu0 %v80_v10  ;;  %210 = vmatpush1.msra.mxu1 %v82_v11  ;;  %v72_v18 = vld [vmem:[%s12483_s1 + $0x160] sm:$0xff]  ;;  %v74_v19 = vld [vmem:[%s12483_s1 + $0x170] sm:$0xff]  ;;  %v69_v20 = vld [vmem:[%s12483_s1 + $0x148] sm:$0xff] }
   0x8   :  { %140 = vmatprep.subr.mxu0 %v77_v12  ;;  %211 = vmatprep.subr.mxu1 %v79_v13  ;;  %v71_v21 = vld [vmem:[%s12483_s1 + $0x158] sm:$0xff]  ;;  %v68_v22 = vld [vmem:[%s12483_s1 + $0x140] sm:$0xff]  ;;  %v70_v23 = vld [vmem:[%s12483_s1 + $0x150] sm:$0xff] }
   0x9   :  { %141 = vmatpush1.msra.mxu0 %v76_v14  ;;  %212 = vmatpush1.msra.mxu1 %v78_v15  ;;  %v65_v24 = vld [vmem:[%s12483_s1 + $0x128] sm:$0xff]  ;;  %v67_v25 = vld [vmem:[%s12483_s1 + $0x138] sm:$0xff]  ;;  %v64_v26 = vld [vmem:[%s12483_s1 + $0x120] sm:$0xff] }
   0xa   :  { %142 = vmatprep.subr.mxu0 %v73_v16  ;;  %213 = vmatprep.subr.mxu1 %v75_v17  ;;  %v66_v27 = vld [vmem:[%s12483_s1 + $0x130] sm:$0xff]  ;;  %v61_v28 = vld [vmem:[%s12483_s1 + $0x108] sm:$0xff]  ;;  %v63_v29 = vld [vmem:[%s12483_s1 + $0x118] sm:$0xff] }
   0xb   :  { %143 = vmatpush1.msra.mxu0 %v72_v18  ;;  %214 = vmatpush1.msra.mxu1 %v74_v19  ;;  %v60_v30 = vld [vmem:[%s12483_s1 + $0x100] sm:$0xff]  ;;  %v62_v31 = vld [vmem:[%s12483_s1 + $0x110] sm:$0xff]  ;;  %v57_v32 = vld [vmem:[%s12483_s1 + $0xe8] sm:$0xff] }
   0xc   :  { %144 = vmatprep.subr.mxu0 %v69_v20  ;;  %215 = vmatprep.subr.mxu1 %v71_v21  ;;  %v59_v33 = vld [vmem:[%s12483_s1 + $0xf8] sm:$0xff]  ;;  %v56_v34 = vld [vmem:[%s12483_s1 + $0xe0] sm:$0xff]  ;;  %v58_v35 = vld [vmem:[%s12483_s1 + $0xf0] sm:$0xff] }
   0xd   :  { %145 = vmatpush1.msra.mxu0 %v68_v22  ;;  %216 = vmatpush1.msra.mxu1 %v70_v23  ;;  %v53_v36 = vld [vmem:[%s12483_s1 + $0xc8] sm:$0xff]  ;;  %v55_v37 = vld [vmem:[%s12483_s1 + $0xd8] sm:$0xff]  ;;  %v52_v38 = vld [vmem:[%s12483_s1 + $0xc0] sm:$0xff] }
   0xe   :  { %146 = vmatprep.subr.mxu0 %v65_v24  ;;  %217 = vmatprep.subr.mxu1 %v67_v25  ;;  %v54_v39 = vld [vmem:[%s12483_s1 + $0xd0] sm:$0xff]  ;;  %v49_v40 = vld [vmem:[%s12483_s1 + $0xa8] sm:$0xff]  ;;  %v51_v41 = vld [vmem:[%s12483_s1 + $0xb8] sm:$0xff] }
   0xf   :  { %147 = vmatpush1.msra.mxu0 %v64_v26  ;;  %218 = vmatpush1.msra.mxu1 %v66_v27  ;;  %v48_v42 = vld [vmem:[%s12483_s1 + $0xa0] sm:$0xff]  ;;  %v50_v43 = vld [vmem:[%s12483_s1 + $0xb0] sm:$0xff]  ;;  %v45_v44 = vld [vmem:[%s12483_s1 + $0x88] sm:$0xff] }
  0x10   :  { %148 = vmatprep.subr.mxu0 %v61_v28  ;;  %219 = vmatprep.subr.mxu1 %v63_v29  ;;  %v47_v45 = vld [vmem:[%s12483_s1 + $0x98] sm:$0xff]  ;;  %v44_v46 = vld [vmem:[%s12483_s1 + $0x80] sm:$0xff]  ;;  %v46_v47 = vld [vmem:[%s12483_s1 + $0x90] sm:$0xff] }
  0x11   :  { %149 = vmatpush1.msra.mxu0 %v60_v30  ;;  %220 = vmatpush1.msra.mxu1 %v62_v31  ;;  %v41_v48 = vld [vmem:[%s12483_s1 + $0x68] sm:$0xff]  ;;  %v43_v49 = vld [vmem:[%s12483_s1 + $0x78] sm:$0xff]  ;;  %v40_v50 = vld [vmem:[%s12483_s1 + $0x60] sm:$0xff] }
  0x12   :  { %150 = vmatprep.subr.mxu0 %v57_v32  ;;  %221 = vmatprep.subr.mxu1 %v59_v33  ;;  %v42_v51 = vld [vmem:[%s12483_s1 + $0x70] sm:$0xff]  ;;  %v37_v52 = vld [vmem:[%s12483_s1 + $0x48] sm:$0xff]  ;;  %v39_v53 = vld [vmem:[%s12483_s1 + $0x58] sm:$0xff] }
  0x13   :  { %151 = vmatpush1.msra.mxu0 %v56_v34  ;;  %222 = vmatpush1.msra.mxu1 %v58_v35  ;;  %v36_v54 = vld [vmem:[%s12483_s1 + $0x40] sm:$0xff]  ;;  %v38_v55 = vld [vmem:[%s12483_s1 + $0x50] sm:$0xff]  ;;  %v33_v56 = vld [vmem:[%s12483_s1 + $0x28] sm:$0xff] }
  0x14   :  { %152 = vmatprep.subr.mxu0 %v53_v36  ;;  %223 = vmatprep.subr.mxu1 %v55_v37  ;;  %v35_v57 = vld [vmem:[%s12483_s1 + $0x38] sm:$0xff]  ;;  %v32_v58 = vld [vmem:[%s12483_s1 + $0x20] sm:$0xff]  ;;  %v34_v59 = vld [vmem:[%s12483_s1 + $0x30] sm:$0xff] }
  0x15   :  { %153 = vmatpush1.msra.mxu0 %v52_v38  ;;  %224 = vmatpush1.msra.mxu1 %v54_v39  ;;  %v29_v60 = vld [vmem:[%s12483_s1 + $0x8] sm:$0xff]  ;;  %v31_v61 = vld [vmem:[%s12483_s1 + $0x18] sm:$0xff]  ;;  %v28_v62 = vld [vmem:[%s12483_s1] sm:$0xff] }
  0x16   :  { %154 = vmatprep.subr.mxu0 %v49_v40  ;;  %225 = vmatprep.subr.mxu1 %v51_v41  ;;  %v30_v63 = vld [vmem:[%s12483_s1 + $0x10] sm:$0xff]  ;;  %v105_v0 = vld [vmem:[%s12483_s1 + $0x268] sm:$0xff]  ;;  %v107_v1 = vld [vmem:[%s12483_s1 + $0x278] sm:$0xff] }
  0x17   :  { %155 = vmatpush1.msra.mxu0 %v48_v42  ;;  %226 = vmatpush1.msra.mxu1 %v50_v43  ;;  %v104_v2 = vld [vmem:[%s12483_s1 + $0x260] sm:$0xff]  ;;  %v106_v3 = vld [vmem:[%s12483_s1 + $0x270] sm:$0xff]  ;;  %v101_v4 = vld [vmem:[%s12483_s1 + $0x248] sm:$0xff] }
  0x18   :  { %156 = vmatprep.subr.mxu0 %v45_v44  ;;  %227 = vmatprep.subr.mxu1 %v47_v45  ;;  %v103_v5 = vld [vmem:[%s12483_s1 + $0x258] sm:$0xff]  ;;  %v100_v6 = vld [vmem:[%s12483_s1 + $0x240] sm:$0xff]  ;;  %v102_v7 = vld [vmem:[%s12483_s1 + $0x250] sm:$0xff] }
  0x19   :  { %157 = vmatpush1.msra.mxu0 %v44_v46  ;;  %228 = vmatpush1.msra.mxu1 %v46_v47  ;;  %v97_v8 = vld [vmem:[%s12483_s1 + $0x228] sm:$0xff]  ;;  %v99_v9 = vld [vmem:[%s12483_s1 + $0x238] sm:$0xff]  ;;  %v96_v10 = vld [vmem:[%s12483_s1 + $0x220] sm:$0xff] }
  0x1a   :  { %158 = vmatprep.subr.mxu0 %v41_v48  ;;  %229 = vmatprep.subr.mxu1 %v43_v49  ;;  %v98_v11 = vld [vmem:[%s12483_s1 + $0x230] sm:$0xff]  ;;  %v93_v12 = vld [vmem:[%s12483_s1 + $0x208] sm:$0xff]  ;;  %v95_v13 = vld [vmem:[%s12483_s1 + $0x218] sm:$0xff] }
  0x1b   :  { %159 = vmatpush1.msra.mxu0 %v40_v50  ;;  %230 = vmatpush1.msra.mxu1 %v42_v51  ;;  %v92_v14 = vld [vmem:[%s12483_s1 + $0x200] sm:$0xff]  ;;  %v27_v15 = vld [vmem:[%s12484_s0 + $0x8] sm:$0xff]  ;;  %v94_v16 = vld [vmem:[%s12483_s1 + $0x210] sm:$0xff] }
  0x1c   :  { %160 = vmatprep.subr.mxu0 %v37_v52  ;;  %231 = vmatprep.subr.mxu1 %v39_v53  ;;  %v26_v17 = vld [vmem:[%s12484_s0] sm:$0xff]  ;;  %v401_v18 = vld [vmem:[%s12485_s3 + $0x3c8] sm:$0xff] }
  0x1d   :  { %161 = vmatpush1.msra.mxu0 %v36_v54  ;;  %232 = vmatpush1.msra.mxu1 %v38_v55  ;;  %v657_v19 = vld [vmem:[%s12485_s3 + $0xbc8] sm:$0xff]  ;;  %v400_v20 = vld [vmem:[%s12485_s3 + $0x3c0] sm:$0xff] }
  0x1e   :  { %162 = vmatprep.subr.mxu0 %v33_v56  ;;  %233 = vmatprep.subr.mxu1 %v35_v57  ;;  %v656_v21 = vld [vmem:[%s12485_s3 + $0xbc0] sm:$0xff]  ;;  %v393_v22 = vld [vmem:[%s12485_s3 + $0x388] sm:$0xff] }
  0x1f   :  { %163 = vmatpush1.msra.mxu0 %v32_v58  ;;  %234 = vmatpush1.msra.mxu1 %v34_v59  ;;  %v649_v23 = vld [vmem:[%s12485_s3 + $0xb88] sm:$0xff]  ;;  %v392_v24 = vld [vmem:[%s12485_s3 + $0x380] sm:$0xff] }
  0x20   :  { %164 = vmatprep.subr.mxu0 %v29_v60  ;;  %235 = vmatprep.subr.mxu1 %v31_v61  ;;  %v648_v25 = vld [vmem:[%s12485_s3 + $0xb80] sm:$0xff]  ;;  %v385_v26 = vld [vmem:[%s12485_s3 + $0x348] sm:$0xff] }
  0x21   :  { %165 = vmatpush1.msra.mxu0 %v28_v62  ;;  %236 = vmatpush1.msra.mxu1 %v30_v63  ;;  %v641_v27 = vld [vmem:[%s12485_s3 + $0xb48] sm:$0xff]  ;;  %v384_v28 = vld [vmem:[%s12485_s3 + $0x340] sm:$0xff] }
  0x22   :  { %190 = vmatprep.subr.mxu0 %v105_v0  ;;  %261 = vmatprep.subr.mxu1 %v107_v1  ;;  %v640_v29 = vld [vmem:[%s12485_s3 + $0xb40] sm:$0xff]  ;;  %v377_v30 = vld [vmem:[%s12485_s3 + $0x308] sm:$0xff] }
  0x23   :  { %191 = vmatpush2.msra.mxu0 %v104_v2  ;;  %262 = vmatpush2.msra.mxu1 %v106_v3  ;;  %v633_v31 = vld [vmem:[%s12485_s3 + $0xb08] sm:$0xff]  ;;  %v376_v32 = vld [vmem:[%s12485_s3 + $0x300] sm:$0xff] }
  0x24   :  { %192 = vmatprep.subr.mxu0 %v101_v4  ;;  %263 = vmatprep.subr.mxu1 %v103_v5  ;;  %v632_v33 = vld [vmem:[%s12485_s3 + $0xb00] sm:$0xff]  ;;  %v369_v34 = vld [vmem:[%s12485_s3 + $0x2c8] sm:$0xff] }
  0x25   :  { %193 = vmatpush2.msra.mxu0 %v100_v6  ;;  %264 = vmatpush2.msra.mxu1 %v102_v7  ;;  %v625_v35 = vld [vmem:[%s12485_s3 + $0xac8] sm:$0xff]  ;;  %v368_v36 = vld [vmem:[%s12485_s3 + $0x2c0] sm:$0xff] }
  0x26   :  { %194 = vmatprep.subr.mxu0 %v97_v8  ;;  %265 = vmatprep.subr.mxu1 %v99_v9  ;;  %v624_v37 = vld [vmem:[%s12485_s3 + $0xac0] sm:$0xff]  ;;  %v361_v38 = vld [vmem:[%s12485_s3 + $0x288] sm:$0xff] }
  0x27   :  { %195 = vmatpush2.msra.mxu0 %v96_v10  ;;  %266 = vmatpush2.msra.mxu1 %v98_v11  ;;  %v617_v39 = vld [vmem:[%s12485_s3 + $0xa88] sm:$0xff]  ;;  %v360_v40 = vld [vmem:[%s12485_s3 + $0x280] sm:$0xff] }
  0x28   :  { %196 = vmatprep.subr.mxu0 %v93_v12  ;;  %267 = vmatprep.subr.mxu1 %v95_v13  ;;  %v616_v41 = vld [vmem:[%s12485_s3 + $0xa80] sm:$0xff]  ;;  %v353_v42 = vld [vmem:[%s12485_s3 + $0x248] sm:$0xff] }
  0x29   :  { %197 = vmatpush2.msra.mxu0 %v92_v14  ;;  %5223 = vmatprep.mubr.msk.f32.mxu0 %vm130_vm0, %v27_v15  ;;  %v609_v43 = vld [vmem:[%s12485_s3 + $0xa48] sm:$0xff]  ;;  %v352_v44 = vld [vmem:[%s12485_s3 + $0x240] sm:$0xff] }
  0x2a   :  { %268 = vmatpush2.msra.mxu1 %v94_v16  ;;  %5224 = vmatprep.mubr.msk.f32.mxu1 %vm130_vm0, %v27_v15  ;;  %v608_v45 = vld [vmem:[%s12485_s3 + $0xa40] sm:$0xff]  ;;  %v345_v46 = vld [vmem:[%s12485_s3 + $0x208] sm:$0xff] }
  0x2b   :  { %199 = vmatmul.mubr.f32.vlgmr.msra.gmra.mxu0 %v26_v17  ;;  %270 = vmatmul.mubr.f32.vlgmr.msra.gmra.mxu1 %v26_v17  ;;  %v601_v47 = vld [vmem:[%s12485_s3 + $0xa08] sm:$0xff]  ;;  %v344_v48 = vld [vmem:[%s12485_s3 + $0x200] sm:$0xff] }
  0x2c   :  { %834 = vmatprep.subr.mxu0 %v401_v18  ;;  %905 = vmatprep.subr.mxu1 %v657_v19  ;;  %v600_v49 = vld [vmem:[%s12485_s3 + $0xa00] sm:$0xff]  ;;  %v337_v50 = vld [vmem:[%s12485_s3 + $0x1c8] sm:$0xff] }
  0x2d   :  { %835 = vmatpush1.msra.mxu0 %v400_v20  ;;  %906 = vmatpush1.msra.mxu1 %v656_v21  ;;  %v593_v51 = vld [vmem:[%s12485_s3 + $0x9c8] sm:$0xff]  ;;  %v336_v52 = vld [vmem:[%s12485_s3 + $0x1c0] sm:$0xff] }
  0x2e   :  { %836 = vmatprep.subr.mxu0 %v393_v22  ;;  %907 = vmatprep.subr.mxu1 %v649_v23  ;;  %v592_v53 = vld [vmem:[%s12485_s3 + $0x9c0] sm:$0xff]  ;;  %v329_v54 = vld [vmem:[%s12485_s3 + $0x188] sm:$0xff] }
  0x2f   :  { %837 = vmatpush1.msra.mxu0 %v392_v24  ;;  %908 = vmatpush1.msra.mxu1 %v648_v25  ;;  %v585_v55 = vld [vmem:[%s12485_s3 + $0x988] sm:$0xff]  ;;  %v328_v56 = vld [vmem:[%s12485_s3 + $0x180] sm:$0xff] }
  0x30   :  { %838 = vmatprep.subr.mxu0 %v385_v26  ;;  %909 = vmatprep.subr.mxu1 %v641_v27  ;;  %v584_v57 = vld [vmem:[%s12485_s3 + $0x980] sm:$0xff]  ;;  %v321_v58 = vld [vmem:[%s12485_s3 + $0x148] sm:$0xff] }
  0x31   :  { %839 = vmatpush1.msra.mxu0 %v384_v28  ;;  %910 = vmatpush1.msra.mxu1 %v640_v29  ;;  %v577_v59 = vld [vmem:[%s12485_s3 + $0x948] sm:$0xff]  ;;  %v320_v60 = vld [vmem:[%s12485_s3 + $0x140] sm:$0xff] }
  0x32   :  { %840 = vmatprep.subr.mxu0 %v377_v30  ;;  %911 = vmatprep.subr.mxu1 %v633_v31  ;;  %v576_v61 = vld [vmem:[%s12485_s3 + $0x940] sm:$0xff]  ;;  %v313_v62 = vld [vmem:[%s12485_s3 + $0x108] sm:$0xff] }
  0x33   :  { %841 = vmatpush1.msra.mxu0 %v376_v32  ;;  %912 = vmatpush1.msra.mxu1 %v632_v33  ;;  %v569_v63 = vld [vmem:[%s12485_s3 + $0x908] sm:$0xff]  ;;  %v312_v0 = vld [vmem:[%s12485_s3 + $0x100] sm:$0xff] }
  0x34   :  { %842 = vmatprep.subr.mxu0 %v369_v34  ;;  %913 = vmatprep.subr.mxu1 %v625_v35  ;;  %v568_v1 = vld [vmem:[%s12485_s3 + $0x900] sm:$0xff]  ;;  %v305_v2 = vld [vmem:[%s12485_s3 + $0xc8] sm:$0xff] }
  0x35   :  { %843 = vmatpush1.msra.mxu0 %v368_v36  ;;  %914 = vmatpush1.msra.mxu1 %v624_v37  ;;  %v561_v3 = vld [vmem:[%s12485_s3 + $0x8c8] sm:$0xff]  ;;  %v304_v4 = vld [vmem:[%s12485_s3 + $0xc0] sm:$0xff] }
  0x36   :  { %844 = vmatprep.subr.mxu0 %v361_v38  ;;  %915 = vmatprep.subr.mxu1 %v617_v39  ;;  %v560_v5 = vld [vmem:[%s12485_s3 + $0x8c0] sm:$0xff]  ;;  %v297_v6 = vld [vmem:[%s12485_s3 + $0x88] sm:$0xff] }
  0x37   :  { %845 = vmatpush1.msra.mxu0 %v360_v40  ;;  %916 = vmatpush1.msra.mxu1 %v616_v41  ;;  %v553_v7 = vld [vmem:[%s12485_s3 + $0x888] sm:$0xff]  ;;  %v296_v8 = vld [vmem:[%s12485_s3 + $0x80] sm:$0xff] }
  0x38   :  { %846 = vmatprep.subr.mxu0 %v353_v42  ;;  %917 = vmatprep.subr.mxu1 %v609_v43  ;;  %v552_v9 = vld [vmem:[%s12485_s3 + $0x880] sm:$0xff]  ;;  %v289_v10 = vld [vmem:[%s12485_s3 + $0x48] sm:$0xff] }
  0x39   :  { %847 = vmatpush1.msra.mxu0 %v352_v44  ;;  %918 = vmatpush1.msra.mxu1 %v608_v45  ;;  %v545_v11 = vld [vmem:[%s12485_s3 + $0x848] sm:$0xff]  ;;  %v288_v12 = vld [vmem:[%s12485_s3 + $0x40] sm:$0xff] }
  0x3a   :  { %848 = vmatprep.subr.mxu0 %v345_v46  ;;  %919 = vmatprep.subr.mxu1 %v601_v47  ;;  %v544_v13 = vld [vmem:[%s12485_s3 + $0x840] sm:$0xff]  ;;  %v281_v14 = vld [vmem:[%s12485_s3 + $0x8] sm:$0xff] }
  0x3b   :  { %849 = vmatpush1.msra.mxu0 %v344_v48  ;;  %920 = vmatpush1.msra.mxu1 %v600_v49  ;;  %v537_v15 = vld [vmem:[%s12485_s3 + $0x808] sm:$0xff]  ;;  %v280_v16 = vld [vmem:[%s12485_s3] sm:$0xff] }
  0x3c   :  { %850 = vmatprep.subr.mxu0 %v337_v50  ;;  %921 = vmatprep.subr.mxu1 %v593_v51  ;;  %v536_v17 = vld [vmem:[%s12485_s3 + $0x800] sm:$0xff]  ;;  %v529_v18 = vld [vmem:[%s12485_s3 + $0x7c8] sm:$0xff] }
  0x3d   :  { %851 = vmatpush1.msra.mxu0 %v336_v52  ;;  %922 = vmatpush1.msra.mxu1 %v592_v53  ;;  %v785_v19 = vld [vmem:[%s12485_s3 + $0xfc8] sm:$0xff]  ;;  %v528_v20 = vld [vmem:[%s12485_s3 + $0x7c0] sm:$0xff] }
  0x3e   :  { %852 = vmatprep.subr.mxu0 %v329_v54  ;;  %923 = vmatprep.subr.mxu1 %v585_v55  ;;  %v784_v21 = vld [vmem:[%s12485_s3 + $0xfc0] sm:$0xff]  ;;  %v521_v22 = vld [vmem:[%s12485_s3 + $0x788] sm:$0xff] }
  0x3f   :  { %853 = vmatpush1.msra.mxu0 %v328_v56  ;;  %924 = vmatpush1.msra.mxu1 %v584_v57  ;;  %v777_v23 = vld [vmem:[%s12485_s3 + $0xf88] sm:$0xff]  ;;  %v520_v24 = vld [vmem:[%s12485_s3 + $0x780] sm:$0xff] }
  0x40   :  { %854 = vmatprep.subr.mxu0 %v321_v58  ;;  %925 = vmatprep.subr.mxu1 %v577_v59  ;;  %v776_v25 = vld [vmem:[%s12485_s3 + $0xf80] sm:$0xff]  ;;  %v513_v26 = vld [vmem:[%s12485_s3 + $0x748] sm:$0xff] }
  0x41   :  { %855 = vmatpush1.msra.mxu0 %v320_v60  ;;  %926 = vmatpush1.msra.mxu1 %v576_v61  ;;  %v769_v27 = vld [vmem:[%s12485_s3 + $0xf48] sm:$0xff]  ;;  %v512_v28 = vld [vmem:[%s12485_s3 + $0x740] sm:$0xff] }
  0x42   :  { %856 = vmatprep.subr.mxu0 %v313_v62  ;;  %927 = vmatprep.subr.mxu1 %v569_v63  ;;  %v768_v29 = vld [vmem:[%s12485_s3 + $0xf40] sm:$0xff]  ;;  %v505_v30 = vld [vmem:[%s12485_s3 + $0x708] sm:$0xff] }
  0x43   :  { %857 = vmatpush1.msra.mxu0 %v312_v0  ;;  %928 = vmatpush1.msra.mxu1 %v568_v1  ;;  %v761_v31 = vld [vmem:[%s12485_s3 + $0xf08] sm:$0xff]  ;;  %v504_v32 = vld [vmem:[%s12485_s3 + $0x700] sm:$0xff] }
  0x44   :  { %858 = vmatprep.subr.mxu0 %v305_v2  ;;  %929 = vmatprep.subr.mxu1 %v561_v3  ;;  %v760_v33 = vld [vmem:[%s12485_s3 + $0xf00] sm:$0xff]  ;;  %v497_v34 = vld [vmem:[%s12485_s3 + $0x6c8] sm:$0xff] }
  0x45   :  { %859 = vmatpush1.msra.mxu0 %v304_v4  ;;  %930 = vmatpush1.msra.mxu1 %v560_v5  ;;  %v753_v35 = vld [vmem:[%s12485_s3 + $0xec8] sm:$0xff]  ;;  %v496_v36 = vld [vmem:[%s12485_s3 + $0x6c0] sm:$0xff] }
  0x46   :  { %860 = vmatprep.subr.mxu0 %v297_v6  ;;  %931 = vmatprep.subr.mxu1 %v553_v7  ;;  %v752_v37 = vld [vmem:[%s12485_s3 + $0xec0] sm:$0xff]  ;;  %v489_v38 = vld [vmem:[%s12485_s3 + $0x688] sm:$0xff] }
  0x47   :  { %861 = vmatpush1.msra.mxu0 %v296_v8  ;;  %932 = vmatpush1.msra.mxu1 %v552_v9  ;;  %v745_v39 = vld [vmem:[%s12485_s3 + $0xe88] sm:$0xff]  ;;  %v488_v40 = vld [vmem:[%s12485_s3 + $0x680] sm:$0xff] }
  0x48   :  { %862 = vmatprep.subr.mxu0 %v289_v10  ;;  %933 = vmatprep.subr.mxu1 %v545_v11  ;;  %v744_v41 = vld [vmem:[%s12485_s3 + $0xe80] sm:$0xff]  ;;  %v481_v42 = vld [vmem:[%s12485_s3 + $0x648] sm:$0xff] }
  0x49   :  { %863 = vmatpush1.msra.mxu0 %v288_v12  ;;  %934 = vmatpush1.msra.mxu1 %v544_v13  ;;  %v737_v43 = vld [vmem:[%s12485_s3 + $0xe48] sm:$0xff]  ;;  %v480_v44 = vld [vmem:[%s12485_s3 + $0x640] sm:$0xff] }
  0x4a   :  { %864 = vmatprep.subr.mxu0 %v281_v14  ;;  %935 = vmatprep.subr.mxu1 %v537_v15  ;;  %v736_v45 = vld [vmem:[%s12485_s3 + $0xe40] sm:$0xff]  ;;  %v473_v46 = vld [vmem:[%s12485_s3 + $0x608] sm:$0xff] }
  0x4b   :  { %865 = vmatpush1.msra.mxu0 %v280_v16  ;;  %936 = vmatpush1.msra.mxu1 %v536_v17  ;;  %v729_v47 = vld [vmem:[%s12485_s3 + $0xe08] sm:$0xff]  ;;  %v472_v48 = vld [vmem:[%s12485_s3 + $0x600] sm:$0xff] }
  0x4c   :  { %866 = vmatprep.subr.mxu0 %v529_v18  ;;  %937 = vmatprep.subr.mxu1 %v785_v19  ;;  %v728_v49 = vld [vmem:[%s12485_s3 + $0xe00] sm:$0xff]  ;;  %v465_v50 = vld [vmem:[%s12485_s3 + $0x5c8] sm:$0xff]  ;;  %v403_v18 = vld [vmem:[%s12485_s3 + $0x3d8] sm:$0xff] }
  0x4d   :  { %867 = vmatpush2.msra.mxu0 %v528_v20  ;;  %938 = vmatpush2.msra.mxu1 %v784_v21  ;;  %v721_v51 = vld [vmem:[%s12485_s3 + $0xdc8] sm:$0xff]  ;;  %v464_v52 = vld [vmem:[%s12485_s3 + $0x5c0] sm:$0xff]  ;;  %v659_v19 = vld [vmem:[%s12485_s3 + $0xbd8] sm:$0xff]  ;;  %v110_v20 = vlaneseq }
  0x4e   :  { %868 = vmatprep.subr.mxu0 %v521_v22  ;;  %939 = vmatprep.subr.mxu1 %v777_v23  ;;  %v720_v53 = vld [vmem:[%s12485_s3 + $0xdc0] sm:$0xff]  ;;  %v457_v54 = vld [vmem:[%s12485_s3 + $0x588] sm:$0xff] }
  0x4f   :  { %869 = vmatpush2.msra.mxu0 %v520_v24  ;;  %940 = vmatpush2.msra.mxu1 %v776_v25  ;;  %v713_v55 = vld [vmem:[%s12485_s3 + $0xd88] sm:$0xff]  ;;  %v456_v56 = vld [vmem:[%s12485_s3 + $0x580] sm:$0xff]  ;;  %v6110_v21 = vshrl.u32 %v110_v20, 7  ;;  %v578_v20 = vld [vmem:[%s12485_s3 + $0x950] sm:$0xff] }
  0x50   :  { %870 = vmatprep.subr.mxu0 %v513_v26  ;;  %941 = vmatprep.subr.mxu1 %v769_v27  ;;  %v712_v57 = vld [vmem:[%s12485_s3 + $0xd80] sm:$0xff]  ;;  %v449_v58 = vld [vmem:[%s12485_s3 + $0x548] sm:$0xff] }
  0x51   :  { %871 = vmatpush2.msra.mxu0 %v512_v28  ;;  %942 = vmatpush2.msra.mxu1 %v768_v29  ;;  %v705_v59 = vld [vmem:[%s12485_s3 + $0xd48] sm:$0xff]  ;;  %v448_v60 = vld [vmem:[%s12485_s3 + $0x540] sm:$0xff]  ;;  %v6113_v22 = vsub.s32 2, %v6110_v21  ;;  %v6116_v23 = vsub.s32 0, %v6110_v21  ;;  %v6122_v25 = vsub.s32 1, %v6110_v21  ;;  %v6125_v26 = vsub.s32 3, %v6110_v21 }
  0x52   :  { %872 = vmatprep.subr.mxu0 %v505_v30  ;;  %943 = vmatprep.subr.mxu1 %v761_v31  ;;  %v704_v61 = vld [vmem:[%s12485_s3 + $0xd40] sm:$0xff]  ;;  %v441_v62 = vld [vmem:[%s12485_s3 + $0x508] sm:$0xff] }
  0x53   :  { %873 = vmatpush2.msra.mxu0 %v504_v32  ;;  %944 = vmatpush2.msra.mxu1 %v760_v33  ;;  %v697_v63 = vld [vmem:[%s12485_s3 + $0xd08] sm:$0xff]  ;;  %v440_v0 = vld [vmem:[%s12485_s3 + $0x500] sm:$0xff] }
  0x54   :  { %874 = vmatprep.subr.mxu0 %v497_v34  ;;  %945 = vmatprep.subr.mxu1 %v753_v35  ;;  %v696_v1 = vld [vmem:[%s12485_s3 + $0xd00] sm:$0xff]  ;;  %v433_v2 = vld [vmem:[%s12485_s3 + $0x4c8] sm:$0xff] }
  0x55   :  { %875 = vmatpush2.msra.mxu0 %v496_v36  ;;  %946 = vmatpush2.msra.mxu1 %v752_v37  ;;  %v689_v3 = vld [vmem:[%s12485_s3 + $0xcc8] sm:$0xff]  ;;  %v432_v4 = vld [vmem:[%s12485_s3 + $0x4c0] sm:$0xff] }
  0x56   :  { %876 = vmatprep.subr.mxu0 %v489_v38  ;;  %947 = vmatprep.subr.mxu1 %v745_v39  ;;  %v688_v5 = vld [vmem:[%s12485_s3 + $0xcc0] sm:$0xff]  ;;  %v425_v6 = vld [vmem:[%s12485_s3 + $0x488] sm:$0xff] }
  0x57   :  { %877 = vmatpush2.msra.mxu0 %v488_v40  ;;  %948 = vmatpush2.msra.mxu1 %v744_v41  ;;  %v681_v7 = vld [vmem:[%s12485_s3 + $0xc88] sm:$0xff]  ;;  %v424_v8 = vld [vmem:[%s12485_s3 + $0x480] sm:$0xff] }
  0x58   :  { %878 = vmatprep.subr.mxu0 %v481_v42  ;;  %949 = vmatprep.subr.mxu1 %v737_v43  ;;  %v680_v9 = vld [vmem:[%s12485_s3 + $0xc80] sm:$0xff]  ;;  %v417_v10 = vld [vmem:[%s12485_s3 + $0x448] sm:$0xff]  ;;  %v402_v43 = vld [vmem:[%s12485_s3 + $0x3d0] sm:$0xff] }
  0x59   :  { %879 = vmatpush2.msra.mxu0 %v480_v44  ;;  %950 = vmatpush2.msra.mxu1 %v736_v45  ;;  %v673_v11 = vld [vmem:[%s12485_s3 + $0xc48] sm:$0xff]  ;;  %v416_v12 = vld [vmem:[%s12485_s3 + $0x440] sm:$0xff]  ;;  %v658_v44 = vld [vmem:[%s12485_s3 + $0xbd0] sm:$0xff] }
  0x5a   :  { %880 = vmatprep.subr.mxu0 %v473_v46  ;;  %951 = vmatprep.subr.mxu1 %v729_v47  ;;  %v672_v13 = vld [vmem:[%s12485_s3 + $0xc40] sm:$0xff]  ;;  %v409_v14 = vld [vmem:[%s12485_s3 + $0x408] sm:$0xff]  ;;  %v395_v45 = vld [vmem:[%s12485_s3 + $0x398] sm:$0xff] }
  0x5b   :  { %881 = vmatpush2.msra.mxu0 %v472_v48  ;;  %952 = vmatpush2.msra.mxu1 %v728_v49  ;;  %v665_v15 = vld [vmem:[%s12485_s3 + $0xc08] sm:$0xff]  ;;  %v408_v16 = vld [vmem:[%s12485_s3 + $0x400] sm:$0xff]  ;;  %v651_v46 = vld [vmem:[%s12485_s3 + $0xb98] sm:$0xff] }
  0x5c   :  { %882 = vmatprep.subr.mxu0 %v465_v50  ;;  %953 = vmatprep.subr.mxu1 %v721_v51  ;;  %v664_v17 = vld [vmem:[%s12485_s3 + $0xc00] sm:$0xff]  ;;  %v394_v47 = vld [vmem:[%s12485_s3 + $0x390] sm:$0xff]  ;;  %v387_v49 = vld [vmem:[%s12485_s3 + $0x358] sm:$0xff] }
  0x5d   :  { %883 = vmatpush2.msra.mxu0 %v464_v52  ;;  %954 = vmatpush2.msra.mxu1 %v720_v53  ;;  %v108_v24 = vld [vmem:[%s12486_s2] sm:$0xf]  ;;  %v650_v48 = vld [vmem:[%s12485_s3 + $0xb90] sm:$0xff]  ;;  %v643_v50 = vld [vmem:[%s12485_s3 + $0xb58] sm:$0xff] }
  0x5e   :  { %884 = vmatprep.subr.mxu0 %v457_v54  ;;  %955 = vmatprep.subr.mxu1 %v713_v55  ;;  %v121_v27 = vrot.slane %v108_v24, %v6113_v22  ;;  %v113_v28 = vrot.slane %v108_v24, %v6116_v23  ;;  %v117_v29 = vrot.slane %v108_v24, %v6122_v25  ;;  %v386_v51 = vld [vmem:[%s12485_s3 + $0x350] sm:$0xff]  ;;  %v379_v53 = vld [vmem:[%s12485_s3 + $0x318] sm:$0xff] }
  0x5f   :  { %885 = vmatpush2.msra.mxu0 %v456_v56  ;;  %956 = vmatpush2.msra.mxu1 %v712_v57  ;;  %v125_v30 = vrot.slane %v108_v24, %v6125_v26  ;;  %v642_v52 = vld [vmem:[%s12485_s3 + $0xb50] sm:$0xff]  ;;  %v635_v54 = vld [vmem:[%s12485_s3 + $0xb18] sm:$0xff] }
  0x60   :  { %886 = vmatprep.subr.mxu0 %v449_v58  ;;  %957 = vmatprep.subr.mxu1 %v705_v59  ;;  %v378_v55 = vld [vmem:[%s12485_s3 + $0x310] sm:$0xff]  ;;  %v371_v57 = vld [vmem:[%s12485_s3 + $0x2d8] sm:$0xff] }
  0x61   :  { %887 = vmatpush2.msra.mxu0 %v448_v60  ;;  %958 = vmatpush2.msra.mxu1 %v704_v61  ;;  %v634_v56 = vld [vmem:[%s12485_s3 + $0xb10] sm:$0xff]  ;;  %v627_v58 = vld [vmem:[%s12485_s3 + $0xad8] sm:$0xff] }
  0x62   :  { %888 = vmatprep.subr.mxu0 %v441_v62  ;;  %959 = vmatprep.subr.mxu1 %v697_v63  ;;  %v370_v59 = vld [vmem:[%s12485_s3 + $0x2d0] sm:$0xff]  ;;  %v363_v61 = vld [vmem:[%s12485_s3 + $0x298] sm:$0xff] }
  0x63   :  { %889 = vmatpush2.msra.mxu0 %v440_v0  ;;  %960 = vmatpush2.msra.mxu1 %v696_v1  ;;  %v626_v60 = vld [vmem:[%s12485_s3 + $0xad0] sm:$0xff]  ;;  %v619_v62 = vld [vmem:[%s12485_s3 + $0xa98] sm:$0xff] }
  0x64   :  { %890 = vmatprep.subr.mxu0 %v433_v2  ;;  %961 = vmatprep.subr.mxu1 %v689_v3  ;;  %v362_v63 = vld [vmem:[%s12485_s3 + $0x290] sm:$0xff]  ;;  %v355_v1 = vld [vmem:[%s12485_s3 + $0x258] sm:$0xff] }
  0x65   :  { %891 = vmatpush2.msra.mxu0 %v432_v4  ;;  %962 = vmatpush2.msra.mxu1 %v688_v5  ;;  %v618_v0 = vld [vmem:[%s12485_s3 + $0xa90] sm:$0xff]  ;;  %v611_v2 = vld [vmem:[%s12485_s3 + $0xa58] sm:$0xff] }
  0x66   :  { %892 = vmatprep.subr.mxu0 %v425_v6  ;;  %963 = vmatprep.subr.mxu1 %v681_v7  ;;  %v354_v3 = vld [vmem:[%s12485_s3 + $0x250] sm:$0xff]  ;;  %v347_v5 = vld [vmem:[%s12485_s3 + $0x218] sm:$0xff] }
  0x67   :  { %893 = vmatpush2.msra.mxu0 %v424_v8  ;;  %964 = vmatpush2.msra.mxu1 %v680_v9  ;;  %v610_v4 = vld [vmem:[%s12485_s3 + $0xa50] sm:$0xff]  ;;  %v603_v6 = vld [vmem:[%s12485_s3 + $0xa18] sm:$0xff] }
  0x68   :  { %894 = vmatprep.subr.mxu0 %v417_v10  ;;  %965 = vmatprep.subr.mxu1 %v673_v11  ;;  %v346_v7 = vld [vmem:[%s12485_s3 + $0x210] sm:$0xff]  ;;  %v339_v9 = vld [vmem:[%s12485_s3 + $0x1d8] sm:$0xff] }
  0x69   :  { %895 = vmatpush2.msra.mxu0 %v416_v12  ;;  %966 = vmatpush2.msra.mxu1 %v672_v13  ;;  %v602_v8 = vld [vmem:[%s12485_s3 + $0xa10] sm:$0xff]  ;;  %v595_v10 = vld [vmem:[%s12485_s3 + $0x9d8] sm:$0xff] }
  0x6a   :  { %896 = vmatprep.subr.mxu0 %v409_v14  ;;  %967 = vmatprep.subr.mxu1 %v665_v15  ;;  %v338_v11 = vld [vmem:[%s12485_s3 + $0x1d0] sm:$0xff]  ;;  %v331_v13 = vld [vmem:[%s12485_s3 + $0x198] sm:$0xff] }
  0x6b   :  { %897 = vmatpush2.msra.mxu0 %v408_v16  ;;  %968 = vmatpush2.msra.mxu1 %v664_v17  ;;  %v594_v12 = vld [vmem:[%s12485_s3 + $0x9d0] sm:$0xff]  ;;  %v587_v14 = vld [vmem:[%s12485_s3 + $0x998] sm:$0xff] }
  0x6c   :  { %976 = vmatprep.subr.mxu0 %v403_v18  ;;  %1047 = vmatprep.subr.mxu1 %v659_v19  ;;  %v330_v15 = vld [vmem:[%s12485_s3 + $0x190] sm:$0xff]  ;;  %v323_v17 = vld [vmem:[%s12485_s3 + $0x158] sm:$0xff] }
  0x6d   :  { %v586_v16 = vld [vmem:[%s12485_s3 + $0x990] sm:$0xff]  ;;  %v579_v18 = vld [vmem:[%s12485_s3 + $0x958] sm:$0xff] }
  0x6e   :  { %v322_v19 = vld [vmem:[%s12485_s3 + $0x150] sm:$0xff]  ;;  %v315_v24 = vld [vmem:[%s12485_s3 + $0x118] sm:$0xff] }
  0xeb   :  { %v200_v31 = vpop.f32.mrf.mxu0  ;;  %v271_v32 = vpop.f32.mrf.mxu1 }
  0xec   :  { %v272_v33 = vadd.f32 %v271_v32, %v121_v27  ;;  %v201_v34 = vadd.f32 %v200_v31, %v113_v28  ;;  %v571_v27 = vld [vmem:[%s12485_s3 + $0x918] sm:$0xff]  ;;  %v314_v28 = vld [vmem:[%s12485_s3 + $0x110] sm:$0xff] }
  0xed   :  { %v202_v35 = vpop.f32.mrf.mxu0  ;;  %v273_v36 = vpop.f32.mrf.mxu1  ;;  %v563_v31 = vld [vmem:[%s12485_s3 + $0x8d8] sm:$0xff]  ;;  %v306_v32 = vld [vmem:[%s12485_s3 + $0xd0] sm:$0xff] }
  0xee   :  { %v203_v37 = vadd.f32 %v202_v35, %v117_v29  ;;  %v274_v38 = vadd.f32 %v273_v36, %v125_v30  ;;  %v6131_v39 = vmax.f32 %v272_v33, 0.0  ;;  %v6137_v42 = vmax.f32 %v201_v34, 0.0  ;;  %v570_v29 = vld [vmem:[%s12485_s3 + $0x910] sm:$0xff]  ;;  %v307_v30 = vld [vmem:[%s12485_s3 + $0xd8] sm:$0xff] }
  0xef   :  { %v562_v33 = vld [vmem:[%s12485_s3 + $0x8d0] sm:$0xff]  ;;  %v299_v34 = vld [vmem:[%s12485_s3 + $0x98] sm:$0xff] }
  0xf0   :  { %v6133_v40 = vmax.f32 %v203_v37, 0.0  ;;  %v6135_v41 = vmax.f32 %v274_v38, 0.0  ;;  %v555_v35 = vld [vmem:[%s12485_s3 + $0x898] sm:$0xff]  ;;  %v298_v36 = vld [vmem:[%s12485_s3 + $0x90] sm:$0xff] }
  0xf1   :  { %v554_v37 = vld [vmem:[%s12485_s3 + $0x890] sm:$0xff]  ;;  %v291_v38 = vld [vmem:[%s12485_s3 + $0x58] sm:$0xff] }
  0xf2   :  { %898 = vmatprep.mubr.f32.mxu0 %v6133_v40  ;;  %969 = vmatprep.mubr.f32.mxu1 %v6135_v41 }
  0xf3   :  { %899 = vmatmul.mubr.f32.vlgmr.msra.gmra.mxu0 %v6137_v42  ;;  %970 = vmatmul.mubr.f32.vlgmr.msra.gmra.mxu1 %v6131_v39 }
  0xf4   :  { %977 = vmatpush1.msra.mxu0 %v402_v43  ;;  %1048 = vmatpush1.msra.mxu1 %v658_v44  ;;  %v547_v43 = vld [vmem:[%s12485_s3 + $0x858] sm:$0xff]  ;;  %v290_v44 = vld [vmem:[%s12485_s3 + $0x50] sm:$0xff] }
  0xf5   :  { %978 = vmatprep.subr.mxu0 %v395_v45  ;;  %1040 = vmatprep.mubr.f32.mxu0 %v6133_v40  ;;  %v546_v45 = vld [vmem:[%s12485_s3 + $0x850] sm:$0xff] }
  0xf6   :  { %1049 = vmatprep.subr.mxu1 %v651_v46  ;;  %1111 = vmatprep.mubr.f32.mxu1 %v6135_v41  ;;  %v283_v46 = vld [vmem:[%s12485_s3 + $0x18] sm:$0xff] }
  0xf7   :  { %979 = vmatpush1.msra.mxu0 %v394_v47  ;;  %1050 = vmatpush1.msra.mxu1 %v650_v48  ;;  %v539_v47 = vld [vmem:[%s12485_s3 + $0x818] sm:$0xff]  ;;  %v282_v48 = vld [vmem:[%s12485_s3 + $0x10] sm:$0xff] }
  0xf8   :  { %980 = vmatprep.subr.mxu0 %v387_v49  ;;  %1051 = vmatprep.subr.mxu1 %v643_v50  ;;  %v538_v49 = vld [vmem:[%s12485_s3 + $0x810] sm:$0xff]  ;;  %v531_v50 = vld [vmem:[%s12485_s3 + $0x7d8] sm:$0xff] }
  0xf9   :  { %981 = vmatpush1.msra.mxu0 %v386_v51  ;;  %1052 = vmatpush1.msra.mxu1 %v642_v52  ;;  %v787_v51 = vld [vmem:[%s12485_s3 + $0xfd8] sm:$0xff]  ;;  %v530_v52 = vld [vmem:[%s12485_s3 + $0x7d0] sm:$0xff] }
  0xfa   :  { %982 = vmatprep.subr.mxu0 %v379_v53  ;;  %1053 = vmatprep.subr.mxu1 %v635_v54  ;;  %v786_v53 = vld [vmem:[%s12485_s3 + $0xfd0] sm:$0xff]  ;;  %v523_v54 = vld [vmem:[%s12485_s3 + $0x798] sm:$0xff] }
  0xfb   :  { %983 = vmatpush1.msra.mxu0 %v378_v55  ;;  %1054 = vmatpush1.msra.mxu1 %v634_v56  ;;  %v779_v55 = vld [vmem:[%s12485_s3 + $0xf98] sm:$0xff]  ;;  %v522_v56 = vld [vmem:[%s12485_s3 + $0x790] sm:$0xff] }
  0xfc   :  { %984 = vmatprep.subr.mxu0 %v371_v57  ;;  %1055 = vmatprep.subr.mxu1 %v627_v58  ;;  %v778_v57 = vld [vmem:[%s12485_s3 + $0xf90] sm:$0xff]  ;;  %v515_v58 = vld [vmem:[%s12485_s3 + $0x758] sm:$0xff] }
  0xfd   :  { %985 = vmatpush1.msra.mxu0 %v370_v59  ;;  %1056 = vmatpush1.msra.mxu1 %v626_v60  ;;  %v771_v59 = vld [vmem:[%s12485_s3 + $0xf58] sm:$0xff]  ;;  %v514_v60 = vld [vmem:[%s12485_s3 + $0x750] sm:$0xff] }
  0xfe   :  { %986 = vmatprep.subr.mxu0 %v363_v61  ;;  %1057 = vmatprep.subr.mxu1 %v619_v62  ;;  %v770_v61 = vld [vmem:[%s12485_s3 + $0xf50] sm:$0xff]  ;;  %v507_v62 = vld [vmem:[%s12485_s3 + $0x718] sm:$0xff] }
  0xff   :  { %987 = vmatpush1.msra.mxu0 %v362_v63  ;;  %1058 = vmatpush1.msra.mxu1 %v618_v0  ;;  %v763_v63 = vld [vmem:[%s12485_s3 + $0xf18] sm:$0xff]  ;;  %v506_v0 = vld [vmem:[%s12485_s3 + $0x710] sm:$0xff] }
 0x100   :  { %988 = vmatprep.subr.mxu0 %v355_v1  ;;  %1059 = vmatprep.subr.mxu1 %v611_v2  ;;  %v762_v1 = vld [vmem:[%s12485_s3 + $0xf10] sm:$0xff]  ;;  %v499_v2 = vld [vmem:[%s12485_s3 + $0x6d8] sm:$0xff] }
 0x101   :  { %989 = vmatpush1.msra.mxu0 %v354_v3  ;;  %1060 = vmatpush1.msra.mxu1 %v610_v4  ;;  %v755_v3 = vld [vmem:[%s12485_s3 + $0xed8] sm:$0xff]  ;;  %v498_v4 = vld [vmem:[%s12485_s3 + $0x6d0] sm:$0xff] }
 0x102   :  { %990 = vmatprep.subr.mxu0 %v347_v5  ;;  %1061 = vmatprep.subr.mxu1 %v603_v6  ;;  %v754_v5 = vld [vmem:[%s12485_s3 + $0xed0] sm:$0xff]  ;;  %v491_v6 = vld [vmem:[%s12485_s3 + $0x698] sm:$0xff] }
 0x103   :  { %991 = vmatpush1.msra.mxu0 %v346_v7  ;;  %1062 = vmatpush1.msra.mxu1 %v602_v8  ;;  %v747_v7 = vld [vmem:[%s12485_s3 + $0xe98] sm:$0xff]  ;;  %v490_v8 = vld [vmem:[%s12485_s3 + $0x690] sm:$0xff] }
 0x104   :  { %992 = vmatprep.subr.mxu0 %v339_v9  ;;  %1063 = vmatprep.subr.mxu1 %v595_v10  ;;  %v746_v9 = vld [vmem:[%s12485_s3 + $0xe90] sm:$0xff]  ;;  %v483_v10 = vld [vmem:[%s12485_s3 + $0x658] sm:$0xff] }
 0x105   :  { %993 = vmatpush1.msra.mxu0 %v338_v11  ;;  %1064 = vmatpush1.msra.mxu1 %v594_v12  ;;  %v739_v11 = vld [vmem:[%s12485_s3 + $0xe58] sm:$0xff]  ;;  %v482_v12 = vld [vmem:[%s12485_s3 + $0x650] sm:$0xff] }
 0x106   :  { %994 = vmatprep.subr.mxu0 %v331_v13  ;;  %1065 = vmatprep.subr.mxu1 %v587_v14  ;;  %v738_v13 = vld [vmem:[%s12485_s3 + $0xe50] sm:$0xff]  ;;  %v475_v14 = vld [vmem:[%s12485_s3 + $0x618] sm:$0xff] }
 0x107   :  { %995 = vmatpush1.msra.mxu0 %v330_v15  ;;  %1066 = vmatpush1.msra.mxu1 %v586_v16  ;;  %v731_v15 = vld [vmem:[%s12485_s3 + $0xe18] sm:$0xff]  ;;  %v474_v16 = vld [vmem:[%s12485_s3 + $0x610] sm:$0xff] }
 0x108   :  { %996 = vmatprep.subr.mxu0 %v323_v17  ;;  %1067 = vmatprep.subr.mxu1 %v579_v18  ;;  %v730_v17 = vld [vmem:[%s12485_s3 + $0xe10] sm:$0xff]  ;;  %v467_v18 = vld [vmem:[%s12485_s3 + $0x5d8] sm:$0xff] }
 0x109   :  { %997 = vmatpush1.msra.mxu0 %v322_v19  ;;  %1068 = vmatpush1.msra.mxu1 %v578_v20  ;;  %v723_v19 = vld [vmem:[%s12485_s3 + $0xdd8] sm:$0xff]  ;;  %v466_v20 = vld [vmem:[%s12485_s3 + $0x5d0] sm:$0xff] }
 0x10a   :  { %998 = vmatprep.subr.mxu0 %v315_v24  ;;  %1069 = vmatprep.subr.mxu1 %v571_v27  ;;  %v722_v24 = vld [vmem:[%s12485_s3 + $0xdd0] sm:$0xff]  ;;  %v459_v27 = vld [vmem:[%s12485_s3 + $0x598] sm:$0xff] }
 0x10b   :  { %999 = vmatpush1.msra.mxu0 %v314_v28  ;;  %1070 = vmatpush1.msra.mxu1 %v570_v29  ;;  %v715_v28 = vld [vmem:[%s12485_s3 + $0xd98] sm:$0xff]  ;;  %v458_v29 = vld [vmem:[%s12485_s3 + $0x590] sm:$0xff] }
 0x10c   :  { %1000 = vmatprep.subr.mxu0 %v307_v30  ;;  %1071 = vmatprep.subr.mxu1 %v563_v31  ;;  %v714_v30 = vld [vmem:[%s12485_s3 + $0xd90] sm:$0xff]  ;;  %v451_v31 = vld [vmem:[%s12485_s3 + $0x558] sm:$0xff] }
 0x10d   :  { %1001 = vmatpush1.msra.mxu0 %v306_v32  ;;  %1072 = vmatpush1.msra.mxu1 %v562_v33  ;;  %v707_v32 = vld [vmem:[%s12485_s3 + $0xd58] sm:$0xff]  ;;  %v450_v33 = vld [vmem:[%s12485_s3 + $0x550] sm:$0xff] }
 0x10e   :  { %1002 = vmatprep.subr.mxu0 %v299_v34  ;;  %1073 = vmatprep.subr.mxu1 %v555_v35  ;;  %v706_v34 = vld [vmem:[%s12485_s3 + $0xd50] sm:$0xff]  ;;  %v443_v35 = vld [vmem:[%s12485_s3 + $0x518] sm:$0xff] }
 0x10f   :  { %1003 = vmatpush1.msra.mxu0 %v298_v36  ;;  %1074 = vmatpush1.msra.mxu1 %v554_v37  ;;  %v699_v36 = vld [vmem:[%s12485_s3 + $0xd18] sm:$0xff]  ;;  %v442_v37 = vld [vmem:[%s12485_s3 + $0x510] sm:$0xff] }
 0x110   :  { %1004 = vmatprep.subr.mxu0 %v291_v38  ;;  %1075 = vmatprep.subr.mxu1 %v547_v43  ;;  %v698_v38 = vld [vmem:[%s12485_s3 + $0xd10] sm:$0xff]  ;;  %v435_v43 = vld [vmem:[%s12485_s3 + $0x4d8] sm:$0xff] }
 0x111   :  { %1005 = vmatpush1.msra.mxu0 %v290_v44  ;;  %1076 = vmatpush1.msra.mxu1 %v546_v45  ;;  %v691_v44 = vld [vmem:[%s12485_s3 + $0xcd8] sm:$0xff]  ;;  %v434_v45 = vld [vmem:[%s12485_s3 + $0x4d0] sm:$0xff] }
 0x112   :  { %1006 = vmatprep.subr.mxu0 %v283_v46  ;;  %1077 = vmatprep.subr.mxu1 %v539_v47  ;;  %v690_v46 = vld [vmem:[%s12485_s3 + $0xcd0] sm:$0xff]  ;;  %v427_v47 = vld [vmem:[%s12485_s3 + $0x498] sm:$0xff] }
 0x113   :  { %1007 = vmatpush1.msra.mxu0 %v282_v48  ;;  %1078 = vmatpush1.msra.mxu1 %v538_v49  ;;  %v683_v48 = vld [vmem:[%s12485_s3 + $0xc98] sm:$0xff]  ;;  %v426_v49 = vld [vmem:[%s12485_s3 + $0x490] sm:$0xff] }
 0x114   :  { %1008 = vmatprep.subr.mxu0 %v531_v50  ;;  %1079 = vmatprep.subr.mxu1 %v787_v51  ;;  %v682_v50 = vld [vmem:[%s12485_s3 + $0xc90] sm:$0xff]  ;;  %v419_v51 = vld [vmem:[%s12485_s3 + $0x458] sm:$0xff] }
 0x115   :  { %1009 = vmatpush2.msra.mxu0 %v530_v52  ;;  %1080 = vmatpush2.msra.mxu1 %v786_v53  ;;  %v675_v52 = vld [vmem:[%s12485_s3 + $0xc58] sm:$0xff]  ;;  %v418_v53 = vld [vmem:[%s12485_s3 + $0x450] sm:$0xff] }
 0x116   :  { %1010 = vmatprep.subr.mxu0 %v523_v54  ;;  %1081 = vmatprep.subr.mxu1 %v779_v55  ;;  %v674_v54 = vld [vmem:[%s12485_s3 + $0xc50] sm:$0xff]  ;;  %v411_v55 = vld [vmem:[%s12485_s3 + $0x418] sm:$0xff] }
 0x117   :  { %1011 = vmatpush2.msra.mxu0 %v522_v56  ;;  %1082 = vmatpush2.msra.mxu1 %v778_v57  ;;  %v667_v56 = vld [vmem:[%s12485_s3 + $0xc18] sm:$0xff]  ;;  %v410_v57 = vld [vmem:[%s12485_s3 + $0x410] sm:$0xff] }
 0x118   :  { %1012 = vmatprep.subr.mxu0 %v515_v58  ;;  %1083 = vmatprep.subr.mxu1 %v771_v59  ;;  %v666_v58 = vld [vmem:[%s12485_s3 + $0xc10] sm:$0xff]  ;;  %v405_v59 = vld [vmem:[%s12485_s3 + $0x3e8] sm:$0xff] }
 0x119   :  { %1013 = vmatpush2.msra.mxu0 %v514_v60  ;;  %1084 = vmatpush2.msra.mxu1 %v770_v61  ;;  %v661_v60 = vld [vmem:[%s12485_s3 + $0xbe8] sm:$0xff]  ;;  %v404_v61 = vld [vmem:[%s12485_s3 + $0x3e0] sm:$0xff] }
 0x11a   :  { %1014 = vmatprep.subr.mxu0 %v507_v62  ;;  %1085 = vmatprep.subr.mxu1 %v763_v63  ;;  %v660_v62 = vld [vmem:[%s12485_s3 + $0xbe0] sm:$0xff]  ;;  %v397_v63 = vld [vmem:[%s12485_s3 + $0x3a8] sm:$0xff] }
 0x11b   :  { %1015 = vmatpush2.msra.mxu0 %v506_v0  ;;  %1086 = vmatpush2.msra.mxu1 %v762_v1  ;;  %v653_v0 = vld [vmem:[%s12485_s3 + $0xba8] sm:$0xff]  ;;  %v396_v1 = vld [vmem:[%s12485_s3 + $0x3a0] sm:$0xff] }
 0x11c   :  { %1016 = vmatprep.subr.mxu0 %v499_v2  ;;  %1087 = vmatprep.subr.mxu1 %v755_v3  ;;  %v652_v2 = vld [vmem:[%s12485_s3 + $0xba0] sm:$0xff]  ;;  %v389_v3 = vld [vmem:[%s12485_s3 + $0x368] sm:$0xff] }
 0x11d   :  { %1017 = vmatpush2.msra.mxu0 %v498_v4  ;;  %1088 = vmatpush2.msra.mxu1 %v754_v5  ;;  %v645_v4 = vld [vmem:[%s12485_s3 + $0xb68] sm:$0xff]  ;;  %v388_v5 = vld [vmem:[%s12485_s3 + $0x360] sm:$0xff] }
 0x11e   :  { %1018 = vmatprep.subr.mxu0 %v491_v6  ;;  %1089 = vmatprep.subr.mxu1 %v747_v7  ;;  %v644_v6 = vld [vmem:[%s12485_s3 + $0xb60] sm:$0xff]  ;;  %v381_v7 = vld [vmem:[%s12485_s3 + $0x328] sm:$0xff] }
 0x11f   :  { %1019 = vmatpush2.msra.mxu0 %v490_v8  ;;  %1090 = vmatpush2.msra.mxu1 %v746_v9  ;;  %v637_v8 = vld [vmem:[%s12485_s3 + $0xb28] sm:$0xff]  ;;  %v380_v9 = vld [vmem:[%s12485_s3 + $0x320] sm:$0xff] }
 0x120   :  { %1020 = vmatprep.subr.mxu0 %v483_v10  ;;  %1091 = vmatprep.subr.mxu1 %v739_v11  ;;  %v636_v10 = vld [vmem:[%s12485_s3 + $0xb20] sm:$0xff]  ;;  %v373_v11 = vld [vmem:[%s12485_s3 + $0x2e8] sm:$0xff] }
 0x121   :  { %1021 = vmatpush2.msra.mxu0 %v482_v12  ;;  %1092 = vmatpush2.msra.mxu1 %v738_v13  ;;  %v629_v12 = vld [vmem:[%s12485_s3 + $0xae8] sm:$0xff]  ;;  %v372_v13 = vld [vmem:[%s12485_s3 + $0x2e0] sm:$0xff] }
 0x122   :  { %1022 = vmatprep.subr.mxu0 %v475_v14  ;;  %1093 = vmatprep.subr.mxu1 %v731_v15  ;;  %v628_v14 = vld [vmem:[%s12485_s3 + $0xae0] sm:$0xff]  ;;  %v365_v15 = vld [vmem:[%s12485_s3 + $0x2a8] sm:$0xff] }
 0x123   :  { %1023 = vmatpush2.msra.mxu0 %v474_v16  ;;  %1094 = vmatpush2.msra.mxu1 %v730_v17  ;;  %v621_v16 = vld [vmem:[%s12485_s3 + $0xaa8] sm:$0xff]  ;;  %v364_v17 = vld [vmem:[%s12485_s3 + $0x2a0] sm:$0xff] }
 0x124   :  { %1024 = vmatprep.subr.mxu0 %v467_v18  ;;  %1095 = vmatprep.subr.mxu1 %v723_v19  ;;  %v620_v18 = vld [vmem:[%s12485_s3 + $0xaa0] sm:$0xff]  ;;  %v357_v19 = vld [vmem:[%s12485_s3 + $0x268] sm:$0xff] }
 0x125   :  { %1025 = vmatpush2.msra.mxu0 %v466_v20  ;;  %1096 = vmatpush2.msra.mxu1 %v722_v24  ;;  %v613_v20 = vld [vmem:[%s12485_s3 + $0xa68] sm:$0xff]  ;;  %v356_v24 = vld [vmem:[%s12485_s3 + $0x260] sm:$0xff] }
 0x126   :  { %1026 = vmatprep.subr.mxu0 %v459_v27  ;;  %1097 = vmatprep.subr.mxu1 %v715_v28  ;;  %v612_v27 = vld [vmem:[%s12485_s3 + $0xa60] sm:$0xff]  ;;  %v349_v28 = vld [vmem:[%s12485_s3 + $0x228] sm:$0xff] }
 0x127   :  { %1027 = vmatpush2.msra.mxu0 %v458_v29  ;;  %1098 = vmatpush2.msra.mxu1 %v714_v30  ;;  %v605_v29 = vld [vmem:[%s12485_s3 + $0xa28] sm:$0xff]  ;;  %v348_v30 = vld [vmem:[%s12485_s3 + $0x220] sm:$0xff] }
 0x128   :  { %1028 = vmatprep.subr.mxu0 %v451_v31  ;;  %1099 = vmatprep.subr.mxu1 %v707_v32  ;;  %v604_v31 = vld [vmem:[%s12485_s3 + $0xa20] sm:$0xff]  ;;  %v341_v32 = vld [vmem:[%s12485_s3 + $0x1e8] sm:$0xff] }
 0x129   :  { %1029 = vmatpush2.msra.mxu0 %v450_v33  ;;  %1100 = vmatpush2.msra.mxu1 %v706_v34  ;;  %v597_v33 = vld [vmem:[%s12485_s3 + $0x9e8] sm:$0xff]  ;;  %v340_v34 = vld [vmem:[%s12485_s3 + $0x1e0] sm:$0xff] }
 0x12a   :  { %1030 = vmatprep.subr.mxu0 %v443_v35  ;;  %1101 = vmatprep.subr.mxu1 %v699_v36  ;;  %v596_v35 = vld [vmem:[%s12485_s3 + $0x9e0] sm:$0xff]  ;;  %v333_v36 = vld [vmem:[%s12485_s3 + $0x1a8] sm:$0xff] }
 0x12b   :  { %1031 = vmatpush2.msra.mxu0 %v442_v37  ;;  %1102 = vmatpush2.msra.mxu1 %v698_v38  ;;  %v589_v37 = vld [vmem:[%s12485_s3 + $0x9a8] sm:$0xff]  ;;  %v332_v38 = vld [vmem:[%s12485_s3 + $0x1a0] sm:$0xff] }
 0x12c   :  { %1032 = vmatprep.subr.mxu0 %v435_v43  ;;  %1103 = vmatprep.subr.mxu1 %v691_v44  ;;  %v588_v43 = vld [vmem:[%s12485_s3 + $0x9a0] sm:$0xff]  ;;  %v325_v44 = vld [vmem:[%s12485_s3 + $0x168] sm:$0xff] }
 0x12d   :  { %1033 = vmatpush2.msra.mxu0 %v434_v45  ;;  %1104 = vmatpush2.msra.mxu1 %v690_v46  ;;  %v581_v45 = vld [vmem:[%s12485_s3 + $0x968] sm:$0xff]  ;;  %v324_v46 = vld [vmem:[%s12485_s3 + $0x160] sm:$0xff] }
 0x12e   :  { %1034 = vmatprep.subr.mxu0 %v427_v47  ;;  %1105 = vmatprep.subr.mxu1 %v683_v48  ;;  %v580_v47 = vld [vmem:[%s12485_s3 + $0x960] sm:$0xff]  ;;  %v317_v48 = vld [vmem:[%s12485_s3 + $0x128] sm:$0xff] }
 0x12f   :  { %1035 = vmatpush2.msra.mxu0 %v426_v49  ;;  %1106 = vmatpush2.msra.mxu1 %v682_v50  ;;  %v573_v49 = vld [vmem:[%s12485_s3 + $0x928] sm:$0xff]  ;;  %v316_v50 = vld [vmem:[%s12485_s3 + $0x120] sm:$0xff] }
 0x130   :  { %1036 = vmatprep.subr.mxu0 %v419_v51  ;;  %1107 = vmatprep.subr.mxu1 %v675_v52  ;;  %v572_v51 = vld [vmem:[%s12485_s3 + $0x920] sm:$0xff]  ;;  %v309_v52 = vld [vmem:[%s12485_s3 + $0xe8] sm:$0xff] }
 0x131   :  { %1037 = vmatpush2.msra.mxu0 %v418_v53  ;;  %1108 = vmatpush2.msra.mxu1 %v674_v54  ;;  %v565_v53 = vld [vmem:[%s12485_s3 + $0x8e8] sm:$0xff]  ;;  %v308_v54 = vld [vmem:[%s12485_s3 + $0xe0] sm:$0xff] }
 0x132   :  { %1038 = vmatprep.subr.mxu0 %v411_v55  ;;  %1109 = vmatprep.subr.mxu1 %v667_v56  ;;  %v564_v55 = vld [vmem:[%s12485_s3 + $0x8e0] sm:$0xff]  ;;  %v301_v56 = vld [vmem:[%s12485_s3 + $0xa8] sm:$0xff] }
 0x133   :  { %1039 = vmatpush2.msra.mxu0 %v410_v57  ;;  %1110 = vmatpush2.msra.mxu1 %v666_v58  ;;  %v557_v57 = vld [vmem:[%s12485_s3 + $0x8a8] sm:$0xff]  ;;  %v300_v58 = vld [vmem:[%s12485_s3 + $0xa0] sm:$0xff] }
 0x134   :  { %1041 = vmatmul.mubr.f32.vlgmr.msra.gmra.mxu0 %v6137_v42  ;;  %1112 = vmatmul.mubr.f32.vlgmr.msra.gmra.mxu1 %v6131_v39 }
 0x135   :  { %1118 = vmatprep.subr.mxu0 %v405_v59  ;;  %1189 = vmatprep.subr.mxu1 %v661_v60  ;;  %v556_v59 = vld [vmem:[%s12485_s3 + $0x8a0] sm:$0xff]  ;;  %v293_v60 = vld [vmem:[%s12485_s3 + $0x68] sm:$0xff] }
 0x136   :  { %1119 = vmatpush1.msra.mxu0 %v404_v61  ;;  %1182 = vmatprep.mubr.f32.mxu0 %v6133_v40  ;;  %v549_v61 = vld [vmem:[%s12485_s3 + $0x868] sm:$0xff] }
 0x137   :  { %1190 = vmatpush1.msra.mxu1 %v660_v62  ;;  %1253 = vmatprep.mubr.f32.mxu1 %v6135_v41  ;;  %v292_v62 = vld [vmem:[%s12485_s3 + $0x60] sm:$0xff] }
 0x138   :  { %1120 = vmatprep.subr.mxu0 %v397_v63  ;;  %1191 = vmatprep.subr.mxu1 %v653_v0  ;;  %v548_v63 = vld [vmem:[%s12485_s3 + $0x860] sm:$0xff]  ;;  %v285_v0 = vld [vmem:[%s12485_s3 + $0x28] sm:$0xff] }
 0x139   :  { %1121 = vmatpush1.msra.mxu0 %v396_v1  ;;  %1192 = vmatpush1.msra.mxu1 %v652_v2  ;;  %v541_v1 = vld [vmem:[%s12485_s3 + $0x828] sm:$0xff]  ;;  %v284_v2 = vld [vmem:[%s12485_s3 + $0x20] sm:$0xff] }
 0x13a   :  { %1122 = vmatprep.subr.mxu0 %v389_v3  ;;  %1193 = vmatprep.subr.mxu1 %v645_v4  ;;  %v540_v3 = vld [vmem:[%s12485_s3 + $0x820] sm:$0xff]  ;;  %v533_v4 = vld [vmem:[%s12485_s3 + $0x7e8] sm:$0xff] }
 0x13b   :  { %1123 = vmatpush1.msra.mxu0 %v388_v5  ;;  %1194 = vmatpush1.msra.mxu1 %v644_v6  ;;  %v789_v5 = vld [vmem:[%s12485_s3 + $0xfe8] sm:$0xff]  ;;  %v532_v6 = vld [vmem:[%s12485_s3 + $0x7e0] sm:$0xff] }
 0x13c   :  { %1124 = vmatprep.subr.mxu0 %v381_v7  ;;  %1195 = vmatprep.subr.mxu1 %v637_v8  ;;  %v788_v7 = vld [vmem:[%s12485_s3 + $0xfe0] sm:$0xff]  ;;  %v525_v8 = vld [vmem:[%s12485_s3 + $0x7a8] sm:$0xff] }
 0x13d   :  { %1125 = vmatpush1.msra.mxu0 %v380_v9  ;;  %1196 = vmatpush1.msra.mxu1 %v636_v10  ;;  %v781_v9 = vld [vmem:[%s12485_s3 + $0xfa8] sm:$0xff]  ;;  %v524_v10 = vld [vmem:[%s12485_s3 + $0x7a0] sm:$0xff] }
 0x13e   :  { %1126 = vmatprep.subr.mxu0 %v373_v11  ;;  %1197 = vmatprep.subr.mxu1 %v629_v12  ;;  %v780_v11 = vld [vmem:[%s12485_s3 + $0xfa0] sm:$0xff]  ;;  %v517_v12 = vld [vmem:[%s12485_s3 + $0x768] sm:$0xff] }
 0x13f   :  { %1127 = vmatpush1.msra.mxu0 %v372_v13  ;;  %1198 = vmatpush1.msra.mxu1 %v628_v14  ;;  %v773_v13 = vld [vmem:[%s12485_s3 + $0xf68] sm:$0xff]  ;;  %v516_v14 = vld [vmem:[%s12485_s3 + $0x760] sm:$0xff] }
 0x140   :  { %1128 = vmatprep.subr.mxu0 %v365_v15  ;;  %1199 = vmatprep.subr.mxu1 %v621_v16  ;;  %v772_v15 = vld [vmem:[%s12485_s3 + $0xf60] sm:$0xff]  ;;  %v509_v16 = vld [vmem:[%s12485_s3 + $0x728] sm:$0xff] }
 0x141   :  { %1129 = vmatpush1.msra.mxu0 %v364_v17  ;;  %1200 = vmatpush1.msra.mxu1 %v620_v18  ;;  %v765_v17 = vld [vmem:[%s12485_s3 + $0xf28] sm:$0xff]  ;;  %v508_v18 = vld [vmem:[%s12485_s3 + $0x720] sm:$0xff] }
 0x142   :  { %1130 = vmatprep.subr.mxu0 %v357_v19  ;;  %1201 = vmatprep.subr.mxu1 %v613_v20  ;;  %v764_v19 = vld [vmem:[%s12485_s3 + $0xf20] sm:$0xff]  ;;  %v501_v20 = vld [vmem:[%s12485_s3 + $0x6e8] sm:$0xff] }
 0x143   :  { %1131 = vmatpush1.msra.mxu0 %v356_v24  ;;  %1202 = vmatpush1.msra.mxu1 %v612_v27  ;;  %v757_v24 = vld [vmem:[%s12485_s3 + $0xee8] sm:$0xff]  ;;  %v500_v27 = vld [vmem:[%s12485_s3 + $0x6e0] sm:$0xff] }
 0x144   :  { %1132 = vmatprep.subr.mxu0 %v349_v28  ;;  %1203 = vmatprep.subr.mxu1 %v605_v29  ;;  %v756_v28 = vld [vmem:[%s12485_s3 + $0xee0] sm:$0xff]  ;;  %v493_v29 = vld [vmem:[%s12485_s3 + $0x6a8] sm:$0xff] }
 0x145   :  { %1133 = vmatpush1.msra.mxu0 %v348_v30  ;;  %1204 = vmatpush1.msra.mxu1 %v604_v31  ;;  %v749_v30 = vld [vmem:[%s12485_s3 + $0xea8] sm:$0xff]  ;;  %v492_v31 = vld [vmem:[%s12485_s3 + $0x6a0] sm:$0xff] }
 0x146   :  { %1134 = vmatprep.subr.mxu0 %v341_v32  ;;  %1205 = vmatprep.subr.mxu1 %v597_v33  ;;  %v748_v32 = vld [vmem:[%s12485_s3 + $0xea0] sm:$0xff]  ;;  %v485_v33 = vld [vmem:[%s12485_s3 + $0x668] sm:$0xff] }
 0x147   :  { %1135 = vmatpush1.msra.mxu0 %v340_v34  ;;  %1206 = vmatpush1.msra.mxu1 %v596_v35  ;;  %v741_v34 = vld [vmem:[%s12485_s3 + $0xe68] sm:$0xff]  ;;  %v484_v35 = vld [vmem:[%s12485_s3 + $0x660] sm:$0xff] }
 0x148   :  { %1136 = vmatprep.subr.mxu0 %v333_v36  ;;  %1207 = vmatprep.subr.mxu1 %v589_v37  ;;  %v740_v36 = vld [vmem:[%s12485_s3 + $0xe60] sm:$0xff]  ;;  %v477_v37 = vld [vmem:[%s12485_s3 + $0x628] sm:$0xff] }
 0x149   :  { %1137 = vmatpush1.msra.mxu0 %v332_v38  ;;  %1208 = vmatpush1.msra.mxu1 %v588_v43  ;;  %v733_v38 = vld [vmem:[%s12485_s3 + $0xe28] sm:$0xff]  ;;  %v476_v43 = vld [vmem:[%s12485_s3 + $0x620] sm:$0xff] }
 0x14a   :  { %1138 = vmatprep.subr.mxu0 %v325_v44  ;;  %1209 = vmatprep.subr.mxu1 %v581_v45  ;;  %v732_v44 = vld [vmem:[%s12485_s3 + $0xe20] sm:$0xff]  ;;  %v469_v45 = vld [vmem:[%s12485_s3 + $0x5e8] sm:$0xff] }
 0x14b   :  { %1139 = vmatpush1.msra.mxu0 %v324_v46  ;;  %1210 = vmatpush1.msra.mxu1 %v580_v47  ;;  %v725_v46 = vld [vmem:[%s12485_s3 + $0xde8] sm:$0xff]  ;;  %v468_v47 = vld [vmem:[%s12485_s3 + $0x5e0] sm:$0xff] }
 0x14c   :  { %1140 = vmatprep.subr.mxu0 %v317_v48  ;;  %1211 = vmatprep.subr.mxu1 %v573_v49  ;;  %v724_v48 = vld [vmem:[%s12485_s3 + $0xde0] sm:$0xff]  ;;  %v461_v49 = vld [vmem:[%s12485_s3 + $0x5a8] sm:$0xff] }
 0x14d   :  { %1141 = vmatpush1.msra.mxu0 %v316_v50  ;;  %1212 = vmatpush1.msra.mxu1 %v572_v51  ;;  %v717_v50 = vld [vmem:[%s12485_s3 + $0xda8] sm:$0xff]  ;;  %v460_v51 = vld [vmem:[%s12485_s3 + $0x5a0] sm:$0xff] }
 0x14e   :  { %1142 = vmatprep.subr.mxu0 %v309_v52  ;;  %1213 = vmatprep.subr.mxu1 %v565_v53  ;;  %v716_v52 = vld [vmem:[%s12485_s3 + $0xda0] sm:$0xff]  ;;  %v453_v53 = vld [vmem:[%s12485_s3 + $0x568] sm:$0xff] }
 0x14f   :  { %1143 = vmatpush1.msra.mxu0 %v308_v54  ;;  %1214 = vmatpush1.msra.mxu1 %v564_v55  ;;  %v709_v54 = vld [vmem:[%s12485_s3 + $0xd68] sm:$0xff]  ;;  %v452_v55 = vld [vmem:[%s12485_s3 + $0x560] sm:$0xff] }
 0x150   :  { %1144 = vmatprep.subr.mxu0 %v301_v56  ;;  %1215 = vmatprep.subr.mxu1 %v557_v57  ;;  %v708_v56 = vld [vmem:[%s12485_s3 + $0xd60] sm:$0xff]  ;;  %v445_v57 = vld [vmem:[%s12485_s3 + $0x528] sm:$0xff] }
 0x151   :  { %1145 = vmatpush1.msra.mxu0 %v300_v58  ;;  %1216 = vmatpush1.msra.mxu1 %v556_v59  ;;  %v701_v58 = vld [vmem:[%s12485_s3 + $0xd28] sm:$0xff]  ;;  %v444_v59 = vld [vmem:[%s12485_s3 + $0x520] sm:$0xff] }
 0x152   :  { %1146 = vmatprep.subr.mxu0 %v293_v60  ;;  %1217 = vmatprep.subr.mxu1 %v549_v61  ;;  %v700_v60 = vld [vmem:[%s12485_s3 + $0xd20] sm:$0xff]  ;;  %v437_v61 = vld [vmem:[%s12485_s3 + $0x4e8] sm:$0xff] }
 0x153   :  { %1147 = vmatpush1.msra.mxu0 %v292_v62  ;;  %1218 = vmatpush1.msra.mxu1 %v548_v63  ;;  %v693_v62 = vld [vmem:[%s12485_s3 + $0xce8] sm:$0xff]  ;;  %v436_v63 = vld [vmem:[%s12485_s3 + $0x4e0] sm:$0xff] }
 0x154   :  { %1148 = vmatprep.subr.mxu0 %v285_v0  ;;  %1219 = vmatprep.subr.mxu1 %v541_v1  ;;  %v692_v0 = vld [vmem:[%s12485_s3 + $0xce0] sm:$0xff]  ;;  %v429_v1 = vld [vmem:[%s12485_s3 + $0x4a8] sm:$0xff] }
 0x155   :  { %1149 = vmatpush1.msra.mxu0 %v284_v2  ;;  %1220 = vmatpush1.msra.mxu1 %v540_v3  ;;  %v685_v2 = vld [vmem:[%s12485_s3 + $0xca8] sm:$0xff]  ;;  %v428_v3 = vld [vmem:[%s12485_s3 + $0x4a0] sm:$0xff] }
 0x156   :  { %1150 = vmatprep.subr.mxu0 %v533_v4  ;;  %1221 = vmatprep.subr.mxu1 %v789_v5  ;;  %v684_v4 = vld [vmem:[%s12485_s3 + $0xca0] sm:$0xff]  ;;  %v421_v5 = vld [vmem:[%s12485_s3 + $0x468] sm:$0xff] }
 0x157   :  { %1151 = vmatpush2.msra.mxu0 %v532_v6  ;;  %1222 = vmatpush2.msra.mxu1 %v788_v7  ;;  %v677_v6 = vld [vmem:[%s12485_s3 + $0xc68] sm:$0xff]  ;;  %v420_v7 = vld [vmem:[%s12485_s3 + $0x460] sm:$0xff] }
 0x158   :  { %1152 = vmatprep.subr.mxu0 %v525_v8  ;;  %1223 = vmatprep.subr.mxu1 %v781_v9  ;;  %v676_v8 = vld [vmem:[%s12485_s3 + $0xc60] sm:$0xff]  ;;  %v413_v9 = vld [vmem:[%s12485_s3 + $0x428] sm:$0xff] }
 0x159   :  { %1153 = vmatpush2.msra.mxu0 %v524_v10  ;;  %1224 = vmatpush2.msra.mxu1 %v780_v11  ;;  %v669_v10 = vld [vmem:[%s12485_s3 + $0xc28] sm:$0xff]  ;;  %v412_v11 = vld [vmem:[%s12485_s3 + $0x420] sm:$0xff] }
 0x15a   :  { %1154 = vmatprep.subr.mxu0 %v517_v12  ;;  %1225 = vmatprep.subr.mxu1 %v773_v13  ;;  %v668_v12 = vld [vmem:[%s12485_s3 + $0xc20] sm:$0xff]  ;;  %v407_v13 = vld [vmem:[%s12485_s3 + $0x3f8] sm:$0xff] }
 0x15b   :  { %1155 = vmatpush2.msra.mxu0 %v516_v14  ;;  %1226 = vmatpush2.msra.mxu1 %v772_v15  ;;  %v663_v14 = vld [vmem:[%s12485_s3 + $0xbf8] sm:$0xff]  ;;  %v406_v15 = vld [vmem:[%s12485_s3 + $0x3f0] sm:$0xff] }
 0x15c   :  { %1156 = vmatprep.subr.mxu0 %v509_v16  ;;  %1227 = vmatprep.subr.mxu1 %v765_v17  ;;  %v662_v16 = vld [vmem:[%s12485_s3 + $0xbf0] sm:$0xff]  ;;  %v399_v17 = vld [vmem:[%s12485_s3 + $0x3b8] sm:$0xff] }
 0x15d   :  { %1157 = vmatpush2.msra.mxu0 %v508_v18  ;;  %1228 = vmatpush2.msra.mxu1 %v764_v19  ;;  %v655_v18 = vld [vmem:[%s12485_s3 + $0xbb8] sm:$0xff]  ;;  %v398_v19 = vld [vmem:[%s12485_s3 + $0x3b0] sm:$0xff] }
 0x15e   :  { %1158 = vmatprep.subr.mxu0 %v501_v20  ;;  %1229 = vmatprep.subr.mxu1 %v757_v24  ;;  %v654_v20 = vld [vmem:[%s12485_s3 + $0xbb0] sm:$0xff]  ;;  %v391_v24 = vld [vmem:[%s12485_s3 + $0x378] sm:$0xff] }
 0x15f   :  { %1159 = vmatpush2.msra.mxu0 %v500_v27  ;;  %1230 = vmatpush2.msra.mxu1 %v756_v28  ;;  %v647_v27 = vld [vmem:[%s12485_s3 + $0xb78] sm:$0xff]  ;;  %v646_v28 = vld [vmem:[%s12485_s3 + $0xb70] sm:$0xff] }
 0x160   :  { %1160 = vmatprep.subr.mxu0 %v493_v29  ;;  %1231 = vmatprep.subr.mxu1 %v749_v30  ;;  %v639_v29 = vld [vmem:[%s12485_s3 + $0xb38] sm:$0xff]  ;;  %v382_v30 = vld [vmem:[%s12485_s3 + $0x330] sm:$0xff] }
 0x161   :  { %1161 = vmatpush2.msra.mxu0 %v492_v31  ;;  %1232 = vmatpush2.msra.mxu1 %v748_v32  ;;  %v638_v31 = vld [vmem:[%s12485_s3 + $0xb30] sm:$0xff]  ;;  %v375_v32 = vld [vmem:[%s12485_s3 + $0x2f8] sm:$0xff] }
 0x162   :  { %1162 = vmatprep.subr.mxu0 %v485_v33  ;;  %1233 = vmatprep.subr.mxu1 %v741_v34  ;;  %v631_v33 = vld [vmem:[%s12485_s3 + $0xaf8] sm:$0xff]  ;;  %v374_v34 = vld [vmem:[%s12485_s3 + $0x2f0] sm:$0xff] }
 0x163   :  { %1163 = vmatpush2.msra.mxu0 %v484_v35  ;;  %1234 = vmatpush2.msra.mxu1 %v740_v36  ;;  %v630_v35 = vld [vmem:[%s12485_s3 + $0xaf0] sm:$0xff]  ;;  %v367_v36 = vld [vmem:[%s12485_s3 + $0x2b8] sm:$0xff] }
 0x164   :  { %1164 = vmatprep.subr.mxu0 %v477_v37  ;;  %1235 = vmatprep.subr.mxu1 %v733_v38  ;;  %v623_v37 = vld [vmem:[%s12485_s3 + $0xab8] sm:$0xff]  ;;  %v366_v38 = vld [vmem:[%s12485_s3 + $0x2b0] sm:$0xff] }
 0x165   :  { %1165 = vmatpush2.msra.mxu0 %v476_v43  ;;  %1236 = vmatpush2.msra.mxu1 %v732_v44  ;;  %v622_v43 = vld [vmem:[%s12485_s3 + $0xab0] sm:$0xff]  ;;  %v359_v44 = vld [vmem:[%s12485_s3 + $0x278] sm:$0xff] }
 0x166   :  { %1166 = vmatprep.subr.mxu0 %v469_v45  ;;  %1237 = vmatprep.subr.mxu1 %v725_v46  ;;  %v615_v45 = vld [vmem:[%s12485_s3 + $0xa78] sm:$0xff]  ;;  %v358_v46 = vld [vmem:[%s12485_s3 + $0x270] sm:$0xff] }
 0x167   :  { %1167 = vmatpush2.msra.mxu0 %v468_v47  ;;  %1238 = vmatpush2.msra.mxu1 %v724_v48  ;;  %v614_v47 = vld [vmem:[%s12485_s3 + $0xa70] sm:$0xff]  ;;  %v351_v48 = vld [vmem:[%s12485_s3 + $0x238] sm:$0xff] }
 0x168   :  { %1168 = vmatprep.subr.mxu0 %v461_v49  ;;  %1239 = vmatprep.subr.mxu1 %v717_v50  ;;  %v607_v49 = vld [vmem:[%s12485_s3 + $0xa38] sm:$0xff]  ;;  %v350_v50 = vld [vmem:[%s12485_s3 + $0x230] sm:$0xff] }
 0x169   :  { %1169 = vmatpush2.msra.mxu0 %v460_v51  ;;  %1240 = vmatpush2.msra.mxu1 %v716_v52  ;;  %v606_v51 = vld [vmem:[%s12485_s3 + $0xa30] sm:$0xff]  ;;  %v343_v52 = vld [vmem:[%s12485_s3 + $0x1f8] sm:$0xff] }
 0x16a   :  { %1170 = vmatprep.subr.mxu0 %v453_v53  ;;  %1241 = vmatprep.subr.mxu1 %v709_v54  ;;  %v599_v53 = vld [vmem:[%s12485_s3 + $0x9f8] sm:$0xff]  ;;  %v342_v54 = vld [vmem:[%s12485_s3 + $0x1f0] sm:$0xff] }
 0x16b   :  { %1171 = vmatpush2.msra.mxu0 %v452_v55  ;;  %1242 = vmatpush2.msra.mxu1 %v708_v56  ;;  %v598_v55 = vld [vmem:[%s12485_s3 + $0x9f0] sm:$0xff]  ;;  %v335_v56 = vld [vmem:[%s12485_s3 + $0x1b8] sm:$0xff] }
 0x16c   :  { %1172 = vmatprep.subr.mxu0 %v445_v57  ;;  %1243 = vmatprep.subr.mxu1 %v701_v58  ;;  %v591_v57 = vld [vmem:[%s12485_s3 + $0x9b8] sm:$0xff]  ;;  %v334_v58 = vld [vmem:[%s12485_s3 + $0x1b0] sm:$0xff] }
 0x16d   :  { %1173 = vmatpush2.msra.mxu0 %v444_v59  ;;  %1244 = vmatpush2.msra.mxu1 %v700_v60  ;;  %v590_v59 = vld [vmem:[%s12485_s3 + $0x9b0] sm:$0xff]  ;;  %v327_v60 = vld [vmem:[%s12485_s3 + $0x178] sm:$0xff] }
 0x16e   :  { %1174 = vmatprep.subr.mxu0 %v437_v61  ;;  %1245 = vmatprep.subr.mxu1 %v693_v62  ;;  %v583_v61 = vld [vmem:[%s12485_s3 + $0x978] sm:$0xff]  ;;  %v326_v62 = vld [vmem:[%s12485_s3 + $0x170] sm:$0xff] }
 0x16f   :  { %1175 = vmatpush2.msra.mxu0 %v436_v63  ;;  %1246 = vmatpush2.msra.mxu1 %v692_v0  ;;  %v582_v63 = vld [vmem:[%s12485_s3 + $0x970] sm:$0xff]  ;;  %v319_v0 = vld [vmem:[%s12485_s3 + $0x138] sm:$0xff] }
 0x170   :  { %1176 = vmatprep.subr.mxu0 %v429_v1  ;;  %1247 = vmatprep.subr.mxu1 %v685_v2  ;;  %v575_v1 = vld [vmem:[%s12485_s3 + $0x938] sm:$0xff]  ;;  %v318_v2 = vld [vmem:[%s12485_s3 + $0x130] sm:$0xff] }
 0x171   :  { %1177 = vmatpush2.msra.mxu0 %v428_v3  ;;  %1248 = vmatpush2.msra.mxu1 %v684_v4  ;;  %v574_v3 = vld [vmem:[%s12485_s3 + $0x930] sm:$0xff]  ;;  %v311_v4 = vld [vmem:[%s12485_s3 + $0xf8] sm:$0xff] }
 0x172   :  { %1178 = vmatprep.subr.mxu0 %v421_v5  ;;  %1249 = vmatprep.subr.mxu1 %v677_v6  ;;  %v567_v5 = vld [vmem:[%s12485_s3 + $0x8f8] sm:$0xff]  ;;  %v310_v6 = vld [vmem:[%s12485_s3 + $0xf0] sm:$0xff] }
 0x173   :  { %1179 = vmatpush2.msra.mxu0 %v420_v7  ;;  %1250 = vmatpush2.msra.mxu1 %v676_v8  ;;  %v566_v7 = vld [vmem:[%s12485_s3 + $0x8f0] sm:$0xff]  ;;  %v303_v8 = vld [vmem:[%s12485_s3 + $0xb8] sm:$0xff] }
 0x174   :  { %1180 = vmatprep.subr.mxu0 %v413_v9  ;;  %1251 = vmatprep.subr.mxu1 %v669_v10  ;;  %v559_v9 = vld [vmem:[%s12485_s3 + $0x8b8] sm:$0xff]  ;;  %v302_v10 = vld [vmem:[%s12485_s3 + $0xb0] sm:$0xff] }
 0x175   :  { %1181 = vmatpush2.msra.mxu0 %v412_v11  ;;  %1252 = vmatpush2.msra.mxu1 %v668_v12  ;;  %v558_v11 = vld [vmem:[%s12485_s3 + $0x8b0] sm:$0xff]  ;;  %v295_v12 = vld [vmem:[%s12485_s3 + $0x78] sm:$0xff] }
 0x176   :  { %1183 = vmatmul.mubr.f32.vlgmr.msra.gmra.mxu0 %v6137_v42  ;;  %1254 = vmatmul.mubr.f32.vlgmr.msra.gmra.mxu1 %v6131_v39 }
 0x177   :  { %1260 = vmatprep.subr.mxu0 %v407_v13  ;;  %1331 = vmatprep.subr.mxu1 %v663_v14  ;;  %v551_v13 = vld [vmem:[%s12485_s3 + $0x878] sm:$0xff]  ;;  %v294_v14 = vld [vmem:[%s12485_s3 + $0x70] sm:$0xff] }
 0x178   :  { %1261 = vmatpush1.msra.mxu0 %v406_v15  ;;  %1324 = vmatprep.mubr.f32.mxu0 %v6133_v40  ;;  %v390_v40 = vld [vmem:[%s12485_s3 + $0x370] sm:$0xff] }
 0x179   :  { %1332 = vmatpush1.msra.mxu1 %v662_v16  ;;  %1395 = vmatprep.mubr.f32.mxu1 %v6135_v41  ;;  %v383_v41 = vld [vmem:[%s12485_s3 + $0x338] sm:$0xff]  ;;  %v550_v15 = vld [vmem:[%s12485_s3 + $0x870] sm:$0xff] }
 0x17a   :  { %1262 = vmatprep.subr.mxu0 %v399_v17  ;;  %1333 = vmatprep.subr.mxu1 %v655_v18  ;;  %v287_v16 = vld [vmem:[%s12485_s3 + $0x38] sm:$0xff]  ;;  %v286_v18 = vld [vmem:[%s12485_s3 + $0x30] sm:$0xff] }
 0x17b   :  { %1263 = vmatpush1.msra.mxu0 %v398_v19  ;;  %1334 = vmatpush1.msra.mxu1 %v654_v20  ;;  %v543_v17 = vld [vmem:[%s12485_s3 + $0x838] sm:$0xff]  ;;  %v542_v19 = vld [vmem:[%s12485_s3 + $0x830] sm:$0xff] }
 0x17c   :  { %1264 = vmatprep.subr.mxu0 %v391_v24  ;;  %1335 = vmatprep.subr.mxu1 %v647_v27  ;;  %v535_v20 = vld [vmem:[%s12485_s3 + $0x7f8] sm:$0xff]  ;;  %v534_v27 = vld [vmem:[%s12485_s3 + $0x7f0] sm:$0xff] }
 0x17d   :  { %1265 = vmatpush1.msra.mxu0 %v390_v40  ;;  %1336 = vmatpush1.msra.mxu1 %v646_v28  ;;  %v791_v24 = vld [vmem:[%s12485_s3 + $0xff8] sm:$0xff]  ;;  %v790_v40 = vld [vmem:[%s12485_s3 + $0xff0] sm:$0xff] }
 0x17e   :  { %1266 = vmatprep.subr.mxu0 %v383_v41  ;;  %1337 = vmatprep.subr.mxu1 %v639_v29  ;;  %v527_v28 = vld [vmem:[%s12485_s3 + $0x7b8] sm:$0xff]  ;;  %v526_v29 = vld [vmem:[%s12485_s3 + $0x7b0] sm:$0xff] }
 0x17f   :  { %1267 = vmatpush1.msra.mxu0 %v382_v30  ;;  %1338 = vmatpush1.msra.mxu1 %v638_v31  ;;  %v783_v41 = vld [vmem:[%s12485_s3 + $0xfb8] sm:$0xff]  ;;  %v782_v30 = vld [vmem:[%s12485_s3 + $0xfb0] sm:$0xff] }
 0x180   :  { %1268 = vmatprep.subr.mxu0 %v375_v32  ;;  %1339 = vmatprep.subr.mxu1 %v631_v33  ;;  %v519_v31 = vld [vmem:[%s12485_s3 + $0x778] sm:$0xff]  ;;  %v518_v33 = vld [vmem:[%s12485_s3 + $0x770] sm:$0xff] }
 0x181   :  { %1269 = vmatpush1.msra.mxu0 %v374_v34  ;;  %1340 = vmatpush1.msra.mxu1 %v630_v35  ;;  %v775_v32 = vld [vmem:[%s12485_s3 + $0xf78] sm:$0xff]  ;;  %v774_v34 = vld [vmem:[%s12485_s3 + $0xf70] sm:$0xff] }
 0x182   :  { %1270 = vmatprep.subr.mxu0 %v367_v36  ;;  %1341 = vmatprep.subr.mxu1 %v623_v37  ;;  %v511_v35 = vld [vmem:[%s12485_s3 + $0x738] sm:$0xff]  ;;  %v510_v37 = vld [vmem:[%s12485_s3 + $0x730] sm:$0xff] }
 0x183   :  { %1271 = vmatpush1.msra.mxu0 %v366_v38  ;;  %1342 = vmatpush1.msra.mxu1 %v622_v43  ;;  %v767_v36 = vld [vmem:[%s12485_s3 + $0xf38] sm:$0xff]  ;;  %v766_v38 = vld [vmem:[%s12485_s3 + $0xf30] sm:$0xff] }
 0x184   :  { %1272 = vmatprep.subr.mxu0 %v359_v44  ;;  %1343 = vmatprep.subr.mxu1 %v615_v45  ;;  %v503_v43 = vld [vmem:[%s12485_s3 + $0x6f8] sm:$0xff]  ;;  %v502_v45 = vld [vmem:[%s12485_s3 + $0x6f0] sm:$0xff] }
 0x185   :  { %1273 = vmatpush1.msra.mxu0 %v358_v46  ;;  %1344 = vmatpush1.msra.mxu1 %v614_v47  ;;  %v759_v44 = vld [vmem:[%s12485_s3 + $0xef8] sm:$0xff]  ;;  %v758_v46 = vld [vmem:[%s12485_s3 + $0xef0] sm:$0xff] }
 0x186   :  { %1274 = vmatprep.subr.mxu0 %v351_v48  ;;  %1345 = vmatprep.subr.mxu1 %v607_v49  ;;  %v495_v47 = vld [vmem:[%s12485_s3 + $0x6b8] sm:$0xff]  ;;  %v494_v49 = vld [vmem:[%s12485_s3 + $0x6b0] sm:$0xff] }
 0x187   :  { %1275 = vmatpush1.msra.mxu0 %v350_v50  ;;  %1346 = vmatpush1.msra.mxu1 %v606_v51  ;;  %v751_v48 = vld [vmem:[%s12485_s3 + $0xeb8] sm:$0xff]  ;;  %v750_v50 = vld [vmem:[%s12485_s3 + $0xeb0] sm:$0xff] }
 0x188   :  { %1276 = vmatprep.subr.mxu0 %v343_v52  ;;  %1347 = vmatprep.subr.mxu1 %v599_v53  ;;  %v487_v51 = vld [vmem:[%s12485_s3 + $0x678] sm:$0xff]  ;;  %v486_v53 = vld [vmem:[%s12485_s3 + $0x670] sm:$0xff] }
 0x189   :  { %1277 = vmatpush1.msra.mxu0 %v342_v54  ;;  %1348 = vmatpush1.msra.mxu1 %v598_v55  ;;  %v743_v52 = vld [vmem:[%s12485_s3 + $0xe78] sm:$0xff]  ;;  %v742_v54 = vld [vmem:[%s12485_s3 + $0xe70] sm:$0xff] }
 0x18a   :  { %1278 = vmatprep.subr.mxu0 %v335_v56  ;;  %1349 = vmatprep.subr.mxu1 %v591_v57  ;;  %v479_v55 = vld [vmem:[%s12485_s3 + $0x638] sm:$0xff]  ;;  %v478_v57 = vld [vmem:[%s12485_s3 + $0x630] sm:$0xff] }
 0x18b   :  { %1279 = vmatpush1.msra.mxu0 %v334_v58  ;;  %1350 = vmatpush1.msra.mxu1 %v590_v59  ;;  %v735_v56 = vld [vmem:[%s12485_s3 + $0xe38] sm:$0xff]  ;;  %v734_v58 = vld [vmem:[%s12485_s3 + $0xe30] sm:$0xff] }
 0x18c   :  { %1280 = vmatprep.subr.mxu0 %v327_v60  ;;  %1351 = vmatprep.subr.mxu1 %v583_v61  ;;  %v471_v59 = vld [vmem:[%s12485_s3 + $0x5f8] sm:$0xff]  ;;  %v470_v61 = vld [vmem:[%s12485_s3 + $0x5f0] sm:$0xff] }
 0x18d   :  { %1281 = vmatpush1.msra.mxu0 %v326_v62  ;;  %1352 = vmatpush1.msra.mxu1 %v582_v63  ;;  %v727_v60 = vld [vmem:[%s12485_s3 + $0xdf8] sm:$0xff]  ;;  %v726_v62 = vld [vmem:[%s12485_s3 + $0xdf0] sm:$0xff] }
 0x18e   :  { %1282 = vmatprep.subr.mxu0 %v319_v0  ;;  %1353 = vmatprep.subr.mxu1 %v575_v1  ;;  %v463_v63 = vld [vmem:[%s12485_s3 + $0x5b8] sm:$0xff]  ;;  %v462_v1 = vld [vmem:[%s12485_s3 + $0x5b0] sm:$0xff] }
 0x18f   :  { %1283 = vmatpush1.msra.mxu0 %v318_v2  ;;  %1354 = vmatpush1.msra.mxu1 %v574_v3  ;;  %v719_v0 = vld [vmem:[%s12485_s3 + $0xdb8] sm:$0xff]  ;;  %v718_v2 = vld [vmem:[%s12485_s3 + $0xdb0] sm:$0xff] }
 0x190   :  { %1284 = vmatprep.subr.mxu0 %v311_v4  ;;  %1355 = vmatprep.subr.mxu1 %v567_v5  ;;  %v455_v3 = vld [vmem:[%s12485_s3 + $0x578] sm:$0xff]  ;;  %v454_v5 = vld [vmem:[%s12485_s3 + $0x570] sm:$0xff] }
 0x191   :  { %1285 = vmatpush1.msra.mxu0 %v310_v6  ;;  %1356 = vmatpush1.msra.mxu1 %v566_v7  ;;  %v711_v4 = vld [vmem:[%s12485_s3 + $0xd78] sm:$0xff]  ;;  %v710_v6 = vld [vmem:[%s12485_s3 + $0xd70] sm:$0xff] }
 0x192   :  { %1286 = vmatprep.subr.mxu0 %v303_v8  ;;  %1357 = vmatprep.subr.mxu1 %v559_v9  ;;  %v447_v7 = vld [vmem:[%s12485_s3 + $0x538] sm:$0xff]  ;;  %v446_v9 = vld [vmem:[%s12485_s3 + $0x530] sm:$0xff] }
 0x193   :  { %1287 = vmatpush1.msra.mxu0 %v302_v10  ;;  %1358 = vmatpush1.msra.mxu1 %v558_v11  ;;  %v703_v8 = vld [vmem:[%s12485_s3 + $0xd38] sm:$0xff]  ;;  %v702_v10 = vld [vmem:[%s12485_s3 + $0xd30] sm:$0xff] }
 0x194   :  { %1288 = vmatprep.subr.mxu0 %v295_v12  ;;  %1359 = vmatprep.subr.mxu1 %v551_v13  ;;  %v439_v11 = vld [vmem:[%s12485_s3 + $0x4f8] sm:$0xff]  ;;  %v438_v13 = vld [vmem:[%s12485_s3 + $0x4f0] sm:$0xff] }
 0x195   :  { %1289 = vmatpush1.msra.mxu0 %v294_v14  ;;  %1360 = vmatpush1.msra.mxu1 %v550_v15  ;;  %v695_v12 = vld [vmem:[%s12485_s3 + $0xcf8] sm:$0xff]  ;;  %v694_v14 = vld [vmem:[%s12485_s3 + $0xcf0] sm:$0xff] }
 0x196   :  { %1290 = vmatprep.subr.mxu0 %v287_v16  ;;  %1361 = vmatprep.subr.mxu1 %v543_v17  ;;  %v431_v15 = vld [vmem:[%s12485_s3 + $0x4b8] sm:$0xff]  ;;  %v430_v17 = vld [vmem:[%s12485_s3 + $0x4b0] sm:$0xff] }
 0x197   :  { %1291 = vmatpush1.msra.mxu0 %v286_v18  ;;  %1362 = vmatpush1.msra.mxu1 %v542_v19  ;;  %v687_v16 = vld [vmem:[%s12485_s3 + $0xcb8] sm:$0xff]  ;;  %v686_v18 = vld [vmem:[%s12485_s3 + $0xcb0] sm:$0xff] }
 0x198   :  { %1292 = vmatprep.subr.mxu0 %v535_v20  ;;  %1363 = vmatprep.subr.mxu1 %v791_v24  ;;  %v423_v19 = vld [vmem:[%s12485_s3 + $0x478] sm:$0xff]  ;;  %v7284_v24 = vld [vmem:[%s12487_s4] sm:$0xff] }
 0x199   :  { %1293 = vmatpush2.msra.mxu0 %v534_v27  ;;  %1364 = vmatpush2.msra.mxu1 %v790_v40  ;;  %v679_v20 = vld [vmem:[%s12485_s3 + $0xc78] sm:$0xff]  ;;  %v422_v27 = vld [vmem:[%s12485_s3 + $0x470] sm:$0xff] }
 0x19a   :  { %1294 = vmatprep.subr.mxu0 %v527_v28  ;;  %1365 = vmatprep.subr.mxu1 %v783_v41  ;;  %v678_v40 = vld [vmem:[%s12485_s3 + $0xc70] sm:$0xff]  ;;  %v801_v28 = vrot.slane %v7284_v24, %v6122_v25  ;;  %v415_v41 = vld [vmem:[%s12485_s3 + $0x438] sm:$0xff] }
 0x19b   :  { %1295 = vmatpush2.msra.mxu0 %v526_v29  ;;  %1366 = vmatpush2.msra.mxu1 %v782_v30  ;;  %v671_v29 = vld [vmem:[%s12485_s3 + $0xc38] sm:$0xff] }
 0x19c   :  { %1296 = vmatprep.subr.mxu0 %v519_v31  ;;  %1367 = vmatprep.subr.mxu1 %v775_v32  ;;  %v414_v32 = vld [vmem:[%s12485_s3 + $0x430] sm:$0xff] }
 0x19d   :  { %1297 = vmatpush2.msra.mxu0 %v518_v33  ;;  %1368 = vmatpush2.msra.mxu1 %v774_v34  ;;  %v670_v33 = vld [vmem:[%s12485_s3 + $0xc30] sm:$0xff] }
 0x19e   :  { %1298 = vmatprep.subr.mxu0 %v511_v35  ;;  %1369 = vmatprep.subr.mxu1 %v767_v36  ;;  %v1606_v35 = vld [vmem:[%s12488_s5 + $0x620] sm:$0xff] }
 0x19f   :  { %1299 = vmatpush2.msra.mxu0 %v510_v37  ;;  %1370 = vmatpush2.msra.mxu1 %v766_v38  ;;  %v2022_v37 = vld [vmem:[%s12488_s5 + $0x1320] sm:$0xff]  ;;  %v1605_v38 = vld [vmem:[%s12488_s5 + $0x618] sm:$0xff] }
 0x1a0   :  { %1300 = vmatprep.subr.mxu0 %v503_v43  ;;  %1371 = vmatprep.subr.mxu1 %v759_v44  ;;  %v2021_v44 = vld [vmem:[%s12488_s5 + $0x1318] sm:$0xff] }
 0x1a1   :  { %1301 = vmatpush2.msra.mxu0 %v502_v45  ;;  %1372 = vmatpush2.msra.mxu1 %v758_v46  ;;  %v1593_v45 = vld [vmem:[%s12488_s5 + $0x5b8] sm:$0xff] }
 0x1a2   :  { %1302 = vmatprep.subr.mxu0 %v495_v47  ;;  %1373 = vmatprep.subr.mxu1 %v751_v48  ;;  %v2009_v47 = vld [vmem:[%s12488_s5 + $0x12b8] sm:$0xff]  ;;  %v1592_v48 = vld [vmem:[%s12488_s5 + $0x5b0] sm:$0xff] }
 0x1a3   :  { %1303 = vmatpush2.msra.mxu0 %v494_v49  ;;  %1374 = vmatpush2.msra.mxu1 %v750_v50  ;;  %v1579_v50 = vld [vmem:[%s12488_s5 + $0x548] sm:$0xff] }
 0x1a4   :  { %1304 = vmatprep.subr.mxu0 %v487_v51  ;;  %1375 = vmatprep.subr.mxu1 %v743_v52  ;;  %v1996_v51 = vld [vmem:[%s12488_s5 + $0x1250] sm:$0xff]  ;;  %v1567_v52 = vld [vmem:[%s12488_s5 + $0x4e8] sm:$0xff] }
 0x1a5   :  { %1305 = vmatpush2.msra.mxu0 %v486_v53  ;;  %1376 = vmatpush2.msra.mxu1 %v742_v54  ;;  %v1995_v53 = vld [vmem:[%s12488_s5 + $0x1248] sm:$0xff]  ;;  %v1566_v54 = vld [vmem:[%s12488_s5 + $0x4e0] sm:$0xff] }
 0x1a6   :  { %1306 = vmatprep.subr.mxu0 %v479_v55  ;;  %1377 = vmatprep.subr.mxu1 %v735_v56  ;;  %v1983_v55 = vld [vmem:[%s12488_s5 + $0x11e8] sm:$0xff]  ;;  %v1554_v56 = vld [vmem:[%s12488_s5 + $0x480] sm:$0xff] }
 0x1a7   :  { %1307 = vmatpush2.msra.mxu0 %v478_v57  ;;  %1378 = vmatpush2.msra.mxu1 %v734_v58  ;;  %v1982_v57 = vld [vmem:[%s12488_s5 + $0x11e0] sm:$0xff]  ;;  %v1553_v58 = vld [vmem:[%s12488_s5 + $0x478] sm:$0xff] }
 0x1a8   :  { %1308 = vmatprep.subr.mxu0 %v471_v59  ;;  %1379 = vmatprep.subr.mxu1 %v727_v60  ;;  %v1970_v59 = vld [vmem:[%s12488_s5 + $0x1180] sm:$0xff]  ;;  %v1541_v60 = vld [vmem:[%s12488_s5 + $0x418] sm:$0xff] }
 0x1a9   :  { %1309 = vmatpush2.msra.mxu0 %v470_v61  ;;  %1380 = vmatpush2.msra.mxu1 %v726_v62  ;;  %v1969_v61 = vld [vmem:[%s12488_s5 + $0x1178] sm:$0xff]  ;;  %v1540_v62 = vld [vmem:[%s12488_s5 + $0x410] sm:$0xff] }
 0x1aa   :  { %1310 = vmatprep.subr.mxu0 %v463_v63  ;;  %1381 = vmatprep.subr.mxu1 %v719_v0  ;;  %v1957_v63 = vld [vmem:[%s12488_s5 + $0x1118] sm:$0xff]  ;;  %v1528_v0 = vld [vmem:[%s12488_s5 + $0x3b0] sm:$0xff] }
 0x1ab   :  { %1311 = vmatpush2.msra.mxu0 %v462_v1  ;;  %1382 = vmatpush2.msra.mxu1 %v718_v2  ;;  %v1956_v1 = vld [vmem:[%s12488_s5 + $0x1110] sm:$0xff]  ;;  %v1527_v2 = vld [vmem:[%s12488_s5 + $0x3a8] sm:$0xff] }
 0x1ac   :  { %1312 = vmatprep.subr.mxu0 %v455_v3  ;;  %1383 = vmatprep.subr.mxu1 %v711_v4  ;;  %v1944_v3 = vld [vmem:[%s12488_s5 + $0x10b0] sm:$0xff]  ;;  %v1515_v4 = vld [vmem:[%s12488_s5 + $0x348] sm:$0xff] }
 0x1ad   :  { %1313 = vmatpush2.msra.mxu0 %v454_v5  ;;  %1384 = vmatpush2.msra.mxu1 %v710_v6  ;;  %v1943_v5 = vld [vmem:[%s12488_s5 + $0x10a8] sm:$0xff]  ;;  %v1514_v6 = vld [vmem:[%s12488_s5 + $0x340] sm:$0xff] }
 0x1ae   :  { %1314 = vmatprep.subr.mxu0 %v447_v7  ;;  %1385 = vmatprep.subr.mxu1 %v703_v8  ;;  %v1931_v7 = vld [vmem:[%s12488_s5 + $0x1048] sm:$0xff]  ;;  %v1502_v8 = vld [vmem:[%s12488_s5 + $0x2e0] sm:$0xff] }
 0x1af   :  { %1315 = vmatpush2.msra.mxu0 %v446_v9  ;;  %1386 = vmatpush2.msra.mxu1 %v702_v10  ;;  %v1930_v9 = vld [vmem:[%s12488_s5 + $0x1040] sm:$0xff]  ;;  %v1501_v10 = vld [vmem:[%s12488_s5 + $0x2d8] sm:$0xff] }
 0x1b0   :  { %1316 = vmatprep.subr.mxu0 %v439_v11  ;;  %1387 = vmatprep.subr.mxu1 %v695_v12  ;;  %v1918_v11 = vld [vmem:[%s12488_s5 + $0xfe0] sm:$0xff]  ;;  %v1489_v12 = vld [vmem:[%s12488_s5 + $0x278] sm:$0xff] }
 0x1b1   :  { %1317 = vmatpush2.msra.mxu0 %v438_v13  ;;  %1388 = vmatpush2.msra.mxu1 %v694_v14  ;;  %v1917_v13 = vld [vmem:[%s12488_s5 + $0xfd8] sm:$0xff]  ;;  %v1488_v14 = vld [vmem:[%s12488_s5 + $0x270] sm:$0xff] }
 0x1b2   :  { %1318 = vmatprep.subr.mxu0 %v431_v15  ;;  %1389 = vmatprep.subr.mxu1 %v687_v16  ;;  %v1905_v15 = vld [vmem:[%s12488_s5 + $0xf78] sm:$0xff]  ;;  %v1476_v16 = vld [vmem:[%s12488_s5 + $0x210] sm:$0xff] }
 0x1b3   :  { %1319 = vmatpush2.msra.mxu0 %v430_v17  ;;  %1390 = vmatpush2.msra.mxu1 %v686_v18  ;;  %v7300_v30 = vpop.f32.mrf.mxu0  ;;  %v7302_v31 = vpop.f32.mrf.mxu1  ;;  %v1904_v17 = vld [vmem:[%s12488_s5 + $0xf70] sm:$0xff]  ;;  %v1475_v18 = vld [vmem:[%s12488_s5 + $0x208] sm:$0xff] }
 0x1b4   :  { %1320 = vmatprep.subr.mxu0 %v423_v19  ;;  %1391 = vmatprep.subr.mxu1 %v679_v20  ;;  %v1892_v19 = vld [vmem:[%s12488_s5 + $0xf10] sm:$0xff]  ;;  %v1463_v20 = vld [vmem:[%s12488_s5 + $0x1a8] sm:$0xff] }
 0x1b5   :  { %1321 = vmatpush2.msra.mxu0 %v422_v27  ;;  %1392 = vmatpush2.msra.mxu1 %v678_v40  ;;  %v902_v34 = vpop.f32.mrf.mxu0  ;;  %v973_v43 = vpop.f32.mrf.mxu1  ;;  %v1891_v27 = vld [vmem:[%s12488_s5 + $0xf08] sm:$0xff]  ;;  %v1462_v40 = vld [vmem:[%s12488_s5 + $0x1a0] sm:$0xff] }
 0x1b6   :  { %1322 = vmatprep.subr.mxu0 %v415_v41  ;;  %1393 = vmatprep.subr.mxu1 %v671_v29  ;;  %v903_v36 = vadd.f32 %v902_v34, %v801_v28  ;;  %v1879_v28 = vld [vmem:[%s12488_s5 + $0xea8] sm:$0xff]  ;;  %v1450_v41 = vld [vmem:[%s12488_s5 + $0x140] sm:$0xff]  ;;  %v1437_v34 = vld [vmem:[%s12488_s5 + $0xd8] sm:$0xff] }
 0x1b7   :  { %1323 = vmatpush2.msra.mxu0 %v414_v32  ;;  %1394 = vmatpush2.msra.mxu1 %v670_v33  ;;  %v1878_v29 = vld [vmem:[%s12488_s5 + $0xea0] sm:$0xff]  ;;  %v1449_v32 = vld [vmem:[%s12488_s5 + $0x138] sm:$0xff] }
 0x1b8   :  { %1325 = vmatmul.mubr.f32.vlgmr.msra.gmra.mxu0 %v6137_v42  ;;  %1396 = vmatmul.mubr.f32.vlgmr.msra.gmra.mxu1 %v6131_v39  ;;  %v974_v46 = vadd.f32 %v973_v43, %v903_v36  ;;  %v1580_v39 = vld [vmem:[%s12488_s5 + $0x550] sm:$0xff]  ;;  %v1866_v33 = vld [vmem:[%s12488_s5 + $0xe40] sm:$0xff] }
 0x1b9   :  { %3143 = vmatprep.subr.mxu0 %v1606_v35  ;;  %3214 = vmatprep.subr.mxu1 %v2022_v37  ;;  %v2008_v42 = vld [vmem:[%s12488_s5 + $0x12b0] sm:$0xff]  ;;  %v1865_v35 = vld [vmem:[%s12488_s5 + $0xe38] sm:$0xff] }
 0x1ba   :  { %3144 = vmatpush1.msra.mxu0 %v1605_v38  ;;  %v7333_v49 = vmax.f32 %v974_v46, 0.0  ;;  %3215 = vmatpush1.msra.mxu1 %v2021_v44  ;;  %v1436_v36 = vld [vmem:[%s12488_s5 + $0xd0] sm:$0xff]  ;;  %v1853_v37 = vld [vmem:[%s12488_s5 + $0xdd8] sm:$0xff]  ;;  %v1423_v44 = vld [vmem:[%s12488_s5 + $0x68] sm:$0xff] }
 0x1bb   :  { %3145 = vmatprep.subr.mxu0 %v1593_v45  ;;  %3216 = vmatprep.subr.mxu1 %v2009_v47  ;;  %v1424_v38 = vld [vmem:[%s12488_s5 + $0x70] sm:$0xff]  ;;  %v1411_v46 = vld [vmem:[%s12488_s5 + $0x8] sm:$0xff] }
 0x1bc   :  { %3146 = vmatpush1.msra.mxu0 %v1592_v48  ;;  %3207 = vmatprep.mubr.f32.mxu0 %v7333_v49  ;;  %v1852_v43 = vld [vmem:[%s12488_s5 + $0xdd0] sm:$0xff]  ;;  %v1839_v47 = vld [vmem:[%s12488_s5 + $0xd68] sm:$0xff]  ;;  %v1410_v48 = vld [vmem:[%s12488_s5] sm:$0xff] }
 0x1bd   :  { %3147 = vmatprep.subr.mxu0 %v1580_v39  ;;  %3217 = vmatpush1.msra.mxu1 %v2008_v42  ;;  %v1840_v45 = vld [vmem:[%s12488_s5 + $0xd70] sm:$0xff]  ;;  %v1827_v39 = vld [vmem:[%s12488_s5 + $0xd08] sm:$0xff]  ;;  %v1814_v42 = vld [vmem:[%s12488_s5 + $0xca0] sm:$0xff] }
 0x1be   :  { %3148 = vmatpush1.msra.mxu0 %v1579_v50  ;;  %3218 = vmatprep.subr.mxu1 %v1996_v51  ;;  %v1826_v50 = vld [vmem:[%s12488_s5 + $0xd00] sm:$0xff]  ;;  %v1813_v51 = vld [vmem:[%s12488_s5 + $0xc98] sm:$0xff] }
 0x1bf   :  { %3149 = vmatprep.subr.mxu0 %v1567_v52  ;;  %3219 = vmatpush1.msra.mxu1 %v1995_v53  ;;  %v2230_v52 = vld [vmem:[%s12488_s5 + $0x19a0] sm:$0xff]  ;;  %v1801_v53 = vld [vmem:[%s12488_s5 + $0xc38] sm:$0xff] }
 0x1c0   :  { %3150 = vmatpush1.msra.mxu0 %v1566_v54  ;;  %3220 = vmatprep.subr.mxu1 %v1983_v55  ;;  %v2229_v54 = vld [vmem:[%s12488_s5 + $0x1998] sm:$0xff]  ;;  %v1800_v55 = vld [vmem:[%s12488_s5 + $0xc30] sm:$0xff] }
 0x1c1   :  { %3151 = vmatprep.subr.mxu0 %v1554_v56  ;;  %3221 = vmatpush1.msra.mxu1 %v1982_v57  ;;  %v2217_v56 = vld [vmem:[%s12488_s5 + $0x1938] sm:$0xff]  ;;  %v1788_v57 = vld [vmem:[%s12488_s5 + $0xbd0] sm:$0xff] }
 0x1c2   :  { %3152 = vmatpush1.msra.mxu0 %v1553_v58  ;;  %3222 = vmatprep.subr.mxu1 %v1970_v59  ;;  %v2216_v58 = vld [vmem:[%s12488_s5 + $0x1930] sm:$0xff]  ;;  %v1787_v59 = vld [vmem:[%s12488_s5 + $0xbc8] sm:$0xff] }
 0x1c3   :  { %3153 = vmatprep.subr.mxu0 %v1541_v60  ;;  %3223 = vmatpush1.msra.mxu1 %v1969_v61  ;;  %v2204_v60 = vld [vmem:[%s12488_s5 + $0x18d0] sm:$0xff]  ;;  %v1775_v61 = vld [vmem:[%s12488_s5 + $0xb68] sm:$0xff] }
 0x1c4   :  { %3154 = vmatpush1.msra.mxu0 %v1540_v62  ;;  %3224 = vmatprep.subr.mxu1 %v1957_v63  ;;  %v2203_v62 = vld [vmem:[%s12488_s5 + $0x18c8] sm:$0xff]  ;;  %v1774_v63 = vld [vmem:[%s12488_s5 + $0xb60] sm:$0xff] }
 0x1c5   :  { %3155 = vmatprep.subr.mxu0 %v1528_v0  ;;  %3225 = vmatpush1.msra.mxu1 %v1956_v1  ;;  %v2191_v0 = vld [vmem:[%s12488_s5 + $0x1868] sm:$0xff]  ;;  %v1762_v1 = vld [vmem:[%s12488_s5 + $0xb00] sm:$0xff] }
 0x1c6   :  { %3156 = vmatpush1.msra.mxu0 %v1527_v2  ;;  %3226 = vmatprep.subr.mxu1 %v1944_v3  ;;  %v2190_v2 = vld [vmem:[%s12488_s5 + $0x1860] sm:$0xff]  ;;  %v1761_v3 = vld [vmem:[%s12488_s5 + $0xaf8] sm:$0xff] }
 0x1c7   :  { %3157 = vmatprep.subr.mxu0 %v1515_v4  ;;  %3227 = vmatpush1.msra.mxu1 %v1943_v5  ;;  %v2178_v4 = vld [vmem:[%s12488_s5 + $0x1800] sm:$0xff]  ;;  %v1749_v5 = vld [vmem:[%s12488_s5 + $0xa98] sm:$0xff] }
 0x1c8   :  { %3158 = vmatpush1.msra.mxu0 %v1514_v6  ;;  %3228 = vmatprep.subr.mxu1 %v1931_v7  ;;  %v2177_v6 = vld [vmem:[%s12488_s5 + $0x17f8] sm:$0xff]  ;;  %v1748_v7 = vld [vmem:[%s12488_s5 + $0xa90] sm:$0xff] }
 0x1c9   :  { %3159 = vmatprep.subr.mxu0 %v1502_v8  ;;  %3229 = vmatpush1.msra.mxu1 %v1930_v9  ;;  %v2165_v8 = vld [vmem:[%s12488_s5 + $0x1798] sm:$0xff]  ;;  %v1736_v9 = vld [vmem:[%s12488_s5 + $0xa30] sm:$0xff] }
 0x1ca   :  { %3160 = vmatpush1.msra.mxu0 %v1501_v10  ;;  %3230 = vmatprep.subr.mxu1 %v1918_v11  ;;  %v2164_v10 = vld [vmem:[%s12488_s5 + $0x1790] sm:$0xff]  ;;  %v1735_v11 = vld [vmem:[%s12488_s5 + $0xa28] sm:$0xff] }
 0x1cb   :  { %3161 = vmatprep.subr.mxu0 %v1489_v12  ;;  %3231 = vmatpush1.msra.mxu1 %v1917_v13  ;;  %v2152_v12 = vld [vmem:[%s12488_s5 + $0x1730] sm:$0xff]  ;;  %v1723_v13 = vld [vmem:[%s12488_s5 + $0x9c8] sm:$0xff] }
 0x1cc   :  { %3162 = vmatpush1.msra.mxu0 %v1488_v14  ;;  %3232 = vmatprep.subr.mxu1 %v1905_v15  ;;  %v2151_v14 = vld [vmem:[%s12488_s5 + $0x1728] sm:$0xff]  ;;  %v1722_v15 = vld [vmem:[%s12488_s5 + $0x9c0] sm:$0xff] }
 0x1cd   :  { %3163 = vmatprep.subr.mxu0 %v1476_v16  ;;  %3233 = vmatpush1.msra.mxu1 %v1904_v17  ;;  %v2139_v16 = vld [vmem:[%s12488_s5 + $0x16c8] sm:$0xff]  ;;  %v1710_v17 = vld [vmem:[%s12488_s5 + $0x960] sm:$0xff] }
 0x1ce   :  { %3164 = vmatpush1.msra.mxu0 %v1475_v18  ;;  %3234 = vmatprep.subr.mxu1 %v1892_v19  ;;  %v2138_v18 = vld [vmem:[%s12488_s5 + $0x16c0] sm:$0xff]  ;;  %v1709_v19 = vld [vmem:[%s12488_s5 + $0x958] sm:$0xff] }
 0x1cf   :  { %3165 = vmatprep.subr.mxu0 %v1463_v20  ;;  %3235 = vmatpush1.msra.mxu1 %v1891_v27  ;;  %v2126_v20 = vld [vmem:[%s12488_s5 + $0x1660] sm:$0xff]  ;;  %v1697_v27 = vld [vmem:[%s12488_s5 + $0x8f8] sm:$0xff] }
 0x1d0   :  { %3166 = vmatpush1.msra.mxu0 %v1462_v40  ;;  %3236 = vmatprep.subr.mxu1 %v1879_v28  ;;  %v2125_v40 = vld [vmem:[%s12488_s5 + $0x1658] sm:$0xff]  ;;  %v1696_v28 = vld [vmem:[%s12488_s5 + $0x8f0] sm:$0xff] }
 0x1d1   :  { %3167 = vmatprep.subr.mxu0 %v1450_v41  ;;  %3237 = vmatpush1.msra.mxu1 %v1878_v29  ;;  %v2113_v41 = vld [vmem:[%s12488_s5 + $0x15f8] sm:$0xff]  ;;  %v1684_v29 = vld [vmem:[%s12488_s5 + $0x890] sm:$0xff] }
 0x1d2   :  { %3168 = vmatpush1.msra.mxu0 %v1449_v32  ;;  %3238 = vmatprep.subr.mxu1 %v1866_v33  ;;  %v2112_v32 = vld [vmem:[%s12488_s5 + $0x15f0] sm:$0xff]  ;;  %v797_v33 = vrot.slane %v7284_v24, %v6116_v23 }
 0x1d3   :  { %3169 = vmatprep.subr.mxu0 %v1437_v34  ;;  %3239 = vmatpush1.msra.mxu1 %v1865_v35  ;;  %v1683_v34 = vld [vmem:[%s12488_s5 + $0x888] sm:$0xff]  ;;  %v2100_v35 = vld [vmem:[%s12488_s5 + $0x1590] sm:$0xff] }
 0x1d4   :  { %3170 = vmatpush1.msra.mxu0 %v1436_v36  ;;  %3240 = vmatprep.subr.mxu1 %v1853_v37  ;;  %v1671_v36 = vld [vmem:[%s12488_s5 + $0x828] sm:$0xff] }
 0x1d5   :  { %3171 = vmatprep.subr.mxu0 %v1424_v38  ;;  %3241 = vmatpush1.msra.mxu1 %v1852_v43  ;;  %v2099_v37 = vld [vmem:[%s12488_s5 + $0x1588] sm:$0xff]  ;;  %v1670_v38 = vld [vmem:[%s12488_s5 + $0x820] sm:$0xff] }
 0x1d6   :  { %3172 = vmatpush1.msra.mxu0 %v1423_v44  ;;  %3242 = vmatprep.subr.mxu1 %v1840_v45  ;;  %v2087_v43 = vld [vmem:[%s12488_s5 + $0x1528] sm:$0xff]  ;;  %v1658_v44 = vld [vmem:[%s12488_s5 + $0x7c0] sm:$0xff] }
 0x1d7   :  { %3173 = vmatprep.subr.mxu0 %v1411_v46  ;;  %3243 = vmatpush1.msra.mxu1 %v1839_v47  ;;  %v2086_v45 = vld [vmem:[%s12488_s5 + $0x1520] sm:$0xff]  ;;  %v901_v46 = vadd.f32 %v7300_v30, %v797_v33  ;;  %v1657_v47 = vld [vmem:[%s12488_s5 + $0x7b8] sm:$0xff] }
 0x1d8   :  { %3174 = vmatpush1.msra.mxu0 %v1410_v48  ;;  %3244 = vmatprep.subr.mxu1 %v1827_v39  ;;  %v2074_v48 = vld [vmem:[%s12488_s5 + $0x14c0] sm:$0xff]  ;;  %v1645_v39 = vld [vmem:[%s12488_s5 + $0x758] sm:$0xff] }
 0x1d9   :  { %3175 = vmatprep.subr.mxu0 %v1814_v42  ;;  %3245 = vmatpush1.msra.mxu1 %v1826_v50  ;;  %v2073_v30 = vld [vmem:[%s12488_s5 + $0x14b8] sm:$0xff]  ;;  %v1644_v42 = vld [vmem:[%s12488_s5 + $0x750] sm:$0xff]  ;;  %v805_v50 = vrot.slane %v7284_v24, %v6113_v22  ;;  %v2814_v33 = vld [vmem:[%s12488_s5 + $0x2be0] sm:$0xff] }
 0x1da   :  { %3176 = vmatpush2.msra.mxu0 %v1813_v51  ;;  %3246 = vmatprep.subr.mxu1 %v2230_v52  ;;  %v2061_v51 = vld [vmem:[%s12488_s5 + $0x1458] sm:$0xff]  ;;  %v1632_v52 = vld [vmem:[%s12488_s5 + $0x6f0] sm:$0xff] }
 0x1db   :  { %3177 = vmatprep.subr.mxu0 %v1801_v53  ;;  %3247 = vmatpush2.msra.mxu1 %v2229_v54  ;;  %v2060_v53 = vld [vmem:[%s12488_s5 + $0x1450] sm:$0xff]  ;;  %v972_v54 = vadd.f32 %v7302_v31, %v901_v46  ;;  %v2334_v46 = vld [vmem:[%s12488_s5 + $0x1ce0] sm:$0xff] }
 0x1dc   :  { %3178 = vmatpush2.msra.mxu0 %v1800_v55  ;;  %3248 = vmatprep.subr.mxu1 %v2217_v56  ;;  %v1631_v55 = vld [vmem:[%s12488_s5 + $0x6e8] sm:$0xff]  ;;  %v809_v56 = vrot.slane %v7284_v24, %v6125_v26  ;;  %v1618_v24 = vld [vmem:[%s12488_s5 + $0x680] sm:$0xff] }
 0x1dd   :  { %3179 = vmatprep.subr.mxu0 %v1788_v57  ;;  %3249 = vmatpush2.msra.mxu1 %v2216_v58  ;;  %v2048_v57 = vld [vmem:[%s12488_s5 + $0x13f0] sm:$0xff]  ;;  %v1619_v58 = vld [vmem:[%s12488_s5 + $0x688] sm:$0xff] }
 0x1de   :  { %3180 = vmatpush2.msra.mxu0 %v1787_v59  ;;  %3250 = vmatprep.subr.mxu1 %v2204_v60  ;;  %v2047_v60 = vld [vmem:[%s12488_s5 + $0x13e8] sm:$0xff] }
 0x1df   :  { %3181 = vmatprep.subr.mxu0 %v1775_v61  ;;  %3251 = vmatpush2.msra.mxu1 %v2203_v62  ;;  %v2035_v62 = vld [vmem:[%s12488_s5 + $0x1388] sm:$0xff] }
 0x1e0   :  { %3182 = vmatpush2.msra.mxu0 %v1774_v63  ;;  %3252 = vmatprep.subr.mxu1 %v2191_v0  ;;  %v2034_v0 = vld [vmem:[%s12488_s5 + $0x1380] sm:$0xff] }
 0x1e1   :  { %3183 = vmatprep.subr.mxu0 %v1762_v1  ;;  %3253 = vmatpush2.msra.mxu1 %v2190_v2  ;;  %v7707_v1 = vmax.f32 %v972_v54, 0.0  ;;  %v2307_v54 = vld [vmem:[%s12488_s5 + $0x1c08] sm:$0xff] }
 0x1e2   :  { %3184 = vmatpush2.msra.mxu0 %v1761_v3  ;;  %3254 = vmatprep.subr.mxu1 %v2178_v4  ;;  %v2438_v3 = vld [vmem:[%s12488_s5 + $0x2020] sm:$0xff] }
 0x1e3   :  { %3185 = vmatprep.subr.mxu0 %v1749_v5  ;;  %3255 = vmatpush2.msra.mxu1 %v2177_v6  ;;  %v2854_v4 = vld [vmem:[%s12488_s5 + $0x2d20] sm:$0xff] }
 0x1e4   :  { %3186 = vmatpush2.msra.mxu0 %v1748_v7  ;;  %3256 = vmatprep.subr.mxu1 %v2165_v8  ;;  %v2437_v7 = vld [vmem:[%s12488_s5 + $0x2018] sm:$0xff] }
 0x1e5   :  { %3187 = vmatprep.subr.mxu0 %v1736_v9  ;;  %3257 = vmatpush2.msra.mxu1 %v2164_v10  ;;  %v2425_v9 = vld [vmem:[%s12488_s5 + $0x1fb8] sm:$0xff]  ;;  %v2424_v10 = vld [vmem:[%s12488_s5 + $0x1fb0] sm:$0xff] }
 0x1e6   :  { %3188 = vmatpush2.msra.mxu0 %v1735_v11  ;;  %3258 = vmatprep.subr.mxu1 %v2152_v12  ;;  %v2412_v12 = vld [vmem:[%s12488_s5 + $0x1f50] sm:$0xff] }
 0x1e7   :  { %3189 = vmatprep.subr.mxu0 %v1723_v13  ;;  %3259 = vmatpush2.msra.mxu1 %v2151_v14  ;;  %v2411_v14 = vld [vmem:[%s12488_s5 + $0x1f48] sm:$0xff] }
 0x1e8   :  { %3190 = vmatpush2.msra.mxu0 %v1722_v15  ;;  %3260 = vmatprep.subr.mxu1 %v2139_v16  ;;  %v2853_v15 = vld [vmem:[%s12488_s5 + $0x2d18] sm:$0xff]  ;;  %v2399_v16 = vld [vmem:[%s12488_s5 + $0x1ee8] sm:$0xff] }
 0x1e9   :  { %3191 = vmatprep.subr.mxu0 %v1710_v17  ;;  %3261 = vmatpush2.msra.mxu1 %v2138_v18  ;;  %v2841_v17 = vld [vmem:[%s12488_s5 + $0x2cb8] sm:$0xff]  ;;  %v2398_v18 = vld [vmem:[%s12488_s5 + $0x1ee0] sm:$0xff] }
 0x1ea   :  { %3192 = vmatpush2.msra.mxu0 %v1709_v19  ;;  %3262 = vmatprep.subr.mxu1 %v2126_v20  ;;  %v2840_v19 = vld [vmem:[%s12488_s5 + $0x2cb0] sm:$0xff]  ;;  %v2386_v20 = vld [vmem:[%s12488_s5 + $0x1e80] sm:$0xff] }
 0x1eb   :  { %3193 = vmatprep.subr.mxu0 %v1697_v27  ;;  %3263 = vmatpush2.msra.mxu1 %v2125_v40  ;;  %v2828_v27 = vld [vmem:[%s12488_s5 + $0x2c50] sm:$0xff]  ;;  %v2385_v40 = vld [vmem:[%s12488_s5 + $0x1e78] sm:$0xff] }
 0x1ec   :  { %3194 = vmatpush2.msra.mxu0 %v1696_v28  ;;  %3264 = vmatprep.subr.mxu1 %v2113_v41  ;;  %v2827_v28 = vld [vmem:[%s12488_s5 + $0x2c48] sm:$0xff]  ;;  %v2373_v41 = vld [vmem:[%s12488_s5 + $0x1e18] sm:$0xff] }
 0x1ed   :  { %3195 = vmatprep.subr.mxu0 %v1684_v29  ;;  %3265 = vmatpush2.msra.mxu1 %v2112_v32  ;;  %v2815_v29 = vld [vmem:[%s12488_s5 + $0x2be8] sm:$0xff]  ;;  %v2372_v32 = vld [vmem:[%s12488_s5 + $0x1e10] sm:$0xff] }
 0x1ee   :  { %3196 = vmatpush2.msra.mxu0 %v1683_v34  ;;  %3266 = vmatprep.subr.mxu1 %v2100_v35  ;;  %v2360_v34 = vld [vmem:[%s12488_s5 + $0x1db0] sm:$0xff]  ;;  %v2802_v35 = vld [vmem:[%s12488_s5 + $0x2b80] sm:$0xff] }
 0x1ef   :  { %3197 = vmatprep.subr.mxu0 %v1671_v36  ;;  %3267 = vmatpush2.msra.mxu1 %v2099_v37  ;;  %v2359_v36 = vld [vmem:[%s12488_s5 + $0x1da8] sm:$0xff]  ;;  %v2801_v37 = vld [vmem:[%s12488_s5 + $0x2b78] sm:$0xff] }
 0x1f0   :  { %3198 = vmatpush2.msra.mxu0 %v1670_v38  ;;  %3268 = vmatprep.subr.mxu1 %v2087_v43  ;;  %v2347_v38 = vld [vmem:[%s12488_s5 + $0x1d48] sm:$0xff]  ;;  %v2789_v43 = vld [vmem:[%s12488_s5 + $0x2b18] sm:$0xff] }
 0x1f1   :  { %3199 = vmatprep.subr.mxu0 %v1658_v44  ;;  %3269 = vmatpush2.msra.mxu1 %v2086_v45  ;;  %v2346_v44 = vld [vmem:[%s12488_s5 + $0x1d40] sm:$0xff]  ;;  %v2788_v45 = vld [vmem:[%s12488_s5 + $0x2b10] sm:$0xff] }
 0x1f2   :  { %3200 = vmatpush2.msra.mxu0 %v1657_v47  ;;  %3270 = vmatprep.subr.mxu1 %v2074_v48  ;;  %v2776_v47 = vld [vmem:[%s12488_s5 + $0x2ab0] sm:$0xff]  ;;  %v2333_v48 = vld [vmem:[%s12488_s5 + $0x1cd8] sm:$0xff] }
 0x1f3   :  { %3201 = vmatprep.subr.mxu0 %v1645_v39  ;;  %3271 = vmatpush2.msra.mxu1 %v2073_v30  ;;  %v2775_v39 = vld [vmem:[%s12488_s5 + $0x2aa8] sm:$0xff]  ;;  %v2321_v30 = vld [vmem:[%s12488_s5 + $0x1c78] sm:$0xff] }
 0x1f4   :  { %3202 = vmatpush2.msra.mxu0 %v1644_v42  ;;  %v1042_v59 = vpop.f32.mrf.mxu0  ;;  %v1113_v31 = vpop.f32.mrf.mxu1  ;;  %3272 = vmatprep.subr.mxu1 %v2061_v51  ;;  %v2763_v42 = vld [vmem:[%s12488_s5 + $0x2a48] sm:$0xff]  ;;  %v2762_v51 = vld [vmem:[%s12488_s5 + $0x2a40] sm:$0xff] }
 0x1f5   :  { %3203 = vmatprep.subr.mxu0 %v1632_v52  ;;  %v1043_v61 = vadd.f32 %v1042_v59, %v805_v50  ;;  %3273 = vmatpush2.msra.mxu1 %v2060_v53  ;;  %v2320_v50 = vld [vmem:[%s12488_s5 + $0x1c70] sm:$0xff]  ;;  %v2750_v53 = vld [vmem:[%s12488_s5 + $0x29e0] sm:$0xff] }
 0x1f6   :  { %3204 = vmatpush2.msra.mxu0 %v1631_v55  ;;  %v1044_v63 = vpop.f32.mrf.mxu0  ;;  %3274 = vmatprep.subr.mxu1 %v2048_v57  ;;  %v1115_v6 = vpop.f32.mrf.mxu1  ;;  %v2308_v52 = vld [vmem:[%s12488_s5 + $0x1c10] sm:$0xff]  ;;  %v2749_v55 = vld [vmem:[%s12488_s5 + $0x29d8] sm:$0xff] }
 0x1f7   :  { %3205 = vmatprep.subr.mxu0 %v1619_v58  ;;  %v1045_v2 = vadd.f32 %v1044_v63, %v809_v56  ;;  %3275 = vmatpush2.msra.mxu1 %v2047_v60  ;;  %v1114_v5 = vadd.f32 %v1113_v31, %v1043_v61  ;;  %v2295_v56 = vld [vmem:[%s12488_s5 + $0x1ba8] sm:$0xff]  ;;  %v2737_v57 = vld [vmem:[%s12488_s5 + $0x2978] sm:$0xff]  ;;  %v2294_v58 = vld [vmem:[%s12488_s5 + $0x1ba0] sm:$0xff] }
 0x1f8   :  { %3206 = vmatpush2.msra.mxu0 %v1618_v24  ;;  %3276 = vmatprep.subr.mxu1 %v2035_v62  ;;  %v2736_v59 = vld [vmem:[%s12488_s5 + $0x2970] sm:$0xff]  ;;  %v2282_v31 = vld [vmem:[%s12488_s5 + $0x1b40] sm:$0xff]  ;;  %v2281_v24 = vld [vmem:[%s12488_s5 + $0x1b38] sm:$0xff] }
 0x1f9   :  { %3208 = vmatmul.mubr.f32.vlgmr.msra.gmra.mxu0 %v7707_v1  ;;  %v1116_v8 = vadd.f32 %v1115_v6, %v1045_v2  ;;  %3277 = vmatpush2.msra.mxu1 %v2034_v0  ;;  %v7730_v13 = vmax.f32 %v1114_v5, 0.0  ;;  %v2724_v60 = vld [vmem:[%s12488_s5 + $0x2910] sm:$0xff]  ;;  %v2723_v61 = vld [vmem:[%s12488_s5 + $0x2908] sm:$0xff]  ;;  %v2269_v62 = vld [vmem:[%s12488_s5 + $0x1ad8] sm:$0xff] }
 0x1fa   :  { %3285 = vmatprep.subr.mxu0 %v2438_v3  ;;  %3356 = vmatprep.subr.mxu1 %v2854_v4  ;;  %v2711_v63 = vld [vmem:[%s12488_s5 + $0x28a8] sm:$0xff]  ;;  %v2268_v0 = vld [vmem:[%s12488_s5 + $0x1ad0] sm:$0xff]  ;;  %v2710_v2 = vld [vmem:[%s12488_s5 + $0x28a0] sm:$0xff] }
 0x1fb   :  { %v7725_v11 = vmax.f32 %v1116_v8, 0.0  ;;  %3286 = vmatpush1.msra.mxu0 %v2437_v7  ;;  %v2256_v3 = vld [vmem:[%s12488_s5 + $0x1a70] sm:$0xff]  ;;  %v2698_v4 = vld [vmem:[%s12488_s5 + $0x2840] sm:$0xff]  ;;  %v2255_v5 = vld [vmem:[%s12488_s5 + $0x1a68] sm:$0xff] }
 0x1fc   :  { %3287 = vmatprep.subr.mxu0 %v2425_v9  ;;  %v2697_v6 = vld [vmem:[%s12488_s5 + $0x2838] sm:$0xff]  ;;  %v2243_v7 = vld [vmem:[%s12488_s5 + $0x1a08] sm:$0xff]  ;;  %v2242_v9 = vld [vmem:[%s12488_s5 + $0x1a00] sm:$0xff] }
 0x1fd   :  { %3278 = vmatprep.mubr.f32.mxu1 %v7725_v11  ;;  %3288 = vmatpush1.msra.mxu0 %v2424_v10  ;;  %v2685_v8 = vld [vmem:[%s12488_s5 + $0x27d8] sm:$0xff]  ;;  %v2684_v10 = vld [vmem:[%s12488_s5 + $0x27d0] sm:$0xff] }
 0x1fe   :  { %3279 = vmatmul.mubr.f32.vlgmr.msra.gmra.mxu1 %v7730_v13  ;;  %3289 = vmatprep.subr.mxu0 %v2412_v12  ;;  %v2646_v12 = vld [vmem:[%s12488_s5 + $0x26a0] sm:$0xff] }
 0x1ff   :  { %3290 = vmatpush1.msra.mxu0 %v2411_v14  ;;  %3357 = vmatpush1.msra.mxu1 %v2853_v15  ;;  %v2672_v14 = vld [vmem:[%s12488_s5 + $0x2770] sm:$0xff]  ;;  %v2645_v15 = vld [vmem:[%s12488_s5 + $0x2698] sm:$0xff] }
 0x200   :  { %3291 = vmatprep.subr.mxu0 %v2399_v16  ;;  %3358 = vmatprep.subr.mxu1 %v2841_v17  ;;  %v2671_v16 = vld [vmem:[%s12488_s5 + $0x2768] sm:$0xff]  ;;  %v2633_v17 = vld [vmem:[%s12488_s5 + $0x2638] sm:$0xff] }
 0x201   :  { %3292 = vmatpush1.msra.mxu0 %v2398_v18  ;;  %3359 = vmatpush1.msra.mxu1 %v2840_v19  ;;  %v2659_v18 = vld [vmem:[%s12488_s5 + $0x2708] sm:$0xff]  ;;  %v2632_v19 = vld [vmem:[%s12488_s5 + $0x2630] sm:$0xff] }
 0x202   :  { %3293 = vmatprep.subr.mxu0 %v2386_v20  ;;  %3360 = vmatprep.subr.mxu1 %v2828_v27  ;;  %v2658_v20 = vld [vmem:[%s12488_s5 + $0x2700] sm:$0xff]  ;;  %v2620_v27 = vld [vmem:[%s12488_s5 + $0x25d0] sm:$0xff] }
 0x203   :  { %3294 = vmatpush1.msra.mxu0 %v2385_v40  ;;  %3361 = vmatpush1.msra.mxu1 %v2827_v28  ;;  %v3062_v40 = vld [vmem:[%s12488_s5 + $0x33a0] sm:$0xff]  ;;  %v2619_v28 = vld [vmem:[%s12488_s5 + $0x25c8] sm:$0xff] }
 0x204   :  { %3295 = vmatprep.subr.mxu0 %v2373_v41  ;;  %3362 = vmatprep.subr.mxu1 %v2815_v29  ;;  %v3061_v41 = vld [vmem:[%s12488_s5 + $0x3398] sm:$0xff]  ;;  %v2607_v29 = vld [vmem:[%s12488_s5 + $0x2568] sm:$0xff] }
 0x205   :  { %3296 = vmatpush1.msra.mxu0 %v2372_v32  ;;  %3363 = vmatpush1.msra.mxu1 %v2814_v33  ;;  %v3049_v32 = vld [vmem:[%s12488_s5 + $0x3338] sm:$0xff]  ;;  %v2606_v33 = vld [vmem:[%s12488_s5 + $0x2560] sm:$0xff] }
 0x206   :  { %3297 = vmatprep.subr.mxu0 %v2360_v34  ;;  %3364 = vmatprep.subr.mxu1 %v2802_v35  ;;  %v3048_v34 = vld [vmem:[%s12488_s5 + $0x3330] sm:$0xff]  ;;  %v2594_v35 = vld [vmem:[%s12488_s5 + $0x2500] sm:$0xff] }
 0x207   :  { %3298 = vmatpush1.msra.mxu0 %v2359_v36  ;;  %3365 = vmatpush1.msra.mxu1 %v2801_v37  ;;  %v3036_v36 = vld [vmem:[%s12488_s5 + $0x32d0] sm:$0xff]  ;;  %v2593_v37 = vld [vmem:[%s12488_s5 + $0x24f8] sm:$0xff] }
 0x208   :  { %3299 = vmatprep.subr.mxu0 %v2347_v38  ;;  %3366 = vmatprep.subr.mxu1 %v2789_v43  ;;  %v3035_v38 = vld [vmem:[%s12488_s5 + $0x32c8] sm:$0xff]  ;;  %v2581_v43 = vld [vmem:[%s12488_s5 + $0x2498] sm:$0xff] }
 0x209   :  { %3300 = vmatpush1.msra.mxu0 %v2346_v44  ;;  %3367 = vmatpush1.msra.mxu1 %v2788_v45  ;;  %v3023_v44 = vld [vmem:[%s12488_s5 + $0x3268] sm:$0xff]  ;;  %v2580_v45 = vld [vmem:[%s12488_s5 + $0x2490] sm:$0xff] }
 0x20a   :  { %3301 = vmatprep.subr.mxu0 %v2334_v46  ;;  %3368 = vmatprep.subr.mxu1 %v2776_v47  ;;  %v3022_v46 = vld [vmem:[%s12488_s5 + $0x3260] sm:$0xff]  ;;  %v2568_v47 = vld [vmem:[%s12488_s5 + $0x2430] sm:$0xff] }
 0x20b   :  { %3302 = vmatpush1.msra.mxu0 %v2333_v48  ;;  %3369 = vmatpush1.msra.mxu1 %v2775_v39  ;;  %v3010_v48 = vld [vmem:[%s12488_s5 + $0x3200] sm:$0xff]  ;;  %v2567_v39 = vld [vmem:[%s12488_s5 + $0x2428] sm:$0xff] }
 0x20c   :  { %3303 = vmatprep.subr.mxu0 %v2321_v30  ;;  %3370 = vmatprep.subr.mxu1 %v2763_v42  ;;  %v3009_v30 = vld [vmem:[%s12488_s5 + $0x31f8] sm:$0xff]  ;;  %v2555_v42 = vld [vmem:[%s12488_s5 + $0x23c8] sm:$0xff] }
 0x20d   :  { %3304 = vmatpush1.msra.mxu0 %v2320_v50  ;;  %3371 = vmatpush1.msra.mxu1 %v2762_v51  ;;  %v2997_v50 = vld [vmem:[%s12488_s5 + $0x3198] sm:$0xff]  ;;  %v2554_v51 = vld [vmem:[%s12488_s5 + $0x23c0] sm:$0xff] }
 0x20e   :  { %3305 = vmatprep.subr.mxu0 %v2308_v52  ;;  %3372 = vmatprep.subr.mxu1 %v2750_v53  ;;  %v2996_v52 = vld [vmem:[%s12488_s5 + $0x3190] sm:$0xff]  ;;  %v2542_v53 = vld [vmem:[%s12488_s5 + $0x2360] sm:$0xff] }
 0x20f   :  { %3306 = vmatpush1.msra.mxu0 %v2307_v54  ;;  %3373 = vmatpush1.msra.mxu1 %v2749_v55  ;;  %v2984_v54 = vld [vmem:[%s12488_s5 + $0x3130] sm:$0xff]  ;;  %v2541_v55 = vld [vmem:[%s12488_s5 + $0x2358] sm:$0xff] }
 0x210   :  { %3307 = vmatprep.subr.mxu0 %v2295_v56  ;;  %3374 = vmatprep.subr.mxu1 %v2737_v57  ;;  %v2983_v56 = vld [vmem:[%s12488_s5 + $0x3128] sm:$0xff]  ;;  %v2529_v57 = vld [vmem:[%s12488_s5 + $0x22f8] sm:$0xff] }
 0x211   :  { %3308 = vmatpush1.msra.mxu0 %v2294_v58  ;;  %3375 = vmatpush1.msra.mxu1 %v2736_v59  ;;  %v2971_v58 = vld [vmem:[%s12488_s5 + $0x30c8] sm:$0xff]  ;;  %v2528_v59 = vld [vmem:[%s12488_s5 + $0x22f0] sm:$0xff] }
 0x212   :  { %3309 = vmatprep.subr.mxu0 %v2282_v31  ;;  %3376 = vmatprep.subr.mxu1 %v2724_v60  ;;  %v2970_v31 = vld [vmem:[%s12488_s5 + $0x30c0] sm:$0xff]  ;;  %v2516_v60 = vld [vmem:[%s12488_s5 + $0x2290] sm:$0xff] }
 0x213   :  { %3310 = vmatpush1.msra.mxu0 %v2281_v24  ;;  %3377 = vmatpush1.msra.mxu1 %v2723_v61  ;;  %v2958_v24 = vld [vmem:[%s12488_s5 + $0x3060] sm:$0xff]  ;;  %v2515_v61 = vld [vmem:[%s12488_s5 + $0x2288] sm:$0xff] }
 0x214   :  { %3311 = vmatprep.subr.mxu0 %v2269_v62  ;;  %3378 = vmatprep.subr.mxu1 %v2711_v63  ;;  %v2957_v62 = vld [vmem:[%s12488_s5 + $0x3058] sm:$0xff]  ;;  %v2503_v63 = vld [vmem:[%s12488_s5 + $0x2228] sm:$0xff] }
 0x215   :  { %3312 = vmatpush1.msra.mxu0 %v2268_v0  ;;  %3379 = vmatpush1.msra.mxu1 %v2710_v2  ;;  %v2945_v0 = vld [vmem:[%s12488_s5 + $0x2ff8] sm:$0xff]  ;;  %v2502_v2 = vld [vmem:[%s12488_s5 + $0x2220] sm:$0xff] }
 0x216   :  { %3313 = vmatprep.subr.mxu0 %v2256_v3  ;;  %3380 = vmatprep.subr.mxu1 %v2698_v4  ;;  %v2944_v3 = vld [vmem:[%s12488_s5 + $0x2ff0] sm:$0xff]  ;;  %v8041_v4 = vsub.s32 4, %v6110_v21 }
 0x217   :  { %3314 = vmatpush1.msra.mxu0 %v2255_v5  ;;  %3381 = vmatpush1.msra.mxu1 %v2697_v6  ;;  %v2490_v5 = vld [vmem:[%s12488_s5 + $0x21c0] sm:$0xff]  ;;  %v2932_v6 = vld [vmem:[%s12488_s5 + $0x2f90] sm:$0xff] }
 0x218   :  { %3315 = vmatprep.subr.mxu0 %v2243_v7  ;;  %3382 = vmatprep.subr.mxu1 %v2685_v8  ;;  %v2489_v7 = vld [vmem:[%s12488_s5 + $0x21b8] sm:$0xff]  ;;  %v2931_v8 = vld [vmem:[%s12488_s5 + $0x2f88] sm:$0xff] }
 0x219   :  { %3316 = vmatpush1.msra.mxu0 %v2242_v9  ;;  %3383 = vmatpush1.msra.mxu1 %v2684_v10  ;;  %v816_v9 = vsub.s32 5, %v6110_v21  ;;  %v2477_v10 = vld [vmem:[%s12488_s5 + $0x2158] sm:$0xff] }
 0x21a   :  { %3317 = vmatprep.subr.mxu0 %v2646_v12  ;;  %3384 = vmatprep.subr.mxu1 %v2672_v14  ;;  %v2919_v12 = vld [vmem:[%s12488_s5 + $0x2f28] sm:$0xff]  ;;  %v2476_v14 = vld [vmem:[%s12488_s5 + $0x2150] sm:$0xff] }
 0x21b   :  { %3318 = vmatpush2.msra.mxu0 %v2645_v15  ;;  %3385 = vmatpush1.msra.mxu1 %v2671_v16  ;;  %v2918_v15 = vld [vmem:[%s12488_s5 + $0x2f20] sm:$0xff] }
 0x21c   :  { %3319 = vmatprep.subr.mxu0 %v2633_v17  ;;  %3386 = vmatprep.subr.mxu1 %v2659_v18  ;;  %v8071_v16 = vld [vmem:[%s12487_s4] sm:$0xff]  ;;  %v2464_v18 = vld [vmem:[%s12488_s5 + $0x20f0] sm:$0xff] }
 0x21d   :  { %3320 = vmatpush2.msra.mxu0 %v2632_v19  ;;  %3387 = vmatpush1.msra.mxu1 %v2658_v20  ;;  %v813_v17 = vrot.slane %v8071_v16, %v8041_v4  ;;  %v2906_v19 = vld [vmem:[%s12488_s5 + $0x2ec0] sm:$0xff]  ;;  %v2463_v20 = vld [vmem:[%s12488_s5 + $0x20e8] sm:$0xff] }
 0x21e   :  { %3321 = vmatprep.subr.mxu0 %v2620_v27  ;;  %3388 = vmatprep.subr.mxu1 %v3062_v40  ;;  %v2905_v27 = vld [vmem:[%s12488_s5 + $0x2eb8] sm:$0xff]  ;;  %v817_v40 = vrot.slane %v8071_v16, %v816_v9 }
 0x21f   :  { %3322 = vmatpush2.msra.mxu0 %v2619_v28  ;;  %3389 = vmatpush2.msra.mxu1 %v3061_v41  ;;  %v2451_v28 = vld [vmem:[%s12488_s5 + $0x2088] sm:$0xff]  ;;  %v2893_v41 = vld [vmem:[%s12488_s5 + $0x2e58] sm:$0xff] }
 0x220   :  { %3323 = vmatprep.subr.mxu0 %v2607_v29  ;;  %3390 = vmatprep.subr.mxu1 %v3049_v32 }
 0x221   :  { %3324 = vmatpush2.msra.mxu0 %v2606_v33  ;;  %3391 = vmatpush2.msra.mxu1 %v3048_v34  ;;  %v2450_v33 = vld [vmem:[%s12488_s5 + $0x2080] sm:$0xff]  ;;  %v2892_v34 = vld [vmem:[%s12488_s5 + $0x2e50] sm:$0xff] }
 0x222   :  { %3325 = vmatprep.subr.mxu0 %v2594_v35  ;;  %3392 = vmatprep.subr.mxu1 %v3036_v36  ;;  %v1608_v36 = vld [vmem:[%s12488_s5 + $0x630] sm:$0xff] }
 0x223   :  { %3326 = vmatpush2.msra.mxu0 %v2593_v37  ;;  %3393 = vmatpush2.msra.mxu1 %v3035_v38  ;;  %v2880_v37 = vld [vmem:[%s12488_s5 + $0x2df0] sm:$0xff] }
 0x224   :  { %3327 = vmatprep.subr.mxu0 %v2581_v43  ;;  %3394 = vmatprep.subr.mxu1 %v3023_v44  ;;  %v2879_v43 = vld [vmem:[%s12488_s5 + $0x2de8] sm:$0xff] }
 0x225   :  { %3328 = vmatpush2.msra.mxu0 %v2580_v45  ;;  %3395 = vmatpush2.msra.mxu1 %v3022_v46  ;;  %v2867_v45 = vld [vmem:[%s12488_s5 + $0x2d88] sm:$0xff] }
 0x226   :  { %3329 = vmatprep.subr.mxu0 %v2568_v47  ;;  %3396 = vmatprep.subr.mxu1 %v3010_v48  ;;  %v2866_v48 = vld [vmem:[%s12488_s5 + $0x2d80] sm:$0xff] }
 0x227   :  { %3330 = vmatpush2.msra.mxu0 %v2567_v39  ;;  %3397 = vmatpush2.msra.mxu1 %v3009_v30  ;;  %v2024_v30 = vld [vmem:[%s12488_s5 + $0x1330] sm:$0xff] }
 0x228   :  { %3331 = vmatprep.subr.mxu0 %v2555_v42  ;;  %3398 = vmatprep.subr.mxu1 %v2997_v50 }
 0x229   :  { %3332 = vmatpush2.msra.mxu0 %v2554_v51  ;;  %3399 = vmatpush2.msra.mxu1 %v2996_v52  ;;  %v1607_v51 = vld [vmem:[%s12488_s5 + $0x628] sm:$0xff] }
 0x22a   :  { %3333 = vmatprep.subr.mxu0 %v2542_v53  ;;  %3400 = vmatprep.subr.mxu1 %v2984_v54  ;;  %v1595_v52 = vld [vmem:[%s12488_s5 + $0x5c8] sm:$0xff]  ;;  %v1594_v53 = vld [vmem:[%s12488_s5 + $0x5c0] sm:$0xff] }
 0x22b   :  { %3334 = vmatpush2.msra.mxu0 %v2541_v55  ;;  %3401 = vmatpush2.msra.mxu1 %v2983_v56  ;;  %v1582_v54 = vld [vmem:[%s12488_s5 + $0x560] sm:$0xff]  ;;  %v1581_v55 = vld [vmem:[%s12488_s5 + $0x558] sm:$0xff] }
 0x22c   :  { %3335 = vmatprep.subr.mxu0 %v2529_v57  ;;  %3402 = vmatprep.subr.mxu1 %v2971_v58  ;;  %v1569_v56 = vld [vmem:[%s12488_s5 + $0x4f8] sm:$0xff]  ;;  %v1568_v57 = vld [vmem:[%s12488_s5 + $0x4f0] sm:$0xff] }
 0x22d   :  { %3336 = vmatpush2.msra.mxu0 %v2528_v59  ;;  %3403 = vmatpush2.msra.mxu1 %v2970_v31  ;;  %v1556_v58 = vld [vmem:[%s12488_s5 + $0x490] sm:$0xff]  ;;  %v1555_v59 = vld [vmem:[%s12488_s5 + $0x488] sm:$0xff] }
 0x22e   :  { %3337 = vmatprep.subr.mxu0 %v2516_v60  ;;  %3404 = vmatprep.subr.mxu1 %v2958_v24  ;;  %v1543_v31 = vld [vmem:[%s12488_s5 + $0x428] sm:$0xff]  ;;  %v1542_v60 = vld [vmem:[%s12488_s5 + $0x420] sm:$0xff] }
 0x22f   :  { %3338 = vmatpush2.msra.mxu0 %v2515_v61  ;;  %3405 = vmatpush2.msra.mxu1 %v2957_v62  ;;  %v1530_v24 = vld [vmem:[%s12488_s5 + $0x3c0] sm:$0xff]  ;;  %v1529_v61 = vld [vmem:[%s12488_s5 + $0x3b8] sm:$0xff] }
 0x230   :  { %3339 = vmatprep.subr.mxu0 %v2503_v63  ;;  %3406 = vmatprep.subr.mxu1 %v2945_v0  ;;  %v1517_v62 = vld [vmem:[%s12488_s5 + $0x358] sm:$0xff]  ;;  %v1516_v63 = vld [vmem:[%s12488_s5 + $0x350] sm:$0xff] }
 0x231   :  { %3340 = vmatpush2.msra.mxu0 %v2502_v2  ;;  %3407 = vmatpush2.msra.mxu1 %v2944_v3  ;;  %v1504_v0 = vld [vmem:[%s12488_s5 + $0x2f0] sm:$0xff]  ;;  %v1503_v2 = vld [vmem:[%s12488_s5 + $0x2e8] sm:$0xff] }
 0x232   :  { %3341 = vmatprep.subr.mxu0 %v2490_v5  ;;  %3408 = vmatprep.subr.mxu1 %v2932_v6  ;;  %v1491_v3 = vld [vmem:[%s12488_s5 + $0x288] sm:$0xff]  ;;  %v1490_v5 = vld [vmem:[%s12488_s5 + $0x280] sm:$0xff] }
 0x233   :  { %3342 = vmatpush2.msra.mxu0 %v2489_v7  ;;  %3409 = vmatpush2.msra.mxu1 %v2931_v8  ;;  %v1478_v6 = vld [vmem:[%s12488_s5 + $0x220] sm:$0xff]  ;;  %v1477_v7 = vld [vmem:[%s12488_s5 + $0x218] sm:$0xff] }
 0x234   :  { %3343 = vmatprep.subr.mxu0 %v2477_v10  ;;  %3410 = vmatprep.subr.mxu1 %v2919_v12  ;;  %v1465_v8 = vld [vmem:[%s12488_s5 + $0x1b8] sm:$0xff]  ;;  %v1464_v10 = vld [vmem:[%s12488_s5 + $0x1b0] sm:$0xff] }
 0x235   :  { %3344 = vmatpush2.msra.mxu0 %v2476_v14  ;;  %3411 = vmatpush2.msra.mxu1 %v2918_v15  ;;  %v1452_v12 = vld [vmem:[%s12488_s5 + $0x150] sm:$0xff]  ;;  %v1451_v14 = vld [vmem:[%s12488_s5 + $0x148] sm:$0xff] }
 0x236   :  { %v1184_v29 = vpop.f32.mrf.mxu0  ;;  %v1255_v32 = vpop.f32.mrf.mxu1  ;;  %3345 = vmatprep.subr.mxu0 %v2464_v18  ;;  %3412 = vmatprep.subr.mxu1 %v2906_v19  ;;  %v1439_v15 = vld [vmem:[%s12488_s5 + $0xe8] sm:$0xff]  ;;  %v1426_v18 = vld [vmem:[%s12488_s5 + $0x80] sm:$0xff]  ;;  %v1425_v19 = vld [vmem:[%s12488_s5 + $0x78] sm:$0xff] }
 0x237   :  { %v1185_v35 = vadd.f32 %v1184_v29, %v813_v17  ;;  %3346 = vmatpush2.msra.mxu0 %v2463_v20  ;;  %3413 = vmatpush2.msra.mxu1 %v2905_v27  ;;  %v1438_v17 = vld [vmem:[%s12488_s5 + $0xe0] sm:$0xff]  ;;  %v1413_v20 = vld [vmem:[%s12488_s5 + $0x18] sm:$0xff]  ;;  %v1412_v27 = vld [vmem:[%s12488_s5 + $0x10] sm:$0xff] }
 0x238   :  { %v1186_v38 = vpop.f32.mrf.mxu0  ;;  %3347 = vmatprep.subr.mxu0 %v2451_v28  ;;  %3414 = vmatprep.subr.mxu1 %v2893_v41  ;;  %v1257_v47 = vpop.f32.mrf.mxu1  ;;  %v1815_v28 = vld [vmem:[%s12488_s5 + $0xca8] sm:$0xff]  ;;  %v1802_v29 = vld [vmem:[%s12488_s5 + $0xc40] sm:$0xff] }
 0x239   :  { %v1187_v44 = vadd.f32 %v1186_v38, %v817_v40  ;;  %3348 = vmatpush2.msra.mxu0 %v2450_v33  ;;  %3415 = vmatpush2.msra.mxu1 %v2892_v34  ;;  %v1256_v46 = vadd.f32 %v1255_v32, %v1185_v35  ;;  %v1816_v40 = vld [vmem:[%s12488_s5 + $0xcb0] sm:$0xff]  ;;  %v1803_v41 = vld [vmem:[%s12488_s5 + $0xc48] sm:$0xff]  ;;  %v1790_v32 = vld [vmem:[%s12488_s5 + $0xbe0] sm:$0xff] }
 0x23a   :  { %3427 = vmatprep.subr.mxu0 %v1608_v36  ;;  %3416 = vmatprep.subr.mxu1 %v2880_v37  ;;  %v1789_v33 = vld [vmem:[%s12488_s5 + $0xbd8] sm:$0xff]  ;;  %v1776_v35 = vld [vmem:[%s12488_s5 + $0xb70] sm:$0xff]  ;;  %v1763_v37 = vld [vmem:[%s12488_s5 + $0xb08] sm:$0xff] }
 0x23b   :  { %v1258_v39 = vadd.f32 %v1257_v47, %v1187_v44  ;;  %3417 = vmatpush2.msra.mxu1 %v2879_v43  ;;  %v8122_v50 = vmax.f32 %v1256_v46, 0.0  ;;  %v1777_v34 = vld [vmem:[%s12488_s5 + $0xb78] sm:$0xff]  ;;  %v1764_v36 = vld [vmem:[%s12488_s5 + $0xb10] sm:$0xff]  ;;  %v1751_v38 = vld [vmem:[%s12488_s5 + $0xaa8] sm:$0xff] }
 0x23c   :  { %3418 = vmatprep.subr.mxu1 %v2867_v45  ;;  %v1750_v43 = vld [vmem:[%s12488_s5 + $0xaa0] sm:$0xff]  ;;  %v1737_v45 = vld [vmem:[%s12488_s5 + $0xa38] sm:$0xff]  ;;  %v1724_v47 = vld [vmem:[%s12488_s5 + $0x9d0] sm:$0xff] }
 0x23d   :  { %v8120_v42 = vmax.f32 %v1258_v39, 0.0  ;;  %3419 = vmatpush2.msra.mxu1 %v2866_v48  ;;  %v1738_v44 = vld [vmem:[%s12488_s5 + $0xa40] sm:$0xff]  ;;  %v1725_v46 = vld [vmem:[%s12488_s5 + $0x9d8] sm:$0xff]  ;;  %v1712_v48 = vld [vmem:[%s12488_s5 + $0x970] sm:$0xff] }
 0x23e   :  { %3498 = vmatprep.subr.mxu1 %v2024_v30  ;;  %v1711_v39 = vld [vmem:[%s12488_s5 + $0x968] sm:$0xff] }
 0x23f   :  { %3349 = vmatprep.mubr.f32.mxu0 %v8120_v42  ;;  %v1699_v30 = vld [vmem:[%s12488_s5 + $0x908] sm:$0xff] }
 0x240   :  { %3350 = vmatmul.mubr.f32.vlgmr.msra.gmra.mxu0 %v8122_v50 }
 0x241   :  { %3428 = vmatpush1.msra.mxu0 %v1607_v51  ;;  %3491 = vmatprep.mubr.f32.mxu0 %v7333_v49  ;;  %v1698_v51 = vld [vmem:[%s12488_s5 + $0x900] sm:$0xff] }
 0x242   :  { %3429 = vmatprep.subr.mxu0 %v1595_v52  ;;  %v1686_v52 = vld [vmem:[%s12488_s5 + $0x8a0] sm:$0xff] }
 0x243   :  { %3430 = vmatpush1.msra.mxu0 %v1594_v53  ;;  %v820_v53 = vsub.s32 6, %v6110_v21 }
 0x244   :  { %3431 = vmatprep.subr.mxu0 %v1582_v54  ;;  %v1685_v54 = vld [vmem:[%s12488_s5 + $0x898] sm:$0xff] }
 0x245   :  { %3432 = vmatpush1.msra.mxu0 %v1581_v55  ;;  %v1673_v55 = vld [vmem:[%s12488_s5 + $0x838] sm:$0xff] }
 0x246   :  { %3433 = vmatprep.subr.mxu0 %v1569_v56  ;;  %v824_v56 = vsub.s32 7, %v6110_v21  ;;  %v2525_v21 = vld [vmem:[%s12488_s5 + $0x22d8] sm:$0xff] }
 0x247   :  { %3434 = vmatpush1.msra.mxu0 %v1568_v57  ;;  %v1672_v57 = vld [vmem:[%s12488_s5 + $0x830] sm:$0xff] }
 0x248   :  { %3435 = vmatprep.subr.mxu0 %v1556_v58  ;;  %v821_v58 = vrot.slane %v8071_v16, %v820_v53 }
 0x249   :  { %3436 = vmatpush1.msra.mxu0 %v1555_v59  ;;  %v1660_v59 = vld [vmem:[%s12488_s5 + $0x7d0] sm:$0xff] }
 0x24a   :  { %3437 = vmatprep.subr.mxu0 %v1543_v31  ;;  %v1659_v31 = vld [vmem:[%s12488_s5 + $0x7c8] sm:$0xff] }
 0x24b   :  { %3438 = vmatpush1.msra.mxu0 %v1542_v60  ;;  %v825_v60 = vrot.slane %v8071_v16, %v824_v56  ;;  %v1633_v16 = vld [vmem:[%s12488_s5 + $0x6f8] sm:$0xff] }
 0x24c   :  { %3439 = vmatprep.subr.mxu0 %v1530_v24  ;;  %v1647_v24 = vld [vmem:[%s12488_s5 + $0x768] sm:$0xff] }
 0x24d   :  { %3440 = vmatpush1.msra.mxu0 %v1529_v61 }
 0x24e   :  { %3441 = vmatprep.subr.mxu0 %v1517_v62 }
 0x24f   :  { %3442 = vmatpush1.msra.mxu0 %v1516_v63  ;;  %v1646_v63 = vld [vmem:[%s12488_s5 + $0x760] sm:$0xff] }
 0x250   :  { %3443 = vmatprep.subr.mxu0 %v1504_v0 }
 0x251   :  { %3444 = vmatpush1.msra.mxu0 %v1503_v2  ;;  %v1634_v2 = vld [vmem:[%s12488_s5 + $0x700] sm:$0xff] }
 0x252   :  { %3445 = vmatprep.subr.mxu0 %v1491_v3 }
 0x253   :  { %3446 = vmatpush1.msra.mxu0 %v1490_v5 }
 0x254   :  { %3447 = vmatprep.subr.mxu0 %v1478_v6  ;;  %v1621_v6 = vld [vmem:[%s12488_s5 + $0x698] sm:$0xff] }
 0x255   :  { %3448 = vmatpush1.msra.mxu0 %v1477_v7 }
 0x256   :  { %3449 = vmatprep.subr.mxu0 %v1465_v8 }
 0x257   :  { %3450 = vmatpush1.msra.mxu0 %v1464_v10  ;;  %v1620_v10 = vld [vmem:[%s12488_s5 + $0x690] sm:$0xff] }
 0x258   :  { %3451 = vmatprep.subr.mxu0 %v1452_v12 }
 0x259   :  { %3452 = vmatpush1.msra.mxu0 %v1451_v14  ;;  %v2440_v14 = vld [vmem:[%s12488_s5 + $0x2030] sm:$0xff] }
 0x25a   :  { %3453 = vmatprep.subr.mxu0 %v1439_v15  ;;  %v2439_v15 = vld [vmem:[%s12488_s5 + $0x2028] sm:$0xff] }
 0x25b   :  { %3454 = vmatpush1.msra.mxu0 %v1438_v17 }
 0x25c   :  { %3455 = vmatprep.subr.mxu0 %v1426_v18 }
 0x25d   :  { %3456 = vmatpush1.msra.mxu0 %v1425_v19  ;;  %v2023_v19 = vld [vmem:[%s12488_s5 + $0x1328] sm:$0xff] }
 0x25e   :  { %3457 = vmatprep.subr.mxu0 %v1413_v20  ;;  %v2011_v20 = vld [vmem:[%s12488_s5 + $0x12c8] sm:$0xff] }
 0x25f   :  { %3458 = vmatpush1.msra.mxu0 %v1412_v27  ;;  %v2427_v27 = vld [vmem:[%s12488_s5 + $0x1fc8] sm:$0xff] }
 0x260   :  { %3459 = vmatprep.subr.mxu0 %v1816_v40  ;;  %v2010_v40 = vld [vmem:[%s12488_s5 + $0x12c0] sm:$0xff] }
 0x261   :  { %3460 = vmatpush2.msra.mxu0 %v1815_v28  ;;  %v2426_v28 = vld [vmem:[%s12488_s5 + $0x1fc0] sm:$0xff] }
 0x262   :  { %3461 = vmatprep.subr.mxu0 %v1803_v41  ;;  %v1998_v41 = vld [vmem:[%s12488_s5 + $0x1260] sm:$0xff] }
 0x263   :  { %3462 = vmatpush2.msra.mxu0 %v1802_v29  ;;  %v2414_v29 = vld [vmem:[%s12488_s5 + $0x1f60] sm:$0xff] }
 0x264   :  { %3463 = vmatprep.subr.mxu0 %v1790_v32  ;;  %v1997_v32 = vld [vmem:[%s12488_s5 + $0x1258] sm:$0xff] }
 0x265   :  { %3464 = vmatpush2.msra.mxu0 %v1789_v33  ;;  %v2413_v33 = vld [vmem:[%s12488_s5 + $0x1f58] sm:$0xff] }
 0x266   :  { %3465 = vmatprep.subr.mxu0 %v1777_v34  ;;  %v1985_v34 = vld [vmem:[%s12488_s5 + $0x11f8] sm:$0xff] }
 0x267   :  { %3466 = vmatpush2.msra.mxu0 %v1776_v35  ;;  %v2401_v35 = vld [vmem:[%s12488_s5 + $0x1ef8] sm:$0xff] }
 0x268   :  { %3467 = vmatprep.subr.mxu0 %v1764_v36  ;;  %v1984_v36 = vld [vmem:[%s12488_s5 + $0x11f0] sm:$0xff] }
 0x269   :  { %3468 = vmatpush2.msra.mxu0 %v1763_v37  ;;  %v2400_v37 = vld [vmem:[%s12488_s5 + $0x1ef0] sm:$0xff] }
 0x26a   :  { %3469 = vmatprep.subr.mxu0 %v1751_v38  ;;  %v1972_v38 = vld [vmem:[%s12488_s5 + $0x1190] sm:$0xff] }
 0x26b   :  { %3470 = vmatpush2.msra.mxu0 %v1750_v43  ;;  %v2388_v43 = vld [vmem:[%s12488_s5 + $0x1e90] sm:$0xff] }
 0x26c   :  { %3471 = vmatprep.subr.mxu0 %v1738_v44  ;;  %v1971_v44 = vld [vmem:[%s12488_s5 + $0x1188] sm:$0xff] }
 0x26d   :  { %3472 = vmatpush2.msra.mxu0 %v1737_v45  ;;  %v2387_v45 = vld [vmem:[%s12488_s5 + $0x1e88] sm:$0xff] }
 0x26e   :  { %3473 = vmatprep.subr.mxu0 %v1725_v46  ;;  %v1959_v46 = vld [vmem:[%s12488_s5 + $0x1128] sm:$0xff] }
 0x26f   :  { %3474 = vmatpush2.msra.mxu0 %v1724_v47  ;;  %v2375_v47 = vld [vmem:[%s12488_s5 + $0x1e28] sm:$0xff] }
 0x270   :  { %3475 = vmatprep.subr.mxu0 %v1712_v48  ;;  %v1958_v48 = vld [vmem:[%s12488_s5 + $0x1120] sm:$0xff] }
 0x271   :  { %3476 = vmatpush2.msra.mxu0 %v1711_v39  ;;  %v2374_v39 = vld [vmem:[%s12488_s5 + $0x1e20] sm:$0xff] }
 0x272   :  { %3477 = vmatprep.subr.mxu0 %v1699_v30  ;;  %v1946_v30 = vld [vmem:[%s12488_s5 + $0x10c0] sm:$0xff] }
 0x273   :  { %3478 = vmatpush2.msra.mxu0 %v1698_v51  ;;  %v2362_v51 = vld [vmem:[%s12488_s5 + $0x1dc0] sm:$0xff] }
 0x274   :  { %3479 = vmatprep.subr.mxu0 %v1686_v52  ;;  %v1945_v52 = vld [vmem:[%s12488_s5 + $0x10b8] sm:$0xff] }
 0x275   :  { %3480 = vmatpush2.msra.mxu0 %v1685_v54  ;;  %v2361_v54 = vld [vmem:[%s12488_s5 + $0x1db8] sm:$0xff] }
 0x276   :  { %3481 = vmatprep.subr.mxu0 %v1673_v55  ;;  %v1933_v55 = vld [vmem:[%s12488_s5 + $0x1058] sm:$0xff] }
 0x277   :  { %3482 = vmatpush2.msra.mxu0 %v1672_v57  ;;  %v2349_v57 = vld [vmem:[%s12488_s5 + $0x1d58] sm:$0xff] }
 0x278   :  { %v1326_v61 = vpop.f32.mrf.mxu0  ;;  %v1397_v62 = vpop.f32.mrf.mxu1  ;;  %3483 = vmatprep.subr.mxu0 %v1660_v59  ;;  %v2348_v59 = vld [vmem:[%s12488_s5 + $0x1d50] sm:$0xff] }
 0x279   :  { %v1327_v0 = vadd.f32 %v1326_v61, %v821_v58  ;;  %3484 = vmatpush2.msra.mxu0 %v1659_v31  ;;  %v1932_v58 = vld [vmem:[%s12488_s5 + $0x1050] sm:$0xff]  ;;  %v2335_v61 = vld [vmem:[%s12488_s5 + $0x1ce8] sm:$0xff] }
 0x27a   :  { %v1328_v3 = vpop.f32.mrf.mxu0  ;;  %3485 = vmatprep.subr.mxu0 %v1647_v24  ;;  %v1399_v8 = vpop.f32.mrf.mxu1  ;;  %v1920_v31 = vld [vmem:[%s12488_s5 + $0xff0] sm:$0xff]  ;;  %v1919_v24 = vld [vmem:[%s12488_s5 + $0xfe8] sm:$0xff] }
 0x27b   :  { %v1329_v5 = vadd.f32 %v1328_v3, %v825_v60  ;;  %3486 = vmatpush2.msra.mxu0 %v1646_v63  ;;  %v1398_v7 = vadd.f32 %v1397_v62, %v1327_v0  ;;  %v2336_v60 = vld [vmem:[%s12488_s5 + $0x1cf0] sm:$0xff]  ;;  %v1907_v62 = vld [vmem:[%s12488_s5 + $0xf88] sm:$0xff]  ;;  %v1906_v0 = vld [vmem:[%s12488_s5 + $0xf80] sm:$0xff] }
 0x27c   :  { %3487 = vmatprep.subr.mxu0 %v1634_v2  ;;  %v2323_v63 = vld [vmem:[%s12488_s5 + $0x1c88] sm:$0xff]  ;;  %v2322_v2 = vld [vmem:[%s12488_s5 + $0x1c80] sm:$0xff] }
 0x27d   :  { %v1400_v12 = vadd.f32 %v1399_v8, %v1329_v5  ;;  %3488 = vmatpush2.msra.mxu0 %v1633_v16  ;;  %v8332_v18 = vmax.f32 %v1398_v7, 0.0  ;;  %v1894_v3 = vld [vmem:[%s12488_s5 + $0xf20] sm:$0xff]  ;;  %v1893_v5 = vld [vmem:[%s12488_s5 + $0xf18] sm:$0xff] }
 0x27e   :  { %3489 = vmatprep.subr.mxu0 %v1621_v6  ;;  %v2310_v16 = vld [vmem:[%s12488_s5 + $0x1c20] sm:$0xff]  ;;  %v2309_v6 = vld [vmem:[%s12488_s5 + $0x1c18] sm:$0xff] }
 0x27f   :  { %v8330_v17 = vmax.f32 %v1400_v12, 0.0  ;;  %3490 = vmatpush2.msra.mxu0 %v1620_v10  ;;  %v1881_v7 = vld [vmem:[%s12488_s5 + $0xeb8] sm:$0xff]  ;;  %v1880_v10 = vld [vmem:[%s12488_s5 + $0xeb0] sm:$0xff] }
 0x280   :  { %3492 = vmatmul.mubr.f32.vlgmr.msra.gmra.mxu0 %v7707_v1  ;;  %3569 = vmatprep.subr.mxu0 %v2440_v14  ;;  %v2297_v8 = vld [vmem:[%s12488_s5 + $0x1bb8] sm:$0xff]  ;;  %v2296_v12 = vld [vmem:[%s12488_s5 + $0x1bb0] sm:$0xff] }
 0x281   :  { %3420 = vmatprep.mubr.f32.mxu1 %v8330_v17  ;;  %3570 = vmatpush1.msra.mxu0 %v2439_v15  ;;  %v1868_v14 = vld [vmem:[%s12488_s5 + $0xe50] sm:$0xff] }
 0x282   :  { %3421 = vmatmul.mubr.f32.vlgmr.msra.gmra.mxu1 %v8332_v18  ;;  %3633 = vmatprep.mubr.f32.mxu0 %v8120_v42  ;;  %v2284_v15 = vld [vmem:[%s12488_s5 + $0x1b50] sm:$0xff] }
 0x283   :  { %3499 = vmatpush1.msra.mxu1 %v2023_v19  ;;  %3562 = vmatprep.mubr.f32.mxu1 %v7725_v11  ;;  %v1867_v19 = vld [vmem:[%s12488_s5 + $0xe48] sm:$0xff] }
 0x284   :  { %3500 = vmatprep.subr.mxu1 %v2011_v20  ;;  %3571 = vmatprep.subr.mxu0 %v2427_v27  ;;  %v2283_v20 = vld [vmem:[%s12488_s5 + $0x1b48] sm:$0xff] }
 0x285   :  { %3501 = vmatpush1.msra.mxu1 %v2010_v40  ;;  %3572 = vmatpush1.msra.mxu0 %v2426_v28  ;;  %v1855_v27 = vld [vmem:[%s12488_s5 + $0xde8] sm:$0xff]  ;;  %v1854_v28 = vld [vmem:[%s12488_s5 + $0xde0] sm:$0xff] }
 0x286   :  { %3502 = vmatprep.subr.mxu1 %v1998_v41  ;;  %3573 = vmatprep.subr.mxu0 %v2414_v29  ;;  %v2271_v40 = vld [vmem:[%s12488_s5 + $0x1ae8] sm:$0xff]  ;;  %v2270_v41 = vld [vmem:[%s12488_s5 + $0x1ae0] sm:$0xff] }
 0x287   :  { %3503 = vmatpush1.msra.mxu1 %v1997_v32  ;;  %3574 = vmatpush1.msra.mxu0 %v2413_v33  ;;  %v1842_v29 = vld [vmem:[%s12488_s5 + $0xd80] sm:$0xff]  ;;  %v1841_v33 = vld [vmem:[%s12488_s5 + $0xd78] sm:$0xff] }
 0x288   :  { %3504 = vmatprep.subr.mxu1 %v1985_v34  ;;  %3575 = vmatprep.subr.mxu0 %v2401_v35  ;;  %v2258_v32 = vld [vmem:[%s12488_s5 + $0x1a80] sm:$0xff]  ;;  %v2257_v34 = vld [vmem:[%s12488_s5 + $0x1a78] sm:$0xff] }
 0x289   :  { %3505 = vmatpush1.msra.mxu1 %v1984_v36  ;;  %3576 = vmatpush1.msra.mxu0 %v2400_v37  ;;  %v1829_v35 = vld [vmem:[%s12488_s5 + $0xd18] sm:$0xff]  ;;  %v1828_v37 = vld [vmem:[%s12488_s5 + $0xd10] sm:$0xff] }
 0x28a   :  { %3506 = vmatprep.subr.mxu1 %v1972_v38  ;;  %3577 = vmatprep.subr.mxu0 %v2388_v43  ;;  %v2245_v36 = vld [vmem:[%s12488_s5 + $0x1a18] sm:$0xff]  ;;  %v2244_v38 = vld [vmem:[%s12488_s5 + $0x1a10] sm:$0xff] }
 0x28b   :  { %3507 = vmatpush1.msra.mxu1 %v1971_v44  ;;  %3578 = vmatpush1.msra.mxu0 %v2387_v45  ;;  %v2232_v43 = vld [vmem:[%s12488_s5 + $0x19b0] sm:$0xff]  ;;  %v2231_v45 = vld [vmem:[%s12488_s5 + $0x19a8] sm:$0xff] }
 0x28c   :  { %3508 = vmatprep.subr.mxu1 %v1959_v46  ;;  %3579 = vmatprep.subr.mxu0 %v2375_v47  ;;  %v2648_v44 = vld [vmem:[%s12488_s5 + $0x26b0] sm:$0xff]  ;;  %v2647_v46 = vld [vmem:[%s12488_s5 + $0x26a8] sm:$0xff] }
 0x28d   :  { %3509 = vmatpush1.msra.mxu1 %v1958_v48  ;;  %3580 = vmatpush1.msra.mxu0 %v2374_v39  ;;  %v2219_v47 = vld [vmem:[%s12488_s5 + $0x1948] sm:$0xff]  ;;  %v2218_v39 = vld [vmem:[%s12488_s5 + $0x1940] sm:$0xff] }
 0x28e   :  { %3510 = vmatprep.subr.mxu1 %v1946_v30  ;;  %3581 = vmatprep.subr.mxu0 %v2362_v51  ;;  %v2635_v48 = vld [vmem:[%s12488_s5 + $0x2648] sm:$0xff]  ;;  %v2634_v30 = vld [vmem:[%s12488_s5 + $0x2640] sm:$0xff] }
 0x28f   :  { %3511 = vmatpush1.msra.mxu1 %v1945_v52  ;;  %3582 = vmatpush1.msra.mxu0 %v2361_v54  ;;  %v2206_v51 = vld [vmem:[%s12488_s5 + $0x18e0] sm:$0xff]  ;;  %v2205_v54 = vld [vmem:[%s12488_s5 + $0x18d8] sm:$0xff] }
 0x290   :  { %3512 = vmatprep.subr.mxu1 %v1933_v55  ;;  %3583 = vmatprep.subr.mxu0 %v2349_v57  ;;  %v2622_v52 = vld [vmem:[%s12488_s5 + $0x25e0] sm:$0xff]  ;;  %v2621_v55 = vld [vmem:[%s12488_s5 + $0x25d8] sm:$0xff] }
 0x291   :  { %3513 = vmatpush1.msra.mxu1 %v1932_v58  ;;  %3584 = vmatpush1.msra.mxu0 %v2348_v59  ;;  %v2193_v57 = vld [vmem:[%s12488_s5 + $0x1878] sm:$0xff]  ;;  %v2192_v59 = vld [vmem:[%s12488_s5 + $0x1870] sm:$0xff] }
 0x292   :  { %3514 = vmatprep.subr.mxu1 %v1920_v31  ;;  %3585 = vmatprep.subr.mxu0 %v2336_v60  ;;  %v2609_v58 = vld [vmem:[%s12488_s5 + $0x2578] sm:$0xff]  ;;  %v2608_v31 = vld [vmem:[%s12488_s5 + $0x2570] sm:$0xff] }
 0x293   :  { %3515 = vmatpush1.msra.mxu1 %v1919_v24  ;;  %3586 = vmatpush1.msra.mxu0 %v2335_v61  ;;  %v2180_v60 = vld [vmem:[%s12488_s5 + $0x1810] sm:$0xff]  ;;  %v2179_v61 = vld [vmem:[%s12488_s5 + $0x1808] sm:$0xff] }
 0x294   :  { %3516 = vmatprep.subr.mxu1 %v1907_v62  ;;  %3587 = vmatprep.subr.mxu0 %v2323_v63  ;;  %v2596_v24 = vld [vmem:[%s12488_s5 + $0x2510] sm:$0xff]  ;;  %v2595_v62 = vld [vmem:[%s12488_s5 + $0x2508] sm:$0xff] }
 0x295   :  { %3517 = vmatpush1.msra.mxu1 %v1906_v0  ;;  %3588 = vmatpush1.msra.mxu0 %v2322_v2  ;;  %v2167_v63 = vld [vmem:[%s12488_s5 + $0x17a8] sm:$0xff]  ;;  %v2166_v2 = vld [vmem:[%s12488_s5 + $0x17a0] sm:$0xff] }
 0x296   :  { %3518 = vmatprep.subr.mxu1 %v1894_v3  ;;  %3589 = vmatprep.subr.mxu0 %v2310_v16  ;;  %v2583_v0 = vld [vmem:[%s12488_s5 + $0x24a8] sm:$0xff]  ;;  %v2582_v3 = vld [vmem:[%s12488_s5 + $0x24a0] sm:$0xff] }
 0x297   :  { %3519 = vmatpush1.msra.mxu1 %v1893_v5  ;;  %3590 = vmatpush1.msra.mxu0 %v2309_v6  ;;  %v2154_v16 = vld [vmem:[%s12488_s5 + $0x1740] sm:$0xff]  ;;  %v2153_v6 = vld [vmem:[%s12488_s5 + $0x1738] sm:$0xff] }
 0x298   :  { %3520 = vmatprep.subr.mxu1 %v1881_v7  ;;  %3591 = vmatprep.subr.mxu0 %v2297_v8  ;;  %v2570_v5 = vld [vmem:[%s12488_s5 + $0x2440] sm:$0xff]  ;;  %v2569_v7 = vld [vmem:[%s12488_s5 + $0x2438] sm:$0xff] }
 0x299   :  { %3521 = vmatpush1.msra.mxu1 %v1880_v10  ;;  %3592 = vmatpush1.msra.mxu0 %v2296_v12  ;;  %v2141_v8 = vld [vmem:[%s12488_s5 + $0x16d8] sm:$0xff]  ;;  %v2140_v12 = vld [vmem:[%s12488_s5 + $0x16d0] sm:$0xff] }
 0x29a   :  { %3522 = vmatprep.subr.mxu1 %v1868_v14  ;;  %3593 = vmatprep.subr.mxu0 %v2284_v15  ;;  %v2557_v10 = vld [vmem:[%s12488_s5 + $0x23d8] sm:$0xff]  ;;  %v2556_v14 = vld [vmem:[%s12488_s5 + $0x23d0] sm:$0xff] }
 0x29b   :  { %3523 = vmatpush1.msra.mxu1 %v1867_v19  ;;  %3594 = vmatpush1.msra.mxu0 %v2283_v20  ;;  %v2128_v15 = vld [vmem:[%s12488_s5 + $0x1670] sm:$0xff]  ;;  %v2127_v20 = vld [vmem:[%s12488_s5 + $0x1668] sm:$0xff] }
 0x29c   :  { %3524 = vmatprep.subr.mxu1 %v1855_v27  ;;  %3595 = vmatprep.subr.mxu0 %v2271_v40  ;;  %v2544_v19 = vld [vmem:[%s12488_s5 + $0x2370] sm:$0xff]  ;;  %v2543_v27 = vld [vmem:[%s12488_s5 + $0x2368] sm:$0xff] }
 0x29d   :  { %3525 = vmatpush1.msra.mxu1 %v1854_v28  ;;  %3596 = vmatpush1.msra.mxu0 %v2270_v41  ;;  %v2115_v40 = vld [vmem:[%s12488_s5 + $0x1608] sm:$0xff]  ;;  %v2114_v41 = vld [vmem:[%s12488_s5 + $0x1600] sm:$0xff] }
 0x29e   :  { %3526 = vmatprep.subr.mxu1 %v1842_v29  ;;  %3597 = vmatprep.subr.mxu0 %v2258_v32  ;;  %v2531_v28 = vld [vmem:[%s12488_s5 + $0x2308] sm:$0xff]  ;;  %v2530_v29 = vld [vmem:[%s12488_s5 + $0x2300] sm:$0xff] }
 0x29f   :  { %3527 = vmatpush1.msra.mxu1 %v1841_v33  ;;  %3598 = vmatpush1.msra.mxu0 %v2257_v34  ;;  %v2102_v32 = vld [vmem:[%s12488_s5 + $0x15a0] sm:$0xff]  ;;  %v2101_v34 = vld [vmem:[%s12488_s5 + $0x1598] sm:$0xff] }
 0x2a0   :  { %3528 = vmatprep.subr.mxu1 %v1829_v35  ;;  %3599 = vmatprep.subr.mxu0 %v2245_v36  ;;  %v2518_v33 = vld [vmem:[%s12488_s5 + $0x22a0] sm:$0xff]  ;;  %v2517_v35 = vld [vmem:[%s12488_s5 + $0x2298] sm:$0xff] }
 0x2a1   :  { %3529 = vmatpush1.msra.mxu1 %v1828_v37  ;;  %3600 = vmatpush1.msra.mxu0 %v2244_v38  ;;  %v2089_v36 = vld [vmem:[%s12488_s5 + $0x1538] sm:$0xff]  ;;  %v2088_v38 = vld [vmem:[%s12488_s5 + $0x1530] sm:$0xff] }
 0x2a2   :  { %3530 = vmatprep.subr.mxu1 %v2232_v43  ;;  %3601 = vmatprep.subr.mxu0 %v2648_v44  ;;  %v2505_v37 = vld [vmem:[%s12488_s5 + $0x2238] sm:$0xff]  ;;  %v2504_v43 = vld [vmem:[%s12488_s5 + $0x2230] sm:$0xff] }
 0x2a3   :  { %3531 = vmatpush2.msra.mxu1 %v2231_v45  ;;  %3602 = vmatpush2.msra.mxu0 %v2647_v46  ;;  %v2076_v44 = vld [vmem:[%s12488_s5 + $0x14d0] sm:$0xff]  ;;  %v2075_v46 = vld [vmem:[%s12488_s5 + $0x14c8] sm:$0xff] }
 0x2a4   :  { %3532 = vmatprep.subr.mxu1 %v2219_v47  ;;  %3603 = vmatprep.subr.mxu0 %v2635_v48  ;;  %v2492_v45 = vld [vmem:[%s12488_s5 + $0x21d0] sm:$0xff]  ;;  %v2491_v47 = vld [vmem:[%s12488_s5 + $0x21c8] sm:$0xff] }
 0x2a5   :  { %3533 = vmatpush2.msra.mxu1 %v2218_v39  ;;  %3604 = vmatpush2.msra.mxu0 %v2634_v30  ;;  %v2063_v48 = vld [vmem:[%s12488_s5 + $0x1468] sm:$0xff]  ;;  %v2062_v30 = vld [vmem:[%s12488_s5 + $0x1460] sm:$0xff] }
 0x2a6   :  { %3534 = vmatprep.subr.mxu1 %v2206_v51  ;;  %3605 = vmatprep.subr.mxu0 %v2622_v52  ;;  %v2479_v39 = vld [vmem:[%s12488_s5 + $0x2168] sm:$0xff]  ;;  %v2478_v51 = vld [vmem:[%s12488_s5 + $0x2160] sm:$0xff] }
 0x2a7   :  { %3535 = vmatpush2.msra.mxu1 %v2205_v54  ;;  %3606 = vmatpush2.msra.mxu0 %v2621_v55  ;;  %v2050_v52 = vld [vmem:[%s12488_s5 + $0x1400] sm:$0xff]  ;;  %v2049_v55 = vld [vmem:[%s12488_s5 + $0x13f8] sm:$0xff] }
 0x2a8   :  { %3536 = vmatprep.subr.mxu1 %v2193_v57  ;;  %3607 = vmatprep.subr.mxu0 %v2609_v58  ;;  %v2466_v54 = vld [vmem:[%s12488_s5 + $0x2100] sm:$0xff]  ;;  %v2465_v57 = vld [vmem:[%s12488_s5 + $0x20f8] sm:$0xff] }
 0x2a9   :  { %3537 = vmatpush2.msra.mxu1 %v2192_v59  ;;  %3608 = vmatpush2.msra.mxu0 %v2608_v31  ;;  %v2037_v58 = vld [vmem:[%s12488_s5 + $0x1398] sm:$0xff]  ;;  %v2036_v31 = vld [vmem:[%s12488_s5 + $0x1390] sm:$0xff] }
 0x2aa   :  { %3538 = vmatprep.subr.mxu1 %v2180_v60  ;;  %3609 = vmatprep.subr.mxu0 %v2596_v24  ;;  %v2453_v59 = vld [vmem:[%s12488_s5 + $0x2098] sm:$0xff]  ;;  %v2452_v60 = vld [vmem:[%s12488_s5 + $0x2090] sm:$0xff] }
 0x2ab   :  { %3539 = vmatpush2.msra.mxu1 %v2179_v61  ;;  %3610 = vmatpush2.msra.mxu0 %v2595_v62  ;;  %v2856_v24 = vld [vmem:[%s12488_s5 + $0x2d30] sm:$0xff]  ;;  %v1610_v61 = vld [vmem:[%s12488_s5 + $0x640] sm:$0xff]  ;;  %v2855_v62 = vld [vmem:[%s12488_s5 + $0x2d28] sm:$0xff] }
 0x2ac   :  { %3540 = vmatprep.subr.mxu1 %v2167_v63  ;;  %3611 = vmatprep.subr.mxu0 %v2583_v0  ;;  %v1609_v63 = vld [vmem:[%s12488_s5 + $0x638] sm:$0xff]  ;;  %v2843_v0 = vld [vmem:[%s12488_s5 + $0x2cc8] sm:$0xff] }
 0x2ad   :  { %3541 = vmatpush2.msra.mxu1 %v2166_v2  ;;  %3612 = vmatpush2.msra.mxu0 %v2582_v3  ;;  %v1597_v2 = vld [vmem:[%s12488_s5 + $0x5d8] sm:$0xff]  ;;  %v2842_v3 = vld [vmem:[%s12488_s5 + $0x2cc0] sm:$0xff] }
 0x2ae   :  { %3542 = vmatprep.subr.mxu1 %v2154_v16  ;;  %3613 = vmatprep.subr.mxu0 %v2570_v5  ;;  %v1596_v16 = vld [vmem:[%s12488_s5 + $0x5d0] sm:$0xff]  ;;  %v2830_v5 = vld [vmem:[%s12488_s5 + $0x2c60] sm:$0xff] }
 0x2af   :  { %3543 = vmatpush2.msra.mxu1 %v2153_v6  ;;  %3614 = vmatpush2.msra.mxu0 %v2569_v7  ;;  %v1584_v6 = vld [vmem:[%s12488_s5 + $0x570] sm:$0xff]  ;;  %v2829_v7 = vld [vmem:[%s12488_s5 + $0x2c58] sm:$0xff] }
 0x2b0   :  { %3544 = vmatprep.subr.mxu1 %v2141_v8  ;;  %3615 = vmatprep.subr.mxu0 %v2557_v10  ;;  %v1583_v8 = vld [vmem:[%s12488_s5 + $0x568] sm:$0xff]  ;;  %v2817_v10 = vld [vmem:[%s12488_s5 + $0x2bf8] sm:$0xff] }
 0x2b1   :  { %3545 = vmatpush2.msra.mxu1 %v2140_v12  ;;  %3616 = vmatpush2.msra.mxu0 %v2556_v14  ;;  %v1571_v12 = vld [vmem:[%s12488_s5 + $0x508] sm:$0xff]  ;;  %v2816_v14 = vld [vmem:[%s12488_s5 + $0x2bf0] sm:$0xff] }
 0x2b2   :  { %3546 = vmatprep.subr.mxu1 %v2128_v15  ;;  %3617 = vmatprep.subr.mxu0 %v2544_v19  ;;  %v1570_v15 = vld [vmem:[%s12488_s5 + $0x500] sm:$0xff]  ;;  %v2804_v19 = vld [vmem:[%s12488_s5 + $0x2b90] sm:$0xff] }
 0x2b3   :  { %3547 = vmatpush2.msra.mxu1 %v2127_v20  ;;  %3618 = vmatpush2.msra.mxu0 %v2543_v27  ;;  %v1558_v20 = vld [vmem:[%s12488_s5 + $0x4a0] sm:$0xff]  ;;  %v2803_v27 = vld [vmem:[%s12488_s5 + $0x2b88] sm:$0xff] }
 0x2b4   :  { %3548 = vmatprep.subr.mxu1 %v2115_v40  ;;  %3619 = vmatprep.subr.mxu0 %v2531_v28  ;;  %v1557_v40 = vld [vmem:[%s12488_s5 + $0x498] sm:$0xff]  ;;  %v2791_v28 = vld [vmem:[%s12488_s5 + $0x2b28] sm:$0xff] }
 0x2b5   :  { %3549 = vmatpush2.msra.mxu1 %v2114_v41  ;;  %3620 = vmatpush2.msra.mxu0 %v2530_v29  ;;  %v1545_v41 = vld [vmem:[%s12488_s5 + $0x438] sm:$0xff]  ;;  %v2790_v29 = vld [vmem:[%s12488_s5 + $0x2b20] sm:$0xff] }
 0x2b6   :  { %3550 = vmatprep.subr.mxu1 %v2102_v32  ;;  %3621 = vmatprep.subr.mxu0 %v2518_v33  ;;  %v1544_v32 = vld [vmem:[%s12488_s5 + $0x430] sm:$0xff]  ;;  %v2778_v33 = vld [vmem:[%s12488_s5 + $0x2ac0] sm:$0xff] }
 0x2b7   :  { %3551 = vmatpush2.msra.mxu1 %v2101_v34  ;;  %3622 = vmatpush2.msra.mxu0 %v2517_v35  ;;  %v1532_v34 = vld [vmem:[%s12488_s5 + $0x3d0] sm:$0xff]  ;;  %v2777_v35 = vld [vmem:[%s12488_s5 + $0x2ab8] sm:$0xff] }
 0x2b8   :  { %3552 = vmatprep.subr.mxu1 %v2089_v36  ;;  %3623 = vmatprep.subr.mxu0 %v2505_v37  ;;  %v1531_v36 = vld [vmem:[%s12488_s5 + $0x3c8] sm:$0xff]  ;;  %v2765_v37 = vld [vmem:[%s12488_s5 + $0x2a58] sm:$0xff] }
 0x2b9   :  { %3553 = vmatpush2.msra.mxu1 %v2088_v38  ;;  %3624 = vmatpush2.msra.mxu0 %v2504_v43  ;;  %v1519_v38 = vld [vmem:[%s12488_s5 + $0x368] sm:$0xff]  ;;  %v2764_v43 = vld [vmem:[%s12488_s5 + $0x2a50] sm:$0xff] }
 0x2ba   :  { %3554 = vmatprep.subr.mxu1 %v2076_v44  ;;  %3625 = vmatprep.subr.mxu0 %v2492_v45  ;;  %v1518_v44 = vld [vmem:[%s12488_s5 + $0x360] sm:$0xff]  ;;  %v2752_v45 = vld [vmem:[%s12488_s5 + $0x29f0] sm:$0xff] }
 0x2bb   :  { %3555 = vmatpush2.msra.mxu1 %v2075_v46  ;;  %3626 = vmatpush2.msra.mxu0 %v2491_v47  ;;  %v1506_v46 = vld [vmem:[%s12488_s5 + $0x300] sm:$0xff]  ;;  %v2751_v47 = vld [vmem:[%s12488_s5 + $0x29e8] sm:$0xff] }
 0x2bc   :  { %3556 = vmatprep.subr.mxu1 %v2063_v48  ;;  %3627 = vmatprep.subr.mxu0 %v2479_v39  ;;  %v1505_v48 = vld [vmem:[%s12488_s5 + $0x2f8] sm:$0xff]  ;;  %v2739_v39 = vld [vmem:[%s12488_s5 + $0x2988] sm:$0xff] }
 0x2bd   :  { %3557 = vmatpush2.msra.mxu1 %v2062_v30  ;;  %3628 = vmatpush2.msra.mxu0 %v2478_v51  ;;  %v1493_v30 = vld [vmem:[%s12488_s5 + $0x298] sm:$0xff]  ;;  %v2738_v51 = vld [vmem:[%s12488_s5 + $0x2980] sm:$0xff] }
 0x2be   :  { %3558 = vmatprep.subr.mxu1 %v2050_v52  ;;  %3629 = vmatprep.subr.mxu0 %v2466_v54  ;;  %v1492_v52 = vld [vmem:[%s12488_s5 + $0x290] sm:$0xff]  ;;  %v2726_v54 = vld [vmem:[%s12488_s5 + $0x2920] sm:$0xff] }
 0x2bf   :  { %3559 = vmatpush2.msra.mxu1 %v2049_v55  ;;  %3630 = vmatpush2.msra.mxu0 %v2465_v57  ;;  %v1480_v55 = vld [vmem:[%s12488_s5 + $0x230] sm:$0xff]  ;;  %v2725_v57 = vld [vmem:[%s12488_s5 + $0x2918] sm:$0xff] }
 0x2c0   :  { %3560 = vmatprep.subr.mxu1 %v2037_v58  ;;  %3631 = vmatprep.subr.mxu0 %v2453_v59  ;;  %v1479_v58 = vld [vmem:[%s12488_s5 + $0x228] sm:$0xff]  ;;  %v2713_v59 = vld [vmem:[%s12488_s5 + $0x28b8] sm:$0xff] }
 0x2c1   :  { %3561 = vmatpush2.msra.mxu1 %v2036_v31  ;;  %3632 = vmatpush2.msra.mxu0 %v2452_v60  ;;  %v1467_v31 = vld [vmem:[%s12488_s5 + $0x1c8] sm:$0xff]  ;;  %v2712_v60 = vld [vmem:[%s12488_s5 + $0x28b0] sm:$0xff] }
 0x2c2   :  { %3563 = vmatmul.mubr.f32.vlgmr.msra.gmra.mxu1 %v7730_v13  ;;  %3634 = vmatmul.mubr.f32.vlgmr.msra.gmra.mxu0 %v8122_v50 }
 0x2c3   :  { %3640 = vmatprep.subr.mxu1 %v2856_v24  ;;  %3711 = vmatprep.subr.mxu0 %v1610_v61  ;;  %v1466_v24 = vld [vmem:[%s12488_s5 + $0x1c0] sm:$0xff]  ;;  %v2700_v61 = vld [vmem:[%s12488_s5 + $0x2850] sm:$0xff] }
 0x2c4   :  { %3641 = vmatpush1.msra.mxu1 %v2855_v62  ;;  %3704 = vmatprep.mubr.f32.mxu1 %v8330_v17  ;;  %v1454_v62 = vld [vmem:[%s12488_s5 + $0x160] sm:$0xff] }
 0x2c5   :  { %3712 = vmatpush1.msra.mxu0 %v1609_v63  ;;  %3775 = vmatprep.mubr.f32.mxu0 %v7333_v49  ;;  %v2699_v63 = vld [vmem:[%s12488_s5 + $0x2848] sm:$0xff] }
 0x2c6   :  { %3642 = vmatprep.subr.mxu1 %v2843_v0  ;;  %3713 = vmatprep.subr.mxu0 %v1597_v2  ;;  %v1453_v0 = vld [vmem:[%s12488_s5 + $0x158] sm:$0xff]  ;;  %v2687_v2 = vld [vmem:[%s12488_s5 + $0x27e8] sm:$0xff] }
 0x2c7   :  { %3643 = vmatpush1.msra.mxu1 %v2842_v3  ;;  %3714 = vmatpush1.msra.mxu0 %v1596_v16  ;;  %v1441_v3 = vld [vmem:[%s12488_s5 + $0xf8] sm:$0xff]  ;;  %v2686_v16 = vld [vmem:[%s12488_s5 + $0x27e0] sm:$0xff] }
 0x2c8   :  { %3644 = vmatprep.subr.mxu1 %v2830_v5  ;;  %3715 = vmatprep.subr.mxu0 %v1584_v6  ;;  %v1440_v5 = vld [vmem:[%s12488_s5 + $0xf0] sm:$0xff]  ;;  %v2674_v6 = vld [vmem:[%s12488_s5 + $0x2780] sm:$0xff] }
 0x2c9   :  { %3645 = vmatpush1.msra.mxu1 %v2829_v7  ;;  %3716 = vmatpush1.msra.mxu0 %v1583_v8  ;;  %v1428_v7 = vld [vmem:[%s12488_s5 + $0x90] sm:$0xff]  ;;  %v2673_v8 = vld [vmem:[%s12488_s5 + $0x2778] sm:$0xff] }
 0x2ca   :  { %3646 = vmatprep.subr.mxu1 %v2817_v10  ;;  %3717 = vmatprep.subr.mxu0 %v1571_v12  ;;  %v1427_v10 = vld [vmem:[%s12488_s5 + $0x88] sm:$0xff]  ;;  %v2661_v12 = vld [vmem:[%s12488_s5 + $0x2718] sm:$0xff] }
 0x2cb   :  { %3647 = vmatpush1.msra.mxu1 %v2816_v14  ;;  %3718 = vmatpush1.msra.mxu0 %v1570_v15  ;;  %v1415_v14 = vld [vmem:[%s12488_s5 + $0x28] sm:$0xff]  ;;  %v2660_v15 = vld [vmem:[%s12488_s5 + $0x2710] sm:$0xff] }
 0x2cc   :  { %3648 = vmatprep.subr.mxu1 %v2804_v19  ;;  %3719 = vmatprep.subr.mxu0 %v1558_v20  ;;  %v1414_v19 = vld [vmem:[%s12488_s5 + $0x20] sm:$0xff]  ;;  %v3064_v20 = vld [vmem:[%s12488_s5 + $0x33b0] sm:$0xff] }
 0x2cd   :  { %3649 = vmatpush1.msra.mxu1 %v2803_v27  ;;  %3720 = vmatpush1.msra.mxu0 %v1557_v40  ;;  %v1818_v27 = vld [vmem:[%s12488_s5 + $0xcc0] sm:$0xff]  ;;  %v3063_v40 = vld [vmem:[%s12488_s5 + $0x33a8] sm:$0xff] }
 0x2ce   :  { %3650 = vmatprep.subr.mxu1 %v2791_v28  ;;  %3721 = vmatprep.subr.mxu0 %v1545_v41  ;;  %v1817_v28 = vld [vmem:[%s12488_s5 + $0xcb8] sm:$0xff]  ;;  %v3051_v41 = vld [vmem:[%s12488_s5 + $0x3348] sm:$0xff] }
 0x2cf   :  { %3651 = vmatpush1.msra.mxu1 %v2790_v29  ;;  %3722 = vmatpush1.msra.mxu0 %v1544_v32  ;;  %v1805_v29 = vld [vmem:[%s12488_s5 + $0xc58] sm:$0xff]  ;;  %v3050_v32 = vld [vmem:[%s12488_s5 + $0x3340] sm:$0xff] }
 0x2d0   :  { %3652 = vmatprep.subr.mxu1 %v2778_v33  ;;  %3723 = vmatprep.subr.mxu0 %v1532_v34  ;;  %v1804_v33 = vld [vmem:[%s12488_s5 + $0xc50] sm:$0xff]  ;;  %v3038_v34 = vld [vmem:[%s12488_s5 + $0x32e0] sm:$0xff] }
 0x2d1   :  { %3653 = vmatpush1.msra.mxu1 %v2777_v35  ;;  %3724 = vmatpush1.msra.mxu0 %v1531_v36  ;;  %v1792_v35 = vld [vmem:[%s12488_s5 + $0xbf0] sm:$0xff]  ;;  %v3037_v36 = vld [vmem:[%s12488_s5 + $0x32d8] sm:$0xff] }
 0x2d2   :  { %3654 = vmatprep.subr.mxu1 %v2765_v37  ;;  %3725 = vmatprep.subr.mxu0 %v1519_v38  ;;  %v1791_v37 = vld [vmem:[%s12488_s5 + $0xbe8] sm:$0xff]  ;;  %v3025_v38 = vld [vmem:[%s12488_s5 + $0x3278] sm:$0xff] }
 0x2d3   :  { %3655 = vmatpush1.msra.mxu1 %v2764_v43  ;;  %3726 = vmatpush1.msra.mxu0 %v1518_v44  ;;  %v1779_v43 = vld [vmem:[%s12488_s5 + $0xb88] sm:$0xff]  ;;  %v3024_v44 = vld [vmem:[%s12488_s5 + $0x3270] sm:$0xff] }
 0x2d4   :  { %3656 = vmatprep.subr.mxu1 %v2752_v45  ;;  %3727 = vmatprep.subr.mxu0 %v1506_v46  ;;  %v1778_v45 = vld [vmem:[%s12488_s5 + $0xb80] sm:$0xff]  ;;  %v3012_v46 = vld [vmem:[%s12488_s5 + $0x3210] sm:$0xff] }
 0x2d5   :  { %3657 = vmatpush1.msra.mxu1 %v2751_v47  ;;  %3728 = vmatpush1.msra.mxu0 %v1505_v48  ;;  %v1766_v47 = vld [vmem:[%s12488_s5 + $0xb20] sm:$0xff]  ;;  %v3011_v48 = vld [vmem:[%s12488_s5 + $0x3208] sm:$0xff] }
 0x2d6   :  { %3658 = vmatprep.subr.mxu1 %v2739_v39  ;;  %3729 = vmatprep.subr.mxu0 %v1493_v30  ;;  %v1765_v39 = vld [vmem:[%s12488_s5 + $0xb18] sm:$0xff]  ;;  %v2999_v30 = vld [vmem:[%s12488_s5 + $0x31a8] sm:$0xff] }
 0x2d7   :  { %3659 = vmatpush1.msra.mxu1 %v2738_v51  ;;  %3730 = vmatpush1.msra.mxu0 %v1492_v52  ;;  %v1753_v51 = vld [vmem:[%s12488_s5 + $0xab8] sm:$0xff]  ;;  %v2998_v52 = vld [vmem:[%s12488_s5 + $0x31a0] sm:$0xff] }
 0x2d8   :  { %3660 = vmatprep.subr.mxu1 %v2726_v54  ;;  %3731 = vmatprep.subr.mxu0 %v1480_v55  ;;  %v1752_v54 = vld [vmem:[%s12488_s5 + $0xab0] sm:$0xff]  ;;  %v2986_v55 = vld [vmem:[%s12488_s5 + $0x3140] sm:$0xff] }
 0x2d9   :  { %3661 = vmatpush1.msra.mxu1 %v2725_v57  ;;  %3732 = vmatpush1.msra.mxu0 %v1479_v58  ;;  %v1740_v57 = vld [vmem:[%s12488_s5 + $0xa50] sm:$0xff]  ;;  %v2985_v58 = vld [vmem:[%s12488_s5 + $0x3138] sm:$0xff] }
 0x2da   :  { %3662 = vmatprep.subr.mxu1 %v2713_v59  ;;  %3733 = vmatprep.subr.mxu0 %v1467_v31  ;;  %v1739_v59 = vld [vmem:[%s12488_s5 + $0xa48] sm:$0xff]  ;;  %v2973_v31 = vld [vmem:[%s12488_s5 + $0x30d8] sm:$0xff] }
 0x2db   :  { %3663 = vmatpush1.msra.mxu1 %v2712_v60  ;;  %3734 = vmatpush1.msra.mxu0 %v1466_v24  ;;  %v1727_v60 = vld [vmem:[%s12488_s5 + $0x9e8] sm:$0xff]  ;;  %v2972_v24 = vld [vmem:[%s12488_s5 + $0x30d0] sm:$0xff] }
 0x2dc   :  { %3664 = vmatprep.subr.mxu1 %v2700_v61  ;;  %3735 = vmatprep.subr.mxu0 %v1454_v62  ;;  %v1726_v61 = vld [vmem:[%s12488_s5 + $0x9e0] sm:$0xff]  ;;  %v2960_v62 = vld [vmem:[%s12488_s5 + $0x3070] sm:$0xff] }
 0x2dd   :  { %3665 = vmatpush1.msra.mxu1 %v2699_v63  ;;  %3736 = vmatpush1.msra.mxu0 %v1453_v0  ;;  %v1714_v63 = vld [vmem:[%s12488_s5 + $0x980] sm:$0xff]  ;;  %v2959_v0 = vld [vmem:[%s12488_s5 + $0x3068] sm:$0xff] }
 0x2de   :  { %3666 = vmatprep.subr.mxu1 %v2687_v2  ;;  %3737 = vmatprep.subr.mxu0 %v1441_v3  ;;  %v1713_v2 = vld [vmem:[%s12488_s5 + $0x978] sm:$0xff]  ;;  %v2947_v3 = vld [vmem:[%s12488_s5 + $0x3008] sm:$0xff] }
 0x2df   :  { %3667 = vmatpush1.msra.mxu1 %v2686_v16  ;;  %3738 = vmatpush1.msra.mxu0 %v1440_v5  ;;  %v1701_v16 = vld [vmem:[%s12488_s5 + $0x918] sm:$0xff]  ;;  %v2946_v5 = vld [vmem:[%s12488_s5 + $0x3000] sm:$0xff] }
 0x2e0   :  { %3668 = vmatprep.subr.mxu1 %v2674_v6  ;;  %3739 = vmatprep.subr.mxu0 %v1428_v7  ;;  %v1700_v6 = vld [vmem:[%s12488_s5 + $0x910] sm:$0xff]  ;;  %v2934_v7 = vld [vmem:[%s12488_s5 + $0x2fa0] sm:$0xff] }
 0x2e1   :  { %3669 = vmatpush1.msra.mxu1 %v2673_v8  ;;  %3740 = vmatpush1.msra.mxu0 %v1427_v10  ;;  %v1688_v8 = vld [vmem:[%s12488_s5 + $0x8b0] sm:$0xff]  ;;  %v2933_v10 = vld [vmem:[%s12488_s5 + $0x2f98] sm:$0xff] }
 0x2e2   :  { %3670 = vmatprep.subr.mxu1 %v2661_v12  ;;  %3741 = vmatprep.subr.mxu0 %v1415_v14  ;;  %v1687_v12 = vld [vmem:[%s12488_s5 + $0x8a8] sm:$0xff]  ;;  %v2921_v14 = vld [vmem:[%s12488_s5 + $0x2f38] sm:$0xff] }
 0x2e3   :  { %3671 = vmatpush1.msra.mxu1 %v2660_v15  ;;  %3742 = vmatpush1.msra.mxu0 %v1414_v19  ;;  %v1675_v15 = vld [vmem:[%s12488_s5 + $0x848] sm:$0xff]  ;;  %v2920_v19 = vld [vmem:[%s12488_s5 + $0x2f30] sm:$0xff] }
 0x2e4   :  { %3672 = vmatprep.subr.mxu1 %v3064_v20  ;;  %3743 = vmatprep.subr.mxu0 %v1818_v27  ;;  %v1674_v20 = vld [vmem:[%s12488_s5 + $0x840] sm:$0xff]  ;;  %v2908_v27 = vld [vmem:[%s12488_s5 + $0x2ed0] sm:$0xff] }
 0x2e5   :  { %3673 = vmatpush2.msra.mxu1 %v3063_v40  ;;  %3744 = vmatpush2.msra.mxu0 %v1817_v28  ;;  %v1662_v40 = vld [vmem:[%s12488_s5 + $0x7e0] sm:$0xff]  ;;  %v2907_v28 = vld [vmem:[%s12488_s5 + $0x2ec8] sm:$0xff] }
 0x2e6   :  { %3674 = vmatprep.subr.mxu1 %v3051_v41  ;;  %3745 = vmatprep.subr.mxu0 %v1805_v29  ;;  %v1661_v41 = vld [vmem:[%s12488_s5 + $0x7d8] sm:$0xff]  ;;  %v2895_v29 = vld [vmem:[%s12488_s5 + $0x2e68] sm:$0xff] }
 0x2e7   :  { %3675 = vmatpush2.msra.mxu1 %v3050_v32  ;;  %3746 = vmatpush2.msra.mxu0 %v1804_v33  ;;  %v1649_v32 = vld [vmem:[%s12488_s5 + $0x778] sm:$0xff]  ;;  %v2894_v33 = vld [vmem:[%s12488_s5 + $0x2e60] sm:$0xff] }
 0x2e8   :  { %3676 = vmatprep.subr.mxu1 %v3038_v34  ;;  %3747 = vmatprep.subr.mxu0 %v1792_v35  ;;  %v1648_v34 = vld [vmem:[%s12488_s5 + $0x770] sm:$0xff]  ;;  %v2882_v35 = vld [vmem:[%s12488_s5 + $0x2e00] sm:$0xff] }
 0x2e9   :  { %3677 = vmatpush2.msra.mxu1 %v3037_v36  ;;  %3748 = vmatpush2.msra.mxu0 %v1791_v37  ;;  %v1636_v36 = vld [vmem:[%s12488_s5 + $0x710] sm:$0xff]  ;;  %v2881_v37 = vld [vmem:[%s12488_s5 + $0x2df8] sm:$0xff] }
 0x2ea   :  { %3678 = vmatprep.subr.mxu1 %v3025_v38  ;;  %3749 = vmatprep.subr.mxu0 %v1779_v43  ;;  %v1635_v38 = vld [vmem:[%s12488_s5 + $0x708] sm:$0xff]  ;;  %v2869_v43 = vld [vmem:[%s12488_s5 + $0x2d98] sm:$0xff] }
 0x2eb   :  { %3679 = vmatpush2.msra.mxu1 %v3024_v44  ;;  %3750 = vmatpush2.msra.mxu0 %v1778_v45  ;;  %v1623_v44 = vld [vmem:[%s12488_s5 + $0x6a8] sm:$0xff]  ;;  %v2868_v45 = vld [vmem:[%s12488_s5 + $0x2d90] sm:$0xff] }
 0x2ec   :  { %3680 = vmatprep.subr.mxu1 %v3012_v46  ;;  %3751 = vmatprep.subr.mxu0 %v1766_v47  ;;  %v1622_v46 = vld [vmem:[%s12488_s5 + $0x6a0] sm:$0xff] }
 0x2ed   :  { %3681 = vmatpush2.msra.mxu1 %v3011_v48  ;;  %3752 = vmatpush2.msra.mxu0 %v1765_v39  ;;  %v2026_v47 = vld [vmem:[%s12488_s5 + $0x1340] sm:$0xff]  ;;  %v2025_v39 = vld [vmem:[%s12488_s5 + $0x1338] sm:$0xff] }
 0x2ee   :  { %3682 = vmatprep.subr.mxu1 %v2999_v30  ;;  %3753 = vmatprep.subr.mxu0 %v1753_v51  ;;  %v2442_v48 = vld [vmem:[%s12488_s5 + $0x2040] sm:$0xff]  ;;  %v2441_v30 = vld [vmem:[%s12488_s5 + $0x2038] sm:$0xff] }
 0x2ef   :  { %3683 = vmatpush2.msra.mxu1 %v2998_v52  ;;  %3754 = vmatpush2.msra.mxu0 %v1752_v54  ;;  %v2013_v51 = vld [vmem:[%s12488_s5 + $0x12d8] sm:$0xff]  ;;  %v2012_v54 = vld [vmem:[%s12488_s5 + $0x12d0] sm:$0xff] }
 0x2f0   :  { %3684 = vmatprep.subr.mxu1 %v2986_v55  ;;  %3755 = vmatprep.subr.mxu0 %v1740_v57  ;;  %v2429_v52 = vld [vmem:[%s12488_s5 + $0x1fd8] sm:$0xff]  ;;  %v2428_v55 = vld [vmem:[%s12488_s5 + $0x1fd0] sm:$0xff] }
 0x2f1   :  { %3685 = vmatpush2.msra.mxu1 %v2985_v58  ;;  %3756 = vmatpush2.msra.mxu0 %v1739_v59  ;;  %v2000_v57 = vld [vmem:[%s12488_s5 + $0x1270] sm:$0xff]  ;;  %v1999_v59 = vld [vmem:[%s12488_s5 + $0x1268] sm:$0xff] }
 0x2f2   :  { %3686 = vmatprep.subr.mxu1 %v2973_v31  ;;  %3757 = vmatprep.subr.mxu0 %v1727_v60  ;;  %v2416_v58 = vld [vmem:[%s12488_s5 + $0x1f70] sm:$0xff]  ;;  %v2415_v31 = vld [vmem:[%s12488_s5 + $0x1f68] sm:$0xff] }
 0x2f3   :  { %3687 = vmatpush2.msra.mxu1 %v2972_v24  ;;  %3758 = vmatpush2.msra.mxu0 %v1726_v61  ;;  %v1987_v60 = vld [vmem:[%s12488_s5 + $0x1208] sm:$0xff]  ;;  %v1986_v61 = vld [vmem:[%s12488_s5 + $0x1200] sm:$0xff] }
 0x2f4   :  { %3688 = vmatprep.subr.mxu1 %v2960_v62  ;;  %3759 = vmatprep.subr.mxu0 %v1714_v63  ;;  %v2403_v24 = vld [vmem:[%s12488_s5 + $0x1f08] sm:$0xff]  ;;  %v2402_v62 = vld [vmem:[%s12488_s5 + $0x1f00] sm:$0xff] }
 0x2f5   :  { %3689 = vmatpush2.msra.mxu1 %v2959_v0  ;;  %3760 = vmatpush2.msra.mxu0 %v1713_v2  ;;  %v1974_v63 = vld [vmem:[%s12488_s5 + $0x11a0] sm:$0xff]  ;;  %v1973_v2 = vld [vmem:[%s12488_s5 + $0x1198] sm:$0xff] }
 0x2f6   :  { %3690 = vmatprep.subr.mxu1 %v2947_v3  ;;  %3761 = vmatprep.subr.mxu0 %v1701_v16  ;;  %v2390_v0 = vld [vmem:[%s12488_s5 + $0x1ea0] sm:$0xff]  ;;  %v2389_v3 = vld [vmem:[%s12488_s5 + $0x1e98] sm:$0xff] }
 0x2f7   :  { %3691 = vmatpush2.msra.mxu1 %v2946_v5  ;;  %3762 = vmatpush2.msra.mxu0 %v1700_v6  ;;  %v1961_v16 = vld [vmem:[%s12488_s5 + $0x1138] sm:$0xff]  ;;  %v1960_v6 = vld [vmem:[%s12488_s5 + $0x1130] sm:$0xff] }
 0x2f8   :  { %3692 = vmatprep.subr.mxu1 %v2934_v7  ;;  %3763 = vmatprep.subr.mxu0 %v1688_v8  ;;  %v2377_v5 = vld [vmem:[%s12488_s5 + $0x1e38] sm:$0xff]  ;;  %v2376_v7 = vld [vmem:[%s12488_s5 + $0x1e30] sm:$0xff] }
 0x2f9   :  { %3693 = vmatpush2.msra.mxu1 %v2933_v10  ;;  %3764 = vmatpush2.msra.mxu0 %v1687_v12  ;;  %v1948_v8 = vld [vmem:[%s12488_s5 + $0x10d0] sm:$0xff]  ;;  %v1947_v12 = vld [vmem:[%s12488_s5 + $0x10c8] sm:$0xff] }
 0x2fa   :  { %3694 = vmatprep.subr.mxu1 %v2921_v14  ;;  %3765 = vmatprep.subr.mxu0 %v1675_v15  ;;  %v2364_v10 = vld [vmem:[%s12488_s5 + $0x1dd0] sm:$0xff]  ;;  %v2363_v14 = vld [vmem:[%s12488_s5 + $0x1dc8] sm:$0xff] }
 0x2fb   :  { %3695 = vmatpush2.msra.mxu1 %v2920_v19  ;;  %3766 = vmatpush2.msra.mxu0 %v1674_v20  ;;  %v1935_v15 = vld [vmem:[%s12488_s5 + $0x1068] sm:$0xff]  ;;  %v1934_v20 = vld [vmem:[%s12488_s5 + $0x1060] sm:$0xff] }
 0x2fc   :  { %3696 = vmatprep.subr.mxu1 %v2908_v27  ;;  %3767 = vmatprep.subr.mxu0 %v1662_v40  ;;  %v2351_v19 = vld [vmem:[%s12488_s5 + $0x1d68] sm:$0xff]  ;;  %v2350_v27 = vld [vmem:[%s12488_s5 + $0x1d60] sm:$0xff] }
 0x2fd   :  { %3697 = vmatpush2.msra.mxu1 %v2907_v28  ;;  %3768 = vmatpush2.msra.mxu0 %v1661_v41  ;;  %v1922_v40 = vld [vmem:[%s12488_s5 + $0x1000] sm:$0xff]  ;;  %v1921_v41 = vld [vmem:[%s12488_s5 + $0xff8] sm:$0xff] }
 0x2fe   :  { %3698 = vmatprep.subr.mxu1 %v2895_v29  ;;  %3769 = vmatprep.subr.mxu0 %v1649_v32  ;;  %v2338_v28 = vld [vmem:[%s12488_s5 + $0x1d00] sm:$0xff]  ;;  %v2337_v29 = vld [vmem:[%s12488_s5 + $0x1cf8] sm:$0xff] }
 0x2ff   :  { %3699 = vmatpush2.msra.mxu1 %v2894_v33  ;;  %3770 = vmatpush2.msra.mxu0 %v1648_v34  ;;  %v1909_v32 = vld [vmem:[%s12488_s5 + $0xf98] sm:$0xff]  ;;  %v1908_v34 = vld [vmem:[%s12488_s5 + $0xf90] sm:$0xff] }
 0x300   :  { %3700 = vmatprep.subr.mxu1 %v2882_v35  ;;  %3771 = vmatprep.subr.mxu0 %v1636_v36  ;;  %v2325_v33 = vld [vmem:[%s12488_s5 + $0x1c98] sm:$0xff]  ;;  %v2324_v35 = vld [vmem:[%s12488_s5 + $0x1c90] sm:$0xff] }
 0x301   :  { %3701 = vmatpush2.msra.mxu1 %v2881_v37  ;;  %3772 = vmatpush2.msra.mxu0 %v1635_v38  ;;  %v1896_v36 = vld [vmem:[%s12488_s5 + $0xf30] sm:$0xff]  ;;  %v1895_v38 = vld [vmem:[%s12488_s5 + $0xf28] sm:$0xff] }
 0x302   :  { %3702 = vmatprep.subr.mxu1 %v2869_v43  ;;  %3773 = vmatprep.subr.mxu0 %v1623_v44  ;;  %v2312_v37 = vld [vmem:[%s12488_s5 + $0x1c30] sm:$0xff]  ;;  %v2311_v43 = vld [vmem:[%s12488_s5 + $0x1c28] sm:$0xff] }
 0x303   :  { %3703 = vmatpush2.msra.mxu1 %v2868_v45  ;;  %3774 = vmatpush2.msra.mxu0 %v1622_v46  ;;  %v1883_v44 = vld [vmem:[%s12488_s5 + $0xec8] sm:$0xff]  ;;  %v1882_v46 = vld [vmem:[%s12488_s5 + $0xec0] sm:$0xff] }
 0x304   :  { %3705 = vmatmul.mubr.f32.vlgmr.msra.gmra.mxu1 %v8332_v18  ;;  %3776 = vmatmul.mubr.f32.vlgmr.msra.gmra.mxu0 %v7707_v1  ;;  %v2299_v45 = vld [vmem:[%s12488_s5 + $0x1bc8] sm:$0xff] }
 0x305   :  { %3782 = vmatprep.subr.mxu1 %v2026_v47  ;;  %3853 = vmatprep.subr.mxu0 %v2442_v48  ;;  %v2298_v47 = vld [vmem:[%s12488_s5 + $0x1bc0] sm:$0xff] }
 0x306   :  { %3783 = vmatpush1.msra.mxu1 %v2025_v39  ;;  %3846 = vmatprep.mubr.f32.mxu1 %v7725_v11  ;;  %v1870_v48 = vld [vmem:[%s12488_s5 + $0xe60] sm:$0xff] }
 0x307   :  { %3854 = vmatpush1.msra.mxu0 %v2441_v30  ;;  %3917 = vmatprep.mubr.f32.mxu0 %v8120_v42  ;;  %v2286_v39 = vld [vmem:[%s12488_s5 + $0x1b60] sm:$0xff]  ;;  %v1869_v30 = vld [vmem:[%s12488_s5 + $0xe58] sm:$0xff] }
 0x308   :  { %3784 = vmatprep.subr.mxu1 %v2013_v51  ;;  %3855 = vmatprep.subr.mxu0 %v2429_v52  ;;  %v2285_v51 = vld [vmem:[%s12488_s5 + $0x1b58] sm:$0xff] }
 0x309   :  { %3785 = vmatpush1.msra.mxu1 %v2012_v54  ;;  %3856 = vmatpush1.msra.mxu0 %v2428_v55  ;;  %v1857_v52 = vld [vmem:[%s12488_s5 + $0xdf8] sm:$0xff]  ;;  %v1856_v55 = vld [vmem:[%s12488_s5 + $0xdf0] sm:$0xff] }
 0x30a   :  { %3786 = vmatprep.subr.mxu1 %v2000_v57  ;;  %3857 = vmatprep.subr.mxu0 %v2416_v58  ;;  %v2273_v54 = vld [vmem:[%s12488_s5 + $0x1af8] sm:$0xff]  ;;  %v2272_v57 = vld [vmem:[%s12488_s5 + $0x1af0] sm:$0xff] }
 0x30b   :  { %3787 = vmatpush1.msra.mxu1 %v1999_v59  ;;  %3858 = vmatpush1.msra.mxu0 %v2415_v31  ;;  %v1844_v58 = vld [vmem:[%s12488_s5 + $0xd90] sm:$0xff]  ;;  %v1843_v31 = vld [vmem:[%s12488_s5 + $0xd88] sm:$0xff] }
 0x30c   :  { %3788 = vmatprep.subr.mxu1 %v1987_v60  ;;  %3859 = vmatprep.subr.mxu0 %v2403_v24  ;;  %v2260_v59 = vld [vmem:[%s12488_s5 + $0x1a90] sm:$0xff]  ;;  %v2259_v60 = vld [vmem:[%s12488_s5 + $0x1a88] sm:$0xff] }
 0x30d   :  { %3789 = vmatpush1.msra.mxu1 %v1986_v61  ;;  %3860 = vmatpush1.msra.mxu0 %v2402_v62  ;;  %v1831_v24 = vld [vmem:[%s12488_s5 + $0xd28] sm:$0xff]  ;;  %v1830_v62 = vld [vmem:[%s12488_s5 + $0xd20] sm:$0xff] }
 0x30e   :  { %3790 = vmatprep.subr.mxu1 %v1974_v63  ;;  %3861 = vmatprep.subr.mxu0 %v2390_v0  ;;  %v2247_v61 = vld [vmem:[%s12488_s5 + $0x1a28] sm:$0xff]  ;;  %v2246_v63 = vld [vmem:[%s12488_s5 + $0x1a20] sm:$0xff] }
 0x30f   :  { %3791 = vmatpush1.msra.mxu1 %v1973_v2  ;;  %3862 = vmatpush1.msra.mxu0 %v2389_v3  ;;  %v2234_v0 = vld [vmem:[%s12488_s5 + $0x19c0] sm:$0xff]  ;;  %v2233_v3 = vld [vmem:[%s12488_s5 + $0x19b8] sm:$0xff] }
 0x310   :  { %3792 = vmatprep.subr.mxu1 %v1961_v16  ;;  %3863 = vmatprep.subr.mxu0 %v2377_v5  ;;  %v2650_v2 = vld [vmem:[%s12488_s5 + $0x26c0] sm:$0xff]  ;;  %v2649_v16 = vld [vmem:[%s12488_s5 + $0x26b8] sm:$0xff] }
 0x311   :  { %3793 = vmatpush1.msra.mxu1 %v1960_v6  ;;  %3864 = vmatpush1.msra.mxu0 %v2376_v7  ;;  %v2221_v5 = vld [vmem:[%s12488_s5 + $0x1958] sm:$0xff]  ;;  %v2220_v7 = vld [vmem:[%s12488_s5 + $0x1950] sm:$0xff] }
 0x312   :  { %3794 = vmatprep.subr.mxu1 %v1948_v8  ;;  %3865 = vmatprep.subr.mxu0 %v2364_v10  ;;  %v2637_v6 = vld [vmem:[%s12488_s5 + $0x2658] sm:$0xff]  ;;  %v2636_v8 = vld [vmem:[%s12488_s5 + $0x2650] sm:$0xff] }
 0x313   :  { %3795 = vmatpush1.msra.mxu1 %v1947_v12  ;;  %3866 = vmatpush1.msra.mxu0 %v2363_v14  ;;  %v2208_v10 = vld [vmem:[%s12488_s5 + $0x18f0] sm:$0xff]  ;;  %v2207_v14 = vld [vmem:[%s12488_s5 + $0x18e8] sm:$0xff] }
 0x314   :  { %3796 = vmatprep.subr.mxu1 %v1935_v15  ;;  %3867 = vmatprep.subr.mxu0 %v2351_v19  ;;  %v2624_v12 = vld [vmem:[%s12488_s5 + $0x25f0] sm:$0xff]  ;;  %v2623_v15 = vld [vmem:[%s12488_s5 + $0x25e8] sm:$0xff] }
 0x315   :  { %3797 = vmatpush1.msra.mxu1 %v1934_v20  ;;  %3868 = vmatpush1.msra.mxu0 %v2350_v27  ;;  %v2195_v19 = vld [vmem:[%s12488_s5 + $0x1888] sm:$0xff]  ;;  %v2194_v27 = vld [vmem:[%s12488_s5 + $0x1880] sm:$0xff] }
 0x316   :  { %3798 = vmatprep.subr.mxu1 %v1922_v40  ;;  %3869 = vmatprep.subr.mxu0 %v2338_v28  ;;  %v2611_v20 = vld [vmem:[%s12488_s5 + $0x2588] sm:$0xff]  ;;  %v2610_v40 = vld [vmem:[%s12488_s5 + $0x2580] sm:$0xff] }
 0x317   :  { %3799 = vmatpush1.msra.mxu1 %v1921_v41  ;;  %3870 = vmatpush1.msra.mxu0 %v2337_v29  ;;  %v2182_v28 = vld [vmem:[%s12488_s5 + $0x1820] sm:$0xff]  ;;  %v2181_v29 = vld [vmem:[%s12488_s5 + $0x1818] sm:$0xff] }
 0x318   :  { %3800 = vmatprep.subr.mxu1 %v1909_v32  ;;  %3871 = vmatprep.subr.mxu0 %v2325_v33  ;;  %v2598_v41 = vld [vmem:[%s12488_s5 + $0x2520] sm:$0xff]  ;;  %v2597_v32 = vld [vmem:[%s12488_s5 + $0x2518] sm:$0xff] }
 0x319   :  { %3801 = vmatpush1.msra.mxu1 %v1908_v34  ;;  %3872 = vmatpush1.msra.mxu0 %v2324_v35  ;;  %v2169_v33 = vld [vmem:[%s12488_s5 + $0x17b8] sm:$0xff]  ;;  %v2168_v35 = vld [vmem:[%s12488_s5 + $0x17b0] sm:$0xff] }
 0x31a   :  { %3802 = vmatprep.subr.mxu1 %v1896_v36  ;;  %3873 = vmatprep.subr.mxu0 %v2312_v37  ;;  %v2585_v34 = vld [vmem:[%s12488_s5 + $0x24b8] sm:$0xff]  ;;  %v2584_v36 = vld [vmem:[%s12488_s5 + $0x24b0] sm:$0xff] }
 0x31b   :  { %3803 = vmatpush1.msra.mxu1 %v1895_v38  ;;  %3874 = vmatpush1.msra.mxu0 %v2311_v43  ;;  %v2156_v37 = vld [vmem:[%s12488_s5 + $0x1750] sm:$0xff]  ;;  %v2155_v43 = vld [vmem:[%s12488_s5 + $0x1748] sm:$0xff] }
 0x31c   :  { %3804 = vmatprep.subr.mxu1 %v1883_v44  ;;  %3875 = vmatprep.subr.mxu0 %v2299_v45  ;;  %v2572_v38 = vld [vmem:[%s12488_s5 + $0x2450] sm:$0xff]  ;;  %v2571_v44 = vld [vmem:[%s12488_s5 + $0x2448] sm:$0xff] }
 0x31d   :  { %3805 = vmatpush1.msra.mxu1 %v1882_v46  ;;  %3876 = vmatpush1.msra.mxu0 %v2298_v47  ;;  %v2143_v45 = vld [vmem:[%s12488_s5 + $0x16e8] sm:$0xff]  ;;  %v2142_v47 = vld [vmem:[%s12488_s5 + $0x16e0] sm:$0xff] }
 0x31e   :  { %3806 = vmatprep.subr.mxu1 %v1870_v48  ;;  %3877 = vmatprep.subr.mxu0 %v2286_v39  ;;  %v2559_v46 = vld [vmem:[%s12488_s5 + $0x23e8] sm:$0xff]  ;;  %v2558_v48 = vld [vmem:[%s12488_s5 + $0x23e0] sm:$0xff] }
 0x31f   :  { %3807 = vmatpush1.msra.mxu1 %v1869_v30  ;;  %3878 = vmatpush1.msra.mxu0 %v2285_v51  ;;  %v2130_v39 = vld [vmem:[%s12488_s5 + $0x1680] sm:$0xff]  ;;  %v2129_v51 = vld [vmem:[%s12488_s5 + $0x1678] sm:$0xff] }
 0x320   :  { %3808 = vmatprep.subr.mxu1 %v1857_v52  ;;  %3879 = vmatprep.subr.mxu0 %v2273_v54  ;;  %v2546_v30 = vld [vmem:[%s12488_s5 + $0x2380] sm:$0xff]  ;;  %v2545_v52 = vld [vmem:[%s12488_s5 + $0x2378] sm:$0xff] }
 0x321   :  { %3809 = vmatpush1.msra.mxu1 %v1856_v55  ;;  %3880 = vmatpush1.msra.mxu0 %v2272_v57  ;;  %v2117_v54 = vld [vmem:[%s12488_s5 + $0x1618] sm:$0xff]  ;;  %v3074_v57 = vld [vmem:[%s12489_s6] sm:$0xff] }
 0x322   :  { %3810 = vmatprep.subr.mxu1 %v1844_v58  ;;  %3881 = vmatprep.subr.mxu0 %v2260_v59  ;;  %v2533_v55 = vld [vmem:[%s12488_s5 + $0x2318] sm:$0xff]  ;;  %v3209_v58 = vpop.f32.mrf.mxu0  ;;  %v2116_v59 = vld [vmem:[%s12488_s5 + $0x1610] sm:$0xff] }
 0x323   :  { %3811 = vmatpush1.msra.mxu1 %v1843_v31  ;;  %3882 = vmatpush1.msra.mxu0 %v2259_v60  ;;  %v2532_v31 = vld [vmem:[%s12488_s5 + $0x2310] sm:$0xff] }
 0x324   :  { %3812 = vmatprep.subr.mxu1 %v1831_v24  ;;  %3883 = vmatprep.subr.mxu0 %v2247_v61  ;;  %v2104_v60 = vld [vmem:[%s12488_s5 + $0x15b0] sm:$0xff]  ;;  %v2103_v61 = vld [vmem:[%s12488_s5 + $0x15a8] sm:$0xff] }
 0x325   :  { %3813 = vmatpush1.msra.mxu1 %v1830_v62  ;;  %3884 = vmatpush1.msra.mxu0 %v2246_v63  ;;  %v2520_v24 = vld [vmem:[%s12488_s5 + $0x22b0] sm:$0xff]  ;;  %v2519_v62 = vld [vmem:[%s12488_s5 + $0x22a8] sm:$0xff]  ;;  %v3081_v63 = vrot.slane %v3074_v57, %v6116_v23 }
 0x326   :  { %3814 = vmatprep.subr.mxu1 %v2234_v0  ;;  %3885 = vmatprep.subr.mxu0 %v2650_v2  ;;  %v2091_v0 = vld [vmem:[%s12488_s5 + $0x1548] sm:$0xff] }
 0x327   :  { %3815 = vmatpush2.msra.mxu1 %v2233_v3  ;;  %3886 = vmatpush2.msra.mxu0 %v2649_v16  ;;  %v2507_v2 = vld [vmem:[%s12488_s5 + $0x2248] sm:$0xff]  ;;  %v3211_v3 = vpop.f32.mrf.mxu0  ;;  %v3280_v16 = vpop.f32.mrf.mxu1 }
 0x328   :  { %3816 = vmatprep.subr.mxu1 %v2221_v5  ;;  %3887 = vmatprep.subr.mxu0 %v2637_v6  ;;  %v2090_v5 = vld [vmem:[%s12488_s5 + $0x1540] sm:$0xff] }
 0x329   :  { %3817 = vmatpush2.msra.mxu1 %v2220_v7  ;;  %3888 = vmatpush2.msra.mxu0 %v2636_v8  ;;  %v2506_v6 = vld [vmem:[%s12488_s5 + $0x2240] sm:$0xff]  ;;  %v3085_v7 = vrot.slane %v3074_v57, %v6122_v25  ;;  %v2857_v57 = vld [vmem:[%s12488_s5 + $0x2d38] sm:$0xff] }
 0x32a   :  { %3818 = vmatprep.subr.mxu1 %v2208_v10  ;;  %3889 = vmatprep.subr.mxu0 %v2624_v12  ;;  %v2078_v8 = vld [vmem:[%s12488_s5 + $0x14e0] sm:$0xff]  ;;  %v3351_v12 = vpop.f32.mrf.mxu0 }
 0x32b   :  { %3819 = vmatpush2.msra.mxu1 %v2207_v14  ;;  %3890 = vmatpush2.msra.mxu0 %v2623_v15  ;;  %v2494_v10 = vld [vmem:[%s12488_s5 + $0x21e0] sm:$0xff]  ;;  %v2077_v14 = vld [vmem:[%s12488_s5 + $0x14d8] sm:$0xff] }
 0x32c   :  { %3820 = vmatprep.subr.mxu1 %v2195_v19  ;;  %3891 = vmatprep.subr.mxu0 %v2611_v20  ;;  %v2493_v15 = vld [vmem:[%s12488_s5 + $0x21d8] sm:$0xff]  ;;  %v3210_v19 = vadd.f32 %v3209_v58, %v3081_v63  ;;  %v2832_v63 = vld [vmem:[%s12488_s5 + $0x2c70] sm:$0xff] }
 0x32d   :  { %3821 = vmatpush2.msra.mxu1 %v2194_v27  ;;  %3892 = vmatpush2.msra.mxu0 %v2610_v40  ;;  %v2065_v20 = vld [vmem:[%s12488_s5 + $0x1478] sm:$0xff]  ;;  %v3282_v40 = vpop.f32.mrf.mxu1 }
 0x32e   :  { %3822 = vmatprep.subr.mxu1 %v2182_v28  ;;  %3893 = vmatprep.subr.mxu0 %v2598_v41  ;;  %v2481_v27 = vld [vmem:[%s12488_s5 + $0x2178] sm:$0xff]  ;;  %v2064_v28 = vld [vmem:[%s12488_s5 + $0x1470] sm:$0xff] }
 0x32f   :  { %3823 = vmatpush2.msra.mxu1 %v2181_v29  ;;  %3894 = vmatpush2.msra.mxu0 %v2597_v32  ;;  %v2480_v41 = vld [vmem:[%s12488_s5 + $0x2170] sm:$0xff]  ;;  %v3212_v29 = vadd.f32 %v3211_v3, %v3085_v7  ;;  %v3281_v32 = vadd.f32 %v3280_v16, %v3210_v19  ;;  %v1585_v3 = vld [vmem:[%s12488_s5 + $0x578] sm:$0xff]  ;;  %v2819_v16 = vld [vmem:[%s12488_s5 + $0x2c08] sm:$0xff] }
 0x330   :  { %3824 = vmatprep.subr.mxu1 %v2169_v33  ;;  %3895 = vmatprep.subr.mxu0 %v2585_v34  ;;  %v2052_v33 = vld [vmem:[%s12488_s5 + $0x1410] sm:$0xff]  ;;  %v1547_v19 = vld [vmem:[%s12488_s5 + $0x448] sm:$0xff] }
 0x331   :  { %3825 = vmatpush2.msra.mxu1 %v2168_v35  ;;  %3896 = vmatpush2.msra.mxu0 %v2584_v36  ;;  %v2468_v34 = vld [vmem:[%s12488_s5 + $0x2110] sm:$0xff]  ;;  %v3353_v35 = vpop.f32.mrf.mxu0  ;;  %v2051_v36 = vld [vmem:[%s12488_s5 + $0x1408] sm:$0xff] }
 0x332   :  { %3826 = vmatprep.subr.mxu1 %v2156_v37  ;;  %3897 = vmatprep.subr.mxu0 %v2572_v38  ;;  %v2467_v37 = vld [vmem:[%s12488_s5 + $0x2108] sm:$0xff]  ;;  %v3283_v38 = vadd.f32 %v3282_v40, %v3212_v29  ;;  %v1572_v7 = vld [vmem:[%s12488_s5 + $0x510] sm:$0xff]  ;;  %v1533_v29 = vld [vmem:[%s12488_s5 + $0x3d8] sm:$0xff] }
 0x333   :  { %3827 = vmatpush2.msra.mxu1 %v2155_v43  ;;  %3898 = vmatpush2.msra.mxu0 %v2571_v44  ;;  %v3352_v43 = vadd.f32 %v3351_v12, %v3281_v32  ;;  %v2039_v44 = vld [vmem:[%s12488_s5 + $0x13a8] sm:$0xff]  ;;  %v2805_v12 = vld [vmem:[%s12488_s5 + $0x2b98] sm:$0xff]  ;;  %v2780_v40 = vld [vmem:[%s12488_s5 + $0x2ad0] sm:$0xff] }
 0x334   :  { %3828 = vmatprep.subr.mxu1 %v2143_v45  ;;  %3899 = vmatprep.subr.mxu0 %v2559_v46  ;;  %v2455_v45 = vld [vmem:[%s12488_s5 + $0x20a8] sm:$0xff]  ;;  %v2038_v46 = vld [vmem:[%s12488_s5 + $0x13a0] sm:$0xff] }
 0x335   :  { %3829 = vmatpush2.msra.mxu1 %v2142_v47  ;;  %3900 = vmatpush2.msra.mxu0 %v2558_v48  ;;  %v2454_v47 = vld [vmem:[%s12488_s5 + $0x20a0] sm:$0xff]  ;;  %v2767_v32 = vld [vmem:[%s12488_s5 + $0x2a68] sm:$0xff] }
 0x336   :  { %3830 = vmatprep.subr.mxu1 %v2130_v39  ;;  %3901 = vmatprep.subr.mxu0 %v2546_v30  ;;  %v3354_v39 = vadd.f32 %v3353_v35, %v3283_v38  ;;  %v2766_v35 = vld [vmem:[%s12488_s5 + $0x2a60] sm:$0xff] }
 0x337   :  { %3831 = vmatpush2.msra.mxu1 %v2129_v51  ;;  %3902 = vmatpush2.msra.mxu0 %v2545_v52  ;;  %v2858_v51 = vld [vmem:[%s12488_s5 + $0x2d40] sm:$0xff]  ;;  %v1612_v52 = vld [vmem:[%s12488_s5 + $0x650] sm:$0xff] }
 0x338   :  { %3832 = vmatprep.subr.mxu1 %v2117_v54  ;;  %3903 = vmatprep.subr.mxu0 %v2533_v55  ;;  %v2754_v38 = vld [vmem:[%s12488_s5 + $0x2a00] sm:$0xff] }
 0x339   :  { %3833 = vmatpush2.msra.mxu1 %v2116_v59  ;;  %3904 = vmatpush2.msra.mxu0 %v2532_v31  ;;  %v1611_v59 = vld [vmem:[%s12488_s5 + $0x648] sm:$0xff]  ;;  %v2845_v31 = vld [vmem:[%s12488_s5 + $0x2cd8] sm:$0xff] }
 0x33a   :  { %3834 = vmatprep.subr.mxu1 %v2104_v60  ;;  %3905 = vmatprep.subr.mxu0 %v2520_v24  ;;  %v1599_v60 = vld [vmem:[%s12488_s5 + $0x5e8] sm:$0xff] }
 0x33b   :  { %3835 = vmatpush2.msra.mxu1 %v2103_v61  ;;  %3906 = vmatpush2.msra.mxu0 %v2519_v62  ;;  %v2844_v61 = vld [vmem:[%s12488_s5 + $0x2cd0] sm:$0xff]  ;;  %v1598_v62 = vld [vmem:[%s12488_s5 + $0x5e0] sm:$0xff] }
 0x33c   :  { %3836 = vmatprep.subr.mxu1 %v2091_v0  ;;  %3907 = vmatprep.subr.mxu0 %v2507_v2  ;;  %v1586_v0 = vld [vmem:[%s12488_s5 + $0x580] sm:$0xff]  ;;  %v2831_v2 = vld [vmem:[%s12488_s5 + $0x2c68] sm:$0xff] }
 0x33d   :  { %3837 = vmatpush2.msra.mxu1 %v2090_v5  ;;  %3908 = vmatpush2.msra.mxu0 %v2506_v6  ;;  %v1573_v5 = vld [vmem:[%s12488_s5 + $0x518] sm:$0xff]  ;;  %v2818_v6 = vld [vmem:[%s12488_s5 + $0x2c00] sm:$0xff] }
 0x33e   :  { %3838 = vmatprep.subr.mxu1 %v2078_v8  ;;  %3909 = vmatprep.subr.mxu0 %v2494_v10  ;;  %v2806_v8 = vld [vmem:[%s12488_s5 + $0x2ba0] sm:$0xff]  ;;  %v1560_v10 = vld [vmem:[%s12488_s5 + $0x4b0] sm:$0xff] }
 0x33f   :  { %3839 = vmatpush2.msra.mxu1 %v2077_v14  ;;  %3910 = vmatpush2.msra.mxu0 %v2493_v15  ;;  %v1559_v14 = vld [vmem:[%s12488_s5 + $0x4a8] sm:$0xff]  ;;  %v2793_v15 = vld [vmem:[%s12488_s5 + $0x2b38] sm:$0xff] }
 0x340   :  { %3840 = vmatprep.subr.mxu1 %v2065_v20  ;;  %3911 = vmatprep.subr.mxu0 %v2481_v27  ;;  %v2792_v20 = vld [vmem:[%s12488_s5 + $0x2b30] sm:$0xff]  ;;  %v1546_v27 = vld [vmem:[%s12488_s5 + $0x440] sm:$0xff] }
 0x341   :  { %3841 = vmatpush2.msra.mxu1 %v2064_v28  ;;  %3912 = vmatpush2.msra.mxu0 %v2480_v41  ;;  %v1534_v28 = vld [vmem:[%s12488_s5 + $0x3e0] sm:$0xff]  ;;  %v2779_v41 = vld [vmem:[%s12488_s5 + $0x2ac8] sm:$0xff] }
 0x342   :  { %3842 = vmatprep.subr.mxu1 %v2052_v33  ;;  %3913 = vmatprep.subr.mxu0 %v2468_v34  ;;  %v3422_v48 = vpop.f32.mrf.mxu1  ;;  %v1521_v33 = vld [vmem:[%s12488_s5 + $0x378] sm:$0xff] }
 0x343   :  { %3843 = vmatpush2.msra.mxu1 %v2051_v36  ;;  %3914 = vmatpush2.msra.mxu0 %v2467_v37  ;;  %v3423_v30 = vadd.f32 %v3422_v48, %v3352_v43  ;;  %v1520_v36 = vld [vmem:[%s12488_s5 + $0x370] sm:$0xff]  ;;  %v2741_v48 = vld [vmem:[%s12488_s5 + $0x2998] sm:$0xff] }
 0x344   :  { %3844 = vmatprep.subr.mxu1 %v2039_v44  ;;  %3915 = vmatprep.subr.mxu0 %v2455_v45  ;;  %v3424_v54 = vpop.f32.mrf.mxu1  ;;  %v1508_v43 = vld [vmem:[%s12488_s5 + $0x310] sm:$0xff]  ;;  %v2753_v45 = vld [vmem:[%s12488_s5 + $0x29f8] sm:$0xff] }
 0x345   :  { %3845 = vmatpush2.msra.mxu1 %v2038_v46  ;;  %3916 = vmatpush2.msra.mxu0 %v2454_v47  ;;  %v5225_v55 = vmul.f32 -1.442695, %v3423_v30  ;;  %v3425_v58 = vadd.f32 %v3424_v54, %v3354_v39  ;;  %v1507_v46 = vld [vmem:[%s12488_s5 + $0x308] sm:$0xff]  ;;  %v2740_v30 = vld [vmem:[%s12488_s5 + $0x2990] sm:$0xff]  ;;  %v1482_v54 = vld [vmem:[%s12488_s5 + $0x240] sm:$0xff] }
 0x346   :  { %3847 = vmatmul.mubr.f32.vlgmr.msra.gmra.mxu1 %v7730_v13  ;;  %3918 = vmatmul.mubr.f32.vlgmr.msra.gmra.mxu0 %v8122_v50  ;;  %v1495_v39 = vld [vmem:[%s12488_s5 + $0x2a8] sm:$0xff] }
 0x347   :  { %3924 = vmatprep.subr.mxu1 %v2858_v51  ;;  %3995 = vmatprep.subr.mxu0 %v1612_v52  ;;  %5378 = vpow2.f32 %v5225_v55  ;;  %v5226_v24 = vmul.f32 -1.442695, %v3425_v58  ;;  %v1494_v51 = vld [vmem:[%s12488_s5 + $0x2a0] sm:$0xff]  ;;  %v2728_v52 = vld [vmem:[%s12488_s5 + $0x2930] sm:$0xff]  ;;  %v2727_v55 = vld [vmem:[%s12488_s5 + $0x2928] sm:$0xff] }
 0x348   :  { %3925 = vmatpush1.msra.mxu1 %v2857_v57  ;;  %3988 = vmatprep.mubr.f32.mxu1 %v8330_v17  ;;  %v1481_v57 = vld [vmem:[%s12488_s5 + $0x238] sm:$0xff]  ;;  %v2715_v58 = vld [vmem:[%s12488_s5 + $0x28c8] sm:$0xff] }
 0x349   :  { %3996 = vmatpush1.msra.mxu0 %v1611_v59  ;;  %4059 = vmatprep.mubr.f32.mxu0 %v7333_v49  ;;  %5380 = vpow2.f32 %v5226_v24  ;;  %v1469_v59 = vld [vmem:[%s12488_s5 + $0x1d8] sm:$0xff]  ;;  %v2702_v24 = vld [vmem:[%s12488_s5 + $0x2860] sm:$0xff] }
 0x34a   :  { %3926 = vmatprep.subr.mxu1 %v2845_v31  ;;  %3997 = vmatprep.subr.mxu0 %v1599_v60  ;;  %v2714_v31 = vld [vmem:[%s12488_s5 + $0x28c0] sm:$0xff]  ;;  %v1468_v60 = vld [vmem:[%s12488_s5 + $0x1d0] sm:$0xff] }
 0x34b   :  { %3927 = vmatpush1.msra.mxu1 %v2844_v61  ;;  %3998 = vmatpush1.msra.mxu0 %v1598_v62  ;;  %v1456_v61 = vld [vmem:[%s12488_s5 + $0x170] sm:$0xff]  ;;  %v2701_v62 = vld [vmem:[%s12488_s5 + $0x2858] sm:$0xff] }
 0x34c   :  { %3928 = vmatprep.subr.mxu1 %v2832_v63  ;;  %3999 = vmatprep.subr.mxu0 %v1586_v0  ;;  %v1455_v63 = vld [vmem:[%s12488_s5 + $0x168] sm:$0xff]  ;;  %v2689_v0 = vld [vmem:[%s12488_s5 + $0x27f8] sm:$0xff] }
 0x34d   :  { %3929 = vmatpush1.msra.mxu1 %v2831_v2  ;;  %4000 = vmatpush1.msra.mxu0 %v1585_v3  ;;  %v1443_v2 = vld [vmem:[%s12488_s5 + $0x108] sm:$0xff]  ;;  %v2688_v3 = vld [vmem:[%s12488_s5 + $0x27f0] sm:$0xff] }
 0x34e   :  { %3930 = vmatprep.subr.mxu1 %v2819_v16  ;;  %4001 = vmatprep.subr.mxu0 %v1573_v5  ;;  %v1442_v16 = vld [vmem:[%s12488_s5 + $0x100] sm:$0xff]  ;;  %v2676_v5 = vld [vmem:[%s12488_s5 + $0x2790] sm:$0xff] }
 0x34f   :  { %3931 = vmatpush1.msra.mxu1 %v2818_v6  ;;  %4002 = vmatpush1.msra.mxu0 %v1572_v7  ;;  %v1430_v6 = vld [vmem:[%s12488_s5 + $0xa0] sm:$0xff]  ;;  %v2675_v7 = vld [vmem:[%s12488_s5 + $0x2788] sm:$0xff] }
 0x350   :  { %3932 = vmatprep.subr.mxu1 %v2806_v8  ;;  %4003 = vmatprep.subr.mxu0 %v1560_v10  ;;  %v1429_v8 = vld [vmem:[%s12488_s5 + $0x98] sm:$0xff]  ;;  %v2663_v10 = vld [vmem:[%s12488_s5 + $0x2728] sm:$0xff] }
 0x351   :  { %3933 = vmatpush1.msra.mxu1 %v2805_v12  ;;  %4004 = vmatpush1.msra.mxu0 %v1559_v14  ;;  %v1417_v12 = vld [vmem:[%s12488_s5 + $0x38] sm:$0xff] }
 0x352   :  { %3934 = vmatprep.subr.mxu1 %v2793_v15  ;;  %4005 = vmatprep.subr.mxu0 %v1547_v19  ;;  %v2662_v15 = vld [vmem:[%s12488_s5 + $0x2720] sm:$0xff]  ;;  %v1416_v19 = vld [vmem:[%s12488_s5 + $0x30] sm:$0xff] }
 0x353   :  { %3935 = vmatpush1.msra.mxu1 %v2792_v20  ;;  %4006 = vmatpush1.msra.mxu0 %v1546_v27  ;;  %v3066_v20 = vld [vmem:[%s12488_s5 + $0x33c0] sm:$0xff]  ;;  %v1820_v27 = vld [vmem:[%s12488_s5 + $0xcd0] sm:$0xff] }
 0x354   :  { %v5379_v34 = vpop.eup %5378  ;;  %3936 = vmatprep.subr.mxu1 %v2780_v40  ;;  %4007 = vmatprep.subr.mxu0 %v1534_v28  ;;  %v3065_v28 = vld [vmem:[%s12488_s5 + $0x33b8] sm:$0xff] }
 0x355   :  { %v5166_v37 = vadd.f32 1.0, %v5379_v34  ;;  %3937 = vmatpush1.msra.mxu1 %v2779_v41  ;;  %4008 = vmatpush1.msra.mxu0 %v1533_v29  ;;  %v1819_v41 = vld [vmem:[%s12488_s5 + $0xcc8] sm:$0xff]  ;;  %v3053_v29 = vld [vmem:[%s12488_s5 + $0x3358] sm:$0xff]  ;;  %v1806_v34 = vld [vmem:[%s12488_s5 + $0xc60] sm:$0xff] }
 0x356   :  { %v5381_v44 = vpop.eup %5380  ;;  %3938 = vmatprep.subr.mxu1 %v2767_v32  ;;  %4009 = vmatprep.subr.mxu0 %v1521_v33  ;;  %v1807_v32 = vld [vmem:[%s12488_s5 + $0xc68] sm:$0xff]  ;;  %v3052_v33 = vld [vmem:[%s12488_s5 + $0x3350] sm:$0xff] }
 0x357   :  { %5382 = vrcp.f32 %v5166_v37  ;;  %v5167_v47 = vadd.f32 1.0, %v5381_v44  ;;  %3939 = vmatpush1.msra.mxu1 %v2766_v35  ;;  %4010 = vmatpush1.msra.mxu0 %v1520_v36  ;;  %v3040_v35 = vld [vmem:[%s12488_s5 + $0x32f0] sm:$0xff]  ;;  %v1794_v36 = vld [vmem:[%s12488_s5 + $0xc00] sm:$0xff]  ;;  %v3039_v37 = vld [vmem:[%s12488_s5 + $0x32e8] sm:$0xff] }
 0x358   :  { %3940 = vmatprep.subr.mxu1 %v2754_v38  ;;  %4011 = vmatprep.subr.mxu0 %v1508_v43  ;;  %v1793_v38 = vld [vmem:[%s12488_s5 + $0xbf8] sm:$0xff]  ;;  %v3027_v43 = vld [vmem:[%s12488_s5 + $0x3288] sm:$0xff] }
 0x359   :  { %5384 = vrcp.f32 %v5167_v47  ;;  %3941 = vmatpush1.msra.mxu1 %v2753_v45  ;;  %4012 = vmatpush1.msra.mxu0 %v1507_v46  ;;  %v1781_v44 = vld [vmem:[%s12488_s5 + $0xb98] sm:$0xff]  ;;  %v3026_v45 = vld [vmem:[%s12488_s5 + $0x3280] sm:$0xff]  ;;  %v1780_v46 = vld [vmem:[%s12488_s5 + $0xb90] sm:$0xff] }
 0x35a   :  { %3942 = vmatprep.subr.mxu1 %v2741_v48  ;;  %4013 = vmatprep.subr.mxu0 %v1495_v39  ;;  %v3014_v47 = vld [vmem:[%s12488_s5 + $0x3220] sm:$0xff]  ;;  %v1768_v48 = vld [vmem:[%s12488_s5 + $0xb30] sm:$0xff]  ;;  %v3013_v39 = vld [vmem:[%s12488_s5 + $0x3218] sm:$0xff] }
 0x35b   :  { %3943 = vmatpush1.msra.mxu1 %v2740_v30  ;;  %4014 = vmatpush1.msra.mxu0 %v1494_v51  ;;  %v1767_v30 = vld [vmem:[%s12488_s5 + $0xb28] sm:$0xff]  ;;  %v3001_v51 = vld [vmem:[%s12488_s5 + $0x31b8] sm:$0xff] }
 0x35c   :  { %3944 = vmatprep.subr.mxu1 %v2728_v52  ;;  %4015 = vmatprep.subr.mxu0 %v1482_v54  ;;  %v1755_v52 = vld [vmem:[%s12488_s5 + $0xac8] sm:$0xff]  ;;  %v3000_v54 = vld [vmem:[%s12488_s5 + $0x31b0] sm:$0xff] }
 0x35d   :  { %3945 = vmatpush1.msra.mxu1 %v2727_v55  ;;  %4016 = vmatpush1.msra.mxu0 %v1481_v57  ;;  %v1754_v55 = vld [vmem:[%s12488_s5 + $0xac0] sm:$0xff]  ;;  %v2988_v57 = vld [vmem:[%s12488_s5 + $0x3150] sm:$0xff] }
 0x35e   :  { %3946 = vmatprep.subr.mxu1 %v2715_v58  ;;  %4017 = vmatprep.subr.mxu0 %v1469_v59  ;;  %v1742_v58 = vld [vmem:[%s12488_s5 + $0xa60] sm:$0xff]  ;;  %v2987_v59 = vld [vmem:[%s12488_s5 + $0x3148] sm:$0xff] }
 0x35f   :  { %3947 = vmatpush1.msra.mxu1 %v2714_v31  ;;  %4018 = vmatpush1.msra.mxu0 %v1468_v60  ;;  %v1741_v31 = vld [vmem:[%s12488_s5 + $0xa58] sm:$0xff]  ;;  %v2975_v60 = vld [vmem:[%s12488_s5 + $0x30e8] sm:$0xff] }
 0x360   :  { %3948 = vmatprep.subr.mxu1 %v2702_v24  ;;  %4019 = vmatprep.subr.mxu0 %v1456_v61  ;;  %v1729_v24 = vld [vmem:[%s12488_s5 + $0x9f8] sm:$0xff]  ;;  %v2974_v61 = vld [vmem:[%s12488_s5 + $0x30e0] sm:$0xff] }
 0x361   :  { %3949 = vmatpush1.msra.mxu1 %v2701_v62  ;;  %4020 = vmatpush1.msra.mxu0 %v1455_v63  ;;  %v1728_v62 = vld [vmem:[%s12488_s5 + $0x9f0] sm:$0xff]  ;;  %v2962_v63 = vld [vmem:[%s12488_s5 + $0x3080] sm:$0xff] }
 0x362   :  { %3950 = vmatprep.subr.mxu1 %v2689_v0  ;;  %4021 = vmatprep.subr.mxu0 %v1443_v2  ;;  %v1716_v0 = vld [vmem:[%s12488_s5 + $0x990] sm:$0xff]  ;;  %v2961_v2 = vld [vmem:[%s12488_s5 + $0x3078] sm:$0xff] }
 0x363   :  { %3951 = vmatpush1.msra.mxu1 %v2688_v3  ;;  %4022 = vmatpush1.msra.mxu0 %v1442_v16  ;;  %v1715_v3 = vld [vmem:[%s12488_s5 + $0x988] sm:$0xff]  ;;  %v2949_v16 = vld [vmem:[%s12488_s5 + $0x3018] sm:$0xff] }
 0x364   :  { %v5383_v14 = vpop.eup %5382  ;;  %3952 = vmatprep.subr.mxu1 %v2676_v5  ;;  %4023 = vmatprep.subr.mxu0 %v1430_v6  ;;  %v1703_v5 = vld [vmem:[%s12488_s5 + $0x928] sm:$0xff]  ;;  %v2948_v6 = vld [vmem:[%s12488_s5 + $0x3010] sm:$0xff] }
 0x365   :  { %5205 = vst [vmem:[%s12490_s7] sm:$0xff] %v5383_v14  ;;  %3953 = vmatpush1.msra.mxu1 %v2675_v7  ;;  %4024 = vmatpush1.msra.mxu0 %v1429_v8  ;;  %v1702_v7 = vld [vmem:[%s12488_s5 + $0x920] sm:$0xff]  ;;  %v2936_v8 = vld [vmem:[%s12488_s5 + $0x2fb0] sm:$0xff]  ;;  %v1689_v14 = vld [vmem:[%s12488_s5 + $0x8b8] sm:$0xff] }
 0x366   :  { %v5385_v40 = vpop.eup %5384  ;;  %3954 = vmatprep.subr.mxu1 %v2663_v10  ;;  %4025 = vmatprep.subr.mxu0 %v1417_v12  ;;  %v1690_v10 = vld [vmem:[%s12488_s5 + $0x8c0] sm:$0xff]  ;;  %v2935_v12 = vld [vmem:[%s12488_s5 + $0x2fa8] sm:$0xff] }
 0x367   :  { %5206 = vst [vmem:[%s12490_s7 + $0x8] sm:$0xff] %v5385_v40  ;;  %3955 = vmatpush1.msra.mxu1 %v2662_v15  ;;  %4026 = vmatpush1.msra.mxu0 %v1416_v19  ;;  %v2923_v15 = vld [vmem:[%s12488_s5 + $0x2f48] sm:$0xff]  ;;  %v1677_v19 = vld [vmem:[%s12488_s5 + $0x858] sm:$0xff]  ;;  %v2910_v40 = vld [vmem:[%s12488_s5 + $0x2ee0] sm:$0xff] }
 0x368   :  { %3956 = vmatprep.subr.mxu1 %v3066_v20  ;;  %4027 = vmatprep.subr.mxu0 %v1820_v27  ;;  %v2922_v20 = vld [vmem:[%s12488_s5 + $0x2f40] sm:$0xff]  ;;  %v1676_v27 = vld [vmem:[%s12488_s5 + $0x850] sm:$0xff] }
 0x369   :  { %3957 = vmatpush2.msra.mxu1 %v3065_v28  ;;  %4028 = vmatpush2.msra.mxu0 %v1819_v41  ;;  %v1664_v28 = vld [vmem:[%s12488_s5 + $0x7f0] sm:$0xff]  ;;  %v2909_v41 = vld [vmem:[%s12488_s5 + $0x2ed8] sm:$0xff] }
 0x36a   :  { %3958 = vmatprep.subr.mxu1 %v3053_v29  ;;  %4029 = vmatprep.subr.mxu0 %v1807_v32  ;;  %v1663_v29 = vld [vmem:[%s12488_s5 + $0x7e8] sm:$0xff]  ;;  %v2897_v32 = vld [vmem:[%s12488_s5 + $0x2e78] sm:$0xff] }
 0x36b   :  { %3959 = vmatpush2.msra.mxu1 %v3052_v33  ;;  %4030 = vmatpush2.msra.mxu0 %v1806_v34  ;;  %v1651_v33 = vld [vmem:[%s12488_s5 + $0x788] sm:$0xff]  ;;  %v2896_v34 = vld [vmem:[%s12488_s5 + $0x2e70] sm:$0xff] }
 0x36c   :  { %3960 = vmatprep.subr.mxu1 %v3040_v35  ;;  %4031 = vmatprep.subr.mxu0 %v1794_v36  ;;  %v1650_v35 = vld [vmem:[%s12488_s5 + $0x780] sm:$0xff]  ;;  %v2884_v36 = vld [vmem:[%s12488_s5 + $0x2e10] sm:$0xff] }
 0x36d   :  { %3961 = vmatpush2.msra.mxu1 %v3039_v37  ;;  %4032 = vmatpush2.msra.mxu0 %v1793_v38  ;;  %v1638_v37 = vld [vmem:[%s12488_s5 + $0x720] sm:$0xff]  ;;  %v2883_v38 = vld [vmem:[%s12488_s5 + $0x2e08] sm:$0xff] }
 0x36e   :  { %3962 = vmatprep.subr.mxu1 %v3027_v43  ;;  %4033 = vmatprep.subr.mxu0 %v1781_v44  ;;  %v1637_v43 = vld [vmem:[%s12488_s5 + $0x718] sm:$0xff]  ;;  %v2871_v44 = vld [vmem:[%s12488_s5 + $0x2da8] sm:$0xff] }
 0x36f   :  { %3963 = vmatpush2.msra.mxu1 %v3026_v45  ;;  %4034 = vmatpush2.msra.mxu0 %v1780_v46  ;;  %v1625_v45 = vld [vmem:[%s12488_s5 + $0x6b8] sm:$0xff]  ;;  %v2870_v46 = vld [vmem:[%s12488_s5 + $0x2da0] sm:$0xff] }
 0x370   :  { %3964 = vmatprep.subr.mxu1 %v3014_v47  ;;  %4035 = vmatprep.subr.mxu0 %v1768_v48  ;;  %v1624_v47 = vld [vmem:[%s12488_s5 + $0x6b0] sm:$0xff] }
 0x371   :  { %3965 = vmatpush2.msra.mxu1 %v3013_v39  ;;  %4036 = vmatpush2.msra.mxu0 %v1767_v30  ;;  %v2028_v48 = vld [vmem:[%s12488_s5 + $0x1350] sm:$0xff]  ;;  %v2027_v30 = vld [vmem:[%s12488_s5 + $0x1348] sm:$0xff] }
 0x372   :  { %3966 = vmatprep.subr.mxu1 %v3001_v51  ;;  %4037 = vmatprep.subr.mxu0 %v1755_v52  ;;  %v2444_v39 = vld [vmem:[%s12488_s5 + $0x2050] sm:$0xff]  ;;  %v2443_v51 = vld [vmem:[%s12488_s5 + $0x2048] sm:$0xff] }
 0x373   :  { %3967 = vmatpush2.msra.mxu1 %v3000_v54  ;;  %4038 = vmatpush2.msra.mxu0 %v1754_v55  ;;  %v2015_v52 = vld [vmem:[%s12488_s5 + $0x12e8] sm:$0xff]  ;;  %v2014_v55 = vld [vmem:[%s12488_s5 + $0x12e0] sm:$0xff] }
 0x374   :  { %3968 = vmatprep.subr.mxu1 %v2988_v57  ;;  %4039 = vmatprep.subr.mxu0 %v1742_v58  ;;  %v2431_v54 = vld [vmem:[%s12488_s5 + $0x1fe8] sm:$0xff]  ;;  %v2430_v57 = vld [vmem:[%s12488_s5 + $0x1fe0] sm:$0xff] }
 0x375   :  { %3969 = vmatpush2.msra.mxu1 %v2987_v59  ;;  %4040 = vmatpush2.msra.mxu0 %v1741_v31  ;;  %v2002_v58 = vld [vmem:[%s12488_s5 + $0x1280] sm:$0xff]  ;;  %v2001_v31 = vld [vmem:[%s12488_s5 + $0x1278] sm:$0xff] }
 0x376   :  { %3970 = vmatprep.subr.mxu1 %v2975_v60  ;;  %4041 = vmatprep.subr.mxu0 %v1729_v24  ;;  %v2418_v59 = vld [vmem:[%s12488_s5 + $0x1f80] sm:$0xff]  ;;  %v2417_v60 = vld [vmem:[%s12488_s5 + $0x1f78] sm:$0xff] }
 0x377   :  { %3971 = vmatpush2.msra.mxu1 %v2974_v61  ;;  %4042 = vmatpush2.msra.mxu0 %v1728_v62  ;;  %v1989_v24 = vld [vmem:[%s12488_s5 + $0x1218] sm:$0xff]  ;;  %v1988_v62 = vld [vmem:[%s12488_s5 + $0x1210] sm:$0xff] }
 0x378   :  { %3972 = vmatprep.subr.mxu1 %v2962_v63  ;;  %4043 = vmatprep.subr.mxu0 %v1716_v0  ;;  %v2405_v61 = vld [vmem:[%s12488_s5 + $0x1f18] sm:$0xff]  ;;  %v2404_v63 = vld [vmem:[%s12488_s5 + $0x1f10] sm:$0xff] }
 0x379   :  { %3973 = vmatpush2.msra.mxu1 %v2961_v2  ;;  %4044 = vmatpush2.msra.mxu0 %v1715_v3  ;;  %v1976_v0 = vld [vmem:[%s12488_s5 + $0x11b0] sm:$0xff]  ;;  %v1975_v3 = vld [vmem:[%s12488_s5 + $0x11a8] sm:$0xff] }
 0x37a   :  { %3974 = vmatprep.subr.mxu1 %v2949_v16  ;;  %4045 = vmatprep.subr.mxu0 %v1703_v5  ;;  %v2392_v2 = vld [vmem:[%s12488_s5 + $0x1eb0] sm:$0xff]  ;;  %v2391_v16 = vld [vmem:[%s12488_s5 + $0x1ea8] sm:$0xff] }
 0x37b   :  { %3975 = vmatpush2.msra.mxu1 %v2948_v6  ;;  %4046 = vmatpush2.msra.mxu0 %v1702_v7  ;;  %v1963_v5 = vld [vmem:[%s12488_s5 + $0x1148] sm:$0xff]  ;;  %v1962_v7 = vld [vmem:[%s12488_s5 + $0x1140] sm:$0xff] }
 0x37c   :  { %3976 = vmatprep.subr.mxu1 %v2936_v8  ;;  %4047 = vmatprep.subr.mxu0 %v1690_v10  ;;  %v2379_v6 = vld [vmem:[%s12488_s5 + $0x1e48] sm:$0xff]  ;;  %v2378_v8 = vld [vmem:[%s12488_s5 + $0x1e40] sm:$0xff] }
 0x37d   :  { %3977 = vmatpush2.msra.mxu1 %v2935_v12  ;;  %4048 = vmatpush2.msra.mxu0 %v1689_v14  ;;  %v1950_v10 = vld [vmem:[%s12488_s5 + $0x10e0] sm:$0xff]  ;;  %v1949_v14 = vld [vmem:[%s12488_s5 + $0x10d8] sm:$0xff] }
 0x37e   :  { %3978 = vmatprep.subr.mxu1 %v2923_v15  ;;  %4049 = vmatprep.subr.mxu0 %v1677_v19  ;;  %v2366_v12 = vld [vmem:[%s12488_s5 + $0x1de0] sm:$0xff]  ;;  %v2365_v15 = vld [vmem:[%s12488_s5 + $0x1dd8] sm:$0xff] }
 0x37f   :  { %3979 = vmatpush2.msra.mxu1 %v2922_v20  ;;  %4050 = vmatpush2.msra.mxu0 %v1676_v27  ;;  %v1937_v19 = vld [vmem:[%s12488_s5 + $0x1078] sm:$0xff]  ;;  %v1936_v27 = vld [vmem:[%s12488_s5 + $0x1070] sm:$0xff] }
 0x380   :  { %3980 = vmatprep.subr.mxu1 %v2910_v40  ;;  %4051 = vmatprep.subr.mxu0 %v1664_v28  ;;  %v2353_v20 = vld [vmem:[%s12488_s5 + $0x1d78] sm:$0xff]  ;;  %v2352_v40 = vld [vmem:[%s12488_s5 + $0x1d70] sm:$0xff] }
 0x381   :  { %3981 = vmatpush2.msra.mxu1 %v2909_v41  ;;  %4052 = vmatpush2.msra.mxu0 %v1663_v29  ;;  %v1924_v28 = vld [vmem:[%s12488_s5 + $0x1010] sm:$0xff]  ;;  %v1923_v29 = vld [vmem:[%s12488_s5 + $0x1008] sm:$0xff] }
 0x382   :  { %3982 = vmatprep.subr.mxu1 %v2897_v32  ;;  %4053 = vmatprep.subr.mxu0 %v1651_v33  ;;  %v2340_v41 = vld [vmem:[%s12488_s5 + $0x1d10] sm:$0xff]  ;;  %v2339_v32 = vld [vmem:[%s12488_s5 + $0x1d08] sm:$0xff] }
 0x383   :  { %3983 = vmatpush2.msra.mxu1 %v2896_v34  ;;  %4054 = vmatpush2.msra.mxu0 %v1650_v35  ;;  %v1911_v33 = vld [vmem:[%s12488_s5 + $0xfa8] sm:$0xff]  ;;  %v1910_v35 = vld [vmem:[%s12488_s5 + $0xfa0] sm:$0xff] }
 0x384   :  { %3984 = vmatprep.subr.mxu1 %v2884_v36  ;;  %4055 = vmatprep.subr.mxu0 %v1638_v37  ;;  %v2327_v34 = vld [vmem:[%s12488_s5 + $0x1ca8] sm:$0xff]  ;;  %v2326_v36 = vld [vmem:[%s12488_s5 + $0x1ca0] sm:$0xff] }
 0x385   :  { %3985 = vmatpush2.msra.mxu1 %v2883_v38  ;;  %4056 = vmatpush2.msra.mxu0 %v1637_v43  ;;  %v1898_v37 = vld [vmem:[%s12488_s5 + $0xf40] sm:$0xff]  ;;  %v1897_v43 = vld [vmem:[%s12488_s5 + $0xf38] sm:$0xff] }
 0x386   :  { %3986 = vmatprep.subr.mxu1 %v2871_v44  ;;  %4057 = vmatprep.subr.mxu0 %v1625_v45  ;;  %v2314_v38 = vld [vmem:[%s12488_s5 + $0x1c40] sm:$0xff]  ;;  %v2313_v44 = vld [vmem:[%s12488_s5 + $0x1c38] sm:$0xff] }
 0x387   :  { %3987 = vmatpush2.msra.mxu1 %v2870_v46  ;;  %4058 = vmatpush2.msra.mxu0 %v1624_v47  ;;  %v1885_v45 = vld [vmem:[%s12488_s5 + $0xed8] sm:$0xff]  ;;  %v1884_v47 = vld [vmem:[%s12488_s5 + $0xed0] sm:$0xff] }
 0x388   :  { %3989 = vmatmul.mubr.f32.vlgmr.msra.gmra.mxu1 %v8332_v18  ;;  %4060 = vmatmul.mubr.f32.vlgmr.msra.gmra.mxu0 %v7707_v1  ;;  %v2301_v46 = vld [vmem:[%s12488_s5 + $0x1bd8] sm:$0xff] }
 0x389   :  { %4066 = vmatprep.subr.mxu1 %v2028_v48  ;;  %4137 = vmatprep.subr.mxu0 %v2444_v39  ;;  %v2300_v48 = vld [vmem:[%s12488_s5 + $0x1bd0] sm:$0xff] }
 0x38a   :  { %4067 = vmatpush1.msra.mxu1 %v2027_v30  ;;  %4130 = vmatprep.mubr.f32.mxu1 %v7725_v11  ;;  %v1872_v39 = vld [vmem:[%s12488_s5 + $0xe70] sm:$0xff] }
 0x38b   :  { %4138 = vmatpush1.msra.mxu0 %v2443_v51  ;;  %4201 = vmatprep.mubr.f32.mxu0 %v8120_v42  ;;  %v2288_v30 = vld [vmem:[%s12488_s5 + $0x1b70] sm:$0xff]  ;;  %v1871_v51 = vld [vmem:[%s12488_s5 + $0xe68] sm:$0xff] }
 0x38c   :  { %4068 = vmatprep.subr.mxu1 %v2015_v52  ;;  %4139 = vmatprep.subr.mxu0 %v2431_v54  ;;  %v2287_v52 = vld [vmem:[%s12488_s5 + $0x1b68] sm:$0xff] }
 0x38d   :  { %4069 = vmatpush1.msra.mxu1 %v2014_v55  ;;  %4140 = vmatpush1.msra.mxu0 %v2430_v57  ;;  %v1859_v54 = vld [vmem:[%s12488_s5 + $0xe08] sm:$0xff]  ;;  %v1858_v57 = vld [vmem:[%s12488_s5 + $0xe00] sm:$0xff] }
 0x38e   :  { %4070 = vmatprep.subr.mxu1 %v2002_v58  ;;  %4141 = vmatprep.subr.mxu0 %v2418_v59  ;;  %v2275_v55 = vld [vmem:[%s12488_s5 + $0x1b08] sm:$0xff]  ;;  %v2274_v58 = vld [vmem:[%s12488_s5 + $0x1b00] sm:$0xff] }
 0x38f   :  { %4071 = vmatpush1.msra.mxu1 %v2001_v31  ;;  %4142 = vmatpush1.msra.mxu0 %v2417_v60  ;;  %v1846_v59 = vld [vmem:[%s12488_s5 + $0xda0] sm:$0xff]  ;;  %v1845_v60 = vld [vmem:[%s12488_s5 + $0xd98] sm:$0xff] }
 0x390   :  { %4072 = vmatprep.subr.mxu1 %v1989_v24  ;;  %4143 = vmatprep.subr.mxu0 %v2405_v61  ;;  %v2262_v31 = vld [vmem:[%s12488_s5 + $0x1aa0] sm:$0xff]  ;;  %v2261_v24 = vld [vmem:[%s12488_s5 + $0x1a98] sm:$0xff] }
 0x391   :  { %4073 = vmatpush1.msra.mxu1 %v1988_v62  ;;  %4144 = vmatpush1.msra.mxu0 %v2404_v63  ;;  %v1833_v61 = vld [vmem:[%s12488_s5 + $0xd38] sm:$0xff]  ;;  %v1832_v63 = vld [vmem:[%s12488_s5 + $0xd30] sm:$0xff] }
 0x392   :  { %4074 = vmatprep.subr.mxu1 %v1976_v0  ;;  %4145 = vmatprep.subr.mxu0 %v2392_v2  ;;  %v2249_v62 = vld [vmem:[%s12488_s5 + $0x1a38] sm:$0xff]  ;;  %v2248_v0 = vld [vmem:[%s12488_s5 + $0x1a30] sm:$0xff] }
 0x393   :  { %4075 = vmatpush1.msra.mxu1 %v1975_v3  ;;  %4146 = vmatpush1.msra.mxu0 %v2391_v16  ;;  %v2236_v2 = vld [vmem:[%s12488_s5 + $0x19d0] sm:$0xff]  ;;  %v2235_v16 = vld [vmem:[%s12488_s5 + $0x19c8] sm:$0xff] }
 0x394   :  { %4076 = vmatprep.subr.mxu1 %v1963_v5  ;;  %4147 = vmatprep.subr.mxu0 %v2379_v6  ;;  %v2652_v3 = vld [vmem:[%s12488_s5 + $0x26d0] sm:$0xff]  ;;  %v2651_v5 = vld [vmem:[%s12488_s5 + $0x26c8] sm:$0xff] }
 0x395   :  { %4077 = vmatpush1.msra.mxu1 %v1962_v7  ;;  %4148 = vmatpush1.msra.mxu0 %v2378_v8  ;;  %v2223_v6 = vld [vmem:[%s12488_s5 + $0x1968] sm:$0xff]  ;;  %v2222_v8 = vld [vmem:[%s12488_s5 + $0x1960] sm:$0xff] }
 0x396   :  { %4078 = vmatprep.subr.mxu1 %v1950_v10  ;;  %4149 = vmatprep.subr.mxu0 %v2366_v12  ;;  %v2639_v7 = vld [vmem:[%s12488_s5 + $0x2668] sm:$0xff]  ;;  %v2638_v10 = vld [vmem:[%s12488_s5 + $0x2660] sm:$0xff] }
 0x397   :  { %4079 = vmatpush1.msra.mxu1 %v1949_v14  ;;  %4150 = vmatpush1.msra.mxu0 %v2365_v15  ;;  %v2210_v12 = vld [vmem:[%s12488_s5 + $0x1900] sm:$0xff]  ;;  %v2209_v15 = vld [vmem:[%s12488_s5 + $0x18f8] sm:$0xff] }
 0x398   :  { %4080 = vmatprep.subr.mxu1 %v1937_v19  ;;  %4151 = vmatprep.subr.mxu0 %v2353_v20  ;;  %v2626_v14 = vld [vmem:[%s12488_s5 + $0x2600] sm:$0xff]  ;;  %v2625_v19 = vld [vmem:[%s12488_s5 + $0x25f8] sm:$0xff] }
 0x399   :  { %4081 = vmatpush1.msra.mxu1 %v1936_v27  ;;  %4152 = vmatpush1.msra.mxu0 %v2352_v40  ;;  %v2197_v20 = vld [vmem:[%s12488_s5 + $0x1898] sm:$0xff]  ;;  %v2196_v40 = vld [vmem:[%s12488_s5 + $0x1890] sm:$0xff] }
 0x39a   :  { %4082 = vmatprep.subr.mxu1 %v1924_v28  ;;  %4153 = vmatprep.subr.mxu0 %v2340_v41  ;;  %v2613_v27 = vld [vmem:[%s12488_s5 + $0x2598] sm:$0xff]  ;;  %v2612_v28 = vld [vmem:[%s12488_s5 + $0x2590] sm:$0xff] }
 0x39b   :  { %4083 = vmatpush1.msra.mxu1 %v1923_v29  ;;  %4154 = vmatpush1.msra.mxu0 %v2339_v32  ;;  %v2184_v41 = vld [vmem:[%s12488_s5 + $0x1830] sm:$0xff]  ;;  %v2183_v32 = vld [vmem:[%s12488_s5 + $0x1828] sm:$0xff] }
 0x39c   :  { %4084 = vmatprep.subr.mxu1 %v1911_v33  ;;  %4155 = vmatprep.subr.mxu0 %v2327_v34  ;;  %v2600_v29 = vld [vmem:[%s12488_s5 + $0x2530] sm:$0xff]  ;;  %v2599_v33 = vld [vmem:[%s12488_s5 + $0x2528] sm:$0xff] }
 0x39d   :  { %4085 = vmatpush1.msra.mxu1 %v1910_v35  ;;  %4156 = vmatpush1.msra.mxu0 %v2326_v36  ;;  %v2171_v34 = vld [vmem:[%s12488_s5 + $0x17c8] sm:$0xff]  ;;  %v2170_v36 = vld [vmem:[%s12488_s5 + $0x17c0] sm:$0xff] }
 0x39e   :  { %4086 = vmatprep.subr.mxu1 %v1898_v37  ;;  %4157 = vmatprep.subr.mxu0 %v2314_v38  ;;  %v2587_v35 = vld [vmem:[%s12488_s5 + $0x24c8] sm:$0xff]  ;;  %v2586_v37 = vld [vmem:[%s12488_s5 + $0x24c0] sm:$0xff] }
 0x39f   :  { %4087 = vmatpush1.msra.mxu1 %v1897_v43  ;;  %4158 = vmatpush1.msra.mxu0 %v2313_v44  ;;  %v2158_v38 = vld [vmem:[%s12488_s5 + $0x1760] sm:$0xff]  ;;  %v2157_v44 = vld [vmem:[%s12488_s5 + $0x1758] sm:$0xff] }
 0x3a0   :  { %4088 = vmatprep.subr.mxu1 %v1885_v45  ;;  %4159 = vmatprep.subr.mxu0 %v2301_v46  ;;  %v2574_v43 = vld [vmem:[%s12488_s5 + $0x2460] sm:$0xff]  ;;  %v2573_v45 = vld [vmem:[%s12488_s5 + $0x2458] sm:$0xff] }
 0x3a1   :  { %4089 = vmatpush1.msra.mxu1 %v1884_v47  ;;  %4160 = vmatpush1.msra.mxu0 %v2300_v48  ;;  %v2145_v46 = vld [vmem:[%s12488_s5 + $0x16f8] sm:$0xff]  ;;  %v2144_v48 = vld [vmem:[%s12488_s5 + $0x16f0] sm:$0xff] }
 0x3a2   :  { %4090 = vmatprep.subr.mxu1 %v1872_v39  ;;  %4161 = vmatprep.subr.mxu0 %v2288_v30  ;;  %v2561_v47 = vld [vmem:[%s12488_s5 + $0x23f8] sm:$0xff]  ;;  %v2560_v39 = vld [vmem:[%s12488_s5 + $0x23f0] sm:$0xff] }
 0x3a3   :  { %4091 = vmatpush1.msra.mxu1 %v1871_v51  ;;  %4162 = vmatpush1.msra.mxu0 %v2287_v52  ;;  %v2132_v30 = vld [vmem:[%s12488_s5 + $0x1690] sm:$0xff]  ;;  %v3493_v52 = vpop.f32.mrf.mxu0 }
 0x3a4   :  { %4092 = vmatprep.subr.mxu1 %v1859_v54  ;;  %4163 = vmatprep.subr.mxu0 %v2275_v55  ;;  %v2548_v51 = vld [vmem:[%s12488_s5 + $0x2390] sm:$0xff]  ;;  %v2131_v54 = vld [vmem:[%s12488_s5 + $0x1688] sm:$0xff] }
 0x3a5   :  { %4093 = vmatpush1.msra.mxu1 %v1858_v57  ;;  %4164 = vmatpush1.msra.mxu0 %v2274_v58  ;;  %v2547_v55 = vld [vmem:[%s12488_s5 + $0x2388] sm:$0xff]  ;;  %v5431_v57 = vld [vmem:[%s12489_s6] sm:$0xff] }
 0x3a6   :  { %4094 = vmatprep.subr.mxu1 %v1846_v59  ;;  %4165 = vmatprep.subr.mxu0 %v2262_v31  ;;  %v3089_v58 = vrot.slane %v5431_v57, %v6113_v22  ;;  %v2119_v59 = vld [vmem:[%s12488_s5 + $0x1628] sm:$0xff] }
 0x3a7   :  { %4095 = vmatpush1.msra.mxu1 %v1845_v60  ;;  %4166 = vmatpush1.msra.mxu0 %v2261_v24  ;;  %v2535_v31 = vld [vmem:[%s12488_s5 + $0x2328] sm:$0xff]  ;;  %v3564_v60 = vpop.f32.mrf.mxu1  ;;  %v2118_v24 = vld [vmem:[%s12488_s5 + $0x1620] sm:$0xff] }
 0x3a8   :  { %4096 = vmatprep.subr.mxu1 %v1833_v61  ;;  %4167 = vmatprep.subr.mxu0 %v2249_v62  ;;  %v2534_v61 = vld [vmem:[%s12488_s5 + $0x2320] sm:$0xff]  ;;  %v3093_v62 = vrot.slane %v5431_v57, %v6125_v26  ;;  %v2860_v57 = vld [vmem:[%s12488_s5 + $0x2d50] sm:$0xff] }
 0x3a9   :  { %4097 = vmatpush1.msra.mxu1 %v1832_v63  ;;  %4168 = vmatpush1.msra.mxu0 %v2248_v0  ;;  %v2106_v63 = vld [vmem:[%s12488_s5 + $0x15c0] sm:$0xff] }
 0x3aa   :  { %4098 = vmatprep.subr.mxu1 %v2236_v2  ;;  %4169 = vmatprep.subr.mxu0 %v2652_v3  ;;  %v2522_v0 = vld [vmem:[%s12488_s5 + $0x22c0] sm:$0xff]  ;;  %v3495_v2 = vpop.f32.mrf.mxu0  ;;  %v2105_v3 = vld [vmem:[%s12488_s5 + $0x15b8] sm:$0xff] }
 0x3ab   :  { %4099 = vmatpush2.msra.mxu1 %v2235_v16  ;;  %4170 = vmatpush2.msra.mxu0 %v2651_v5  ;;  %v2521_v16 = vld [vmem:[%s12488_s5 + $0x22b8] sm:$0xff]  ;;  %v3494_v5 = vadd.f32 %v3493_v52, %v3089_v58  ;;  %v1614_v58 = vld [vmem:[%s12488_s5 + $0x660] sm:$0xff] }
 0x3ac   :  { %4100 = vmatprep.subr.mxu1 %v2223_v6  ;;  %4171 = vmatprep.subr.mxu0 %v2639_v7  ;;  %v2093_v6 = vld [vmem:[%s12488_s5 + $0x1558] sm:$0xff] }
 0x3ad   :  { %4101 = vmatpush2.msra.mxu1 %v2222_v8  ;;  %4172 = vmatpush2.msra.mxu0 %v2638_v10  ;;  %v2509_v7 = vld [vmem:[%s12488_s5 + $0x2258] sm:$0xff]  ;;  %v3566_v8 = vpop.f32.mrf.mxu1  ;;  %v2092_v10 = vld [vmem:[%s12488_s5 + $0x1550] sm:$0xff] }
 0x3ae   :  { %4102 = vmatprep.subr.mxu1 %v2210_v12  ;;  %4173 = vmatprep.subr.mxu0 %v2626_v14  ;;  %v2508_v12 = vld [vmem:[%s12488_s5 + $0x2250] sm:$0xff]  ;;  %v3496_v14 = vadd.f32 %v3495_v2, %v3093_v62  ;;  %v2846_v62 = vld [vmem:[%s12488_s5 + $0x2ce0] sm:$0xff] }
 0x3af   :  { %4103 = vmatpush2.msra.mxu1 %v2209_v15  ;;  %4174 = vmatpush2.msra.mxu0 %v2625_v19  ;;  %v3565_v15 = vadd.f32 %v3564_v60, %v3494_v5  ;;  %v2080_v19 = vld [vmem:[%s12488_s5 + $0x14f0] sm:$0xff]  ;;  %v1613_v60 = vld [vmem:[%s12488_s5 + $0x658] sm:$0xff] }
 0x3b0   :  { %4104 = vmatprep.subr.mxu1 %v2197_v20  ;;  %4175 = vmatprep.subr.mxu0 %v2613_v27  ;;  %v2496_v20 = vld [vmem:[%s12488_s5 + $0x21f0] sm:$0xff]  ;;  %v3635_v27 = vpop.f32.mrf.mxu0  ;;  %v2821_v5 = vld [vmem:[%s12488_s5 + $0x2c18] sm:$0xff] }
 0x3b1   :  { %4105 = vmatpush2.msra.mxu1 %v2196_v40  ;;  %4176 = vmatpush2.msra.mxu0 %v2612_v28  ;;  %v2079_v40 = vld [vmem:[%s12488_s5 + $0x14e8] sm:$0xff]  ;;  %v1588_v2 = vld [vmem:[%s12488_s5 + $0x590] sm:$0xff] }
 0x3b2   :  { %4106 = vmatprep.subr.mxu1 %v2184_v41  ;;  %4177 = vmatprep.subr.mxu0 %v2600_v29  ;;  %v2495_v28 = vld [vmem:[%s12488_s5 + $0x21e8] sm:$0xff]  ;;  %v3567_v41 = vadd.f32 %v3566_v8, %v3496_v14  ;;  %v1574_v8 = vld [vmem:[%s12488_s5 + $0x520] sm:$0xff] }
 0x3b3   :  { %4107 = vmatpush2.msra.mxu1 %v2183_v32  ;;  %4178 = vmatpush2.msra.mxu0 %v2599_v33  ;;  %v2067_v29 = vld [vmem:[%s12488_s5 + $0x1488] sm:$0xff]  ;;  %v2066_v33 = vld [vmem:[%s12488_s5 + $0x1480] sm:$0xff] }
 0x3b4   :  { %4108 = vmatprep.subr.mxu1 %v2171_v34  ;;  %4179 = vmatprep.subr.mxu0 %v2587_v35  ;;  %v2483_v32 = vld [vmem:[%s12488_s5 + $0x2188] sm:$0xff]  ;;  %v2482_v34 = vld [vmem:[%s12488_s5 + $0x2180] sm:$0xff]  ;;  %v3636_v35 = vadd.f32 %v3635_v27, %v3565_v15  ;;  %v1561_v15 = vld [vmem:[%s12488_s5 + $0x4b8] sm:$0xff] }
 0x3b5   :  { %4109 = vmatpush2.msra.mxu1 %v2170_v36  ;;  %4180 = vmatpush2.msra.mxu0 %v2586_v37  ;;  %v2054_v36 = vld [vmem:[%s12488_s5 + $0x1420] sm:$0xff]  ;;  %v2807_v14 = vld [vmem:[%s12488_s5 + $0x2ba8] sm:$0xff] }
 0x3b6   :  { %4110 = vmatprep.subr.mxu1 %v2158_v38  ;;  %4181 = vmatprep.subr.mxu0 %v2574_v43  ;;  %v2470_v37 = vld [vmem:[%s12488_s5 + $0x2120] sm:$0xff]  ;;  %v3637_v38 = vpop.f32.mrf.mxu0  ;;  %v2053_v43 = vld [vmem:[%s12488_s5 + $0x1418] sm:$0xff] }
 0x3b7   :  { %4111 = vmatpush2.msra.mxu1 %v2157_v44  ;;  %4182 = vmatpush2.msra.mxu0 %v2573_v45  ;;  %v2469_v44 = vld [vmem:[%s12488_s5 + $0x2118] sm:$0xff]  ;;  %v2794_v27 = vld [vmem:[%s12488_s5 + $0x2b40] sm:$0xff] }
 0x3b8   :  { %4112 = vmatprep.subr.mxu1 %v2145_v46  ;;  %4183 = vmatprep.subr.mxu0 %v2561_v47  ;;  %v3638_v46 = vadd.f32 %v3637_v38, %v3567_v41  ;;  %v2041_v47 = vld [vmem:[%s12488_s5 + $0x13b8] sm:$0xff]  ;;  %v1536_v41 = vld [vmem:[%s12488_s5 + $0x3f0] sm:$0xff] }
 0x3b9   :  { %4113 = vmatpush2.msra.mxu1 %v2144_v48  ;;  %4184 = vmatpush2.msra.mxu0 %v2560_v39  ;;  %v2457_v48 = vld [vmem:[%s12488_s5 + $0x20b8] sm:$0xff]  ;;  %v2768_v38 = vld [vmem:[%s12488_s5 + $0x2a70] sm:$0xff] }
 0x3ba   :  { %4114 = vmatprep.subr.mxu1 %v2132_v30  ;;  %4185 = vmatprep.subr.mxu0 %v2548_v51  ;;  %v2040_v30 = vld [vmem:[%s12488_s5 + $0x13b0] sm:$0xff] }
 0x3bb   :  { %4115 = vmatpush2.msra.mxu1 %v2131_v54  ;;  %4186 = vmatpush2.msra.mxu0 %v2547_v55  ;;  %v2456_v51 = vld [vmem:[%s12488_s5 + $0x20b0] sm:$0xff] }
 0x3bc   :  { %4116 = vmatprep.subr.mxu1 %v2119_v59  ;;  %4187 = vmatprep.subr.mxu0 %v2535_v31  ;;  %v2859_v59 = vld [vmem:[%s12488_s5 + $0x2d48] sm:$0xff] }
 0x3bd   :  { %4117 = vmatpush2.msra.mxu1 %v2118_v24  ;;  %4188 = vmatpush2.msra.mxu0 %v2534_v61  ;;  %v2847_v24 = vld [vmem:[%s12488_s5 + $0x2ce8] sm:$0xff]  ;;  %v1601_v61 = vld [vmem:[%s12488_s5 + $0x5f8] sm:$0xff] }
 0x3be   :  { %4118 = vmatprep.subr.mxu1 %v2106_v63  ;;  %4189 = vmatprep.subr.mxu0 %v2522_v0  ;;  %v1600_v63 = vld [vmem:[%s12488_s5 + $0x5f0] sm:$0xff]  ;;  %v2834_v0 = vld [vmem:[%s12488_s5 + $0x2c80] sm:$0xff] }
 0x3bf   :  { %4119 = vmatpush2.msra.mxu1 %v2105_v3  ;;  %4190 = vmatpush2.msra.mxu0 %v2521_v16  ;;  %v2833_v3 = vld [vmem:[%s12488_s5 + $0x2c78] sm:$0xff]  ;;  %v1587_v16 = vld [vmem:[%s12488_s5 + $0x588] sm:$0xff] }
 0x3c0   :  { %4120 = vmatprep.subr.mxu1 %v2093_v6  ;;  %4191 = vmatprep.subr.mxu0 %v2509_v7  ;;  %v1575_v6 = vld [vmem:[%s12488_s5 + $0x528] sm:$0xff]  ;;  %v2820_v7 = vld [vmem:[%s12488_s5 + $0x2c10] sm:$0xff] }
 0x3c1   :  { %4121 = vmatpush2.msra.mxu1 %v2092_v10  ;;  %4192 = vmatpush2.msra.mxu0 %v2508_v12  ;;  %v2808_v10 = vld [vmem:[%s12488_s5 + $0x2bb0] sm:$0xff]  ;;  %v1562_v12 = vld [vmem:[%s12488_s5 + $0x4c0] sm:$0xff] }
 0x3c2   :  { %4122 = vmatprep.subr.mxu1 %v2080_v19  ;;  %4193 = vmatprep.subr.mxu0 %v2496_v20  ;;  %v2795_v19 = vld [vmem:[%s12488_s5 + $0x2b48] sm:$0xff]  ;;  %v1549_v20 = vld [vmem:[%s12488_s5 + $0x458] sm:$0xff] }
 0x3c3   :  { %4123 = vmatpush2.msra.mxu1 %v2079_v40  ;;  %4194 = vmatpush2.msra.mxu0 %v2495_v28  ;;  %v1548_v40 = vld [vmem:[%s12488_s5 + $0x450] sm:$0xff]  ;;  %v2782_v28 = vld [vmem:[%s12488_s5 + $0x2ae0] sm:$0xff] }
 0x3c4   :  { %4124 = vmatprep.subr.mxu1 %v2067_v29  ;;  %4195 = vmatprep.subr.mxu0 %v2483_v32  ;;  %v3706_v45 = vpop.f32.mrf.mxu1  ;;  %v2781_v32 = vld [vmem:[%s12488_s5 + $0x2ad8] sm:$0xff] }
 0x3c5   :  { %4125 = vmatpush2.msra.mxu1 %v2066_v33  ;;  %4196 = vmatpush2.msra.mxu0 %v2482_v34  ;;  %v3707_v39 = vadd.f32 %v3706_v45, %v3636_v35  ;;  %v1535_v33 = vld [vmem:[%s12488_s5 + $0x3e8] sm:$0xff]  ;;  %v2769_v35 = vld [vmem:[%s12488_s5 + $0x2a78] sm:$0xff]  ;;  %v2756_v45 = vld [vmem:[%s12488_s5 + $0x2a10] sm:$0xff] }
 0x3c6   :  { %4126 = vmatprep.subr.mxu1 %v2054_v36  ;;  %4197 = vmatprep.subr.mxu0 %v2470_v37  ;;  %v3708_v52 = vpop.f32.mrf.mxu1  ;;  %v1523_v36 = vld [vmem:[%s12488_s5 + $0x388] sm:$0xff] }
 0x3c7   :  { %4127 = vmatpush2.msra.mxu1 %v2053_v43  ;;  %4198 = vmatpush2.msra.mxu0 %v2469_v44  ;;  %v5227_v54 = vmul.f32 -1.442695, %v3707_v39  ;;  %v3709_v55 = vadd.f32 %v3708_v52, %v3638_v46  ;;  %v1522_v43 = vld [vmem:[%s12488_s5 + $0x380] sm:$0xff]  ;;  %v2743_v39 = vld [vmem:[%s12488_s5 + $0x29a8] sm:$0xff]  ;;  %v1496_v52 = vld [vmem:[%s12488_s5 + $0x2b0] sm:$0xff] }
 0x3c8   :  { %4128 = vmatprep.subr.mxu1 %v2041_v47  ;;  %4199 = vmatprep.subr.mxu0 %v2457_v48  ;;  %v1510_v46 = vld [vmem:[%s12488_s5 + $0x320] sm:$0xff]  ;;  %v2755_v47 = vld [vmem:[%s12488_s5 + $0x2a08] sm:$0xff]  ;;  %v1509_v48 = vld [vmem:[%s12488_s5 + $0x318] sm:$0xff] }
 0x3c9   :  { %4129 = vmatpush2.msra.mxu1 %v2040_v30  ;;  %4200 = vmatpush2.msra.mxu0 %v2456_v51  ;;  %5386 = vpow2.f32 %v5227_v54  ;;  %v5228_v31 = vmul.f32 -1.442695, %v3709_v55  ;;  %v1497_v30 = vld [vmem:[%s12488_s5 + $0x2b8] sm:$0xff]  ;;  %v2742_v51 = vld [vmem:[%s12488_s5 + $0x29a0] sm:$0xff]  ;;  %v1484_v55 = vld [vmem:[%s12488_s5 + $0x250] sm:$0xff] }
 0x3ca   :  { %4131 = vmatmul.mubr.f32.vlgmr.msra.gmra.mxu1 %v7730_v13  ;;  %4202 = vmatmul.mubr.f32.vlgmr.msra.gmra.mxu0 %v8122_v50  ;;  %v2730_v54 = vld [vmem:[%s12488_s5 + $0x2940] sm:$0xff] }
 0x3cb   :  { %4208 = vmatprep.subr.mxu1 %v2860_v57  ;;  %4279 = vmatprep.subr.mxu0 %v1614_v58  ;;  %5388 = vpow2.f32 %v5228_v31  ;;  %v2729_v57 = vld [vmem:[%s12488_s5 + $0x2938] sm:$0xff]  ;;  %v1483_v58 = vld [vmem:[%s12488_s5 + $0x248] sm:$0xff] }
 0x3cc   :  { %4209 = vmatpush1.msra.mxu1 %v2859_v59  ;;  %4272 = vmatprep.mubr.f32.mxu1 %v8330_v17  ;;  %v2717_v59 = vld [vmem:[%s12488_s5 + $0x28d8] sm:$0xff]  ;;  %v1471_v31 = vld [vmem:[%s12488_s5 + $0x1e8] sm:$0xff] }
 0x3cd   :  { %4280 = vmatpush1.msra.mxu0 %v1613_v60  ;;  %4343 = vmatprep.mubr.f32.mxu0 %v7333_v49  ;;  %v2716_v60 = vld [vmem:[%s12488_s5 + $0x28d0] sm:$0xff] }
 0x3ce   :  { %4210 = vmatprep.subr.mxu1 %v2847_v24  ;;  %4281 = vmatprep.subr.mxu0 %v1601_v61  ;;  %v1470_v24 = vld [vmem:[%s12488_s5 + $0x1e0] sm:$0xff]  ;;  %v2704_v61 = vld [vmem:[%s12488_s5 + $0x2870] sm:$0xff] }
 0x3cf   :  { %4211 = vmatpush1.msra.mxu1 %v2846_v62  ;;  %4282 = vmatpush1.msra.mxu0 %v1600_v63  ;;  %v1458_v62 = vld [vmem:[%s12488_s5 + $0x180] sm:$0xff]  ;;  %v2703_v63 = vld [vmem:[%s12488_s5 + $0x2868] sm:$0xff] }
 0x3d0   :  { %4212 = vmatprep.subr.mxu1 %v2834_v0  ;;  %4283 = vmatprep.subr.mxu0 %v1588_v2  ;;  %v1457_v0 = vld [vmem:[%s12488_s5 + $0x178] sm:$0xff]  ;;  %v2691_v2 = vld [vmem:[%s12488_s5 + $0x2808] sm:$0xff] }
 0x3d1   :  { %4213 = vmatpush1.msra.mxu1 %v2833_v3  ;;  %4284 = vmatpush1.msra.mxu0 %v1587_v16  ;;  %v1445_v3 = vld [vmem:[%s12488_s5 + $0x118] sm:$0xff]  ;;  %v2690_v16 = vld [vmem:[%s12488_s5 + $0x2800] sm:$0xff] }
 0x3d2   :  { %4214 = vmatprep.subr.mxu1 %v2821_v5  ;;  %4285 = vmatprep.subr.mxu0 %v1575_v6  ;;  %v1444_v5 = vld [vmem:[%s12488_s5 + $0x110] sm:$0xff]  ;;  %v2678_v6 = vld [vmem:[%s12488_s5 + $0x27a0] sm:$0xff] }
 0x3d3   :  { %4215 = vmatpush1.msra.mxu1 %v2820_v7  ;;  %4286 = vmatpush1.msra.mxu0 %v1574_v8  ;;  %v1432_v7 = vld [vmem:[%s12488_s5 + $0xb0] sm:$0xff] }
 0x3d4   :  { %4216 = vmatprep.subr.mxu1 %v2808_v10  ;;  %4287 = vmatprep.subr.mxu0 %v1562_v12  ;;  %v2677_v10 = vld [vmem:[%s12488_s5 + $0x2798] sm:$0xff]  ;;  %v1431_v12 = vld [vmem:[%s12488_s5 + $0xa8] sm:$0xff] }
 0x3d5   :  { %4217 = vmatpush1.msra.mxu1 %v2807_v14  ;;  %4288 = vmatpush1.msra.mxu0 %v1561_v15  ;;  %v2665_v14 = vld [vmem:[%s12488_s5 + $0x2738] sm:$0xff]  ;;  %v1419_v15 = vld [vmem:[%s12488_s5 + $0x48] sm:$0xff] }
 0x3d6   :  { %v5387_v29 = vpop.eup %5386  ;;  %4218 = vmatprep.subr.mxu1 %v2795_v19  ;;  %4289 = vmatprep.subr.mxu0 %v1549_v20  ;;  %v2664_v20 = vld [vmem:[%s12488_s5 + $0x2730] sm:$0xff] }
 0x3d7   :  { %v5168_v34 = vadd.f32 1.0, %v5387_v29  ;;  %4219 = vmatpush1.msra.mxu1 %v2794_v27  ;;  %4290 = vmatpush1.msra.mxu0 %v1548_v40  ;;  %v1418_v27 = vld [vmem:[%s12488_s5 + $0x40] sm:$0xff]  ;;  %v3068_v40 = vld [vmem:[%s12488_s5 + $0x33d0] sm:$0xff]  ;;  %v1821_v29 = vld [vmem:[%s12488_s5 + $0xcd8] sm:$0xff] }
 0x3d8   :  { %v5389_v37 = vpop.eup %5388  ;;  %4220 = vmatprep.subr.mxu1 %v2782_v28  ;;  %4291 = vmatprep.subr.mxu0 %v1536_v41  ;;  %v1822_v28 = vld [vmem:[%s12488_s5 + $0xce0] sm:$0xff]  ;;  %v3067_v41 = vld [vmem:[%s12488_s5 + $0x33c8] sm:$0xff] }
 0x3d9   :  { %5390 = vrcp.f32 %v5168_v34  ;;  %v5169_v44 = vadd.f32 1.0, %v5389_v37  ;;  %4221 = vmatpush1.msra.mxu1 %v2781_v32  ;;  %4292 = vmatpush1.msra.mxu0 %v1535_v33  ;;  %v3055_v32 = vld [vmem:[%s12488_s5 + $0x3368] sm:$0xff]  ;;  %v1809_v33 = vld [vmem:[%s12488_s5 + $0xc78] sm:$0xff]  ;;  %v3054_v34 = vld [vmem:[%s12488_s5 + $0x3360] sm:$0xff] }
 0x3da   :  { %4222 = vmatprep.subr.mxu1 %v2769_v35  ;;  %4293 = vmatprep.subr.mxu0 %v1523_v36  ;;  %v1808_v35 = vld [vmem:[%s12488_s5 + $0xc70] sm:$0xff]  ;;  %v3042_v36 = vld [vmem:[%s12488_s5 + $0x3300] sm:$0xff] }
 0x3db   :  { %5392 = vrcp.f32 %v5169_v44  ;;  %4223 = vmatpush1.msra.mxu1 %v2768_v38  ;;  %4294 = vmatpush1.msra.mxu0 %v1522_v43  ;;  %v1796_v37 = vld [vmem:[%s12488_s5 + $0xc10] sm:$0xff]  ;;  %v3041_v38 = vld [vmem:[%s12488_s5 + $0x32f8] sm:$0xff]  ;;  %v1795_v43 = vld [vmem:[%s12488_s5 + $0xc08] sm:$0xff] }
 0x3dc   :  { %4224 = vmatprep.subr.mxu1 %v2756_v45  ;;  %4295 = vmatprep.subr.mxu0 %v1510_v46  ;;  %v3029_v44 = vld [vmem:[%s12488_s5 + $0x3298] sm:$0xff]  ;;  %v1783_v45 = vld [vmem:[%s12488_s5 + $0xba8] sm:$0xff]  ;;  %v3028_v46 = vld [vmem:[%s12488_s5 + $0x3290] sm:$0xff] }
 0x3dd   :  { %4225 = vmatpush1.msra.mxu1 %v2755_v47  ;;  %4296 = vmatpush1.msra.mxu0 %v1509_v48  ;;  %v1782_v47 = vld [vmem:[%s12488_s5 + $0xba0] sm:$0xff]  ;;  %v3016_v48 = vld [vmem:[%s12488_s5 + $0x3230] sm:$0xff] }
 0x3de   :  { %4226 = vmatprep.subr.mxu1 %v2743_v39  ;;  %4297 = vmatprep.subr.mxu0 %v1497_v30  ;;  %v1770_v39 = vld [vmem:[%s12488_s5 + $0xb40] sm:$0xff]  ;;  %v3015_v30 = vld [vmem:[%s12488_s5 + $0x3228] sm:$0xff] }
 0x3df   :  { %4227 = vmatpush1.msra.mxu1 %v2742_v51  ;;  %4298 = vmatpush1.msra.mxu0 %v1496_v52  ;;  %v1769_v51 = vld [vmem:[%s12488_s5 + $0xb38] sm:$0xff]  ;;  %v3003_v52 = vld [vmem:[%s12488_s5 + $0x31c8] sm:$0xff] }
 0x3e0   :  { %4228 = vmatprep.subr.mxu1 %v2730_v54  ;;  %4299 = vmatprep.subr.mxu0 %v1484_v55  ;;  %v1757_v54 = vld [vmem:[%s12488_s5 + $0xad8] sm:$0xff]  ;;  %v3002_v55 = vld [vmem:[%s12488_s5 + $0x31c0] sm:$0xff] }
 0x3e1   :  { %4229 = vmatpush1.msra.mxu1 %v2729_v57  ;;  %4300 = vmatpush1.msra.mxu0 %v1483_v58  ;;  %v1756_v57 = vld [vmem:[%s12488_s5 + $0xad0] sm:$0xff]  ;;  %v2990_v58 = vld [vmem:[%s12488_s5 + $0x3160] sm:$0xff] }
 0x3e2   :  { %4230 = vmatprep.subr.mxu1 %v2717_v59  ;;  %4301 = vmatprep.subr.mxu0 %v1471_v31  ;;  %v1744_v59 = vld [vmem:[%s12488_s5 + $0xa70] sm:$0xff]  ;;  %v2989_v31 = vld [vmem:[%s12488_s5 + $0x3158] sm:$0xff] }
 0x3e3   :  { %4231 = vmatpush1.msra.mxu1 %v2716_v60  ;;  %4302 = vmatpush1.msra.mxu0 %v1470_v24  ;;  %v1743_v60 = vld [vmem:[%s12488_s5 + $0xa68] sm:$0xff]  ;;  %v2977_v24 = vld [vmem:[%s12488_s5 + $0x30f8] sm:$0xff] }
 0x3e4   :  { %4232 = vmatprep.subr.mxu1 %v2704_v61  ;;  %4303 = vmatprep.subr.mxu0 %v1458_v62  ;;  %v1731_v61 = vld [vmem:[%s12488_s5 + $0xa08] sm:$0xff]  ;;  %v2976_v62 = vld [vmem:[%s12488_s5 + $0x30f0] sm:$0xff] }
 0x3e5   :  { %4233 = vmatpush1.msra.mxu1 %v2703_v63  ;;  %4304 = vmatpush1.msra.mxu0 %v1457_v0  ;;  %v1730_v63 = vld [vmem:[%s12488_s5 + $0xa00] sm:$0xff]  ;;  %v2964_v0 = vld [vmem:[%s12488_s5 + $0x3090] sm:$0xff] }
 0x3e6   :  { %v5391_v8 = vpop.eup %5390  ;;  %4234 = vmatprep.subr.mxu1 %v2691_v2  ;;  %4305 = vmatprep.subr.mxu0 %v1445_v3  ;;  %v1718_v2 = vld [vmem:[%s12488_s5 + $0x9a0] sm:$0xff]  ;;  %v2963_v3 = vld [vmem:[%s12488_s5 + $0x3088] sm:$0xff] }
 0x3e7   :  { %5207 = vst [vmem:[%s12490_s7 + $0x10] sm:$0xff] %v5391_v8  ;;  %4235 = vmatpush1.msra.mxu1 %v2690_v16  ;;  %4306 = vmatpush1.msra.mxu0 %v1444_v5  ;;  %v1717_v16 = vld [vmem:[%s12488_s5 + $0x998] sm:$0xff]  ;;  %v2951_v5 = vld [vmem:[%s12488_s5 + $0x3028] sm:$0xff]  ;;  %v1704_v8 = vld [vmem:[%s12488_s5 + $0x930] sm:$0xff] }
 0x3e8   :  { %v5393_v19 = vpop.eup %5392  ;;  %4236 = vmatprep.subr.mxu1 %v2678_v6  ;;  %4307 = vmatprep.subr.mxu0 %v1432_v7  ;;  %v1705_v6 = vld [vmem:[%s12488_s5 + $0x938] sm:$0xff]  ;;  %v2950_v7 = vld [vmem:[%s12488_s5 + $0x3020] sm:$0xff] }
 0x3e9   :  { %5208 = vst [vmem:[%s12490_s7 + $0x18] sm:$0xff] %v5393_v19  ;;  %4237 = vmatpush1.msra.mxu1 %v2677_v10  ;;  %4308 = vmatpush1.msra.mxu0 %v1431_v12  ;;  %v2938_v10 = vld [vmem:[%s12488_s5 + $0x2fc0] sm:$0xff]  ;;  %v1692_v12 = vld [vmem:[%s12488_s5 + $0x8d0] sm:$0xff]  ;;  %v2925_v19 = vld [vmem:[%s12488_s5 + $0x2f58] sm:$0xff] }
 0x3ea   :  { %4238 = vmatprep.subr.mxu1 %v2665_v14  ;;  %4309 = vmatprep.subr.mxu0 %v1419_v15  ;;  %v2937_v14 = vld [vmem:[%s12488_s5 + $0x2fb8] sm:$0xff]  ;;  %v1691_v15 = vld [vmem:[%s12488_s5 + $0x8c8] sm:$0xff] }
 0x3eb   :  { %4239 = vmatpush1.msra.mxu1 %v2664_v20  ;;  %4310 = vmatpush1.msra.mxu0 %v1418_v27  ;;  %v1679_v20 = vld [vmem:[%s12488_s5 + $0x868] sm:$0xff]  ;;  %v2924_v27 = vld [vmem:[%s12488_s5 + $0x2f50] sm:$0xff] }
 0x3ec   :  { %4240 = vmatprep.subr.mxu1 %v3068_v40  ;;  %4311 = vmatprep.subr.mxu0 %v1822_v28  ;;  %v1678_v40 = vld [vmem:[%s12488_s5 + $0x860] sm:$0xff]  ;;  %v2912_v28 = vld [vmem:[%s12488_s5 + $0x2ef0] sm:$0xff] }
 0x3ed   :  { %4241 = vmatpush2.msra.mxu1 %v3067_v41  ;;  %4312 = vmatpush2.msra.mxu0 %v1821_v29  ;;  %v1666_v41 = vld [vmem:[%s12488_s5 + $0x800] sm:$0xff]  ;;  %v2911_v29 = vld [vmem:[%s12488_s5 + $0x2ee8] sm:$0xff] }
 0x3ee   :  { %4242 = vmatprep.subr.mxu1 %v3055_v32  ;;  %4313 = vmatprep.subr.mxu0 %v1809_v33  ;;  %v1665_v32 = vld [vmem:[%s12488_s5 + $0x7f8] sm:$0xff]  ;;  %v2899_v33 = vld [vmem:[%s12488_s5 + $0x2e88] sm:$0xff] }
 0x3ef   :  { %4243 = vmatpush2.msra.mxu1 %v3054_v34  ;;  %4314 = vmatpush2.msra.mxu0 %v1808_v35  ;;  %v1653_v34 = vld [vmem:[%s12488_s5 + $0x798] sm:$0xff]  ;;  %v2898_v35 = vld [vmem:[%s12488_s5 + $0x2e80] sm:$0xff] }
 0x3f0   :  { %4244 = vmatprep.subr.mxu1 %v3042_v36  ;;  %4315 = vmatprep.subr.mxu0 %v1796_v37  ;;  %v1652_v36 = vld [vmem:[%s12488_s5 + $0x790] sm:$0xff]  ;;  %v2886_v37 = vld [vmem:[%s12488_s5 + $0x2e20] sm:$0xff] }
 0x3f1   :  { %4245 = vmatpush2.msra.mxu1 %v3041_v38  ;;  %4316 = vmatpush2.msra.mxu0 %v1795_v43  ;;  %v1640_v38 = vld [vmem:[%s12488_s5 + $0x730] sm:$0xff]  ;;  %v2885_v43 = vld [vmem:[%s12488_s5 + $0x2e18] sm:$0xff] }
 0x3f2   :  { %4246 = vmatprep.subr.mxu1 %v3029_v44  ;;  %4317 = vmatprep.subr.mxu0 %v1783_v45  ;;  %v1639_v44 = vld [vmem:[%s12488_s5 + $0x728] sm:$0xff]  ;;  %v2873_v45 = vld [vmem:[%s12488_s5 + $0x2db8] sm:$0xff] }
 0x3f3   :  { %4247 = vmatpush2.msra.mxu1 %v3028_v46  ;;  %4318 = vmatpush2.msra.mxu0 %v1782_v47  ;;  %v1627_v46 = vld [vmem:[%s12488_s5 + $0x6c8] sm:$0xff]  ;;  %v2872_v47 = vld [vmem:[%s12488_s5 + $0x2db0] sm:$0xff] }
 0x3f4   :  { %4248 = vmatprep.subr.mxu1 %v3016_v48  ;;  %4319 = vmatprep.subr.mxu0 %v1770_v39  ;;  %v1626_v48 = vld [vmem:[%s12488_s5 + $0x6c0] sm:$0xff] }
 0x3f5   :  { %4249 = vmatpush2.msra.mxu1 %v3015_v30  ;;  %4320 = vmatpush2.msra.mxu0 %v1769_v51  ;;  %v2030_v39 = vld [vmem:[%s12488_s5 + $0x1360] sm:$0xff]  ;;  %v2029_v51 = vld [vmem:[%s12488_s5 + $0x1358] sm:$0xff] }
 0x3f6   :  { %4250 = vmatprep.subr.mxu1 %v3003_v52  ;;  %4321 = vmatprep.subr.mxu0 %v1757_v54  ;;  %v2446_v30 = vld [vmem:[%s12488_s5 + $0x2060] sm:$0xff]  ;;  %v2445_v52 = vld [vmem:[%s12488_s5 + $0x2058] sm:$0xff] }
 0x3f7   :  { %4251 = vmatpush2.msra.mxu1 %v3002_v55  ;;  %4322 = vmatpush2.msra.mxu0 %v1756_v57  ;;  %v2017_v54 = vld [vmem:[%s12488_s5 + $0x12f8] sm:$0xff]  ;;  %v2016_v57 = vld [vmem:[%s12488_s5 + $0x12f0] sm:$0xff] }
 0x3f8   :  { %4252 = vmatprep.subr.mxu1 %v2990_v58  ;;  %4323 = vmatprep.subr.mxu0 %v1744_v59  ;;  %v2433_v55 = vld [vmem:[%s12488_s5 + $0x1ff8] sm:$0xff]  ;;  %v2432_v58 = vld [vmem:[%s12488_s5 + $0x1ff0] sm:$0xff] }
 0x3f9   :  { %4253 = vmatpush2.msra.mxu1 %v2989_v31  ;;  %4324 = vmatpush2.msra.mxu0 %v1743_v60  ;;  %v2004_v59 = vld [vmem:[%s12488_s5 + $0x1290] sm:$0xff]  ;;  %v2003_v60 = vld [vmem:[%s12488_s5 + $0x1288] sm:$0xff] }
 0x3fa   :  { %4254 = vmatprep.subr.mxu1 %v2977_v24  ;;  %4325 = vmatprep.subr.mxu0 %v1731_v61  ;;  %v2420_v31 = vld [vmem:[%s12488_s5 + $0x1f90] sm:$0xff]  ;;  %v2419_v24 = vld [vmem:[%s12488_s5 + $0x1f88] sm:$0xff] }
 0x3fb   :  { %4255 = vmatpush2.msra.mxu1 %v2976_v62  ;;  %4326 = vmatpush2.msra.mxu0 %v1730_v63  ;;  %v1991_v61 = vld [vmem:[%s12488_s5 + $0x1228] sm:$0xff]  ;;  %v1990_v63 = vld [vmem:[%s12488_s5 + $0x1220] sm:$0xff] }
 0x3fc   :  { %4256 = vmatprep.subr.mxu1 %v2964_v0  ;;  %4327 = vmatprep.subr.mxu0 %v1718_v2  ;;  %v2407_v62 = vld [vmem:[%s12488_s5 + $0x1f28] sm:$0xff]  ;;  %v2406_v0 = vld [vmem:[%s12488_s5 + $0x1f20] sm:$0xff] }
 0x3fd   :  { %4257 = vmatpush2.msra.mxu1 %v2963_v3  ;;  %4328 = vmatpush2.msra.mxu0 %v1717_v16  ;;  %v1978_v2 = vld [vmem:[%s12488_s5 + $0x11c0] sm:$0xff]  ;;  %v1977_v16 = vld [vmem:[%s12488_s5 + $0x11b8] sm:$0xff] }
 0x3fe   :  { %4258 = vmatprep.subr.mxu1 %v2951_v5  ;;  %4329 = vmatprep.subr.mxu0 %v1705_v6  ;;  %v2394_v3 = vld [vmem:[%s12488_s5 + $0x1ec0] sm:$0xff]  ;;  %v2393_v5 = vld [vmem:[%s12488_s5 + $0x1eb8] sm:$0xff] }
 0x3ff   :  { %4259 = vmatpush2.msra.mxu1 %v2950_v7  ;;  %4330 = vmatpush2.msra.mxu0 %v1704_v8  ;;  %v1965_v6 = vld [vmem:[%s12488_s5 + $0x1158] sm:$0xff]  ;;  %v1964_v8 = vld [vmem:[%s12488_s5 + $0x1150] sm:$0xff] }
 0x400   :  { %4260 = vmatprep.subr.mxu1 %v2938_v10  ;;  %4331 = vmatprep.subr.mxu0 %v1692_v12  ;;  %v2381_v7 = vld [vmem:[%s12488_s5 + $0x1e58] sm:$0xff]  ;;  %v2380_v10 = vld [vmem:[%s12488_s5 + $0x1e50] sm:$0xff] }
 0x401   :  { %4261 = vmatpush2.msra.mxu1 %v2937_v14  ;;  %4332 = vmatpush2.msra.mxu0 %v1691_v15  ;;  %v1952_v12 = vld [vmem:[%s12488_s5 + $0x10f0] sm:$0xff]  ;;  %v1951_v15 = vld [vmem:[%s12488_s5 + $0x10e8] sm:$0xff] }
 0x402   :  { %4262 = vmatprep.subr.mxu1 %v2925_v19  ;;  %4333 = vmatprep.subr.mxu0 %v1679_v20  ;;  %v2368_v14 = vld [vmem:[%s12488_s5 + $0x1df0] sm:$0xff]  ;;  %v2367_v19 = vld [vmem:[%s12488_s5 + $0x1de8] sm:$0xff] }
 0x403   :  { %4263 = vmatpush2.msra.mxu1 %v2924_v27  ;;  %4334 = vmatpush2.msra.mxu0 %v1678_v40  ;;  %v1939_v20 = vld [vmem:[%s12488_s5 + $0x1088] sm:$0xff]  ;;  %v1938_v40 = vld [vmem:[%s12488_s5 + $0x1080] sm:$0xff] }
 0x404   :  { %4264 = vmatprep.subr.mxu1 %v2912_v28  ;;  %4335 = vmatprep.subr.mxu0 %v1666_v41  ;;  %v2355_v27 = vld [vmem:[%s12488_s5 + $0x1d88] sm:$0xff]  ;;  %v2354_v28 = vld [vmem:[%s12488_s5 + $0x1d80] sm:$0xff] }
 0x405   :  { %4265 = vmatpush2.msra.mxu1 %v2911_v29  ;;  %4336 = vmatpush2.msra.mxu0 %v1665_v32  ;;  %v1926_v41 = vld [vmem:[%s12488_s5 + $0x1020] sm:$0xff]  ;;  %v1925_v32 = vld [vmem:[%s12488_s5 + $0x1018] sm:$0xff] }
 0x406   :  { %4266 = vmatprep.subr.mxu1 %v2899_v33  ;;  %4337 = vmatprep.subr.mxu0 %v1653_v34  ;;  %v2342_v29 = vld [vmem:[%s12488_s5 + $0x1d20] sm:$0xff]  ;;  %v2341_v33 = vld [vmem:[%s12488_s5 + $0x1d18] sm:$0xff] }
 0x407   :  { %4267 = vmatpush2.msra.mxu1 %v2898_v35  ;;  %4338 = vmatpush2.msra.mxu0 %v1652_v36  ;;  %v1913_v34 = vld [vmem:[%s12488_s5 + $0xfb8] sm:$0xff]  ;;  %v1912_v36 = vld [vmem:[%s12488_s5 + $0xfb0] sm:$0xff] }
 0x408   :  { %4268 = vmatprep.subr.mxu1 %v2886_v37  ;;  %4339 = vmatprep.subr.mxu0 %v1640_v38  ;;  %v2329_v35 = vld [vmem:[%s12488_s5 + $0x1cb8] sm:$0xff]  ;;  %v2328_v37 = vld [vmem:[%s12488_s5 + $0x1cb0] sm:$0xff] }
 0x409   :  { %4269 = vmatpush2.msra.mxu1 %v2885_v43  ;;  %4340 = vmatpush2.msra.mxu0 %v1639_v44  ;;  %v1900_v38 = vld [vmem:[%s12488_s5 + $0xf50] sm:$0xff]  ;;  %v1899_v44 = vld [vmem:[%s12488_s5 + $0xf48] sm:$0xff] }
 0x40a   :  { %4270 = vmatprep.subr.mxu1 %v2873_v45  ;;  %4341 = vmatprep.subr.mxu0 %v1627_v46  ;;  %v2316_v43 = vld [vmem:[%s12488_s5 + $0x1c50] sm:$0xff]  ;;  %v2315_v45 = vld [vmem:[%s12488_s5 + $0x1c48] sm:$0xff] }
 0x40b   :  { %4271 = vmatpush2.msra.mxu1 %v2872_v47  ;;  %4342 = vmatpush2.msra.mxu0 %v1626_v48  ;;  %v1887_v46 = vld [vmem:[%s12488_s5 + $0xee8] sm:$0xff]  ;;  %v1886_v48 = vld [vmem:[%s12488_s5 + $0xee0] sm:$0xff] }
 0x40c   :  { %4273 = vmatmul.mubr.f32.vlgmr.msra.gmra.mxu1 %v8332_v18  ;;  %4344 = vmatmul.mubr.f32.vlgmr.msra.gmra.mxu0 %v7707_v1  ;;  %v2303_v47 = vld [vmem:[%s12488_s5 + $0x1be8] sm:$0xff] }
 0x40d   :  { %4350 = vmatprep.subr.mxu1 %v2030_v39  ;;  %4421 = vmatprep.subr.mxu0 %v2446_v30  ;;  %v2302_v39 = vld [vmem:[%s12488_s5 + $0x1be0] sm:$0xff] }
 0x40e   :  { %4351 = vmatpush1.msra.mxu1 %v2029_v51  ;;  %4414 = vmatprep.mubr.f32.mxu1 %v7725_v11  ;;  %v1874_v30 = vld [vmem:[%s12488_s5 + $0xe80] sm:$0xff] }
 0x40f   :  { %4422 = vmatpush1.msra.mxu0 %v2445_v52  ;;  %4485 = vmatprep.mubr.f32.mxu0 %v8120_v42  ;;  %v2290_v51 = vld [vmem:[%s12488_s5 + $0x1b80] sm:$0xff]  ;;  %v1873_v52 = vld [vmem:[%s12488_s5 + $0xe78] sm:$0xff] }
 0x410   :  { %4352 = vmatprep.subr.mxu1 %v2017_v54  ;;  %4423 = vmatprep.subr.mxu0 %v2433_v55  ;;  %v2289_v54 = vld [vmem:[%s12488_s5 + $0x1b78] sm:$0xff] }
 0x411   :  { %4353 = vmatpush1.msra.mxu1 %v2016_v57  ;;  %4424 = vmatpush1.msra.mxu0 %v2432_v58  ;;  %v1861_v55 = vld [vmem:[%s12488_s5 + $0xe18] sm:$0xff]  ;;  %v1860_v58 = vld [vmem:[%s12488_s5 + $0xe10] sm:$0xff] }
 0x412   :  { %4354 = vmatprep.subr.mxu1 %v2004_v59  ;;  %4425 = vmatprep.subr.mxu0 %v2420_v31  ;;  %v2277_v57 = vld [vmem:[%s12488_s5 + $0x1b18] sm:$0xff]  ;;  %v2276_v59 = vld [vmem:[%s12488_s5 + $0x1b10] sm:$0xff] }
 0x413   :  { %4355 = vmatpush1.msra.mxu1 %v2003_v60  ;;  %4426 = vmatpush1.msra.mxu0 %v2419_v24  ;;  %v1848_v31 = vld [vmem:[%s12488_s5 + $0xdb0] sm:$0xff]  ;;  %v1847_v24 = vld [vmem:[%s12488_s5 + $0xda8] sm:$0xff] }
 0x414   :  { %4356 = vmatprep.subr.mxu1 %v1991_v61  ;;  %4427 = vmatprep.subr.mxu0 %v2407_v62  ;;  %v2264_v60 = vld [vmem:[%s12488_s5 + $0x1ab0] sm:$0xff]  ;;  %v2263_v61 = vld [vmem:[%s12488_s5 + $0x1aa8] sm:$0xff] }
 0x415   :  { %4357 = vmatpush1.msra.mxu1 %v1990_v63  ;;  %4428 = vmatpush1.msra.mxu0 %v2406_v0  ;;  %v1835_v62 = vld [vmem:[%s12488_s5 + $0xd48] sm:$0xff]  ;;  %v1834_v0 = vld [vmem:[%s12488_s5 + $0xd40] sm:$0xff] }
 0x416   :  { %4358 = vmatprep.subr.mxu1 %v1978_v2  ;;  %4429 = vmatprep.subr.mxu0 %v2394_v3  ;;  %v2251_v63 = vld [vmem:[%s12488_s5 + $0x1a48] sm:$0xff]  ;;  %v2250_v2 = vld [vmem:[%s12488_s5 + $0x1a40] sm:$0xff] }
 0x417   :  { %4359 = vmatpush1.msra.mxu1 %v1977_v16  ;;  %4430 = vmatpush1.msra.mxu0 %v2393_v5  ;;  %v2238_v3 = vld [vmem:[%s12488_s5 + $0x19e0] sm:$0xff]  ;;  %v2237_v5 = vld [vmem:[%s12488_s5 + $0x19d8] sm:$0xff] }
 0x418   :  { %4360 = vmatprep.subr.mxu1 %v1965_v6  ;;  %4431 = vmatprep.subr.mxu0 %v2381_v7  ;;  %v2654_v16 = vld [vmem:[%s12488_s5 + $0x26e0] sm:$0xff]  ;;  %v2653_v6 = vld [vmem:[%s12488_s5 + $0x26d8] sm:$0xff] }
 0x419   :  { %4361 = vmatpush1.msra.mxu1 %v1964_v8  ;;  %4432 = vmatpush1.msra.mxu0 %v2380_v10  ;;  %v2225_v7 = vld [vmem:[%s12488_s5 + $0x1978] sm:$0xff]  ;;  %v2224_v10 = vld [vmem:[%s12488_s5 + $0x1970] sm:$0xff] }
 0x41a   :  { %4362 = vmatprep.subr.mxu1 %v1952_v12  ;;  %4433 = vmatprep.subr.mxu0 %v2368_v14  ;;  %v2641_v8 = vld [vmem:[%s12488_s5 + $0x2678] sm:$0xff]  ;;  %v2640_v12 = vld [vmem:[%s12488_s5 + $0x2670] sm:$0xff] }
 0x41b   :  { %4363 = vmatpush1.msra.mxu1 %v1951_v15  ;;  %4434 = vmatpush1.msra.mxu0 %v2367_v19  ;;  %v2212_v14 = vld [vmem:[%s12488_s5 + $0x1910] sm:$0xff]  ;;  %v2211_v19 = vld [vmem:[%s12488_s5 + $0x1908] sm:$0xff] }
 0x41c   :  { %4364 = vmatprep.subr.mxu1 %v1939_v20  ;;  %4435 = vmatprep.subr.mxu0 %v2355_v27  ;;  %v2628_v15 = vld [vmem:[%s12488_s5 + $0x2610] sm:$0xff]  ;;  %v2627_v20 = vld [vmem:[%s12488_s5 + $0x2608] sm:$0xff] }
 0x41d   :  { %4365 = vmatpush1.msra.mxu1 %v1938_v40  ;;  %4436 = vmatpush1.msra.mxu0 %v2354_v28  ;;  %v2199_v27 = vld [vmem:[%s12488_s5 + $0x18a8] sm:$0xff]  ;;  %v2198_v28 = vld [vmem:[%s12488_s5 + $0x18a0] sm:$0xff] }
 0x41e   :  { %4366 = vmatprep.subr.mxu1 %v1926_v41  ;;  %4437 = vmatprep.subr.mxu0 %v2342_v29  ;;  %v2615_v40 = vld [vmem:[%s12488_s5 + $0x25a8] sm:$0xff]  ;;  %v2614_v41 = vld [vmem:[%s12488_s5 + $0x25a0] sm:$0xff] }
 0x41f   :  { %4367 = vmatpush1.msra.mxu1 %v1925_v32  ;;  %4438 = vmatpush1.msra.mxu0 %v2341_v33  ;;  %v2186_v29 = vld [vmem:[%s12488_s5 + $0x1840] sm:$0xff]  ;;  %v2185_v33 = vld [vmem:[%s12488_s5 + $0x1838] sm:$0xff] }
 0x420   :  { %4368 = vmatprep.subr.mxu1 %v1913_v34  ;;  %4439 = vmatprep.subr.mxu0 %v2329_v35  ;;  %v2602_v32 = vld [vmem:[%s12488_s5 + $0x2540] sm:$0xff]  ;;  %v2601_v34 = vld [vmem:[%s12488_s5 + $0x2538] sm:$0xff] }
 0x421   :  { %4369 = vmatpush1.msra.mxu1 %v1912_v36  ;;  %4440 = vmatpush1.msra.mxu0 %v2328_v37  ;;  %v2173_v35 = vld [vmem:[%s12488_s5 + $0x17d8] sm:$0xff]  ;;  %v2172_v37 = vld [vmem:[%s12488_s5 + $0x17d0] sm:$0xff] }
 0x422   :  { %4370 = vmatprep.subr.mxu1 %v1900_v38  ;;  %4441 = vmatprep.subr.mxu0 %v2316_v43  ;;  %v2589_v36 = vld [vmem:[%s12488_s5 + $0x24d8] sm:$0xff]  ;;  %v2588_v38 = vld [vmem:[%s12488_s5 + $0x24d0] sm:$0xff] }
 0x423   :  { %4371 = vmatpush1.msra.mxu1 %v1899_v44  ;;  %4442 = vmatpush1.msra.mxu0 %v2315_v45  ;;  %v2160_v43 = vld [vmem:[%s12488_s5 + $0x1770] sm:$0xff]  ;;  %v2159_v45 = vld [vmem:[%s12488_s5 + $0x1768] sm:$0xff] }
 0x424   :  { %4372 = vmatprep.subr.mxu1 %v1887_v46  ;;  %4443 = vmatprep.subr.mxu0 %v2303_v47  ;;  %v2576_v44 = vld [vmem:[%s12488_s5 + $0x2470] sm:$0xff]  ;;  %v2575_v46 = vld [vmem:[%s12488_s5 + $0x2468] sm:$0xff] }
 0x425   :  { %4373 = vmatpush1.msra.mxu1 %v1886_v48  ;;  %4444 = vmatpush1.msra.mxu0 %v2302_v39  ;;  %v2147_v47 = vld [vmem:[%s12488_s5 + $0x1708] sm:$0xff]  ;;  %v2146_v39 = vld [vmem:[%s12488_s5 + $0x1700] sm:$0xff] }
 0x426   :  { %4374 = vmatprep.subr.mxu1 %v1874_v30  ;;  %4445 = vmatprep.subr.mxu0 %v2290_v51  ;;  %v2563_v48 = vld [vmem:[%s12488_s5 + $0x2408] sm:$0xff]  ;;  %v2562_v30 = vld [vmem:[%s12488_s5 + $0x2400] sm:$0xff] }
 0x427   :  { %4375 = vmatpush1.msra.mxu1 %v1873_v52  ;;  %4446 = vmatpush1.msra.mxu0 %v2289_v54  ;;  %v2134_v51 = vld [vmem:[%s12488_s5 + $0x16a0] sm:$0xff]  ;;  %v3777_v54 = vpop.f32.mrf.mxu0 }
 0x428   :  { %4376 = vmatprep.subr.mxu1 %v1861_v55  ;;  %4447 = vmatprep.subr.mxu0 %v2277_v57  ;;  %v2550_v52 = vld [vmem:[%s12488_s5 + $0x23a0] sm:$0xff]  ;;  %v2133_v55 = vld [vmem:[%s12488_s5 + $0x1698] sm:$0xff] }
 0x429   :  { %4377 = vmatpush1.msra.mxu1 %v1860_v58  ;;  %4448 = vmatpush1.msra.mxu0 %v2276_v59  ;;  %v2549_v57 = vld [vmem:[%s12488_s5 + $0x2398] sm:$0xff]  ;;  %v5432_v58 = vld [vmem:[%s12489_s6] sm:$0xff] }
 0x42a   :  { %4378 = vmatprep.subr.mxu1 %v1848_v31  ;;  %4449 = vmatprep.subr.mxu0 %v2264_v60  ;;  %v3097_v59 = vrot.slane %v5432_v58, %v8041_v4  ;;  %v2121_v31 = vld [vmem:[%s12488_s5 + $0x1638] sm:$0xff] }
 0x42b   :  { %4379 = vmatpush1.msra.mxu1 %v1847_v24  ;;  %4450 = vmatpush1.msra.mxu0 %v2263_v61  ;;  %v2537_v60 = vld [vmem:[%s12488_s5 + $0x2338] sm:$0xff]  ;;  %v3848_v24 = vpop.f32.mrf.mxu1  ;;  %v2120_v61 = vld [vmem:[%s12488_s5 + $0x1630] sm:$0xff] }
 0x42c   :  { %4380 = vmatprep.subr.mxu1 %v1835_v62  ;;  %4451 = vmatprep.subr.mxu0 %v2251_v63  ;;  %v2536_v62 = vld [vmem:[%s12488_s5 + $0x2330] sm:$0xff]  ;;  %v3101_v63 = vrot.slane %v5432_v58, %v816_v9  ;;  %v2523_v9 = vld [vmem:[%s12488_s5 + $0x22c8] sm:$0xff] }
 0x42d   :  { %4381 = vmatpush1.msra.mxu1 %v1834_v0  ;;  %4452 = vmatpush1.msra.mxu0 %v2250_v2  ;;  %v2108_v0 = vld [vmem:[%s12488_s5 + $0x15d0] sm:$0xff] }
 0x42e   :  { %4382 = vmatprep.subr.mxu1 %v2238_v3  ;;  %4453 = vmatprep.subr.mxu0 %v2654_v16  ;;  %v2524_v2 = vld [vmem:[%s12488_s5 + $0x22d0] sm:$0xff]  ;;  %v3779_v3 = vpop.f32.mrf.mxu0  ;;  %v2107_v16 = vld [vmem:[%s12488_s5 + $0x15c8] sm:$0xff] }
 0x42f   :  { %4383 = vmatpush2.msra.mxu1 %v2237_v5  ;;  %4454 = vmatpush2.msra.mxu0 %v2653_v6  ;;  %v3778_v5 = vadd.f32 %v3777_v54, %v3097_v59  ;;  %v2095_v6 = vld [vmem:[%s12488_s5 + $0x1568] sm:$0xff]  ;;  %v1616_v58 = vld [vmem:[%s12488_s5 + $0x670] sm:$0xff]  ;;  %v2861_v59 = vld [vmem:[%s12488_s5 + $0x2d58] sm:$0xff] }
 0x430   :  { %4384 = vmatprep.subr.mxu1 %v2225_v7  ;;  %4455 = vmatprep.subr.mxu0 %v2641_v8  ;;  %v2511_v7 = vld [vmem:[%s12488_s5 + $0x2268] sm:$0xff]  ;;  %v3850_v8 = vpop.f32.mrf.mxu1 }
 0x431   :  { %4385 = vmatpush2.msra.mxu1 %v2224_v10  ;;  %4456 = vmatpush2.msra.mxu0 %v2640_v12  ;;  %v2094_v10 = vld [vmem:[%s12488_s5 + $0x1560] sm:$0xff] }
 0x432   :  { %4386 = vmatprep.subr.mxu1 %v2212_v14  ;;  %4457 = vmatprep.subr.mxu0 %v2628_v15  ;;  %v2510_v12 = vld [vmem:[%s12488_s5 + $0x2260] sm:$0xff]  ;;  %v3780_v14 = vadd.f32 %v3779_v3, %v3101_v63  ;;  %v3849_v15 = vadd.f32 %v3848_v24, %v3778_v5  ;;  %v2849_v24 = vld [vmem:[%s12488_s5 + $0x2cf8] sm:$0xff]  ;;  %v2835_v3 = vld [vmem:[%s12488_s5 + $0x2c88] sm:$0xff] }
 0x433   :  { %4387 = vmatpush2.msra.mxu1 %v2211_v19  ;;  %4458 = vmatpush2.msra.mxu0 %v2627_v20  ;;  %v2082_v19 = vld [vmem:[%s12488_s5 + $0x1500] sm:$0xff]  ;;  %v1577_v5 = vld [vmem:[%s12488_s5 + $0x538] sm:$0xff] }
 0x434   :  { %4388 = vmatprep.subr.mxu1 %v2199_v27  ;;  %4459 = vmatprep.subr.mxu0 %v2615_v40  ;;  %v2498_v20 = vld [vmem:[%s12488_s5 + $0x2200] sm:$0xff]  ;;  %v3919_v27 = vpop.f32.mrf.mxu0  ;;  %v2081_v40 = vld [vmem:[%s12488_s5 + $0x14f8] sm:$0xff] }
 0x435   :  { %4389 = vmatpush2.msra.mxu1 %v2198_v28  ;;  %4460 = vmatpush2.msra.mxu0 %v2614_v41  ;;  %v2497_v28 = vld [vmem:[%s12488_s5 + $0x21f8] sm:$0xff]  ;;  %v3851_v41 = vadd.f32 %v3850_v8, %v3780_v14  ;;  %v1602_v63 = vld [vmem:[%s12488_s5 + $0x600] sm:$0xff]  ;;  %v1563_v14 = vld [vmem:[%s12488_s5 + $0x4c8] sm:$0xff] }
 0x436   :  { %4390 = vmatprep.subr.mxu1 %v2186_v29  ;;  %4461 = vmatprep.subr.mxu0 %v2602_v32  ;;  %v2069_v29 = vld [vmem:[%s12488_s5 + $0x1498] sm:$0xff]  ;;  %v2810_v8 = vld [vmem:[%s12488_s5 + $0x2bc0] sm:$0xff] }
 0x437   :  { %4391 = vmatpush2.msra.mxu1 %v2185_v33  ;;  %4462 = vmatpush2.msra.mxu0 %v2601_v34  ;;  %v2485_v32 = vld [vmem:[%s12488_s5 + $0x2198] sm:$0xff]  ;;  %v2068_v33 = vld [vmem:[%s12488_s5 + $0x1490] sm:$0xff] }
 0x438   :  { %4392 = vmatprep.subr.mxu1 %v2173_v35  ;;  %4463 = vmatprep.subr.mxu0 %v2589_v36  ;;  %v2484_v34 = vld [vmem:[%s12488_s5 + $0x2190] sm:$0xff]  ;;  %v3920_v35 = vadd.f32 %v3919_v27, %v3849_v15  ;;  %v2797_v15 = vld [vmem:[%s12488_s5 + $0x2b58] sm:$0xff]  ;;  %v1550_v27 = vld [vmem:[%s12488_s5 + $0x460] sm:$0xff] }
 0x439   :  { %4393 = vmatpush2.msra.mxu1 %v2172_v37  ;;  %4464 = vmatpush2.msra.mxu0 %v2588_v38  ;;  %v2056_v36 = vld [vmem:[%s12488_s5 + $0x1430] sm:$0xff]  ;;  %v3921_v38 = vpop.f32.mrf.mxu0 }
 0x43a   :  { %4394 = vmatprep.subr.mxu1 %v2160_v43  ;;  %4465 = vmatprep.subr.mxu0 %v2576_v44  ;;  %v2472_v37 = vld [vmem:[%s12488_s5 + $0x2130] sm:$0xff]  ;;  %v2055_v43 = vld [vmem:[%s12488_s5 + $0x1428] sm:$0xff] }
 0x43b   :  { %4395 = vmatpush2.msra.mxu1 %v2159_v45  ;;  %4466 = vmatpush2.msra.mxu0 %v2575_v46  ;;  %v2471_v44 = vld [vmem:[%s12488_s5 + $0x2128] sm:$0xff]  ;;  %v3922_v46 = vadd.f32 %v3921_v38, %v3851_v41  ;;  %v1524_v38 = vld [vmem:[%s12488_s5 + $0x390] sm:$0xff] }
 0x43c   :  { %4396 = vmatprep.subr.mxu1 %v2147_v47  ;;  %4467 = vmatprep.subr.mxu0 %v2563_v48  ;;  %v2043_v47 = vld [vmem:[%s12488_s5 + $0x13c8] sm:$0xff] }
 0x43d   :  { %4397 = vmatpush2.msra.mxu1 %v2146_v39  ;;  %4468 = vmatpush2.msra.mxu0 %v2562_v30  ;;  %v2459_v48 = vld [vmem:[%s12488_s5 + $0x20c8] sm:$0xff]  ;;  %v2042_v30 = vld [vmem:[%s12488_s5 + $0x13c0] sm:$0xff] }
 0x43e   :  { %4398 = vmatprep.subr.mxu1 %v2134_v51  ;;  %4469 = vmatprep.subr.mxu0 %v2550_v52  ;;  %v2458_v51 = vld [vmem:[%s12488_s5 + $0x20c0] sm:$0xff] }
 0x43f   :  { %4399 = vmatpush2.msra.mxu1 %v2133_v55  ;;  %4470 = vmatpush2.msra.mxu0 %v2549_v57  ;;  %v2862_v57 = vld [vmem:[%s12488_s5 + $0x2d60] sm:$0xff] }
 0x440   :  { %4400 = vmatprep.subr.mxu1 %v2121_v31  ;;  %4471 = vmatprep.subr.mxu0 %v2537_v60  ;;  %v1615_v60 = vld [vmem:[%s12488_s5 + $0x668] sm:$0xff] }
 0x441   :  { %4401 = vmatpush2.msra.mxu1 %v2120_v61  ;;  %4472 = vmatpush2.msra.mxu0 %v2536_v62  ;;  %v1603_v61 = vld [vmem:[%s12488_s5 + $0x608] sm:$0xff]  ;;  %v2848_v62 = vld [vmem:[%s12488_s5 + $0x2cf0] sm:$0xff] }
 0x442   :  { %4402 = vmatprep.subr.mxu1 %v2108_v0  ;;  %4473 = vmatprep.subr.mxu0 %v2524_v2  ;;  %v2836_v0 = vld [vmem:[%s12488_s5 + $0x2c90] sm:$0xff]  ;;  %v1590_v2 = vld [vmem:[%s12488_s5 + $0x5a0] sm:$0xff] }
 0x443   :  { %4403 = vmatpush2.msra.mxu1 %v2107_v16  ;;  %4474 = vmatpush2.msra.mxu0 %v2523_v9  ;;  %v1589_v16 = vld [vmem:[%s12488_s5 + $0x598] sm:$0xff]  ;;  %v2823_v9 = vld [vmem:[%s12488_s5 + $0x2c28] sm:$0xff] }
 0x444   :  { %4404 = vmatprep.subr.mxu1 %v2095_v6  ;;  %4475 = vmatprep.subr.mxu0 %v2511_v7  ;;  %v2822_v6 = vld [vmem:[%s12488_s5 + $0x2c20] sm:$0xff]  ;;  %v1576_v7 = vld [vmem:[%s12488_s5 + $0x530] sm:$0xff] }
 0x445   :  { %4405 = vmatpush2.msra.mxu1 %v2094_v10  ;;  %4476 = vmatpush2.msra.mxu0 %v2510_v12  ;;  %v1564_v10 = vld [vmem:[%s12488_s5 + $0x4d0] sm:$0xff]  ;;  %v2809_v12 = vld [vmem:[%s12488_s5 + $0x2bb8] sm:$0xff] }
 0x446   :  { %4406 = vmatprep.subr.mxu1 %v2082_v19  ;;  %4477 = vmatprep.subr.mxu0 %v2498_v20  ;;  %v1551_v19 = vld [vmem:[%s12488_s5 + $0x468] sm:$0xff]  ;;  %v2796_v20 = vld [vmem:[%s12488_s5 + $0x2b50] sm:$0xff] }
 0x447   :  { %4407 = vmatpush2.msra.mxu1 %v2081_v40  ;;  %4478 = vmatpush2.msra.mxu0 %v2497_v28  ;;  %v2784_v40 = vld [vmem:[%s12488_s5 + $0x2af0] sm:$0xff]  ;;  %v1538_v28 = vld [vmem:[%s12488_s5 + $0x400] sm:$0xff] }
 0x448   :  { %4408 = vmatprep.subr.mxu1 %v2069_v29  ;;  %4479 = vmatprep.subr.mxu0 %v2485_v32  ;;  %v3990_v45 = vpop.f32.mrf.mxu1  ;;  %v2783_v29 = vld [vmem:[%s12488_s5 + $0x2ae8] sm:$0xff]  ;;  %v1537_v32 = vld [vmem:[%s12488_s5 + $0x3f8] sm:$0xff] }
 0x449   :  { %4409 = vmatpush2.msra.mxu1 %v2068_v33  ;;  %4480 = vmatpush2.msra.mxu0 %v2484_v34  ;;  %v3991_v39 = vadd.f32 %v3990_v45, %v3920_v35  ;;  %v2771_v34 = vld [vmem:[%s12488_s5 + $0x2a88] sm:$0xff]  ;;  %v1525_v35 = vld [vmem:[%s12488_s5 + $0x398] sm:$0xff]  ;;  %v1512_v45 = vld [vmem:[%s12488_s5 + $0x330] sm:$0xff] }
 0x44a   :  { %4410 = vmatprep.subr.mxu1 %v2056_v36  ;;  %4481 = vmatprep.subr.mxu0 %v2472_v37  ;;  %v3992_v52 = vpop.f32.mrf.mxu1  ;;  %v2770_v37 = vld [vmem:[%s12488_s5 + $0x2a80] sm:$0xff] }
 0x44b   :  { %4411 = vmatpush2.msra.mxu1 %v2055_v43  ;;  %4482 = vmatpush2.msra.mxu0 %v2471_v44  ;;  %v5229_v54 = vmul.f32 -1.442695, %v3991_v39  ;;  %v3993_v55 = vadd.f32 %v3992_v52, %v3922_v46  ;;  %v2758_v44 = vld [vmem:[%s12488_s5 + $0x2a20] sm:$0xff]  ;;  %v2757_v46 = vld [vmem:[%s12488_s5 + $0x2a18] sm:$0xff]  ;;  %v1499_v39 = vld [vmem:[%s12488_s5 + $0x2c8] sm:$0xff] }
 0x44c   :  { %4412 = vmatprep.subr.mxu1 %v2043_v47  ;;  %4483 = vmatprep.subr.mxu0 %v2459_v48  ;;  %v1511_v47 = vld [vmem:[%s12488_s5 + $0x328] sm:$0xff]  ;;  %v2745_v48 = vld [vmem:[%s12488_s5 + $0x29b8] sm:$0xff]  ;;  %v2732_v52 = vld [vmem:[%s12488_s5 + $0x2950] sm:$0xff] }
 0x44d   :  { %4413 = vmatpush2.msra.mxu1 %v2042_v30  ;;  %4484 = vmatpush2.msra.mxu0 %v2458_v51  ;;  %5394 = vpow2.f32 %v5229_v54  ;;  %v5230_v31 = vmul.f32 -1.442695, %v3993_v55  ;;  %v2744_v30 = vld [vmem:[%s12488_s5 + $0x29b0] sm:$0xff]  ;;  %v1498_v51 = vld [vmem:[%s12488_s5 + $0x2c0] sm:$0xff]  ;;  %v2731_v55 = vld [vmem:[%s12488_s5 + $0x2948] sm:$0xff] }
 0x44e   :  { %4415 = vmatmul.mubr.f32.vlgmr.msra.gmra.mxu1 %v7730_v13  ;;  %4486 = vmatmul.mubr.f32.vlgmr.msra.gmra.mxu0 %v8122_v50  ;;  %v1486_v54 = vld [vmem:[%s12488_s5 + $0x260] sm:$0xff] }
 0x44f   :  { %4492 = vmatprep.subr.mxu1 %v2862_v57  ;;  %4563 = vmatprep.subr.mxu0 %v1616_v58  ;;  %5396 = vpow2.f32 %v5230_v31  ;;  %v1485_v57 = vld [vmem:[%s12488_s5 + $0x258] sm:$0xff]  ;;  %v2719_v58 = vld [vmem:[%s12488_s5 + $0x28e8] sm:$0xff]  ;;  %v2718_v31 = vld [vmem:[%s12488_s5 + $0x28e0] sm:$0xff] }
 0x450   :  { %4493 = vmatpush1.msra.mxu1 %v2861_v59  ;;  %4556 = vmatprep.mubr.f32.mxu1 %v8330_v17  ;;  %v1473_v59 = vld [vmem:[%s12488_s5 + $0x1f8] sm:$0xff] }
 0x451   :  { %4564 = vmatpush1.msra.mxu0 %v1615_v60  ;;  %4627 = vmatprep.mubr.f32.mxu0 %v7333_v49  ;;  %v1472_v60 = vld [vmem:[%s12488_s5 + $0x1f0] sm:$0xff] }
 0x452   :  { %4494 = vmatprep.subr.mxu1 %v2849_v24  ;;  %4565 = vmatprep.subr.mxu0 %v1603_v61  ;;  %v2706_v24 = vld [vmem:[%s12488_s5 + $0x2880] sm:$0xff]  ;;  %v1460_v61 = vld [vmem:[%s12488_s5 + $0x190] sm:$0xff] }
 0x453   :  { %4495 = vmatpush1.msra.mxu1 %v2848_v62  ;;  %4566 = vmatpush1.msra.mxu0 %v1602_v63  ;;  %v2705_v62 = vld [vmem:[%s12488_s5 + $0x2878] sm:$0xff]  ;;  %v1459_v63 = vld [vmem:[%s12488_s5 + $0x188] sm:$0xff] }
 0x454   :  { %4496 = vmatprep.subr.mxu1 %v2836_v0  ;;  %4567 = vmatprep.subr.mxu0 %v1590_v2  ;;  %v2693_v0 = vld [vmem:[%s12488_s5 + $0x2818] sm:$0xff]  ;;  %v1447_v2 = vld [vmem:[%s12488_s5 + $0x128] sm:$0xff] }
 0x455   :  { %4497 = vmatpush1.msra.mxu1 %v2835_v3  ;;  %4568 = vmatpush1.msra.mxu0 %v1589_v16  ;;  %v2692_v3 = vld [vmem:[%s12488_s5 + $0x2810] sm:$0xff]  ;;  %v1446_v16 = vld [vmem:[%s12488_s5 + $0x120] sm:$0xff] }
 0x456   :  { %4498 = vmatprep.subr.mxu1 %v2823_v9  ;;  %4569 = vmatprep.subr.mxu0 %v1577_v5  ;;  %v2680_v9 = vld [vmem:[%s12488_s5 + $0x27b0] sm:$0xff]  ;;  %v1434_v5 = vld [vmem:[%s12488_s5 + $0xc0] sm:$0xff] }
 0x457   :  { %4499 = vmatpush1.msra.mxu1 %v2822_v6  ;;  %4570 = vmatpush1.msra.mxu0 %v1576_v7  ;;  %v2679_v7 = vld [vmem:[%s12488_s5 + $0x27a8] sm:$0xff] }
 0x458   :  { %4500 = vmatprep.subr.mxu1 %v2810_v8  ;;  %4571 = vmatprep.subr.mxu0 %v1564_v10  ;;  %v1433_v8 = vld [vmem:[%s12488_s5 + $0xb8] sm:$0xff]  ;;  %v2667_v10 = vld [vmem:[%s12488_s5 + $0x2748] sm:$0xff] }
 0x459   :  { %4501 = vmatpush1.msra.mxu1 %v2809_v12  ;;  %4572 = vmatpush1.msra.mxu0 %v1563_v14  ;;  %v1421_v12 = vld [vmem:[%s12488_s5 + $0x58] sm:$0xff] }
 0x45a   :  { %v5395_v41 = vpop.eup %5394  ;;  %4502 = vmatprep.subr.mxu1 %v2797_v15  ;;  %4573 = vmatprep.subr.mxu0 %v1551_v19  ;;  %v2666_v15 = vld [vmem:[%s12488_s5 + $0x2740] sm:$0xff]  ;;  %v1420_v19 = vld [vmem:[%s12488_s5 + $0x50] sm:$0xff] }
 0x45b   :  { %v5170_v33 = vadd.f32 1.0, %v5395_v41  ;;  %4503 = vmatpush1.msra.mxu1 %v2796_v20  ;;  %4574 = vmatpush1.msra.mxu0 %v1550_v27  ;;  %v3070_v20 = vld [vmem:[%s12488_s5 + $0x33e0] sm:$0xff]  ;;  %v1824_v27 = vld [vmem:[%s12488_s5 + $0xcf0] sm:$0xff]  ;;  %v3057_v41 = vld [vmem:[%s12488_s5 + $0x3378] sm:$0xff] }
 0x45c   :  { %v5397_v36 = vpop.eup %5396  ;;  %4504 = vmatprep.subr.mxu1 %v2784_v40  ;;  %4575 = vmatprep.subr.mxu0 %v1538_v28  ;;  %v3069_v40 = vld [vmem:[%s12488_s5 + $0x33d8] sm:$0xff]  ;;  %v1823_v28 = vld [vmem:[%s12488_s5 + $0xce8] sm:$0xff] }
 0x45d   :  { %5398 = vrcp.f32 %v5170_v33  ;;  %v5171_v43 = vadd.f32 1.0, %v5397_v36  ;;  %4505 = vmatpush1.msra.mxu1 %v2783_v29  ;;  %4576 = vmatpush1.msra.mxu0 %v1537_v32  ;;  %v1811_v29 = vld [vmem:[%s12488_s5 + $0xc88] sm:$0xff]  ;;  %v3056_v32 = vld [vmem:[%s12488_s5 + $0x3370] sm:$0xff]  ;;  %v1810_v33 = vld [vmem:[%s12488_s5 + $0xc80] sm:$0xff] }
 0x45e   :  { %4506 = vmatprep.subr.mxu1 %v2771_v34  ;;  %4577 = vmatprep.subr.mxu0 %v1525_v35  ;;  %v3044_v34 = vld [vmem:[%s12488_s5 + $0x3310] sm:$0xff]  ;;  %v1798_v35 = vld [vmem:[%s12488_s5 + $0xc20] sm:$0xff]  ;;  %v3043_v36 = vld [vmem:[%s12488_s5 + $0x3308] sm:$0xff] }
 0x45f   :  { %5400 = vrcp.f32 %v5171_v43  ;;  %4507 = vmatpush1.msra.mxu1 %v2770_v37  ;;  %4578 = vmatpush1.msra.mxu0 %v1524_v38  ;;  %v1797_v37 = vld [vmem:[%s12488_s5 + $0xc18] sm:$0xff]  ;;  %v3031_v38 = vld [vmem:[%s12488_s5 + $0x32a8] sm:$0xff] }
 0x460   :  { %4508 = vmatprep.subr.mxu1 %v2758_v44  ;;  %4579 = vmatprep.subr.mxu0 %v1512_v45  ;;  %v1785_v43 = vld [vmem:[%s12488_s5 + $0xbb8] sm:$0xff]  ;;  %v3030_v44 = vld [vmem:[%s12488_s5 + $0x32a0] sm:$0xff]  ;;  %v1784_v45 = vld [vmem:[%s12488_s5 + $0xbb0] sm:$0xff] }
 0x461   :  { %4509 = vmatpush1.msra.mxu1 %v2757_v46  ;;  %4580 = vmatpush1.msra.mxu0 %v1511_v47  ;;  %v3018_v46 = vld [vmem:[%s12488_s5 + $0x3240] sm:$0xff]  ;;  %v1772_v47 = vld [vmem:[%s12488_s5 + $0xb50] sm:$0xff] }
 0x462   :  { %4510 = vmatprep.subr.mxu1 %v2745_v48  ;;  %4581 = vmatprep.subr.mxu0 %v1499_v39  ;;  %v3017_v48 = vld [vmem:[%s12488_s5 + $0x3238] sm:$0xff]  ;;  %v1771_v39 = vld [vmem:[%s12488_s5 + $0xb48] sm:$0xff] }
 0x463   :  { %4511 = vmatpush1.msra.mxu1 %v2744_v30  ;;  %4582 = vmatpush1.msra.mxu0 %v1498_v51  ;;  %v3005_v30 = vld [vmem:[%s12488_s5 + $0x31d8] sm:$0xff]  ;;  %v1759_v51 = vld [vmem:[%s12488_s5 + $0xae8] sm:$0xff] }
 0x464   :  { %4512 = vmatprep.subr.mxu1 %v2732_v52  ;;  %4583 = vmatprep.subr.mxu0 %v1486_v54  ;;  %v3004_v52 = vld [vmem:[%s12488_s5 + $0x31d0] sm:$0xff]  ;;  %v1758_v54 = vld [vmem:[%s12488_s5 + $0xae0] sm:$0xff] }
 0x465   :  { %4513 = vmatpush1.msra.mxu1 %v2731_v55  ;;  %4584 = vmatpush1.msra.mxu0 %v1485_v57  ;;  %v2992_v55 = vld [vmem:[%s12488_s5 + $0x3170] sm:$0xff]  ;;  %v1746_v57 = vld [vmem:[%s12488_s5 + $0xa80] sm:$0xff] }
 0x466   :  { %4514 = vmatprep.subr.mxu1 %v2719_v58  ;;  %4585 = vmatprep.subr.mxu0 %v1473_v59  ;;  %v2991_v58 = vld [vmem:[%s12488_s5 + $0x3168] sm:$0xff]  ;;  %v1745_v59 = vld [vmem:[%s12488_s5 + $0xa78] sm:$0xff] }
 0x467   :  { %4515 = vmatpush1.msra.mxu1 %v2718_v31  ;;  %4586 = vmatpush1.msra.mxu0 %v1472_v60  ;;  %v2979_v31 = vld [vmem:[%s12488_s5 + $0x3108] sm:$0xff]  ;;  %v1733_v60 = vld [vmem:[%s12488_s5 + $0xa18] sm:$0xff] }
 0x468   :  { %4516 = vmatprep.subr.mxu1 %v2706_v24  ;;  %4587 = vmatprep.subr.mxu0 %v1460_v61  ;;  %v2978_v24 = vld [vmem:[%s12488_s5 + $0x3100] sm:$0xff]  ;;  %v1732_v61 = vld [vmem:[%s12488_s5 + $0xa10] sm:$0xff] }
 0x469   :  { %4517 = vmatpush1.msra.mxu1 %v2705_v62  ;;  %4588 = vmatpush1.msra.mxu0 %v1459_v63  ;;  %v2966_v62 = vld [vmem:[%s12488_s5 + $0x30a0] sm:$0xff]  ;;  %v1720_v63 = vld [vmem:[%s12488_s5 + $0x9b0] sm:$0xff] }
 0x46a   :  { %v5399_v6 = vpop.eup %5398  ;;  %4518 = vmatprep.subr.mxu1 %v2693_v0  ;;  %4589 = vmatprep.subr.mxu0 %v1447_v2  ;;  %v2965_v0 = vld [vmem:[%s12488_s5 + $0x3098] sm:$0xff]  ;;  %v1719_v2 = vld [vmem:[%s12488_s5 + $0x9a8] sm:$0xff] }
 0x46b   :  { %5209 = vst [vmem:[%s12490_s7 + $0x20] sm:$0xff] %v5399_v6  ;;  %4519 = vmatpush1.msra.mxu1 %v2692_v3  ;;  %4590 = vmatpush1.msra.mxu0 %v1446_v16  ;;  %v2953_v3 = vld [vmem:[%s12488_s5 + $0x3038] sm:$0xff]  ;;  %v1707_v16 = vld [vmem:[%s12488_s5 + $0x948] sm:$0xff]  ;;  %v2940_v6 = vld [vmem:[%s12488_s5 + $0x2fd0] sm:$0xff] }
 0x46c   :  { %v5401_v14 = vpop.eup %5400  ;;  %4520 = vmatprep.subr.mxu1 %v2680_v9  ;;  %4591 = vmatprep.subr.mxu0 %v1434_v5  ;;  %v2952_v9 = vld [vmem:[%s12488_s5 + $0x3030] sm:$0xff]  ;;  %v1706_v5 = vld [vmem:[%s12488_s5 + $0x940] sm:$0xff] }
 0x46d   :  { %5210 = vst [vmem:[%s12490_s7 + $0x28] sm:$0xff] %v5401_v14  ;;  %4521 = vmatpush1.msra.mxu1 %v2679_v7  ;;  %4592 = vmatpush1.msra.mxu0 %v1433_v8  ;;  %v1694_v7 = vld [vmem:[%s12488_s5 + $0x8e0] sm:$0xff]  ;;  %v2939_v8 = vld [vmem:[%s12488_s5 + $0x2fc8] sm:$0xff]  ;;  %v1681_v14 = vld [vmem:[%s12488_s5 + $0x878] sm:$0xff] }
 0x46e   :  { %4522 = vmatprep.subr.mxu1 %v2667_v10  ;;  %4593 = vmatprep.subr.mxu0 %v1421_v12  ;;  %v1693_v10 = vld [vmem:[%s12488_s5 + $0x8d8] sm:$0xff]  ;;  %v2927_v12 = vld [vmem:[%s12488_s5 + $0x2f68] sm:$0xff] }
 0x46f   :  { %4523 = vmatpush1.msra.mxu1 %v2666_v15  ;;  %4594 = vmatpush1.msra.mxu0 %v1420_v19  ;;  %v2926_v15 = vld [vmem:[%s12488_s5 + $0x2f60] sm:$0xff]  ;;  %v1680_v19 = vld [vmem:[%s12488_s5 + $0x870] sm:$0xff] }
 0x470   :  { %4524 = vmatprep.subr.mxu1 %v3070_v20  ;;  %4595 = vmatprep.subr.mxu0 %v1824_v27  ;;  %v2914_v20 = vld [vmem:[%s12488_s5 + $0x2f00] sm:$0xff]  ;;  %v1668_v27 = vld [vmem:[%s12488_s5 + $0x810] sm:$0xff] }
 0x471   :  { %4525 = vmatpush2.msra.mxu1 %v3069_v40  ;;  %4596 = vmatpush2.msra.mxu0 %v1823_v28  ;;  %v2913_v40 = vld [vmem:[%s12488_s5 + $0x2ef8] sm:$0xff]  ;;  %v1667_v28 = vld [vmem:[%s12488_s5 + $0x808] sm:$0xff] }
 0x472   :  { %4526 = vmatprep.subr.mxu1 %v3057_v41  ;;  %4597 = vmatprep.subr.mxu0 %v1811_v29  ;;  %v2901_v41 = vld [vmem:[%s12488_s5 + $0x2e98] sm:$0xff]  ;;  %v1655_v29 = vld [vmem:[%s12488_s5 + $0x7a8] sm:$0xff] }
 0x473   :  { %4527 = vmatpush2.msra.mxu1 %v3056_v32  ;;  %4598 = vmatpush2.msra.mxu0 %v1810_v33  ;;  %v2900_v32 = vld [vmem:[%s12488_s5 + $0x2e90] sm:$0xff]  ;;  %v1654_v33 = vld [vmem:[%s12488_s5 + $0x7a0] sm:$0xff] }
 0x474   :  { %4528 = vmatprep.subr.mxu1 %v3044_v34  ;;  %4599 = vmatprep.subr.mxu0 %v1798_v35  ;;  %v2888_v34 = vld [vmem:[%s12488_s5 + $0x2e30] sm:$0xff]  ;;  %v1642_v35 = vld [vmem:[%s12488_s5 + $0x740] sm:$0xff] }
 0x475   :  { %4529 = vmatpush2.msra.mxu1 %v3043_v36  ;;  %4600 = vmatpush2.msra.mxu0 %v1797_v37  ;;  %v2887_v36 = vld [vmem:[%s12488_s5 + $0x2e28] sm:$0xff]  ;;  %v1641_v37 = vld [vmem:[%s12488_s5 + $0x738] sm:$0xff] }
 0x476   :  { %4530 = vmatprep.subr.mxu1 %v3031_v38  ;;  %4601 = vmatprep.subr.mxu0 %v1785_v43  ;;  %v2875_v38 = vld [vmem:[%s12488_s5 + $0x2dc8] sm:$0xff]  ;;  %v1629_v43 = vld [vmem:[%s12488_s5 + $0x6d8] sm:$0xff] }
 0x477   :  { %4531 = vmatpush2.msra.mxu1 %v3030_v44  ;;  %4602 = vmatpush2.msra.mxu0 %v1784_v45  ;;  %v2874_v44 = vld [vmem:[%s12488_s5 + $0x2dc0] sm:$0xff]  ;;  %v1628_v45 = vld [vmem:[%s12488_s5 + $0x6d0] sm:$0xff] }
 0x478   :  { %4532 = vmatprep.subr.mxu1 %v3018_v46  ;;  %4603 = vmatprep.subr.mxu0 %v1772_v47  ;;  %v2032_v46 = vld [vmem:[%s12488_s5 + $0x1370] sm:$0xff] }
 0x479   :  { %4533 = vmatpush2.msra.mxu1 %v3017_v48  ;;  %4604 = vmatpush2.msra.mxu0 %v1771_v39  ;;  %v2448_v47 = vld [vmem:[%s12488_s5 + $0x2070] sm:$0xff]  ;;  %v2031_v48 = vld [vmem:[%s12488_s5 + $0x1368] sm:$0xff] }
 0x47a   :  { %4534 = vmatprep.subr.mxu1 %v3005_v30  ;;  %4605 = vmatprep.subr.mxu0 %v1759_v51  ;;  %v2447_v39 = vld [vmem:[%s12488_s5 + $0x2068] sm:$0xff] }
 0x47b   :  { %4535 = vmatpush2.msra.mxu1 %v3004_v52  ;;  %4606 = vmatpush2.msra.mxu0 %v1758_v54  ;;  %v2019_v30 = vld [vmem:[%s12488_s5 + $0x1308] sm:$0xff]  ;;  %v2018_v52 = vld [vmem:[%s12488_s5 + $0x1300] sm:$0xff] }
 0x47c   :  { %4536 = vmatprep.subr.mxu1 %v2992_v55  ;;  %4607 = vmatprep.subr.mxu0 %v1746_v57  ;;  %v2435_v51 = vld [vmem:[%s12488_s5 + $0x2008] sm:$0xff]  ;;  %v2434_v54 = vld [vmem:[%s12488_s5 + $0x2000] sm:$0xff] }
 0x47d   :  { %4537 = vmatpush2.msra.mxu1 %v2991_v58  ;;  %4608 = vmatpush2.msra.mxu0 %v1745_v59  ;;  %v2006_v55 = vld [vmem:[%s12488_s5 + $0x12a0] sm:$0xff]  ;;  %v2005_v58 = vld [vmem:[%s12488_s5 + $0x1298] sm:$0xff] }
 0x47e   :  { %4538 = vmatprep.subr.mxu1 %v2979_v31  ;;  %4609 = vmatprep.subr.mxu0 %v1733_v60  ;;  %v2422_v57 = vld [vmem:[%s12488_s5 + $0x1fa0] sm:$0xff]  ;;  %v2421_v59 = vld [vmem:[%s12488_s5 + $0x1f98] sm:$0xff] }
 0x47f   :  { %4539 = vmatpush2.msra.mxu1 %v2978_v24  ;;  %4610 = vmatpush2.msra.mxu0 %v1732_v61  ;;  %v1993_v31 = vld [vmem:[%s12488_s5 + $0x1238] sm:$0xff]  ;;  %v1992_v24 = vld [vmem:[%s12488_s5 + $0x1230] sm:$0xff] }
 0x480   :  { %4540 = vmatprep.subr.mxu1 %v2966_v62  ;;  %4611 = vmatprep.subr.mxu0 %v1720_v63  ;;  %v2409_v60 = vld [vmem:[%s12488_s5 + $0x1f38] sm:$0xff]  ;;  %v2408_v61 = vld [vmem:[%s12488_s5 + $0x1f30] sm:$0xff] }
 0x481   :  { %4541 = vmatpush2.msra.mxu1 %v2965_v0  ;;  %4612 = vmatpush2.msra.mxu0 %v1719_v2  ;;  %v1980_v62 = vld [vmem:[%s12488_s5 + $0x11d0] sm:$0xff]  ;;  %v1979_v0 = vld [vmem:[%s12488_s5 + $0x11c8] sm:$0xff] }
 0x482   :  { %4542 = vmatprep.subr.mxu1 %v2953_v3  ;;  %4613 = vmatprep.subr.mxu0 %v1707_v16  ;;  %v2396_v63 = vld [vmem:[%s12488_s5 + $0x1ed0] sm:$0xff]  ;;  %v2395_v2 = vld [vmem:[%s12488_s5 + $0x1ec8] sm:$0xff] }
 0x483   :  { %4543 = vmatpush2.msra.mxu1 %v2952_v9  ;;  %4614 = vmatpush2.msra.mxu0 %v1706_v5  ;;  %v1967_v3 = vld [vmem:[%s12488_s5 + $0x1168] sm:$0xff]  ;;  %v1966_v9 = vld [vmem:[%s12488_s5 + $0x1160] sm:$0xff] }
 0x484   :  { %4544 = vmatprep.subr.mxu1 %v2940_v6  ;;  %4615 = vmatprep.subr.mxu0 %v1694_v7  ;;  %v2383_v16 = vld [vmem:[%s12488_s5 + $0x1e68] sm:$0xff]  ;;  %v2382_v5 = vld [vmem:[%s12488_s5 + $0x1e60] sm:$0xff] }
 0x485   :  { %4545 = vmatpush2.msra.mxu1 %v2939_v8  ;;  %4616 = vmatpush2.msra.mxu0 %v1693_v10  ;;  %v1954_v6 = vld [vmem:[%s12488_s5 + $0x1100] sm:$0xff]  ;;  %v1953_v8 = vld [vmem:[%s12488_s5 + $0x10f8] sm:$0xff] }
 0x486   :  { %4546 = vmatprep.subr.mxu1 %v2927_v12  ;;  %4617 = vmatprep.subr.mxu0 %v1681_v14  ;;  %v2370_v7 = vld [vmem:[%s12488_s5 + $0x1e00] sm:$0xff]  ;;  %v2369_v10 = vld [vmem:[%s12488_s5 + $0x1df8] sm:$0xff] }
 0x487   :  { %4547 = vmatpush2.msra.mxu1 %v2926_v15  ;;  %4618 = vmatpush2.msra.mxu0 %v1680_v19  ;;  %v1941_v12 = vld [vmem:[%s12488_s5 + $0x1098] sm:$0xff]  ;;  %v1940_v15 = vld [vmem:[%s12488_s5 + $0x1090] sm:$0xff] }
 0x488   :  { %4548 = vmatprep.subr.mxu1 %v2914_v20  ;;  %4619 = vmatprep.subr.mxu0 %v1668_v27  ;;  %v2357_v14 = vld [vmem:[%s12488_s5 + $0x1d98] sm:$0xff]  ;;  %v2356_v19 = vld [vmem:[%s12488_s5 + $0x1d90] sm:$0xff] }
 0x489   :  { %4549 = vmatpush2.msra.mxu1 %v2913_v40  ;;  %4620 = vmatpush2.msra.mxu0 %v1667_v28  ;;  %v1928_v20 = vld [vmem:[%s12488_s5 + $0x1030] sm:$0xff]  ;;  %v1927_v40 = vld [vmem:[%s12488_s5 + $0x1028] sm:$0xff] }
 0x48a   :  { %4550 = vmatprep.subr.mxu1 %v2901_v41  ;;  %4621 = vmatprep.subr.mxu0 %v1655_v29  ;;  %v2344_v27 = vld [vmem:[%s12488_s5 + $0x1d30] sm:$0xff]  ;;  %v2343_v28 = vld [vmem:[%s12488_s5 + $0x1d28] sm:$0xff] }
 0x48b   :  { %4551 = vmatpush2.msra.mxu1 %v2900_v32  ;;  %4622 = vmatpush2.msra.mxu0 %v1654_v33  ;;  %v1915_v41 = vld [vmem:[%s12488_s5 + $0xfc8] sm:$0xff]  ;;  %v1914_v32 = vld [vmem:[%s12488_s5 + $0xfc0] sm:$0xff] }
 0x48c   :  { %4552 = vmatprep.subr.mxu1 %v2888_v34  ;;  %4623 = vmatprep.subr.mxu0 %v1642_v35  ;;  %v2331_v29 = vld [vmem:[%s12488_s5 + $0x1cc8] sm:$0xff]  ;;  %v2330_v33 = vld [vmem:[%s12488_s5 + $0x1cc0] sm:$0xff] }
 0x48d   :  { %4553 = vmatpush2.msra.mxu1 %v2887_v36  ;;  %4624 = vmatpush2.msra.mxu0 %v1641_v37  ;;  %v1902_v34 = vld [vmem:[%s12488_s5 + $0xf60] sm:$0xff]  ;;  %v1901_v36 = vld [vmem:[%s12488_s5 + $0xf58] sm:$0xff] }
 0x48e   :  { %4554 = vmatprep.subr.mxu1 %v2875_v38  ;;  %4625 = vmatprep.subr.mxu0 %v1629_v43  ;;  %v2318_v35 = vld [vmem:[%s12488_s5 + $0x1c60] sm:$0xff]  ;;  %v2317_v37 = vld [vmem:[%s12488_s5 + $0x1c58] sm:$0xff] }
 0x48f   :  { %4555 = vmatpush2.msra.mxu1 %v2874_v44  ;;  %4626 = vmatpush2.msra.mxu0 %v1628_v45  ;;  %v1889_v38 = vld [vmem:[%s12488_s5 + $0xef8] sm:$0xff]  ;;  %v1888_v44 = vld [vmem:[%s12488_s5 + $0xef0] sm:$0xff] }
 0x490   :  { %4557 = vmatmul.mubr.f32.vlgmr.msra.gmra.mxu1 %v8332_v18  ;;  %4628 = vmatmul.mubr.f32.vlgmr.msra.gmra.mxu0 %v7707_v1  ;;  %v2305_v43 = vld [vmem:[%s12488_s5 + $0x1bf8] sm:$0xff]  ;;  %v2304_v45 = vld [vmem:[%s12488_s5 + $0x1bf0] sm:$0xff] }
 0x491   :  { %4634 = vmatprep.subr.mxu1 %v2032_v46  ;;  %4705 = vmatprep.subr.mxu0 %v2448_v47  ;;  %v1876_v46 = vld [vmem:[%s12488_s5 + $0xe90] sm:$0xff] }
 0x492   :  { %4635 = vmatpush1.msra.mxu1 %v2031_v48  ;;  %4698 = vmatprep.mubr.f32.mxu1 %v7725_v11  ;;  %v2292_v47 = vld [vmem:[%s12488_s5 + $0x1b90] sm:$0xff]  ;;  %v1875_v48 = vld [vmem:[%s12488_s5 + $0xe88] sm:$0xff] }
 0x493   :  { %4706 = vmatpush1.msra.mxu0 %v2447_v39  ;;  %4769 = vmatprep.mubr.f32.mxu0 %v8120_v42  ;;  %v2291_v39 = vld [vmem:[%s12488_s5 + $0x1b88] sm:$0xff] }
 0x494   :  { %4636 = vmatprep.subr.mxu1 %v2019_v30  ;;  %4707 = vmatprep.subr.mxu0 %v2435_v51  ;;  %v1863_v30 = vld [vmem:[%s12488_s5 + $0xe28] sm:$0xff] }
 0x495   :  { %4637 = vmatpush1.msra.mxu1 %v2018_v52  ;;  %4708 = vmatpush1.msra.mxu0 %v2434_v54  ;;  %v2279_v51 = vld [vmem:[%s12488_s5 + $0x1b28] sm:$0xff]  ;;  %v1862_v52 = vld [vmem:[%s12488_s5 + $0xe20] sm:$0xff] }
 0x496   :  { %4638 = vmatprep.subr.mxu1 %v2006_v55  ;;  %4709 = vmatprep.subr.mxu0 %v2422_v57  ;;  %v2278_v54 = vld [vmem:[%s12488_s5 + $0x1b20] sm:$0xff] }
 0x497   :  { %4639 = vmatpush1.msra.mxu1 %v2005_v58  ;;  %4710 = vmatpush1.msra.mxu0 %v2421_v59  ;;  %v1850_v55 = vld [vmem:[%s12488_s5 + $0xdc0] sm:$0xff]  ;;  %v1849_v58 = vld [vmem:[%s12488_s5 + $0xdb8] sm:$0xff] }
 0x498   :  { %4640 = vmatprep.subr.mxu1 %v1993_v31  ;;  %4711 = vmatprep.subr.mxu0 %v2409_v60  ;;  %v2266_v57 = vld [vmem:[%s12488_s5 + $0x1ac0] sm:$0xff]  ;;  %v2265_v59 = vld [vmem:[%s12488_s5 + $0x1ab8] sm:$0xff] }
 0x499   :  { %4641 = vmatpush1.msra.mxu1 %v1992_v24  ;;  %4712 = vmatpush1.msra.mxu0 %v2408_v61  ;;  %v1837_v31 = vld [vmem:[%s12488_s5 + $0xd58] sm:$0xff]  ;;  %v1836_v24 = vld [vmem:[%s12488_s5 + $0xd50] sm:$0xff] }
 0x49a   :  { %4642 = vmatprep.subr.mxu1 %v1980_v62  ;;  %4713 = vmatprep.subr.mxu0 %v2396_v63  ;;  %v2253_v60 = vld [vmem:[%s12488_s5 + $0x1a58] sm:$0xff]  ;;  %v2252_v61 = vld [vmem:[%s12488_s5 + $0x1a50] sm:$0xff] }
 0x49b   :  { %4643 = vmatpush1.msra.mxu1 %v1979_v0  ;;  %4714 = vmatpush1.msra.mxu0 %v2395_v2  ;;  %v2240_v62 = vld [vmem:[%s12488_s5 + $0x19f0] sm:$0xff]  ;;  %v2239_v0 = vld [vmem:[%s12488_s5 + $0x19e8] sm:$0xff] }
 0x49c   :  { %4644 = vmatprep.subr.mxu1 %v1967_v3  ;;  %4715 = vmatprep.subr.mxu0 %v2383_v16  ;;  %v2656_v63 = vld [vmem:[%s12488_s5 + $0x26f0] sm:$0xff]  ;;  %v2655_v2 = vld [vmem:[%s12488_s5 + $0x26e8] sm:$0xff] }
 0x49d   :  { %4645 = vmatpush1.msra.mxu1 %v1966_v9  ;;  %4716 = vmatpush1.msra.mxu0 %v2382_v5  ;;  %v2227_v3 = vld [vmem:[%s12488_s5 + $0x1988] sm:$0xff]  ;;  %v2226_v9 = vld [vmem:[%s12488_s5 + $0x1980] sm:$0xff] }
 0x49e   :  { %4646 = vmatprep.subr.mxu1 %v1954_v6  ;;  %4717 = vmatprep.subr.mxu0 %v2370_v7  ;;  %v2643_v16 = vld [vmem:[%s12488_s5 + $0x2688] sm:$0xff]  ;;  %v2642_v5 = vld [vmem:[%s12488_s5 + $0x2680] sm:$0xff] }
 0x49f   :  { %4647 = vmatpush1.msra.mxu1 %v1953_v8  ;;  %4718 = vmatpush1.msra.mxu0 %v2369_v10  ;;  %v2214_v6 = vld [vmem:[%s12488_s5 + $0x1920] sm:$0xff]  ;;  %v2213_v8 = vld [vmem:[%s12488_s5 + $0x1918] sm:$0xff] }
 0x4a0   :  { %4648 = vmatprep.subr.mxu1 %v1941_v12  ;;  %4719 = vmatprep.subr.mxu0 %v2357_v14  ;;  %v2630_v7 = vld [vmem:[%s12488_s5 + $0x2620] sm:$0xff]  ;;  %v2629_v10 = vld [vmem:[%s12488_s5 + $0x2618] sm:$0xff] }
 0x4a1   :  { %4649 = vmatpush1.msra.mxu1 %v1940_v15  ;;  %4720 = vmatpush1.msra.mxu0 %v2356_v19  ;;  %v2201_v12 = vld [vmem:[%s12488_s5 + $0x18b8] sm:$0xff]  ;;  %v2200_v15 = vld [vmem:[%s12488_s5 + $0x18b0] sm:$0xff] }
 0x4a2   :  { %4650 = vmatprep.subr.mxu1 %v1928_v20  ;;  %4721 = vmatprep.subr.mxu0 %v2344_v27  ;;  %v2617_v14 = vld [vmem:[%s12488_s5 + $0x25b8] sm:$0xff]  ;;  %v2616_v19 = vld [vmem:[%s12488_s5 + $0x25b0] sm:$0xff] }
 0x4a3   :  { %4651 = vmatpush1.msra.mxu1 %v1927_v40  ;;  %4722 = vmatpush1.msra.mxu0 %v2343_v28  ;;  %v2188_v20 = vld [vmem:[%s12488_s5 + $0x1850] sm:$0xff]  ;;  %v2187_v40 = vld [vmem:[%s12488_s5 + $0x1848] sm:$0xff] }
 0x4a4   :  { %4652 = vmatprep.subr.mxu1 %v1915_v41  ;;  %4723 = vmatprep.subr.mxu0 %v2331_v29  ;;  %v2604_v27 = vld [vmem:[%s12488_s5 + $0x2550] sm:$0xff]  ;;  %v2603_v28 = vld [vmem:[%s12488_s5 + $0x2548] sm:$0xff] }
 0x4a5   :  { %4653 = vmatpush1.msra.mxu1 %v1914_v32  ;;  %4724 = vmatpush1.msra.mxu0 %v2330_v33  ;;  %v2175_v41 = vld [vmem:[%s12488_s5 + $0x17e8] sm:$0xff]  ;;  %v2174_v32 = vld [vmem:[%s12488_s5 + $0x17e0] sm:$0xff] }
 0x4a6   :  { %4654 = vmatprep.subr.mxu1 %v1902_v34  ;;  %4725 = vmatprep.subr.mxu0 %v2318_v35  ;;  %v2591_v29 = vld [vmem:[%s12488_s5 + $0x24e8] sm:$0xff]  ;;  %v2590_v33 = vld [vmem:[%s12488_s5 + $0x24e0] sm:$0xff] }
 0x4a7   :  { %4655 = vmatpush1.msra.mxu1 %v1901_v36  ;;  %4726 = vmatpush1.msra.mxu0 %v2317_v37  ;;  %v2162_v34 = vld [vmem:[%s12488_s5 + $0x1780] sm:$0xff]  ;;  %v2161_v36 = vld [vmem:[%s12488_s5 + $0x1778] sm:$0xff] }
 0x4a8   :  { %4656 = vmatprep.subr.mxu1 %v1889_v38  ;;  %4727 = vmatprep.subr.mxu0 %v2305_v43  ;;  %v2578_v35 = vld [vmem:[%s12488_s5 + $0x2480] sm:$0xff]  ;;  %v2577_v37 = vld [vmem:[%s12488_s5 + $0x2478] sm:$0xff] }
 0x4a9   :  { %4657 = vmatpush1.msra.mxu1 %v1888_v44  ;;  %4728 = vmatpush1.msra.mxu0 %v2304_v45  ;;  %v2149_v38 = vld [vmem:[%s12488_s5 + $0x1718] sm:$0xff]  ;;  %v2148_v44 = vld [vmem:[%s12488_s5 + $0x1710] sm:$0xff] }
 0x4aa   :  { %4658 = vmatprep.subr.mxu1 %v1876_v46  ;;  %4729 = vmatprep.subr.mxu0 %v2292_v47  ;;  %v2565_v43 = vld [vmem:[%s12488_s5 + $0x2418] sm:$0xff]  ;;  %v2564_v45 = vld [vmem:[%s12488_s5 + $0x2410] sm:$0xff] }
 0x4ab   :  { %4659 = vmatpush1.msra.mxu1 %v1875_v48  ;;  %4730 = vmatpush1.msra.mxu0 %v2291_v39  ;;  %v2136_v46 = vld [vmem:[%s12488_s5 + $0x16b0] sm:$0xff]  ;;  %v4061_v48 = vpop.f32.mrf.mxu0  ;;  %v2135_v39 = vld [vmem:[%s12488_s5 + $0x16a8] sm:$0xff] }
 0x4ac   :  { %4660 = vmatprep.subr.mxu1 %v1863_v30  ;;  %4731 = vmatprep.subr.mxu0 %v2279_v51  ;;  %v2552_v47 = vld [vmem:[%s12488_s5 + $0x23b0] sm:$0xff]  ;;  %v2551_v30 = vld [vmem:[%s12488_s5 + $0x23a8] sm:$0xff]  ;;  %v5433_v51 = vld [vmem:[%s12489_s6] sm:$0xff] }
 0x4ad   :  { %4661 = vmatpush1.msra.mxu1 %v1862_v52  ;;  %4732 = vmatpush1.msra.mxu0 %v2278_v54  ;;  %v3105_v52 = vrot.slane %v5433_v51, %v820_v53  ;;  %v2123_v54 = vld [vmem:[%s12488_s5 + $0x1648] sm:$0xff]  ;;  %v2538_v53 = vld [vmem:[%s12488_s5 + $0x2340] sm:$0xff] }
 0x4ae   :  { %4662 = vmatprep.subr.mxu1 %v1850_v55  ;;  %4733 = vmatprep.subr.mxu0 %v2266_v57  ;;  %v2539_v55 = vld [vmem:[%s12488_s5 + $0x2348] sm:$0xff]  ;;  %v4132_v57 = vpop.f32.mrf.mxu1 }
 0x4af   :  { %4663 = vmatpush1.msra.mxu1 %v1849_v58  ;;  %4734 = vmatpush1.msra.mxu0 %v2265_v59  ;;  %v2122_v58 = vld [vmem:[%s12488_s5 + $0x1640] sm:$0xff]  ;;  %v3109_v59 = vrot.slane %v5433_v51, %v824_v56  ;;  %v4062_v56 = vadd.f32 %v4061_v48, %v3105_v52  ;;  %v1825_v48 = vld [vmem:[%s12488_s5 + $0xcf8] sm:$0xff]  ;;  %v2851_v52 = vld [vmem:[%s12488_s5 + $0x2d08] sm:$0xff] }
 0x4b0   :  { %4664 = vmatprep.subr.mxu1 %v1837_v31  ;;  %4735 = vmatprep.subr.mxu0 %v2253_v60  ;;  %v2110_v31 = vld [vmem:[%s12488_s5 + $0x15e0] sm:$0xff]  ;;  %v1617_v51 = vld [vmem:[%s12488_s5 + $0x678] sm:$0xff] }
 0x4b1   :  { %4665 = vmatpush1.msra.mxu1 %v1836_v24  ;;  %4736 = vmatpush1.msra.mxu0 %v2252_v61  ;;  %v2526_v60 = vld [vmem:[%s12488_s5 + $0x22e0] sm:$0xff]  ;;  %v4063_v24 = vpop.f32.mrf.mxu0  ;;  %v2109_v61 = vld [vmem:[%s12488_s5 + $0x15d8] sm:$0xff] }
 0x4b2   :  { %4666 = vmatprep.subr.mxu1 %v2240_v62  ;;  %4737 = vmatprep.subr.mxu0 %v2656_v63  ;;  %v2097_v62 = vld [vmem:[%s12488_s5 + $0x1578] sm:$0xff] }
 0x4b3   :  { %4667 = vmatpush2.msra.mxu1 %v2239_v0  ;;  %4738 = vmatpush2.msra.mxu0 %v2655_v2  ;;  %v2513_v63 = vld [vmem:[%s12488_s5 + $0x2278] sm:$0xff]  ;;  %v4134_v0 = vpop.f32.mrf.mxu1  ;;  %v2096_v2 = vld [vmem:[%s12488_s5 + $0x1570] sm:$0xff] }
 0x4b4   :  { %4668 = vmatprep.subr.mxu1 %v2227_v3  ;;  %4739 = vmatprep.subr.mxu0 %v2643_v16  ;;  %v2512_v3 = vld [vmem:[%s12488_s5 + $0x2270] sm:$0xff]  ;;  %v4064_v16 = vadd.f32 %v4063_v24, %v3109_v59  ;;  %v2837_v59 = vld [vmem:[%s12488_s5 + $0x2c98] sm:$0xff] }
 0x4b5   :  { %4669 = vmatpush2.msra.mxu1 %v2226_v9  ;;  %4740 = vmatpush2.msra.mxu0 %v2642_v5  ;;  %v4133_v9 = vadd.f32 %v4132_v57, %v4062_v56  ;;  %v2084_v5 = vld [vmem:[%s12488_s5 + $0x1510] sm:$0xff]  ;;  %v1773_v56 = vld [vmem:[%s12488_s5 + $0xb58] sm:$0xff] }
 0x4b6   :  { %4670 = vmatprep.subr.mxu1 %v2214_v6  ;;  %4741 = vmatprep.subr.mxu0 %v2630_v7  ;;  %v2500_v6 = vld [vmem:[%s12488_s5 + $0x2210] sm:$0xff]  ;;  %v4203_v7 = vpop.f32.mrf.mxu0 }
 0x4b7   :  { %4671 = vmatpush2.msra.mxu1 %v2213_v8  ;;  %4742 = vmatpush2.msra.mxu0 %v2629_v10  ;;  %v2083_v8 = vld [vmem:[%s12488_s5 + $0x1508] sm:$0xff]  ;;  %v1604_v57 = vld [vmem:[%s12488_s5 + $0x610] sm:$0xff] }
 0x4b8   :  { %4672 = vmatprep.subr.mxu1 %v2201_v12  ;;  %4743 = vmatprep.subr.mxu0 %v2617_v14  ;;  %v2499_v10 = vld [vmem:[%s12488_s5 + $0x2208] sm:$0xff]  ;;  %v4135_v12 = vadd.f32 %v4134_v0, %v4064_v16  ;;  %v2824_v24 = vld [vmem:[%s12488_s5 + $0x2c30] sm:$0xff] }
 0x4b9   :  { %4673 = vmatpush2.msra.mxu1 %v2200_v15  ;;  %4744 = vmatpush2.msra.mxu0 %v2616_v19  ;;  %v2071_v14 = vld [vmem:[%s12488_s5 + $0x14a8] sm:$0xff]  ;;  %v2070_v19 = vld [vmem:[%s12488_s5 + $0x14a0] sm:$0xff]  ;;  %v1552_v16 = vld [vmem:[%s12488_s5 + $0x470] sm:$0xff] }
 0x4ba   :  { %4674 = vmatprep.subr.mxu1 %v2188_v20  ;;  %4745 = vmatprep.subr.mxu0 %v2604_v27  ;;  %v2487_v15 = vld [vmem:[%s12488_s5 + $0x21a8] sm:$0xff]  ;;  %v2486_v20 = vld [vmem:[%s12488_s5 + $0x21a0] sm:$0xff]  ;;  %v4204_v27 = vadd.f32 %v4203_v7, %v4133_v9  ;;  %v2785_v7 = vld [vmem:[%s12488_s5 + $0x2af8] sm:$0xff] }
 0x4bb   :  { %4675 = vmatpush2.msra.mxu1 %v2187_v40  ;;  %4746 = vmatpush2.msra.mxu0 %v2603_v28  ;;  %v2058_v40 = vld [vmem:[%s12488_s5 + $0x1440] sm:$0xff]  ;;  %v2799_v0 = vld [vmem:[%s12488_s5 + $0x2b68] sm:$0xff] }
 0x4bc   :  { %4676 = vmatprep.subr.mxu1 %v2175_v41  ;;  %4747 = vmatprep.subr.mxu0 %v2591_v29  ;;  %v2474_v28 = vld [vmem:[%s12488_s5 + $0x2140] sm:$0xff]  ;;  %v4205_v41 = vpop.f32.mrf.mxu0  ;;  %v2057_v29 = vld [vmem:[%s12488_s5 + $0x1438] sm:$0xff] }
 0x4bd   :  { %4677 = vmatpush2.msra.mxu1 %v2174_v32  ;;  %4748 = vmatpush2.msra.mxu0 %v2590_v33  ;;  %v2473_v32 = vld [vmem:[%s12488_s5 + $0x2138] sm:$0xff]  ;;  %v2786_v9 = vld [vmem:[%s12488_s5 + $0x2b00] sm:$0xff] }
 0x4be   :  { %4678 = vmatprep.subr.mxu1 %v2162_v34  ;;  %4749 = vmatprep.subr.mxu0 %v2578_v35  ;;  %v4206_v34 = vadd.f32 %v4205_v41, %v4135_v12  ;;  %v2045_v35 = vld [vmem:[%s12488_s5 + $0x13d8] sm:$0xff]  ;;  %v2759_v41 = vld [vmem:[%s12488_s5 + $0x2a28] sm:$0xff] }
 0x4bf   :  { %4679 = vmatpush2.msra.mxu1 %v2161_v36  ;;  %4750 = vmatpush2.msra.mxu0 %v2577_v37  ;;  %v2461_v36 = vld [vmem:[%s12488_s5 + $0x20d8] sm:$0xff] }
 0x4c0   :  { %4680 = vmatprep.subr.mxu1 %v2149_v38  ;;  %4751 = vmatprep.subr.mxu0 %v2565_v43  ;;  %v2044_v38 = vld [vmem:[%s12488_s5 + $0x13d0] sm:$0xff]  ;;  %v2773_v12 = vld [vmem:[%s12488_s5 + $0x2a98] sm:$0xff] }
 0x4c1   :  { %4681 = vmatpush2.msra.mxu1 %v2148_v44  ;;  %4752 = vmatpush2.msra.mxu0 %v2564_v45  ;;  %v2460_v43 = vld [vmem:[%s12488_s5 + $0x20d0] sm:$0xff] }
 0x4c2   :  { %4682 = vmatprep.subr.mxu1 %v2136_v46  ;;  %4753 = vmatprep.subr.mxu0 %v2552_v47  ;;  %v2864_v47 = vld [vmem:[%s12488_s5 + $0x2d70] sm:$0xff] }
 0x4c3   :  { %4683 = vmatpush2.msra.mxu1 %v2135_v39  ;;  %4754 = vmatpush2.msra.mxu0 %v2551_v30  ;;  %v2863_v39 = vld [vmem:[%s12488_s5 + $0x2d68] sm:$0xff] }
 0x4c4   :  { %4684 = vmatprep.subr.mxu1 %v2123_v54  ;;  %4755 = vmatprep.subr.mxu0 %v2539_v55  ;;  %v1812_v54 = vld [vmem:[%s12488_s5 + $0xc90] sm:$0xff]  ;;  %v2850_v55 = vld [vmem:[%s12488_s5 + $0x2d00] sm:$0xff] }
 0x4c5   :  { %4685 = vmatpush2.msra.mxu1 %v2122_v58  ;;  %4756 = vmatpush2.msra.mxu0 %v2538_v53  ;;  %v2838_v58 = vld [vmem:[%s12488_s5 + $0x2ca0] sm:$0xff]  ;;  %v1799_v53 = vld [vmem:[%s12488_s5 + $0xc28] sm:$0xff] }
 0x4c6   :  { %4686 = vmatprep.subr.mxu1 %v2110_v31  ;;  %4757 = vmatprep.subr.mxu0 %v2526_v60  ;;  %v1591_v31 = vld [vmem:[%s12488_s5 + $0x5a8] sm:$0xff]  ;;  %v1786_v60 = vld [vmem:[%s12488_s5 + $0xbc0] sm:$0xff] }
 0x4c7   :  { %4687 = vmatpush2.msra.mxu1 %v2109_v61  ;;  %4758 = vmatpush2.msra.mxu0 %v2525_v21  ;;  %v1578_v61 = vld [vmem:[%s12488_s5 + $0x540] sm:$0xff]  ;;  %v2812_v21 = vld [vmem:[%s12488_s5 + $0x2bd0] sm:$0xff] }
 0x4c8   :  { %4688 = vmatprep.subr.mxu1 %v2097_v62  ;;  %4759 = vmatprep.subr.mxu0 %v2513_v63  ;;  %v2811_v62 = vld [vmem:[%s12488_s5 + $0x2bc8] sm:$0xff]  ;;  %v1565_v63 = vld [vmem:[%s12488_s5 + $0x4d8] sm:$0xff] }
 0x4c9   :  { %4689 = vmatpush2.msra.mxu1 %v2096_v2  ;;  %4760 = vmatpush2.msra.mxu0 %v2512_v3  ;;  %v1760_v2 = vld [vmem:[%s12488_s5 + $0xaf0] sm:$0xff]  ;;  %v2798_v3 = vld [vmem:[%s12488_s5 + $0x2b60] sm:$0xff] }
 0x4ca   :  { %4690 = vmatprep.subr.mxu1 %v2084_v5  ;;  %4761 = vmatprep.subr.mxu0 %v2500_v6  ;;  %v1747_v5 = vld [vmem:[%s12488_s5 + $0xa88] sm:$0xff] }
 0x4cb   :  { %4691 = vmatpush2.msra.mxu1 %v2083_v8  ;;  %4762 = vmatpush2.msra.mxu0 %v2499_v10  ;;  %v1539_v8 = vld [vmem:[%s12488_s5 + $0x408] sm:$0xff] }
 0x4cc   :  { %4692 = vmatprep.subr.mxu1 %v2071_v14  ;;  %4763 = vmatprep.subr.mxu0 %v2487_v15  ;;  %v4274_v33 = vpop.f32.mrf.mxu1  ;;  %v1734_v14 = vld [vmem:[%s12488_s5 + $0xa20] sm:$0xff] }
 0x4cd   :  { %4693 = vmatpush2.msra.mxu1 %v2070_v19  ;;  %4764 = vmatpush2.msra.mxu0 %v2486_v20  ;;  %v4275_v37 = vadd.f32 %v4274_v33, %v4204_v27  ;;  %v2772_v19 = vld [vmem:[%s12488_s5 + $0x2a90] sm:$0xff]  ;;  %v1526_v20 = vld [vmem:[%s12488_s5 + $0x3a0] sm:$0xff] }
 0x4ce   :  { %4694 = vmatprep.subr.mxu1 %v2058_v40  ;;  %4765 = vmatprep.subr.mxu0 %v2474_v28  ;;  %v4276_v44 = vpop.f32.mrf.mxu1  ;;  %v2760_v40 = vld [vmem:[%s12488_s5 + $0x2a30] sm:$0xff]  ;;  %v1721_v28 = vld [vmem:[%s12488_s5 + $0x9b8] sm:$0xff] }
 0x4cf   :  { %4695 = vmatpush2.msra.mxu1 %v2057_v29  ;;  %4766 = vmatpush2.msra.mxu0 %v2473_v32  ;;  %v5231_v45 = vmul.f32 -1.442695, %v4275_v37  ;;  %v4277_v46 = vadd.f32 %v4276_v44, %v4206_v34  ;;  %v1513_v29 = vld [vmem:[%s12488_s5 + $0x338] sm:$0xff]  ;;  %v2747_v32 = vld [vmem:[%s12488_s5 + $0x29c8] sm:$0xff]  ;;  %v1708_v33 = vld [vmem:[%s12488_s5 + $0x950] sm:$0xff] }
 0x4d0   :  { %4696 = vmatprep.subr.mxu1 %v2045_v35  ;;  %4767 = vmatprep.subr.mxu0 %v2461_v36  ;;  %v2746_v34 = vld [vmem:[%s12488_s5 + $0x29c0] sm:$0xff]  ;;  %v1500_v35 = vld [vmem:[%s12488_s5 + $0x2d0] sm:$0xff]  ;;  %v1695_v37 = vld [vmem:[%s12488_s5 + $0x8e8] sm:$0xff] }
 0x4d1   :  { %4697 = vmatpush2.msra.mxu1 %v2044_v38  ;;  %4768 = vmatpush2.msra.mxu0 %v2460_v43  ;;  %5402 = vpow2.f32 %v5231_v45  ;;  %v5232_v30 = vmul.f32 -1.442695, %v4277_v46  ;;  %v2734_v36 = vld [vmem:[%s12488_s5 + $0x2960] sm:$0xff]  ;;  %v2733_v38 = vld [vmem:[%s12488_s5 + $0x2958] sm:$0xff]  ;;  %v1487_v43 = vld [vmem:[%s12488_s5 + $0x268] sm:$0xff] }
 0x4d2   :  { %4699 = vmatmul.mubr.f32.vlgmr.msra.gmra.mxu1 %v7730_v13  ;;  %4770 = vmatmul.mubr.f32.vlgmr.msra.gmra.mxu0 %v8122_v50  ;;  %v2721_v44 = vld [vmem:[%s12488_s5 + $0x28f8] sm:$0xff]  ;;  %v1682_v45 = vld [vmem:[%s12488_s5 + $0x880] sm:$0xff]  ;;  %v2720_v46 = vld [vmem:[%s12488_s5 + $0x28f0] sm:$0xff] }
 0x4d3   :  { %4776 = vmatprep.subr.mxu1 %v2864_v47  ;;  %5238 = vmatprep.subr.mxu0 %v1825_v48  ;;  %5404 = vpow2.f32 %v5232_v30  ;;  %v1474_v47 = vld [vmem:[%s12488_s5 + $0x200] sm:$0xff]  ;;  %v2708_v48 = vld [vmem:[%s12488_s5 + $0x2890] sm:$0xff]  ;;  %v2707_v30 = vld [vmem:[%s12488_s5 + $0x2888] sm:$0xff] }
 0x4d4   :  { %4777 = vmatpush1.msra.mxu1 %v2863_v39  ;;  %4840 = vmatprep.mubr.f32.mxu1 %v8330_v17  ;;  %v1669_v39 = vld [vmem:[%s12488_s5 + $0x818] sm:$0xff] }
 0x4d5   :  { %5239 = vmatpush3.msra.mxu0 %v1617_v51  ;;  %4911 = vmatprep.mubr.f32.mxu0 %v7333_v49  ;;  %v2825_v49 = vld [vmem:[%s12488_s5 + $0x2c38] sm:$0xff] }
 0x4d6   :  { %4778 = vmatprep.subr.mxu1 %v2851_v52  ;;  %5240 = vmatprep.subr.mxu0 %v1812_v54  ;;  %v1461_v51 = vld [vmem:[%s12488_s5 + $0x198] sm:$0xff]  ;;  %v2695_v52 = vld [vmem:[%s12488_s5 + $0x2828] sm:$0xff]  ;;  %v1656_v54 = vld [vmem:[%s12488_s5 + $0x7b0] sm:$0xff] }
 0x4d7   :  { %4779 = vmatpush1.msra.mxu1 %v2850_v55  ;;  %5241 = vmatpush3.msra.mxu0 %v1604_v57  ;;  %v2694_v55 = vld [vmem:[%s12488_s5 + $0x2820] sm:$0xff]  ;;  %v1448_v57 = vld [vmem:[%s12488_s5 + $0x130] sm:$0xff] }
 0x4d8   :  { %4780 = vmatprep.subr.mxu1 %v2838_v58  ;;  %5242 = vmatprep.subr.mxu0 %v1799_v53  ;;  %v2682_v58 = vld [vmem:[%s12488_s5 + $0x27c0] sm:$0xff]  ;;  %v1643_v53 = vld [vmem:[%s12488_s5 + $0x748] sm:$0xff] }
 0x4d9   :  { %4781 = vmatpush1.msra.mxu1 %v2837_v59  ;;  %5243 = vmatpush3.msra.mxu0 %v1591_v31  ;;  %v2681_v31 = vld [vmem:[%s12488_s5 + $0x27b8] sm:$0xff] }
 0x4da   :  { %4782 = vmatprep.subr.mxu1 %v2825_v49  ;;  %5244 = vmatprep.subr.mxu0 %v1786_v60  ;;  %v1435_v49 = vld [vmem:[%s12488_s5 + $0xc8] sm:$0xff]  ;;  %v2669_v60 = vld [vmem:[%s12488_s5 + $0x2758] sm:$0xff] }
 0x4db   :  { %4783 = vmatpush1.msra.mxu1 %v2824_v24  ;;  %5245 = vmatpush3.msra.mxu0 %v1578_v61  ;;  %v1630_v24 = vld [vmem:[%s12488_s5 + $0x6e0] sm:$0xff] }
 0x4dc   :  { %4784 = vmatprep.subr.mxu1 %v2812_v21  ;;  %5246 = vmatprep.subr.mxu0 %v1773_v56  ;;  %v2668_v21 = vld [vmem:[%s12488_s5 + $0x2750] sm:$0xff]  ;;  %v1422_v56 = vld [vmem:[%s12488_s5 + $0x60] sm:$0xff] }
 0x4dd   :  { %4785 = vmatpush1.msra.mxu1 %v2811_v62  ;;  %5247 = vmatpush3.msra.mxu0 %v1565_v63  ;;  %v3072_v62 = vld [vmem:[%s12488_s5 + $0x33f0] sm:$0xff]  ;;  %v2657_v63 = vld [vmem:[%s12488_s5 + $0x26f8] sm:$0xff] }
 0x4de   :  { %v5403_v6 = vpop.eup %5402  ;;  %4786 = vmatprep.subr.mxu1 %v2799_v0  ;;  %5248 = vmatprep.subr.mxu0 %v1760_v2  ;;  %v3071_v0 = vld [vmem:[%s12488_s5 + $0x33e8] sm:$0xff]  ;;  %v2449_v2 = vld [vmem:[%s12488_s5 + $0x2078] sm:$0xff] }
 0x4df   :  { %v5172_v10 = vadd.f32 1.0, %v5403_v6  ;;  %4787 = vmatpush1.msra.mxu1 %v2798_v3  ;;  %5249 = vmatpush3.msra.mxu0 %v1552_v16  ;;  %v3059_v3 = vld [vmem:[%s12488_s5 + $0x3388] sm:$0xff]  ;;  %v2644_v16 = vld [vmem:[%s12488_s5 + $0x2690] sm:$0xff] }
 0x4e0   :  { %v5405_v15 = vpop.eup %5404  ;;  %4788 = vmatprep.subr.mxu1 %v2786_v9  ;;  %5250 = vmatprep.subr.mxu0 %v1747_v5  ;;  %v3058_v9 = vld [vmem:[%s12488_s5 + $0x3380] sm:$0xff]  ;;  %v2436_v5 = vld [vmem:[%s12488_s5 + $0x2010] sm:$0xff]  ;;  %v2631_v6 = vld [vmem:[%s12488_s5 + $0x2628] sm:$0xff] }
 0x4e1   :  { %5406 = vrcp.f32 %v5172_v10  ;;  %v5173_v27 = vadd.f32 1.0, %v5405_v15  ;;  %4789 = vmatpush1.msra.mxu1 %v2785_v7  ;;  %5251 = vmatpush3.msra.mxu0 %v1539_v8  ;;  %v3045_v7 = vld [vmem:[%s12488_s5 + $0x3318] sm:$0xff]  ;;  %v2423_v8 = vld [vmem:[%s12488_s5 + $0x1fa8] sm:$0xff]  ;;  %v2618_v10 = vld [vmem:[%s12488_s5 + $0x25c0] sm:$0xff] }
 0x4e2   :  { %4790 = vmatprep.subr.mxu1 %v2773_v12  ;;  %5252 = vmatprep.subr.mxu0 %v1734_v14  ;;  %v3032_v12 = vld [vmem:[%s12488_s5 + $0x32b0] sm:$0xff]  ;;  %v2410_v14 = vld [vmem:[%s12488_s5 + $0x1f40] sm:$0xff] }
 0x4e3   :  { %5408 = vrcp.f32 %v5173_v27  ;;  %4791 = vmatpush1.msra.mxu1 %v2772_v19  ;;  %5253 = vmatpush3.msra.mxu0 %v1526_v20  ;;  %v3020_v15 = vld [vmem:[%s12488_s5 + $0x3250] sm:$0xff]  ;;  %v2605_v19 = vld [vmem:[%s12488_s5 + $0x2558] sm:$0xff]  ;;  %v3019_v20 = vld [vmem:[%s12488_s5 + $0x3248] sm:$0xff] }
 0x4e4   :  { %4792 = vmatprep.subr.mxu1 %v2760_v40  ;;  %5254 = vmatprep.subr.mxu0 %v1721_v28  ;;  %v2397_v27 = vld [vmem:[%s12488_s5 + $0x1ed8] sm:$0xff]  ;;  %v3007_v40 = vld [vmem:[%s12488_s5 + $0x31e8] sm:$0xff]  ;;  %v2592_v28 = vld [vmem:[%s12488_s5 + $0x24f0] sm:$0xff] }
 0x4e5   :  { %4793 = vmatpush1.msra.mxu1 %v2759_v41  ;;  %5255 = vmatpush3.msra.mxu0 %v1513_v29  ;;  %v3006_v41 = vld [vmem:[%s12488_s5 + $0x31e0] sm:$0xff]  ;;  %v2384_v29 = vld [vmem:[%s12488_s5 + $0x1e70] sm:$0xff] }
 0x4e6   :  { %4794 = vmatprep.subr.mxu1 %v2747_v32  ;;  %5256 = vmatprep.subr.mxu0 %v1708_v33  ;;  %v2994_v32 = vld [vmem:[%s12488_s5 + $0x3180] sm:$0xff]  ;;  %v2579_v33 = vld [vmem:[%s12488_s5 + $0x2488] sm:$0xff] }
 0x4e7   :  { %4795 = vmatpush1.msra.mxu1 %v2746_v34  ;;  %5257 = vmatpush3.msra.mxu0 %v1500_v35  ;;  %v2993_v34 = vld [vmem:[%s12488_s5 + $0x3178] sm:$0xff]  ;;  %v2371_v35 = vld [vmem:[%s12488_s5 + $0x1e08] sm:$0xff] }
 0x4e8   :  { %4796 = vmatprep.subr.mxu1 %v2734_v36  ;;  %5258 = vmatprep.subr.mxu0 %v1695_v37  ;;  %v2981_v36 = vld [vmem:[%s12488_s5 + $0x3118] sm:$0xff]  ;;  %v2566_v37 = vld [vmem:[%s12488_s5 + $0x2420] sm:$0xff] }
 0x4e9   :  { %4797 = vmatpush1.msra.mxu1 %v2733_v38  ;;  %5259 = vmatpush3.msra.mxu0 %v1487_v43  ;;  %v2980_v38 = vld [vmem:[%s12488_s5 + $0x3110] sm:$0xff]  ;;  %v2358_v43 = vld [vmem:[%s12488_s5 + $0x1da0] sm:$0xff] }
 0x4ea   :  { %4798 = vmatprep.subr.mxu1 %v2721_v44  ;;  %5260 = vmatprep.subr.mxu0 %v1682_v45  ;;  %v2968_v44 = vld [vmem:[%s12488_s5 + $0x30b0] sm:$0xff]  ;;  %v2553_v45 = vld [vmem:[%s12488_s5 + $0x23b8] sm:$0xff] }
 0x4eb   :  { %4799 = vmatpush1.msra.mxu1 %v2720_v46  ;;  %5261 = vmatpush3.msra.mxu0 %v1474_v47  ;;  %v2967_v46 = vld [vmem:[%s12488_s5 + $0x30a8] sm:$0xff]  ;;  %v2345_v47 = vld [vmem:[%s12488_s5 + $0x1d38] sm:$0xff] }
 0x4ec   :  { %4800 = vmatprep.subr.mxu1 %v2708_v48  ;;  %5262 = vmatprep.subr.mxu0 %v1669_v39  ;;  %v2955_v48 = vld [vmem:[%s12488_s5 + $0x3048] sm:$0xff]  ;;  %v2540_v39 = vld [vmem:[%s12488_s5 + $0x2350] sm:$0xff] }
 0x4ed   :  { %4801 = vmatpush1.msra.mxu1 %v2707_v30  ;;  %5263 = vmatpush3.msra.mxu0 %v1461_v51  ;;  %v2954_v30 = vld [vmem:[%s12488_s5 + $0x3040] sm:$0xff]  ;;  %v2332_v51 = vld [vmem:[%s12488_s5 + $0x1cd0] sm:$0xff] }
 0x4ee   :  { %v5407_v59 = vpop.eup %5406  ;;  %4802 = vmatprep.subr.mxu1 %v2695_v52  ;;  %5264 = vmatprep.subr.mxu0 %v1656_v54  ;;  %v2942_v52 = vld [vmem:[%s12488_s5 + $0x2fe0] sm:$0xff]  ;;  %v2527_v54 = vld [vmem:[%s12488_s5 + $0x22e8] sm:$0xff] }
 0x4ef   :  { %5211 = vst [vmem:[%s12490_s7 + $0x30] sm:$0xff] %v5407_v59  ;;  %4803 = vmatpush1.msra.mxu1 %v2694_v55  ;;  %5265 = vmatpush3.msra.mxu0 %v1448_v57  ;;  %v2941_v55 = vld [vmem:[%s12488_s5 + $0x2fd8] sm:$0xff]  ;;  %v2319_v57 = vld [vmem:[%s12488_s5 + $0x1c68] sm:$0xff]  ;;  %v2928_v59 = vld [vmem:[%s12488_s5 + $0x2f70] sm:$0xff] }
 0x4f0   :  { %v5409_v61 = vpop.eup %5408  ;;  %4804 = vmatprep.subr.mxu1 %v2682_v58  ;;  %5266 = vmatprep.subr.mxu0 %v1643_v53  ;;  %v2929_v58 = vld [vmem:[%s12488_s5 + $0x2f78] sm:$0xff]  ;;  %v2514_v53 = vld [vmem:[%s12488_s5 + $0x2280] sm:$0xff] }
 0x4f1   :  { %5212 = vst [vmem:[%s12490_s7 + $0x38] sm:$0xff] %v5409_v61  ;;  %4805 = vmatpush1.msra.mxu1 %v2681_v31  ;;  %5267 = vmatpush3.msra.mxu0 %v1435_v49  ;;  %v2306_v31 = vld [vmem:[%s12488_s5 + $0x1c00] sm:$0xff]  ;;  %v2916_v49 = vld [vmem:[%s12488_s5 + $0x2f10] sm:$0xff]  ;;  %v2293_v61 = vld [vmem:[%s12488_s5 + $0x1b98] sm:$0xff] }
 0x4f2   :  { %4806 = vmatprep.subr.mxu1 %v2669_v60  ;;  %5268 = vmatprep.subr.mxu0 %v1630_v24  ;;  %v2501_v60 = vld [vmem:[%s12488_s5 + $0x2218] sm:$0xff]  ;;  %v2915_v24 = vld [vmem:[%s12488_s5 + $0x2f08] sm:$0xff] }
 0x4f3   :  { %4807 = vmatpush1.msra.mxu1 %v2668_v21  ;;  %5269 = vmatpush3.msra.mxu0 %v1422_v56  ;;  %v2903_v21 = vld [vmem:[%s12488_s5 + $0x2ea8] sm:$0xff]  ;;  %v2488_v56 = vld [vmem:[%s12488_s5 + $0x21b0] sm:$0xff] }
 0x4f4   :  { %4808 = vmatprep.subr.mxu1 %v3072_v62  ;;  %4912 = vmatmul.mubr.f32.vlgmr.msra.gmra.mxu0 %v7707_v1  ;;  %v3046_v1 = vld [vmem:[%s12488_s5 + $0x3320] sm:$0xff] }
 0x4f5   :  { %5308 = vmatprep.subr.mxu0 %v2657_v63  ;;  %4809 = vmatpush2.msra.mxu1 %v3071_v0  ;;  %v2902_v62 = vld [vmem:[%s12488_s5 + $0x2ea0] sm:$0xff]  ;;  %v2280_v63 = vld [vmem:[%s12488_s5 + $0x1b30] sm:$0xff] }
 0x4f6   :  { %5309 = vmatpush3.msra.mxu0 %v2449_v2  ;;  %5051 = vmatprep.mubr.f32.mxu0 %v8120_v42  ;;  %v3033_v42 = vld [vmem:[%s12488_s5 + $0x32b8] sm:$0xff]  ;;  %v2890_v0 = vld [vmem:[%s12488_s5 + $0x2e40] sm:$0xff]  ;;  %v2475_v2 = vld [vmem:[%s12488_s5 + $0x2148] sm:$0xff] }
 0x4f7   :  { %4810 = vmatprep.subr.mxu1 %v3059_v3  ;;  %5310 = vmatprep.subr.mxu0 %v2644_v16  ;;  %v2889_v3 = vld [vmem:[%s12488_s5 + $0x2e38] sm:$0xff]  ;;  %v2267_v16 = vld [vmem:[%s12488_s5 + $0x1ac8] sm:$0xff] }
 0x4f8   :  { %4811 = vmatpush2.msra.mxu1 %v3058_v9  ;;  %5311 = vmatpush3.msra.mxu0 %v2436_v5  ;;  %v2877_v9 = vld [vmem:[%s12488_s5 + $0x2dd8] sm:$0xff]  ;;  %v2462_v5 = vld [vmem:[%s12488_s5 + $0x20e0] sm:$0xff] }
 0x4f9   :  { %4812 = vmatprep.subr.mxu1 %v3046_v1  ;;  %5312 = vmatprep.subr.mxu0 %v2631_v6  ;;  %v2876_v1 = vld [vmem:[%s12488_s5 + $0x2dd0] sm:$0xff]  ;;  %v2254_v6 = vld [vmem:[%s12488_s5 + $0x1a60] sm:$0xff] }
 0x4fa   :  { %4813 = vmatpush2.msra.mxu1 %v3045_v7  ;;  %5313 = vmatpush3.msra.mxu0 %v2423_v8  ;;  %v2241_v7 = vld [vmem:[%s12488_s5 + $0x19f8] sm:$0xff] }
 0x4fb   :  { %4814 = vmatprep.subr.mxu1 %v3033_v42  ;;  %5314 = vmatprep.subr.mxu0 %v2618_v10  ;;  %v2033_v8 = vld [vmem:[%s12488_s5 + $0x1378] sm:$0xff]  ;;  %v2228_v42 = vld [vmem:[%s12488_s5 + $0x1990] sm:$0xff] }
 0x4fc   :  { %4815 = vmatpush2.msra.mxu1 %v3032_v12  ;;  %5315 = vmatpush3.msra.mxu0 %v2410_v14  ;;  %v2020_v10 = vld [vmem:[%s12488_s5 + $0x1310] sm:$0xff]  ;;  %v2215_v12 = vld [vmem:[%s12488_s5 + $0x1928] sm:$0xff] }
 0x4fd   :  { %4816 = vmatprep.subr.mxu1 %v3020_v15  ;;  %5316 = vmatprep.subr.mxu0 %v2605_v19  ;;  %v2007_v14 = vld [vmem:[%s12488_s5 + $0x12a8] sm:$0xff]  ;;  %v2202_v15 = vld [vmem:[%s12488_s5 + $0x18c0] sm:$0xff]  ;;  %v1981_v19 = vld [vmem:[%s12488_s5 + $0x11d8] sm:$0xff] }
 0x4fe   :  { %4817 = vmatpush2.msra.mxu1 %v3019_v20  ;;  %5317 = vmatpush3.msra.mxu0 %v2397_v27  ;;  %v2176_v20 = vld [vmem:[%s12488_s5 + $0x17f0] sm:$0xff] }
 0x4ff   :  { %4818 = vmatprep.subr.mxu1 %v3007_v40  ;;  %5318 = vmatprep.subr.mxu0 %v2592_v28  ;;  %v1968_v27 = vld [vmem:[%s12488_s5 + $0x1170] sm:$0xff]  ;;  %v2163_v40 = vld [vmem:[%s12488_s5 + $0x1788] sm:$0xff] }
 0x500   :  { %4819 = vmatpush2.msra.mxu1 %v3006_v41  ;;  %5319 = vmatpush3.msra.mxu0 %v2384_v29  ;;  %v1955_v28 = vld [vmem:[%s12488_s5 + $0x1108] sm:$0xff]  ;;  %v2150_v41 = vld [vmem:[%s12488_s5 + $0x1720] sm:$0xff] }
 0x501   :  { %4820 = vmatprep.subr.mxu1 %v2994_v32  ;;  %5320 = vmatprep.subr.mxu0 %v2579_v33  ;;  %v1942_v29 = vld [vmem:[%s12488_s5 + $0x10a0] sm:$0xff]  ;;  %v2137_v32 = vld [vmem:[%s12488_s5 + $0x16b8] sm:$0xff] }
 0x502   :  { %4821 = vmatpush2.msra.mxu1 %v2993_v34  ;;  %5321 = vmatpush3.msra.mxu0 %v2371_v35  ;;  %v1929_v33 = vld [vmem:[%s12488_s5 + $0x1038] sm:$0xff]  ;;  %v2124_v34 = vld [vmem:[%s12488_s5 + $0x1650] sm:$0xff] }
 0x503   :  { %4822 = vmatprep.subr.mxu1 %v2981_v36  ;;  %5322 = vmatprep.subr.mxu0 %v2566_v37  ;;  %v1916_v35 = vld [vmem:[%s12488_s5 + $0xfd0] sm:$0xff]  ;;  %v2111_v36 = vld [vmem:[%s12488_s5 + $0x15e8] sm:$0xff] }
 0x504   :  { %4823 = vmatpush2.msra.mxu1 %v2980_v38  ;;  %5323 = vmatpush3.msra.mxu0 %v2358_v43  ;;  %v1903_v37 = vld [vmem:[%s12488_s5 + $0xf68] sm:$0xff]  ;;  %v2098_v38 = vld [vmem:[%s12488_s5 + $0x1580] sm:$0xff] }
 0x505   :  { %4824 = vmatprep.subr.mxu1 %v2968_v44  ;;  %5324 = vmatprep.subr.mxu0 %v2553_v45  ;;  %v1890_v43 = vld [vmem:[%s12488_s5 + $0xf00] sm:$0xff]  ;;  %v2085_v44 = vld [vmem:[%s12488_s5 + $0x1518] sm:$0xff] }
 0x506   :  { %4825 = vmatpush2.msra.mxu1 %v2967_v46  ;;  %5325 = vmatpush3.msra.mxu0 %v2345_v47  ;;  %v1877_v45 = vld [vmem:[%s12488_s5 + $0xe98] sm:$0xff]  ;;  %v2072_v46 = vld [vmem:[%s12488_s5 + $0x14b0] sm:$0xff] }
 0x507   :  { %4826 = vmatprep.subr.mxu1 %v2955_v48  ;;  %5326 = vmatprep.subr.mxu0 %v2540_v39  ;;  %v1864_v47 = vld [vmem:[%s12488_s5 + $0xe30] sm:$0xff]  ;;  %v2059_v48 = vld [vmem:[%s12488_s5 + $0x1448] sm:$0xff] }
 0x508   :  { %4827 = vmatpush2.msra.mxu1 %v2954_v30  ;;  %5327 = vmatpush3.msra.mxu0 %v2332_v51  ;;  %v1851_v39 = vld [vmem:[%s12488_s5 + $0xdc8] sm:$0xff]  ;;  %v2046_v30 = vld [vmem:[%s12488_s5 + $0x13e0] sm:$0xff] }
 0x509   :  { %4828 = vmatprep.subr.mxu1 %v2942_v52  ;;  %5328 = vmatprep.subr.mxu0 %v2527_v54  ;;  %v1838_v51 = vld [vmem:[%s12488_s5 + $0xd60] sm:$0xff]  ;;  %v3073_v52 = vld [vmem:[%s12488_s5 + $0x33f8] sm:$0xff] }
 0x50a   :  { %4829 = vmatpush2.msra.mxu1 %v2941_v55  ;;  %5329 = vmatpush3.msra.mxu0 %v2319_v57  ;;  %v2865_v54 = vld [vmem:[%s12488_s5 + $0x2d78] sm:$0xff]  ;;  %v3060_v55 = vld [vmem:[%s12488_s5 + $0x3390] sm:$0xff] }
 0x50b   :  { %4830 = vmatprep.subr.mxu1 %v2929_v58  ;;  %5330 = vmatprep.subr.mxu0 %v2514_v53  ;;  %v2852_v57 = vld [vmem:[%s12488_s5 + $0x2d10] sm:$0xff]  ;;  %v3047_v58 = vld [vmem:[%s12488_s5 + $0x3328] sm:$0xff] }
 0x50c   :  { %4831 = vmatpush2.msra.mxu1 %v2928_v59  ;;  %5331 = vmatpush3.msra.mxu0 %v2306_v31  ;;  %v2839_v53 = vld [vmem:[%s12488_s5 + $0x2ca8] sm:$0xff]  ;;  %v2826_v59 = vld [vmem:[%s12488_s5 + $0x2c40] sm:$0xff]  ;;  %v2813_v31 = vld [vmem:[%s12488_s5 + $0x2bd8] sm:$0xff] }
 0x50d   :  { %4832 = vmatprep.subr.mxu1 %v2916_v49  ;;  %5332 = vmatprep.subr.mxu0 %v2501_v60  ;;  %v3008_v49 = vld [vmem:[%s12488_s5 + $0x31f0] sm:$0xff] }
 0x50e   :  { %4833 = vmatpush2.msra.mxu1 %v2915_v24  ;;  %5333 = vmatpush3.msra.mxu0 %v2293_v61  ;;  %v2800_v60 = vld [vmem:[%s12488_s5 + $0x2b70] sm:$0xff]  ;;  %v2995_v24 = vld [vmem:[%s12488_s5 + $0x3188] sm:$0xff] }
 0x50f   :  { %4834 = vmatprep.subr.mxu1 %v2903_v21  ;;  %5334 = vmatprep.subr.mxu0 %v2488_v56  ;;  %v2787_v61 = vld [vmem:[%s12488_s5 + $0x2b08] sm:$0xff]  ;;  %v2982_v21 = vld [vmem:[%s12488_s5 + $0x3120] sm:$0xff] }
 0x510   :  { %4835 = vmatpush2.msra.mxu1 %v2902_v62  ;;  %5335 = vmatpush3.msra.mxu0 %v2280_v63  ;;  %v2774_v56 = vld [vmem:[%s12488_s5 + $0x2aa0] sm:$0xff]  ;;  %v12407_v62 = vld [vmem:[%s12489_s6 + $0x8] sm:$0x1f]  ;;  %v2969_v63 = vld [vmem:[%s12488_s5 + $0x30b8] sm:$0xff] }
 0x511   :  { %4836 = vmatprep.subr.mxu1 %v2890_v0  ;;  %5336 = vmatprep.subr.mxu0 %v2475_v2  ;;  %v2761_v0 = vld [vmem:[%s12488_s5 + $0x2a38] sm:$0xff]  ;;  %v4345_v2 = vpop.f32.mrf.mxu0 }
 0x512   :  { %4837 = vmatpush2.msra.mxu1 %v2889_v3  ;;  %5337 = vmatpush3.msra.mxu0 %v2267_v16  ;;  %v2956_v3 = vld [vmem:[%s12488_s5 + $0x3050] sm:$0xff]  ;;  %v3113_v16 = vrot.slane %v12407_v62, %v6116_v23 }
 0x513   :  { %4838 = vmatprep.subr.mxu1 %v2877_v9  ;;  %5338 = vmatprep.subr.mxu0 %v2462_v5  ;;  %v2748_v9 = vld [vmem:[%s12488_s5 + $0x29d0] sm:$0xff]  ;;  %v4416_v5 = vpop.f32.mrf.mxu1  ;;  %v4347_v23 = vpop.f32.mrf.mxu0 }
 0x514   :  { %4839 = vmatpush2.msra.mxu1 %v2876_v1  ;;  %5339 = vmatpush3.msra.mxu0 %v2254_v6  ;;  %v2943_v1 = vld [vmem:[%s12488_s5 + $0x2fe8] sm:$0xff]  ;;  %v3117_v6 = vrot.slane %v12407_v62, %v6122_v25  ;;  %v2917_v25 = vld [vmem:[%s12488_s5 + $0x2f18] sm:$0xff] }
 0x515   :  { %4841 = vmatmul.mubr.f32.vlgmr.msra.gmra.mxu1 %v8332_v18  ;;  %5273 = vmatprep.subr.mxu1 %v2241_v7  ;;  %v2735_v7 = vld [vmem:[%s12488_s5 + $0x2968] sm:$0xff] }
 0x516   :  { %5052 = vmatmul.mubr.f32.vlgmr.msra.gmra.mxu0 %v8122_v50  ;;  %5274 = vmatpush3.msra.mxu1 %v2033_v8  ;;  %v1994_v50 = vld [vmem:[%s12488_s5 + $0x1240] sm:$0xff] }
 0x517   :  { %4981 = vmatprep.mubr.f32.mxu1 %v7725_v11  ;;  %5275 = vmatprep.subr.mxu1 %v2228_v42  ;;  %v2189_v11 = vld [vmem:[%s12488_s5 + $0x1858] sm:$0xff]  ;;  %v2930_v8 = vld [vmem:[%s12488_s5 + $0x2f80] sm:$0xff]  ;;  %v4346_v42 = vadd.f32 %v4345_v2, %v3113_v16 }
 0x518   :  { %5276 = vmatpush3.msra.mxu1 %v2020_v10  ;;  %v2722_v10 = vld [vmem:[%s12488_s5 + $0x2900] sm:$0xff] }
 0x519   :  { %5277 = vmatprep.subr.mxu1 %v2215_v12  ;;  %v4418_v12 = vpop.f32.mrf.mxu1 }
 0x51a   :  { %5278 = vmatpush3.msra.mxu1 %v2007_v14  ;;  %v4348_v14 = vadd.f32 %v4347_v23, %v3117_v6  ;;  %v3129_v23 = vrot.slane %v12407_v62, %v8041_v4 }
 0x51b   :  { %5279 = vmatprep.subr.mxu1 %v2202_v15  ;;  %v4417_v15 = vadd.f32 %v4416_v5, %v4346_v42 }
 0x51c   :  { %5280 = vmatpush3.msra.mxu1 %v1994_v50  ;;  %v2709_v50 = vld [vmem:[%s12488_s5 + $0x2898] sm:$0xff] }
 0x51d   :  { %5281 = vmatprep.subr.mxu1 %v2189_v11  ;;  %v4487_v11 = vpop.f32.mrf.mxu0 }
 0x51e   :  { %5282 = vmatpush3.msra.mxu1 %v1981_v19  ;;  %v2904_v19 = vld [vmem:[%s12488_s5 + $0x2eb0] sm:$0xff] }
 0x51f   :  { %5283 = vmatprep.subr.mxu1 %v2176_v20  ;;  %v4419_v20 = vadd.f32 %v4418_v12, %v4348_v14 }
 0x520   :  { %5284 = vmatpush3.msra.mxu1 %v1968_v27  ;;  %v2696_v27 = vld [vmem:[%s12488_s5 + $0x2830] sm:$0xff] }
 0x521   :  { %5285 = vmatprep.subr.mxu1 %v2163_v40  ;;  %v2891_v40 = vld [vmem:[%s12488_s5 + $0x2e48] sm:$0xff] }
 0x522   :  { %5286 = vmatpush3.msra.mxu1 %v1955_v28  ;;  %v4488_v28 = vadd.f32 %v4487_v11, %v4417_v15 }
 0x523   :  { %5287 = vmatprep.subr.mxu1 %v2150_v41  ;;  %v2683_v41 = vld [vmem:[%s12488_s5 + $0x27c8] sm:$0xff] }
 0x524   :  { %5288 = vmatpush3.msra.mxu1 %v1942_v29  ;;  %v4489_v29 = vpop.f32.mrf.mxu0 }
 0x525   :  { %5289 = vmatprep.subr.mxu1 %v2137_v32  ;;  %v2878_v32 = vld [vmem:[%s12488_s5 + $0x2de0] sm:$0xff] }
 0x526   :  { %5290 = vmatpush3.msra.mxu1 %v1929_v33 }
 0x527   :  { %5291 = vmatprep.subr.mxu1 %v2124_v34  ;;  %v4490_v34 = vadd.f32 %v4489_v29, %v4419_v20 }
 0x528   :  { %5292 = vmatpush3.msra.mxu1 %v1916_v35  ;;  %v2670_v35 = vld [vmem:[%s12488_s5 + $0x2760] sm:$0xff] }
 0x529   :  { %5293 = vmatprep.subr.mxu1 %v2111_v36 }
 0x52a   :  { %5294 = vmatpush3.msra.mxu1 %v1903_v37 }
 0x52b   :  { %5295 = vmatprep.subr.mxu1 %v2098_v38 }
 0x52c   :  { %5296 = vmatpush3.msra.mxu1 %v1890_v43 }
 0x52d   :  { %5297 = vmatprep.subr.mxu1 %v2085_v44 }
 0x52e   :  { %5298 = vmatpush3.msra.mxu1 %v1877_v45 }
 0x52f   :  { %5299 = vmatprep.subr.mxu1 %v2072_v46 }
 0x530   :  { %5300 = vmatpush3.msra.mxu1 %v1864_v47 }
 0x531   :  { %5301 = vmatprep.subr.mxu1 %v2059_v48 }
 0x532   :  { %5302 = vmatpush3.msra.mxu1 %v1851_v39 }
 0x533   :  { %5303 = vmatprep.subr.mxu1 %v2046_v30 }
 0x534   :  { %5304 = vmatpush3.msra.mxu1 %v1838_v51 }
 0x535   :  { %4982 = vmatmul.mubr.f32.vlgmr.msra.gmra.mxu1 %v7730_v13  ;;  %5343 = vmatprep.subr.mxu1 %v3073_v52  ;;  %v3034_v13 = vld [vmem:[%s12488_s5 + $0x32c0] sm:$0xff] }
 0x536   :  { %5344 = vmatpush3.msra.mxu1 %v2865_v54  ;;  %5121 = vmatprep.mubr.f32.mxu1 %v8330_v17  ;;  %v3021_v17 = vld [vmem:[%s12488_s5 + $0x3258] sm:$0xff]  ;;  %v3125_v54 = vrot.slane %v12407_v62, %v6125_v26 }
 0x537   :  { %5345 = vmatprep.subr.mxu1 %v3060_v55 }
 0x538   :  { %5346 = vmatpush3.msra.mxu1 %v2852_v57 }
 0x539   :  { %5347 = vmatprep.subr.mxu1 %v3047_v58 }
 0x53a   :  { %5348 = vmatpush3.msra.mxu1 %v2839_v53 }
 0x53b   :  { %5349 = vmatprep.subr.mxu1 %v3034_v13 }
 0x53c   :  { %5350 = vmatpush3.msra.mxu1 %v2826_v59 }
 0x53d   :  { %5351 = vmatprep.subr.mxu1 %v3021_v17 }
 0x53e   :  { %5352 = vmatpush3.msra.mxu1 %v2813_v31 }
 0x53f   :  { %5353 = vmatprep.subr.mxu1 %v3008_v49 }
 0x540   :  { %5354 = vmatpush3.msra.mxu1 %v2800_v60 }
 0x541   :  { %5355 = vmatprep.subr.mxu1 %v2995_v24 }
 0x542   :  { %5356 = vmatpush3.msra.mxu1 %v2787_v61 }
 0x543   :  { %5357 = vmatprep.subr.mxu1 %v2982_v21 }
 0x544   :  { %5358 = vmatpush3.msra.mxu1 %v2774_v56 }
 0x545   :  { %5359 = vmatprep.subr.mxu1 %v2969_v63 }
 0x546   :  { %5360 = vmatpush3.msra.mxu1 %v2761_v0 }
 0x547   :  { %5361 = vmatprep.subr.mxu1 %v2956_v3 }
 0x548   :  { %5362 = vmatpush3.msra.mxu1 %v2748_v9 }
 0x549   :  { %5363 = vmatprep.subr.mxu1 %v2943_v1 }
 0x54a   :  { %5364 = vmatpush3.msra.mxu1 %v2735_v7 }
 0x54b   :  { %5365 = vmatprep.subr.mxu1 %v2930_v8 }
 0x54c   :  { %5366 = vmatpush3.msra.mxu1 %v2722_v10 }
 0x54d   :  { %5367 = vmatprep.subr.mxu1 %v2917_v25 }
 0x54e   :  { %5368 = vmatpush3.msra.mxu1 %v2709_v50 }
 0x54f   :  { %5369 = vmatprep.subr.mxu1 %v2904_v19 }
 0x550   :  { %5370 = vmatpush3.msra.mxu1 %v2696_v27  ;;  %v4558_v33 = vpop.f32.mrf.mxu1  ;;  %v4629_v51 = vpop.f32.mrf.mxu0 }
 0x551   :  { %5371 = vmatprep.subr.mxu1 %v2891_v40  ;;  %v4559_v36 = vadd.f32 %v4558_v33, %v4488_v28 }
 0x552   :  { %5372 = vmatpush3.msra.mxu1 %v2683_v41  ;;  %v4560_v37 = vpop.f32.mrf.mxu1  ;;  %v4631_v55 = vpop.f32.mrf.mxu0 }
 0x553   :  { %5373 = vmatprep.subr.mxu1 %v2878_v32  ;;  %v5233_v38 = vmul.f32 -1.442695, %v4559_v36  ;;  %v4561_v43 = vadd.f32 %v4560_v37, %v4490_v34  ;;  %v4632_v53 = vadd.f32 %v4631_v55, %v3125_v54 }
 0x554   :  { %5374 = vmatpush3.msra.mxu1 %v2670_v35 }
 0x555   :  { %5410 = vpow2.f32 %v5233_v38  ;;  %5122 = vmatmul.mubr.f32.vlgmr.msra.gmra.mxu1 %v8332_v18  ;;  %v5234_v44 = vmul.f32 -1.442695, %v4561_v43  ;;  %v3121_v18 = vrot.slane %v12407_v62, %v6113_v22 }
 0x557   :  { %5412 = vpow2.f32 %v5234_v44  ;;  %v4630_v57 = vadd.f32 %v4629_v51, %v3121_v18 }
 0x562   :  { %v5411_v45 = vpop.eup %5410 }
 0x563   :  { %v5174_v46 = vadd.f32 1.0, %v5411_v45 }
 0x564   :  { %v5413_v47 = vpop.eup %5412 }
 0x565   :  { %5414 = vrcp.f32 %v5174_v46  ;;  %v5175_v48 = vadd.f32 1.0, %v5413_v47 }
 0x567   :  { %5416 = vrcp.f32 %v5175_v48 }
 0x572   :  { %v5415_v39 = vpop.eup %5414 }
 0x573   :  { %5213 = vst [vmem:[%s12490_s7 + $0x40] sm:$0xff] %v5415_v39 }
 0x574   :  { %v5417_v30 = vpop.eup %5416 }
 0x575   :  { %5214 = vst [vmem:[%s12490_s7 + $0x48] sm:$0xff] %v5417_v30 }
 0x592   :  { %v4700_v52 = vpop.f32.mrf.mxu1  ;;  %v4771_v59 = vpop.f32.mrf.mxu0 }
 0x593   :  { %v4701_v13 = vadd.f32 %v4700_v52, %v4630_v57 }
 0x594   :  { %v4702_v58 = vpop.f32.mrf.mxu1  ;;  %v4773_v49 = vpop.f32.mrf.mxu0 }
 0x595   :  { %v4703_v17 = vadd.f32 %v4702_v58, %v4632_v53  ;;  %v4772_v31 = vadd.f32 %v4771_v59, %v4701_v13 }
 0x597   :  { %v4774_v24 = vadd.f32 %v4773_v49, %v4703_v17 }
 0x5b4   :  { %v5270_v5 = vpop.f32.mrf.mxu0 }
 0x5b6   :  { %v5271_v6 = vpop.f32.mrf.mxu0 }
 0x5b7   :  { %v5272_v8 = vadd.f32 %v5271_v6, %v5270_v5 }
 0x5b9   :  { %v4914_v12 = vadd.f32 %v5272_v8, %v3129_v23 }
 0x5d5   :  { %v4842_v60 = vpop.f32.mrf.mxu1 }
 0x5d6   :  { %v4843_v61 = vadd.f32 %v4842_v60, %v4772_v31  ;;  %v5340_v42 = vpop.f32.mrf.mxu0 }
 0x5d7   :  { %v4844_v21 = vpop.f32.mrf.mxu1 }
 0x5d8   :  { %v5235_v56 = vmul.f32 -1.442695, %v4843_v61  ;;  %v4845_v63 = vadd.f32 %v4844_v21, %v4774_v24  ;;  %v5341_v25 = vpop.f32.mrf.mxu0 }
 0x5d9   :  { %v5342_v50 = vadd.f32 %v5341_v25, %v5340_v42 }
 0x5da   :  { %5418 = vpow2.f32 %v5235_v56  ;;  %v5236_v22 = vmul.f32 -1.442695, %v4845_v63 }
 0x5dc   :  { %5420 = vpow2.f32 %v5236_v22 }
 0x5e7   :  { %v5419_v0 = vpop.eup %5418 }
 0x5e8   :  { %v5176_v26 = vadd.f32 1.0, %v5419_v0 }
 0x5e9   :  { %v5421_v2 = vpop.eup %5420 }
 0x5ea   :  { %5422 = vrcp.f32 %v5176_v26  ;;  %v5177_v3 = vadd.f32 1.0, %v5421_v2 }
 0x5ec   :  { %5424 = vrcp.f32 %v5177_v3 }
 0x5f5   :  { %v5305_v1 = vpop.f32.mrf.mxu1 }
 0x5f7   :  { %v5423_v16 = vpop.eup %5422  ;;  %v5306_v7 = vpop.f32.mrf.mxu1 }
 0x5f8   :  { %5215 = vst [vmem:[%s12490_s7 + $0x50] sm:$0xff] %v5423_v16  ;;  %v5307_v10 = vadd.f32 %v5306_v7, %v5305_v1 }
 0x5f9   :  { %v5425_v9 = vpop.eup %5424 }
 0x5fa   :  { %5216 = vst [vmem:[%s12490_s7 + $0x58] sm:$0xff] %v5425_v9  ;;  %v4984_v14 = vadd.f32 %v5307_v10, %v4914_v12 }
 0x5fc   :  { %v5054_v19 = vadd.f32 %v5342_v50, %v4984_v14 }
 0x615   :  { %v5375_v15 = vpop.f32.mrf.mxu1 }
 0x617   :  { %v5376_v11 = vpop.f32.mrf.mxu1 }
 0x618   :  { %v5377_v20 = vadd.f32 %v5376_v11, %v5375_v15 }
 0x61a   :  { %v5124_v27 = vadd.f32 %v5377_v20, %v5054_v19 }
 0x61c   :  { %v5237_v40 = vmul.f32 -1.442695, %v5124_v27 }
 0x61e   :  { %5426 = vpow2.f32 %v5237_v40 }
 0x62b   :  { %v5427_v28 = vpop.eup %5426 }
 0x62c   :  { %v5178_v41 = vadd.f32 1.0, %v5427_v28 }
 0x62e   :  { %5428 = vrcp.f32 %v5178_v41 }
 0x63b   :  { %v5429_v29 = vpop.eup %5428 }
 0x63c   :  { %5218 = vst.msk [vmem:[%s12490_s7 + $0x60] sm:$0xff] %vm5217_vm1, %v5429_v29 }

</bundles_post_ra>
